<compile_context>
chip_gen: v5e
topology: v5e:2x2
jax: 0.10.0
libtpu: 0.0.40
codegen_flags: <defaults>
</compile_context>

<pallas_src>
import functools

import jax
import jax.numpy as jnp
from jax.experimental import pallas as pl
from jax.experimental.pallas import tpu as pltpu


# ------------------------------------------------------------------- kernel --

def _cnn_kernel(p1_ref, w1_ref, b1_ref, w2_ref, b2_ref, w3_ref, b3_ref,
                w4_ref, b4_ref, w5_ref, b5_ref, out_ref,
                p2_ref, patch2_ref, p3_ref):
    f32 = jnp.float32
    bf16 = jnp.bfloat16
    B = out_ref.shape[0]                       # samples handled by this step

    # ---- conv1 (im2col matmul) + ReLU ------------------------------------
    # p1 rows per sample are ordered (x%2, y%2, y//2, x//2) with x//2 padded
    # to 16, i.e. 4 quarters of 192 rows each.
    a1 = jnp.dot(p1_ref[...], w1_ref[...], preferred_element_type=f32)
    a1 = jnp.maximum(a1 + b1_ref[...], 0.0)                      # (B*768, 16)

    # ---- maxpool1 2x2: one max over the 4 (x%2, y%2) quarters ------------
    a1r = a1.reshape(B, 4, 192, 16)
    pooled = jnp.maximum(jnp.maximum(a1r[:, 0], a1r[:, 1]),
                         jnp.maximum(a1r[:, 2], a1r[:, 3]))      # (B, 192, 16)
    # rows = yh*16 + xh  (yh in 0..11, xh in 0..11 valid, 12..15 padding)
    p2_ref[...] = pooled.reshape(B, 12, 16, 16)

    # ---- conv2 5x5, 16->32: stage ONE (B*64, 400) patch matrix -----------
    for i in range(5):
        for j in range(5):
            piece = p2_ref[:, pl.ds(i, 8), pl.ds(j, 8), :]       # (B, 8, 8, 16)
            patch2_ref[:, pl.ds(16 * (i * 5 + j), 16)] = (
                piece.reshape(B * 64, 16).astype(bf16))

    # single im2col matmul + bias + ReLU; rows = b*64 + u*8 + v  (8x8 map)
    a2 = jnp.dot(patch2_ref[...], w2_ref[...], preferred_element_type=f32)
    a2 = jnp.maximum(a2 + b2_ref[...], 0.0)                      # (B*64, 32)

    # ---- maxpool2 2x2 fused with conv3 lane-packing ----------------------
    # y-pair reduction: one whole-block max over the u%2 axis.
    a2r = a2.reshape(B, 4, 2, 8, 32)                  # (b, u//2, u%2, v, c)
    m = jnp.maximum(a2r[:, :, 0], a2r[:, :, 1])                  # (B, 4, 8, 32)
    # x-pair reduction + pack the 4x4x32 pooled map into lanes of (B, 512).
    for w in range(4):
        for vh in range(4):
            blk = jnp.maximum(m[:, w, 2 * vh, :], m[:, w, 2 * vh + 1, :])
            p3_ref[:, pl.ds(32 * (w * 4 + vh), 32)] = blk.astype(bf16)

    # ---- conv3 4x4, 32->100 -> 1x1: ONE (B,512)@(512,100) matmul ---------
    feat = jnp.dot(p3_ref[...], w3_ref[...],
                   preferred_element_type=f32) + b3_ref[...]     # (B, 100)

    # ---- classifier: ReLU -> Linear(100,100) -> ReLU -> Linear(100,10) ---
    h = jnp.maximum(feat, 0.0).astype(bf16)
    h = jnp.maximum(jnp.dot(h, w4_ref[...], preferred_element_type=f32)
                    + b4_ref[...], 0.0)
    logits = (jnp.dot(h.astype(bf16), w5_ref[...], preferred_element_type=f32)
              + b5_ref[...])                                     # (B, 128)
    out_ref[...] = logits                      # lanes 10..127 are zero padding


# ------------------------------------------------------------------ wrapper --

@functools.partial(jax.jit, static_argnames=("block_batch",))
def cnn_forward(params, x, block_batch=16):
    N = x.shape[0]
    assert x.shape[1:] == (1, 28, 28)
    bf16 = jnp.bfloat16

    # Samples per grid step; pad the batch so it divides evenly.
    B = block_batch if N >= block_batch else N
    G = -(-N // B)
    Npad = G * B
    if Npad != N:
        x = jnp.pad(x, ((0, Npad - N), (0, 0), (0, 0), (0, 0)))
    xs = x[:, 0]                                                 # (Npad, 28, 28)

    # conv1 im2col (tiny, one fused XLA gather): patch column k = i*5 + j.
    cols = [xs[:, i:i + 24, j:j + 24] for i in range(5) for j in range(5)]
    patches = jnp.stack(cols, axis=-1)                           # (n, y, x, 25)
    # Reorder rows to (x%2, y%2, y//2, x//2) and pad x//2 from 12 -> 16 so the
    # in-kernel pools / reshapes are whole-block and tile aligned.
    patches = patches.reshape(Npad, 12, 2, 12, 2, 25)            # (n,yh,yl,xh,xl,k)
    patches = patches.transpose(0, 4, 2, 1, 3, 5)                # (n,xl,yl,yh,xh,k)
    patches = jnp.pad(patches, ((0, 0), (0, 0), (0, 0), (0, 0), (0, 4), (0, 0)))
    p1 = patches.reshape(Npad * 768, 25)
    p1 = jnp.pad(p1, ((0, 0), (0, 7))).astype(bf16)              # K: 25 -> 32

    # Weight re-layouts (free, fused by XLA); matmul operands in bf16.
    w1m = jnp.pad(params["w1"].reshape(16, 25).T,
                  ((0, 7), (0, 0))).astype(bf16)                 # (32, 16)
    w2p = params["w2"].transpose(2, 3, 1, 0).reshape(400, 32).astype(bf16)
    w3p = params["w3"].transpose(2, 3, 1, 0).reshape(512, 100).astype(bf16)
    w4t = params["w4"].T.astype(bf16)                            # (100, 100)
    w5p = jnp.pad(params["w5"].T, ((0, 0), (0, 118))).astype(bf16)  # (100, 128)
    b1 = params["b1"].reshape(1, 16)
    b2 = params["b2"].reshape(1, 32)
    b3 = params["b3"].reshape(1, 100)
    b4 = params["b4"].reshape(1, 100)
    b5 = jnp.pad(params["b5"].reshape(1, 10), ((0, 0), (0, 118)))   # (1, 128)

    out = pl.pallas_call(
        _cnn_kernel,
        out_shape=jax.ShapeDtypeStruct((Npad, 128), jnp.float32),
        grid=(G,),
        in_specs=[
            pl.BlockSpec((B * 768, 32), lambda g: (g, 0)),   # conv1 patches
            pl.BlockSpec((32, 16), lambda g: (0, 0)),        # conv1 weight
            pl.BlockSpec((1, 16), lambda g: (0, 0)),         # conv1 bias
            pl.BlockSpec((400, 32), lambda g: (0, 0)),       # conv2 weight (im2col)
            pl.BlockSpec((1, 32), lambda g: (0, 0)),         # conv2 bias
            pl.BlockSpec((512, 100), lambda g: (0, 0)),      # conv3 weight (im2col)
            pl.BlockSpec((1, 100), lambda g: (0, 0)),        # conv3 bias
            pl.BlockSpec((100, 100), lambda g: (0, 0)),      # fc1 weight
            pl.BlockSpec((1, 100), lambda g: (0, 0)),        # fc1 bias
            pl.BlockSpec((100, 128), lambda g: (0, 0)),      # fc2 weight (padded)
            pl.BlockSpec((1, 128), lambda g: (0, 0)),        # fc2 bias (padded)
        ],
        out_specs=pl.BlockSpec((B, 128), lambda g: (g, 0)),
        scratch_shapes=[
            pltpu.VMEM((B, 12, 16, 16), jnp.float32),    # pool1 out (12x12, x-pad 16)
            pltpu.VMEM((B * 64, 400), jnp.bfloat16),     # conv2 im2col patches
            pltpu.VMEM((B, 512), jnp.bfloat16),          # pool2 out, lane-packed
        ],
        compiler_params=pltpu.CompilerParams(
            dimension_semantics=("parallel",),
            vmem_limit_bytes=32 * 1024 * 1024),
    )(p1, w1m, b1, w2p, b2, w3p, b3, w4t, b4, w5p, b5)
    return out[:N, :10]


# --------------------------------------------------------------- parameters --

def _uniform(key, shape, bound):
    return jax.random.uniform(key, shape, jnp.float32, -bound, bound)


def init_params(key):
    """Deterministic init mimicking PyTorch's default U(-1/sqrt(fan_in), +)."""
    ks = jax.random.split(key, 10)
    p = {}
    fan = 1 * 5 * 5
    p["w1"] = _uniform(ks[0], (16, 1, 5, 5), fan ** -0.5)
    p["b1"] = _uniform(ks[1], (16,), fan ** -0.5)
    fan = 16 * 5 * 5
    p["w2"] = _uniform(ks[2], (32, 16, 5, 5), fan ** -0.5)
    p["b2"] = _uniform(ks[3], (32,), fan ** -0.5)
    fan = 32 * 4 * 4
    p["w3"] = _uniform(ks[4], (100, 32, 4, 4), fan ** -0.5)
    p["b3"] = _uniform(ks[5], (100,), fan ** -0.5)
    fan = 100
    p["w4"] = _uniform(ks[6], (100, 100), fan ** -0.5)
    p["b4"] = _uniform(ks[7], (100,), fan ** -0.5)
    fan = 100
    p["w5"] = _uniform(ks[8], (10, 100), fan ** -0.5)
    p["b5"] = _uniform(ks[9], (10,), fan ** -0.5)
    return p


if __name__ == "__main__":
    key = jax.random.PRNGKey(0)
    pkey, xkey = jax.random.split(key)
    params = init_params(pkey)
    # 28x28 input so the flattened feature vector is 100-dim (Linear(100, ...)).
    x = jax.random.normal(xkey, (2, 1, 28, 28), dtype=jnp.float32)
    out = cnn_forward(params, x)
    out = jax.block_until_ready(out)
    assert out.shape == (2, 10) and out.dtype == jnp.float32
    print("KERNEL_OK")
</pallas_src>

<mosaic_0001>
module attributes {stable_mosaic.version = 11 : i64} {
  func.func @_cnn_kernel(%arg0: i32, %arg1: memref<1536x32xbf16, #tpu.memory_space<vmem>>, %arg2: memref<32x16xbf16, #tpu.memory_space<vmem>>, %arg3: memref<1x16xf32, #tpu.memory_space<vmem>>, %arg4: memref<400x32xbf16, #tpu.memory_space<vmem>>, %arg5: memref<1x32xf32, #tpu.memory_space<vmem>>, %arg6: memref<512x100xbf16, #tpu.memory_space<vmem>>, %arg7: memref<1x100xf32, #tpu.memory_space<vmem>>, %arg8: memref<100x100xbf16, #tpu.memory_space<vmem>>, %arg9: memref<1x100xf32, #tpu.memory_space<vmem>>, %arg10: memref<100x128xbf16, #tpu.memory_space<vmem>>, %arg11: memref<1x128xf32, #tpu.memory_space<vmem>>, %arg12: memref<2x128xf32, #tpu.memory_space<vmem>>, %arg13: memref<2x12x16x16xf32, #tpu.memory_space<vmem>>, %arg14: memref<128x400xbf16, #tpu.memory_space<vmem>>, %arg15: memref<2x512xbf16, #tpu.memory_space<vmem>>) attributes {dimension_semantics = [#tpu.dimension_semantics<parallel>], iteration_bounds = array<i64: 1>, scalar_prefetch = 0 : i64, scratch_operands = 3 : i64, tpu.core_type = #tpu.core_type<tc>, window_params = [{transform_indices = @transform_0, window_bounds = array<i64: 1536, 32>}, {pipeline_mode = #tpu.pipeline_mode<synchronous>, transform_indices = @transform_1, window_bounds = array<i64: 32, 16>}, {pipeline_mode = #tpu.pipeline_mode<synchronous>, transform_indices = @transform_2, window_bounds = array<i64: 1, 16>}, {pipeline_mode = #tpu.pipeline_mode<synchronous>, transform_indices = @transform_3, window_bounds = array<i64: 400, 32>}, {pipeline_mode = #tpu.pipeline_mode<synchronous>, transform_indices = @transform_4, window_bounds = array<i64: 1, 32>}, {pipeline_mode = #tpu.pipeline_mode<synchronous>, transform_indices = @transform_5, window_bounds = array<i64: 512, 100>}, {pipeline_mode = #tpu.pipeline_mode<synchronous>, transform_indices = @transform_6, window_bounds = array<i64: 1, 100>}, {pipeline_mode = #tpu.pipeline_mode<synchronous>, transform_indices = @transform_7, window_bounds = array<i64: 100, 100>}, {pipeline_mode = #tpu.pipeline_mode<synchronous>, transform_indices = @transform_8, window_bounds = array<i64: 1, 100>}, {pipeline_mode = #tpu.pipeline_mode<synchronous>, transform_indices = @transform_9, window_bounds = array<i64: 100, 128>}, {pipeline_mode = #tpu.pipeline_mode<synchronous>, transform_indices = @transform_10, window_bounds = array<i64: 1, 128>}, {transform_indices = @transform_11, window_bounds = array<i64: 2, 128>}]} {
    %c0 = arith.constant 0 : index
    %c0_0 = arith.constant 0 : index
    %0 = vector.load %arg1[%c0, %c0_0] : memref<1536x32xbf16, #tpu.memory_space<vmem>>, vector<1536x32xbf16>
    %c0_1 = arith.constant 0 : index
    %c0_2 = arith.constant 0 : index
    %1 = vector.load %arg2[%c0_1, %c0_2] : memref<32x16xbf16, #tpu.memory_space<vmem>>, vector<32x16xbf16>
    %cst = arith.constant dense<0.000000e+00> : vector<1536x16xf32>
    %2 = tpu.matmul %0, %1, %cst {dimension_numbers = #tpu.dot_dimension_numbers<[1], [0], [0], [1], [0, 0, 1, 1], [], []>} : vector<1536x32xbf16>, vector<32x16xbf16>, vector<1536x16xf32> -> vector<1536x16xf32>
    %c0_3 = arith.constant 0 : index
    %c0_4 = arith.constant 0 : index
    %3 = vector.load %arg3[%c0_3, %c0_4] : memref<1x16xf32, #tpu.memory_space<vmem>>, vector<1x16xf32>
    %4 = vector.broadcast %3 : vector<1x16xf32> to vector<1536x16xf32>
    %5 = arith.addf %2, %4 : vector<1536x16xf32>
    %cst_5 = arith.constant 0.000000e+00 : f32
    %6 = vector.broadcast %cst_5 : f32 to vector<1536x16xf32>
    %7 = arith.maximumf %5, %6 : vector<1536x16xf32>
    %8 = vector.shape_cast %7 : vector<1536x16xf32> to vector<2x4x192x16xf32>
    %9 = vector.extract_strided_slice %8 {offsets = [0, 0, 0, 0], sizes = [2, 1, 192, 16], strides = [1, 1, 1, 1]} : vector<2x4x192x16xf32> to vector<2x1x192x16xf32>
    %10 = vector.shape_cast %9 : vector<2x1x192x16xf32> to vector<2x192x16xf32>
    %11 = vector.extract_strided_slice %8 {offsets = [0, 1, 0, 0], sizes = [2, 1, 192, 16], strides = [1, 1, 1, 1]} : vector<2x4x192x16xf32> to vector<2x1x192x16xf32>
    %12 = vector.shape_cast %11 : vector<2x1x192x16xf32> to vector<2x192x16xf32>
    %13 = arith.maximumf %10, %12 : vector<2x192x16xf32>
    %14 = vector.extract_strided_slice %8 {offsets = [0, 2, 0, 0], sizes = [2, 1, 192, 16], strides = [1, 1, 1, 1]} : vector<2x4x192x16xf32> to vector<2x1x192x16xf32>
    %15 = vector.shape_cast %14 : vector<2x1x192x16xf32> to vector<2x192x16xf32>
    %16 = vector.extract_strided_slice %8 {offsets = [0, 3, 0, 0], sizes = [2, 1, 192, 16], strides = [1, 1, 1, 1]} : vector<2x4x192x16xf32> to vector<2x1x192x16xf32>
    %17 = vector.shape_cast %16 : vector<2x1x192x16xf32> to vector<2x192x16xf32>
    %18 = arith.maximumf %15, %17 : vector<2x192x16xf32>
    %19 = arith.maximumf %13, %18 : vector<2x192x16xf32>
    %20 = vector.shape_cast %19 : vector<2x192x16xf32> to vector<2x12x16x16xf32>
    %c0_6 = arith.constant 0 : index
    %c0_7 = arith.constant 0 : index
    %c0_8 = arith.constant 0 : index
    %c0_9 = arith.constant 0 : index
    %21 = vector.load %arg13[%c0_6, %c0_7, %c0_8, %c0_9] : memref<2x12x16x16xf32, #tpu.memory_space<vmem>>, vector<2x12x16x16xf32>
    tpu.vector_store %arg13[%c0_6, %c0_7, %c0_8, %c0_9], %20 {strides = array<i32>} : memref<2x12x16x16xf32, #tpu.memory_space<vmem>>, vector<2x12x16x16xf32>,
    %c0_10 = arith.constant 0 : index
    %c0_11 = arith.constant 0 : index
    %c0_12 = arith.constant 0 : index
    %c0_13 = arith.constant 0 : index
    %22 = vector.load %arg13[%c0_10, %c0_11, %c0_12, %c0_13] : memref<2x12x16x16xf32, #tpu.memory_space<vmem>>, vector<2x8x8x16xf32>
    %23 = vector.shape_cast %22 : vector<2x8x8x16xf32> to vector<128x16xf32>
    %24 = arith.truncf %23 : vector<128x16xf32> to vector<128x16xbf16>
    %c0_14 = arith.constant 0 : index
    %c0_15 = arith.constant 0 : index
    %25 = vector.load %arg14[%c0_14, %c0_15] : memref<128x400xbf16, #tpu.memory_space<vmem>>, vector<128x16xbf16>
    tpu.vector_store %arg14[%c0_14, %c0_15], %24 {strides = array<i32>} : memref<128x400xbf16, #tpu.memory_space<vmem>>, vector<128x16xbf16>,
    %c0_16 = arith.constant 0 : index
    %c0_17 = arith.constant 0 : index
    %c1 = arith.constant 1 : index
    %c0_18 = arith.constant 0 : index
    %26 = vector.load %arg13[%c0_16, %c0_17, %c1, %c0_18] : memref<2x12x16x16xf32, #tpu.memory_space<vmem>>, vector<2x8x8x16xf32>
    %27 = vector.shape_cast %26 : vector<2x8x8x16xf32> to vector<128x16xf32>
    %28 = arith.truncf %27 : vector<128x16xf32> to vector<128x16xbf16>
    %c0_19 = arith.constant 0 : index
    %c16 = arith.constant 16 : index
    %29 = vector.load %arg14[%c0_19, %c16] : memref<128x400xbf16, #tpu.memory_space<vmem>>, vector<128x16xbf16>
    tpu.vector_store %arg14[%c0_19, %c16], %28 {strides = array<i32>} : memref<128x400xbf16, #tpu.memory_space<vmem>>, vector<128x16xbf16>,
    %c0_20 = arith.constant 0 : index
    %c0_21 = arith.constant 0 : index
    %c2 = arith.constant 2 : index
    %c0_22 = arith.constant 0 : index
    %30 = vector.load %arg13[%c0_20, %c0_21, %c2, %c0_22] : memref<2x12x16x16xf32, #tpu.memory_space<vmem>>, vector<2x8x8x16xf32>
    %31 = vector.shape_cast %30 : vector<2x8x8x16xf32> to vector<128x16xf32>
    %32 = arith.truncf %31 : vector<128x16xf32> to vector<128x16xbf16>
    %c0_23 = arith.constant 0 : index
    %c32 = arith.constant 32 : index
    %33 = vector.load %arg14[%c0_23, %c32] : memref<128x400xbf16, #tpu.memory_space<vmem>>, vector<128x16xbf16>
    tpu.vector_store %arg14[%c0_23, %c32], %32 {strides = array<i32>} : memref<128x400xbf16, #tpu.memory_space<vmem>>, vector<128x16xbf16>,
    %c0_24 = arith.constant 0 : index
    %c0_25 = arith.constant 0 : index
    %c3 = arith.constant 3 : index
    %c0_26 = arith.constant 0 : index
    %34 = vector.load %arg13[%c0_24, %c0_25, %c3, %c0_26] : memref<2x12x16x16xf32, #tpu.memory_space<vmem>>, vector<2x8x8x16xf32>
    %35 = vector.shape_cast %34 : vector<2x8x8x16xf32> to vector<128x16xf32>
    %36 = arith.truncf %35 : vector<128x16xf32> to vector<128x16xbf16>
    %c0_27 = arith.constant 0 : index
    %c48 = arith.constant 48 : index
    %37 = vector.load %arg14[%c0_27, %c48] : memref<128x400xbf16, #tpu.memory_space<vmem>>, vector<128x16xbf16>
    tpu.vector_store %arg14[%c0_27, %c48], %36 {strides = array<i32>} : memref<128x400xbf16, #tpu.memory_space<vmem>>, vector<128x16xbf16>,
    %c0_28 = arith.constant 0 : index
    %c0_29 = arith.constant 0 : index
    %c4 = arith.constant 4 : index
    %c0_30 = arith.constant 0 : index
    %38 = vector.load %arg13[%c0_28, %c0_29, %c4, %c0_30] : memref<2x12x16x16xf32, #tpu.memory_space<vmem>>, vector<2x8x8x16xf32>
    %39 = vector.shape_cast %38 : vector<2x8x8x16xf32> to vector<128x16xf32>
    %40 = arith.truncf %39 : vector<128x16xf32> to vector<128x16xbf16>
    %c0_31 = arith.constant 0 : index
    %c64 = arith.constant 64 : index
    %41 = vector.load %arg14[%c0_31, %c64] : memref<128x400xbf16, #tpu.memory_space<vmem>>, vector<128x16xbf16>
    tpu.vector_store %arg14[%c0_31, %c64], %40 {strides = array<i32>} : memref<128x400xbf16, #tpu.memory_space<vmem>>, vector<128x16xbf16>,
    %c0_32 = arith.constant 0 : index
    %c1_33 = arith.constant 1 : index
    %c0_34 = arith.constant 0 : index
    %c0_35 = arith.constant 0 : index
    %42 = vector.load %arg13[%c0_32, %c1_33, %c0_34, %c0_35] : memref<2x12x16x16xf32, #tpu.memory_space<vmem>>, vector<2x8x8x16xf32>
    %43 = vector.shape_cast %42 : vector<2x8x8x16xf32> to vector<128x16xf32>
    %44 = arith.truncf %43 : vector<128x16xf32> to vector<128x16xbf16>
    %c0_36 = arith.constant 0 : index
    %c80 = arith.constant 80 : index
    %45 = vector.load %arg14[%c0_36, %c80] : memref<128x400xbf16, #tpu.memory_space<vmem>>, vector<128x16xbf16>
    tpu.vector_store %arg14[%c0_36, %c80], %44 {strides = array<i32>} : memref<128x400xbf16, #tpu.memory_space<vmem>>, vector<128x16xbf16>,
    %c0_37 = arith.constant 0 : index
    %c1_38 = arith.constant 1 : index
    %c1_39 = arith.constant 1 : index
    %c0_40 = arith.constant 0 : index
    %46 = vector.load %arg13[%c0_37, %c1_38, %c1_39, %c0_40] : memref<2x12x16x16xf32, #tpu.memory_space<vmem>>, vector<2x8x8x16xf32>
    %47 = vector.shape_cast %46 : vector<2x8x8x16xf32> to vector<128x16xf32>
    %48 = arith.truncf %47 : vector<128x16xf32> to vector<128x16xbf16>
    %c0_41 = arith.constant 0 : index
    %c96 = arith.constant 96 : index
    %49 = vector.load %arg14[%c0_41, %c96] : memref<128x400xbf16, #tpu.memory_space<vmem>>, vector<128x16xbf16>
    tpu.vector_store %arg14[%c0_41, %c96], %48 {strides = array<i32>} : memref<128x400xbf16, #tpu.memory_space<vmem>>, vector<128x16xbf16>,
    %c0_42 = arith.constant 0 : index
    %c1_43 = arith.constant 1 : index
    %c2_44 = arith.constant 2 : index
    %c0_45 = arith.constant 0 : index
    %50 = vector.load %arg13[%c0_42, %c1_43, %c2_44, %c0_45] : memref<2x12x16x16xf32, #tpu.memory_space<vmem>>, vector<2x8x8x16xf32>
    %51 = vector.shape_cast %50 : vector<2x8x8x16xf32> to vector<128x16xf32>
    %52 = arith.truncf %51 : vector<128x16xf32> to vector<128x16xbf16>
    %c0_46 = arith.constant 0 : index
    %c112 = arith.constant 112 : index
    %53 = vector.load %arg14[%c0_46, %c112] : memref<128x400xbf16, #tpu.memory_space<vmem>>, vector<128x16xbf16>
    tpu.vector_store %arg14[%c0_46, %c112], %52 {strides = array<i32>} : memref<128x400xbf16, #tpu.memory_space<vmem>>, vector<128x16xbf16>,
    %c0_47 = arith.constant 0 : index
    %c1_48 = arith.constant 1 : index
    %c3_49 = arith.constant 3 : index
    %c0_50 = arith.constant 0 : index
    %54 = vector.load %arg13[%c0_47, %c1_48, %c3_49, %c0_50] : memref<2x12x16x16xf32, #tpu.memory_space<vmem>>, vector<2x8x8x16xf32>
    %55 = vector.shape_cast %54 : vector<2x8x8x16xf32> to vector<128x16xf32>
    %56 = arith.truncf %55 : vector<128x16xf32> to vector<128x16xbf16>
    %c0_51 = arith.constant 0 : index
    %c128 = arith.constant 128 : index
    %57 = vector.load %arg14[%c0_51, %c128] : memref<128x400xbf16, #tpu.memory_space<vmem>>, vector<128x16xbf16>
    tpu.vector_store %arg14[%c0_51, %c128], %56 {strides = array<i32>} : memref<128x400xbf16, #tpu.memory_space<vmem>>, vector<128x16xbf16>,
    %c0_52 = arith.constant 0 : index
    %c1_53 = arith.constant 1 : index
    %c4_54 = arith.constant 4 : index
    %c0_55 = arith.constant 0 : index
    %58 = vector.load %arg13[%c0_52, %c1_53, %c4_54, %c0_55] : memref<2x12x16x16xf32, #tpu.memory_space<vmem>>, vector<2x8x8x16xf32>
    %59 = vector.shape_cast %58 : vector<2x8x8x16xf32> to vector<128x16xf32>
    %60 = arith.truncf %59 : vector<128x16xf32> to vector<128x16xbf16>
    %c0_56 = arith.constant 0 : index
    %c144 = arith.constant 144 : index
    %61 = vector.load %arg14[%c0_56, %c144] : memref<128x400xbf16, #tpu.memory_space<vmem>>, vector<128x16xbf16>
    tpu.vector_store %arg14[%c0_56, %c144], %60 {strides = array<i32>} : memref<128x400xbf16, #tpu.memory_space<vmem>>, vector<128x16xbf16>,
    %c0_57 = arith.constant 0 : index
    %c2_58 = arith.constant 2 : index
    %c0_59 = arith.constant 0 : index
    %c0_60 = arith.constant 0 : index
    %62 = vector.load %arg13[%c0_57, %c2_58, %c0_59, %c0_60] : memref<2x12x16x16xf32, #tpu.memory_space<vmem>>, vector<2x8x8x16xf32>
    %63 = vector.shape_cast %62 : vector<2x8x8x16xf32> to vector<128x16xf32>
    %64 = arith.truncf %63 : vector<128x16xf32> to vector<128x16xbf16>
    %c0_61 = arith.constant 0 : index
    %c160 = arith.constant 160 : index
    %65 = vector.load %arg14[%c0_61, %c160] : memref<128x400xbf16, #tpu.memory_space<vmem>>, vector<128x16xbf16>
    tpu.vector_store %arg14[%c0_61, %c160], %64 {strides = array<i32>} : memref<128x400xbf16, #tpu.memory_space<vmem>>, vector<128x16xbf16>,
    %c0_62 = arith.constant 0 : index
    %c2_63 = arith.constant 2 : index
    %c1_64 = arith.constant 1 : index
    %c0_65 = arith.constant 0 : index
    %66 = vector.load %arg13[%c0_62, %c2_63, %c1_64, %c0_65] : memref<2x12x16x16xf32, #tpu.memory_space<vmem>>, vector<2x8x8x16xf32>
    %67 = vector.shape_cast %66 : vector<2x8x8x16xf32> to vector<128x16xf32>
    %68 = arith.truncf %67 : vector<128x16xf32> to vector<128x16xbf16>
    %c0_66 = arith.constant 0 : index
    %c176 = arith.constant 176 : index
    %69 = vector.load %arg14[%c0_66, %c176] : memref<128x400xbf16, #tpu.memory_space<vmem>>, vector<128x16xbf16>
    tpu.vector_store %arg14[%c0_66, %c176], %68 {strides = array<i32>} : memref<128x400xbf16, #tpu.memory_space<vmem>>, vector<128x16xbf16>,
    %c0_67 = arith.constant 0 : index
    %c2_68 = arith.constant 2 : index
    %c2_69 = arith.constant 2 : index
    %c0_70 = arith.constant 0 : index
    %70 = vector.load %arg13[%c0_67, %c2_68, %c2_69, %c0_70] : memref<2x12x16x16xf32, #tpu.memory_space<vmem>>, vector<2x8x8x16xf32>
    %71 = vector.shape_cast %70 : vector<2x8x8x16xf32> to vector<128x16xf32>
    %72 = arith.truncf %71 : vector<128x16xf32> to vector<128x16xbf16>
    %c0_71 = arith.constant 0 : index
    %c192 = arith.constant 192 : index
    %73 = vector.load %arg14[%c0_71, %c192] : memref<128x400xbf16, #tpu.memory_space<vmem>>, vector<128x16xbf16>
    tpu.vector_store %arg14[%c0_71, %c192], %72 {strides = array<i32>} : memref<128x400xbf16, #tpu.memory_space<vmem>>, vector<128x16xbf16>,
    %c0_72 = arith.constant 0 : index
    %c2_73 = arith.constant 2 : index
    %c3_74 = arith.constant 3 : index
    %c0_75 = arith.constant 0 : index
    %74 = vector.load %arg13[%c0_72, %c2_73, %c3_74, %c0_75] : memref<2x12x16x16xf32, #tpu.memory_space<vmem>>, vector<2x8x8x16xf32>
    %75 = vector.shape_cast %74 : vector<2x8x8x16xf32> to vector<128x16xf32>
    %76 = arith.truncf %75 : vector<128x16xf32> to vector<128x16xbf16>
    %c0_76 = arith.constant 0 : index
    %c208 = arith.constant 208 : index
    %77 = vector.load %arg14[%c0_76, %c208] : memref<128x400xbf16, #tpu.memory_space<vmem>>, vector<128x16xbf16>
    tpu.vector_store %arg14[%c0_76, %c208], %76 {strides = array<i32>} : memref<128x400xbf16, #tpu.memory_space<vmem>>, vector<128x16xbf16>,
    %c0_77 = arith.constant 0 : index
    %c2_78 = arith.constant 2 : index
    %c4_79 = arith.constant 4 : index
    %c0_80 = arith.constant 0 : index
    %78 = vector.load %arg13[%c0_77, %c2_78, %c4_79, %c0_80] : memref<2x12x16x16xf32, #tpu.memory_space<vmem>>, vector<2x8x8x16xf32>
    %79 = vector.shape_cast %78 : vector<2x8x8x16xf32> to vector<128x16xf32>
    %80 = arith.truncf %79 : vector<128x16xf32> to vector<128x16xbf16>
    %c0_81 = arith.constant 0 : index
    %c224 = arith.constant 224 : index
    %81 = vector.load %arg14[%c0_81, %c224] : memref<128x400xbf16, #tpu.memory_space<vmem>>, vector<128x16xbf16>
    tpu.vector_store %arg14[%c0_81, %c224], %80 {strides = array<i32>} : memref<128x400xbf16, #tpu.memory_space<vmem>>, vector<128x16xbf16>,
    %c0_82 = arith.constant 0 : index
    %c3_83 = arith.constant 3 : index
    %c0_84 = arith.constant 0 : index
    %c0_85 = arith.constant 0 : index
    %82 = vector.load %arg13[%c0_82, %c3_83, %c0_84, %c0_85] : memref<2x12x16x16xf32, #tpu.memory_space<vmem>>, vector<2x8x8x16xf32>
    %83 = vector.shape_cast %82 : vector<2x8x8x16xf32> to vector<128x16xf32>
    %84 = arith.truncf %83 : vector<128x16xf32> to vector<128x16xbf16>
    %c0_86 = arith.constant 0 : index
    %c240 = arith.constant 240 : index
    %85 = vector.load %arg14[%c0_86, %c240] : memref<128x400xbf16, #tpu.memory_space<vmem>>, vector<128x16xbf16>
    tpu.vector_store %arg14[%c0_86, %c240], %84 {strides = array<i32>} : memref<128x400xbf16, #tpu.memory_space<vmem>>, vector<128x16xbf16>,
    %c0_87 = arith.constant 0 : index
    %c3_88 = arith.constant 3 : index
    %c1_89 = arith.constant 1 : index
    %c0_90 = arith.constant 0 : index
    %86 = vector.load %arg13[%c0_87, %c3_88, %c1_89, %c0_90] : memref<2x12x16x16xf32, #tpu.memory_space<vmem>>, vector<2x8x8x16xf32>
    %87 = vector.shape_cast %86 : vector<2x8x8x16xf32> to vector<128x16xf32>
    %88 = arith.truncf %87 : vector<128x16xf32> to vector<128x16xbf16>
    %c0_91 = arith.constant 0 : index
    %c256 = arith.constant 256 : index
    %89 = vector.load %arg14[%c0_91, %c256] : memref<128x400xbf16, #tpu.memory_space<vmem>>, vector<128x16xbf16>
    tpu.vector_store %arg14[%c0_91, %c256], %88 {strides = array<i32>} : memref<128x400xbf16, #tpu.memory_space<vmem>>, vector<128x16xbf16>,
    %c0_92 = arith.constant 0 : index
    %c3_93 = arith.constant 3 : index
    %c2_94 = arith.constant 2 : index
    %c0_95 = arith.constant 0 : index
    %90 = vector.load %arg13[%c0_92, %c3_93, %c2_94, %c0_95] : memref<2x12x16x16xf32, #tpu.memory_space<vmem>>, vector<2x8x8x16xf32>
    %91 = vector.shape_cast %90 : vector<2x8x8x16xf32> to vector<128x16xf32>
    %92 = arith.truncf %91 : vector<128x16xf32> to vector<128x16xbf16>
    %c0_96 = arith.constant 0 : index
    %c272 = arith.constant 272 : index
    %93 = vector.load %arg14[%c0_96, %c272] : memref<128x400xbf16, #tpu.memory_space<vmem>>, vector<128x16xbf16>
    tpu.vector_store %arg14[%c0_96, %c272], %92 {strides = array<i32>} : memref<128x400xbf16, #tpu.memory_space<vmem>>, vector<128x16xbf16>,
    %c0_97 = arith.constant 0 : index
    %c3_98 = arith.constant 3 : index
    %c3_99 = arith.constant 3 : index
    %c0_100 = arith.constant 0 : index
    %94 = vector.load %arg13[%c0_97, %c3_98, %c3_99, %c0_100] : memref<2x12x16x16xf32, #tpu.memory_space<vmem>>, vector<2x8x8x16xf32>
    %95 = vector.shape_cast %94 : vector<2x8x8x16xf32> to vector<128x16xf32>
    %96 = arith.truncf %95 : vector<128x16xf32> to vector<128x16xbf16>
    %c0_101 = arith.constant 0 : index
    %c288 = arith.constant 288 : index
    %97 = vector.load %arg14[%c0_101, %c288] : memref<128x400xbf16, #tpu.memory_space<vmem>>, vector<128x16xbf16>
    tpu.vector_store %arg14[%c0_101, %c288], %96 {strides = array<i32>} : memref<128x400xbf16, #tpu.memory_space<vmem>>, vector<128x16xbf16>,
    %c0_102 = arith.constant 0 : index
    %c3_103 = arith.constant 3 : index
    %c4_104 = arith.constant 4 : index
    %c0_105 = arith.constant 0 : index
    %98 = vector.load %arg13[%c0_102, %c3_103, %c4_104, %c0_105] : memref<2x12x16x16xf32, #tpu.memory_space<vmem>>, vector<2x8x8x16xf32>
    %99 = vector.shape_cast %98 : vector<2x8x8x16xf32> to vector<128x16xf32>
    %100 = arith.truncf %99 : vector<128x16xf32> to vector<128x16xbf16>
    %c0_106 = arith.constant 0 : index
    %c304 = arith.constant 304 : index
    %101 = vector.load %arg14[%c0_106, %c304] : memref<128x400xbf16, #tpu.memory_space<vmem>>, vector<128x16xbf16>
    tpu.vector_store %arg14[%c0_106, %c304], %100 {strides = array<i32>} : memref<128x400xbf16, #tpu.memory_space<vmem>>, vector<128x16xbf16>,
    %c0_107 = arith.constant 0 : index
    %c4_108 = arith.constant 4 : index
    %c0_109 = arith.constant 0 : index
    %c0_110 = arith.constant 0 : index
    %102 = vector.load %arg13[%c0_107, %c4_108, %c0_109, %c0_110] : memref<2x12x16x16xf32, #tpu.memory_space<vmem>>, vector<2x8x8x16xf32>
    %103 = vector.shape_cast %102 : vector<2x8x8x16xf32> to vector<128x16xf32>
    %104 = arith.truncf %103 : vector<128x16xf32> to vector<128x16xbf16>
    %c0_111 = arith.constant 0 : index
    %c320 = arith.constant 320 : index
    %105 = vector.load %arg14[%c0_111, %c320] : memref<128x400xbf16, #tpu.memory_space<vmem>>, vector<128x16xbf16>
    tpu.vector_store %arg14[%c0_111, %c320], %104 {strides = array<i32>} : memref<128x400xbf16, #tpu.memory_space<vmem>>, vector<128x16xbf16>,
    %c0_112 = arith.constant 0 : index
    %c4_113 = arith.constant 4 : index
    %c1_114 = arith.constant 1 : index
    %c0_115 = arith.constant 0 : index
    %106 = vector.load %arg13[%c0_112, %c4_113, %c1_114, %c0_115] : memref<2x12x16x16xf32, #tpu.memory_space<vmem>>, vector<2x8x8x16xf32>
    %107 = vector.shape_cast %106 : vector<2x8x8x16xf32> to vector<128x16xf32>
    %108 = arith.truncf %107 : vector<128x16xf32> to vector<128x16xbf16>
    %c0_116 = arith.constant 0 : index
    %c336 = arith.constant 336 : index
    %109 = vector.load %arg14[%c0_116, %c336] : memref<128x400xbf16, #tpu.memory_space<vmem>>, vector<128x16xbf16>
    tpu.vector_store %arg14[%c0_116, %c336], %108 {strides = array<i32>} : memref<128x400xbf16, #tpu.memory_space<vmem>>, vector<128x16xbf16>,
    %c0_117 = arith.constant 0 : index
    %c4_118 = arith.constant 4 : index
    %c2_119 = arith.constant 2 : index
    %c0_120 = arith.constant 0 : index
    %110 = vector.load %arg13[%c0_117, %c4_118, %c2_119, %c0_120] : memref<2x12x16x16xf32, #tpu.memory_space<vmem>>, vector<2x8x8x16xf32>
    %111 = vector.shape_cast %110 : vector<2x8x8x16xf32> to vector<128x16xf32>
    %112 = arith.truncf %111 : vector<128x16xf32> to vector<128x16xbf16>
    %c0_121 = arith.constant 0 : index
    %c352 = arith.constant 352 : index
    %113 = vector.load %arg14[%c0_121, %c352] : memref<128x400xbf16, #tpu.memory_space<vmem>>, vector<128x16xbf16>
    tpu.vector_store %arg14[%c0_121, %c352], %112 {strides = array<i32>} : memref<128x400xbf16, #tpu.memory_space<vmem>>, vector<128x16xbf16>,
    %c0_122 = arith.constant 0 : index
    %c4_123 = arith.constant 4 : index
    %c3_124 = arith.constant 3 : index
    %c0_125 = arith.constant 0 : index
    %114 = vector.load %arg13[%c0_122, %c4_123, %c3_124, %c0_125] : memref<2x12x16x16xf32, #tpu.memory_space<vmem>>, vector<2x8x8x16xf32>
    %115 = vector.shape_cast %114 : vector<2x8x8x16xf32> to vector<128x16xf32>
    %116 = arith.truncf %115 : vector<128x16xf32> to vector<128x16xbf16>
    %c0_126 = arith.constant 0 : index
    %c368 = arith.constant 368 : index
    %117 = vector.load %arg14[%c0_126, %c368] : memref<128x400xbf16, #tpu.memory_space<vmem>>, vector<128x16xbf16>
    tpu.vector_store %arg14[%c0_126, %c368], %116 {strides = array<i32>} : memref<128x400xbf16, #tpu.memory_space<vmem>>, vector<128x16xbf16>,
    %c0_127 = arith.constant 0 : index
    %c4_128 = arith.constant 4 : index
    %c4_129 = arith.constant 4 : index
    %c0_130 = arith.constant 0 : index
    %118 = vector.load %arg13[%c0_127, %c4_128, %c4_129, %c0_130] : memref<2x12x16x16xf32, #tpu.memory_space<vmem>>, vector<2x8x8x16xf32>
    %119 = vector.shape_cast %118 : vector<2x8x8x16xf32> to vector<128x16xf32>
    %120 = arith.truncf %119 : vector<128x16xf32> to vector<128x16xbf16>
    %c0_131 = arith.constant 0 : index
    %c384 = arith.constant 384 : index
    %121 = vector.load %arg14[%c0_131, %c384] : memref<128x400xbf16, #tpu.memory_space<vmem>>, vector<128x16xbf16>
    tpu.vector_store %arg14[%c0_131, %c384], %120 {strides = array<i32>} : memref<128x400xbf16, #tpu.memory_space<vmem>>, vector<128x16xbf16>,
    %c0_132 = arith.constant 0 : index
    %c0_133 = arith.constant 0 : index
    %122 = vector.load %arg14[%c0_132, %c0_133] : memref<128x400xbf16, #tpu.memory_space<vmem>>, vector<128x400xbf16>
    %c0_134 = arith.constant 0 : index
    %c0_135 = arith.constant 0 : index
    %123 = vector.load %arg4[%c0_134, %c0_135] : memref<400x32xbf16, #tpu.memory_space<vmem>>, vector<400x32xbf16>
    %cst_136 = arith.constant dense<0.000000e+00> : vector<128x32xf32>
    %124 = tpu.matmul %122, %123, %cst_136 {dimension_numbers = #tpu.dot_dimension_numbers<[1], [0], [0], [1], [0, 0, 1, 1], [], []>} : vector<128x400xbf16>, vector<400x32xbf16>, vector<128x32xf32> -> vector<128x32xf32>
    %c0_137 = arith.constant 0 : index
    %c0_138 = arith.constant 0 : index
    %125 = vector.load %arg5[%c0_137, %c0_138] : memref<1x32xf32, #tpu.memory_space<vmem>>, vector<1x32xf32>
    %126 = vector.broadcast %125 : vector<1x32xf32> to vector<128x32xf32>
    %127 = arith.addf %124, %126 : vector<128x32xf32>
    %cst_139 = arith.constant 0.000000e+00 : f32
    %128 = vector.broadcast %cst_139 : f32 to vector<128x32xf32>
    %129 = arith.maximumf %127, %128 : vector<128x32xf32>
    %130 = vector.shape_cast %129 : vector<128x32xf32> to vector<2x4x2x8x32xf32>
    %131 = vector.extract_strided_slice %130 {offsets = [0, 0, 0, 0, 0], sizes = [2, 4, 1, 8, 32], strides = [1, 1, 1, 1, 1]} : vector<2x4x2x8x32xf32> to vector<2x4x1x8x32xf32>
    %132 = vector.shape_cast %131 : vector<2x4x1x8x32xf32> to vector<2x4x8x32xf32>
    %133 = vector.extract_strided_slice %130 {offsets = [0, 0, 1, 0, 0], sizes = [2, 4, 1, 8, 32], strides = [1, 1, 1, 1, 1]} : vector<2x4x2x8x32xf32> to vector<2x4x1x8x32xf32>
    %134 = vector.shape_cast %133 : vector<2x4x1x8x32xf32> to vector<2x4x8x32xf32>
    %135 = arith.maximumf %132, %134 : vector<2x4x8x32xf32>
    %136 = vector.extract_strided_slice %135 {offsets = [0, 0, 0, 0], sizes = [2, 1, 1, 32], strides = [1, 1, 1, 1]} : vector<2x4x8x32xf32> to vector<2x1x1x32xf32>
    %137 = vector.shape_cast %136 : vector<2x1x1x32xf32> to vector<2x32xf32>
    %138 = vector.extract_strided_slice %135 {offsets = [0, 0, 1, 0], sizes = [2, 1, 1, 32], strides = [1, 1, 1, 1]} : vector<2x4x8x32xf32> to vector<2x1x1x32xf32>
    %139 = vector.shape_cast %138 : vector<2x1x1x32xf32> to vector<2x32xf32>
    %140 = arith.maximumf %137, %139 : vector<2x32xf32>
    %141 = arith.truncf %140 : vector<2x32xf32> to vector<2x32xbf16>
    %c0_140 = arith.constant 0 : index
    %c0_141 = arith.constant 0 : index
    %142 = vector.load %arg15[%c0_140, %c0_141] : memref<2x512xbf16, #tpu.memory_space<vmem>>, vector<2x32xbf16>
    tpu.vector_store %arg15[%c0_140, %c0_141], %141 {strides = array<i32>} : memref<2x512xbf16, #tpu.memory_space<vmem>>, vector<2x32xbf16>,
    %143 = vector.extract_strided_slice %135 {offsets = [0, 0, 2, 0], sizes = [2, 1, 1, 32], strides = [1, 1, 1, 1]} : vector<2x4x8x32xf32> to vector<2x1x1x32xf32>
    %144 = vector.shape_cast %143 : vector<2x1x1x32xf32> to vector<2x32xf32>
    %145 = vector.extract_strided_slice %135 {offsets = [0, 0, 3, 0], sizes = [2, 1, 1, 32], strides = [1, 1, 1, 1]} : vector<2x4x8x32xf32> to vector<2x1x1x32xf32>
    %146 = vector.shape_cast %145 : vector<2x1x1x32xf32> to vector<2x32xf32>
    %147 = arith.maximumf %144, %146 : vector<2x32xf32>
    %148 = arith.truncf %147 : vector<2x32xf32> to vector<2x32xbf16>
    %c0_142 = arith.constant 0 : index
    %c32_143 = arith.constant 32 : index
    %149 = vector.load %arg15[%c0_142, %c32_143] : memref<2x512xbf16, #tpu.memory_space<vmem>>, vector<2x32xbf16>
    tpu.vector_store %arg15[%c0_142, %c32_143], %148 {strides = array<i32>} : memref<2x512xbf16, #tpu.memory_space<vmem>>, vector<2x32xbf16>,
    %150 = vector.extract_strided_slice %135 {offsets = [0, 0, 4, 0], sizes = [2, 1, 1, 32], strides = [1, 1, 1, 1]} : vector<2x4x8x32xf32> to vector<2x1x1x32xf32>
    %151 = vector.shape_cast %150 : vector<2x1x1x32xf32> to vector<2x32xf32>
    %152 = vector.extract_strided_slice %135 {offsets = [0, 0, 5, 0], sizes = [2, 1, 1, 32], strides = [1, 1, 1, 1]} : vector<2x4x8x32xf32> to vector<2x1x1x32xf32>
    %153 = vector.shape_cast %152 : vector<2x1x1x32xf32> to vector<2x32xf32>
    %154 = arith.maximumf %151, %153 : vector<2x32xf32>
    %155 = arith.truncf %154 : vector<2x32xf32> to vector<2x32xbf16>
    %c0_144 = arith.constant 0 : index
    %c64_145 = arith.constant 64 : index
    %156 = vector.load %arg15[%c0_144, %c64_145] : memref<2x512xbf16, #tpu.memory_space<vmem>>, vector<2x32xbf16>
    tpu.vector_store %arg15[%c0_144, %c64_145], %155 {strides = array<i32>} : memref<2x512xbf16, #tpu.memory_space<vmem>>, vector<2x32xbf16>,
    %157 = vector.extract_strided_slice %135 {offsets = [0, 0, 6, 0], sizes = [2, 1, 1, 32], strides = [1, 1, 1, 1]} : vector<2x4x8x32xf32> to vector<2x1x1x32xf32>
    %158 = vector.shape_cast %157 : vector<2x1x1x32xf32> to vector<2x32xf32>
    %159 = vector.extract_strided_slice %135 {offsets = [0, 0, 7, 0], sizes = [2, 1, 1, 32], strides = [1, 1, 1, 1]} : vector<2x4x8x32xf32> to vector<2x1x1x32xf32>
    %160 = vector.shape_cast %159 : vector<2x1x1x32xf32> to vector<2x32xf32>
    %161 = arith.maximumf %158, %160 : vector<2x32xf32>
    %162 = arith.truncf %161 : vector<2x32xf32> to vector<2x32xbf16>
    %c0_146 = arith.constant 0 : index
    %c96_147 = arith.constant 96 : index
    %163 = vector.load %arg15[%c0_146, %c96_147] : memref<2x512xbf16, #tpu.memory_space<vmem>>, vector<2x32xbf16>
    tpu.vector_store %arg15[%c0_146, %c96_147], %162 {strides = array<i32>} : memref<2x512xbf16, #tpu.memory_space<vmem>>, vector<2x32xbf16>,
    %164 = vector.extract_strided_slice %135 {offsets = [0, 1, 0, 0], sizes = [2, 1, 1, 32], strides = [1, 1, 1, 1]} : vector<2x4x8x32xf32> to vector<2x1x1x32xf32>
    %165 = vector.shape_cast %164 : vector<2x1x1x32xf32> to vector<2x32xf32>
    %166 = vector.extract_strided_slice %135 {offsets = [0, 1, 1, 0], sizes = [2, 1, 1, 32], strides = [1, 1, 1, 1]} : vector<2x4x8x32xf32> to vector<2x1x1x32xf32>
    %167 = vector.shape_cast %166 : vector<2x1x1x32xf32> to vector<2x32xf32>
    %168 = arith.maximumf %165, %167 : vector<2x32xf32>
    %169 = arith.truncf %168 : vector<2x32xf32> to vector<2x32xbf16>
    %c0_148 = arith.constant 0 : index
    %c128_149 = arith.constant 128 : index
    %170 = vector.load %arg15[%c0_148, %c128_149] : memref<2x512xbf16, #tpu.memory_space<vmem>>, vector<2x32xbf16>
    tpu.vector_store %arg15[%c0_148, %c128_149], %169 {strides = array<i32>} : memref<2x512xbf16, #tpu.memory_space<vmem>>, vector<2x32xbf16>,
    %171 = vector.extract_strided_slice %135 {offsets = [0, 1, 2, 0], sizes = [2, 1, 1, 32], strides = [1, 1, 1, 1]} : vector<2x4x8x32xf32> to vector<2x1x1x32xf32>
    %172 = vector.shape_cast %171 : vector<2x1x1x32xf32> to vector<2x32xf32>
    %173 = vector.extract_strided_slice %135 {offsets = [0, 1, 3, 0], sizes = [2, 1, 1, 32], strides = [1, 1, 1, 1]} : vector<2x4x8x32xf32> to vector<2x1x1x32xf32>
    %174 = vector.shape_cast %173 : vector<2x1x1x32xf32> to vector<2x32xf32>
    %175 = arith.maximumf %172, %174 : vector<2x32xf32>
    %176 = arith.truncf %175 : vector<2x32xf32> to vector<2x32xbf16>
    %c0_150 = arith.constant 0 : index
    %c160_151 = arith.constant 160 : index
    %177 = vector.load %arg15[%c0_150, %c160_151] : memref<2x512xbf16, #tpu.memory_space<vmem>>, vector<2x32xbf16>
    tpu.vector_store %arg15[%c0_150, %c160_151], %176 {strides = array<i32>} : memref<2x512xbf16, #tpu.memory_space<vmem>>, vector<2x32xbf16>,
    %178 = vector.extract_strided_slice %135 {offsets = [0, 1, 4, 0], sizes = [2, 1, 1, 32], strides = [1, 1, 1, 1]} : vector<2x4x8x32xf32> to vector<2x1x1x32xf32>
    %179 = vector.shape_cast %178 : vector<2x1x1x32xf32> to vector<2x32xf32>
    %180 = vector.extract_strided_slice %135 {offsets = [0, 1, 5, 0], sizes = [2, 1, 1, 32], strides = [1, 1, 1, 1]} : vector<2x4x8x32xf32> to vector<2x1x1x32xf32>
    %181 = vector.shape_cast %180 : vector<2x1x1x32xf32> to vector<2x32xf32>
    %182 = arith.maximumf %179, %181 : vector<2x32xf32>
    %183 = arith.truncf %182 : vector<2x32xf32> to vector<2x32xbf16>
    %c0_152 = arith.constant 0 : index
    %c192_153 = arith.constant 192 : index
    %184 = vector.load %arg15[%c0_152, %c192_153] : memref<2x512xbf16, #tpu.memory_space<vmem>>, vector<2x32xbf16>
    tpu.vector_store %arg15[%c0_152, %c192_153], %183 {strides = array<i32>} : memref<2x512xbf16, #tpu.memory_space<vmem>>, vector<2x32xbf16>,
    %185 = vector.extract_strided_slice %135 {offsets = [0, 1, 6, 0], sizes = [2, 1, 1, 32], strides = [1, 1, 1, 1]} : vector<2x4x8x32xf32> to vector<2x1x1x32xf32>
    %186 = vector.shape_cast %185 : vector<2x1x1x32xf32> to vector<2x32xf32>
    %187 = vector.extract_strided_slice %135 {offsets = [0, 1, 7, 0], sizes = [2, 1, 1, 32], strides = [1, 1, 1, 1]} : vector<2x4x8x32xf32> to vector<2x1x1x32xf32>
    %188 = vector.shape_cast %187 : vector<2x1x1x32xf32> to vector<2x32xf32>
    %189 = arith.maximumf %186, %188 : vector<2x32xf32>
    %190 = arith.truncf %189 : vector<2x32xf32> to vector<2x32xbf16>
    %c0_154 = arith.constant 0 : index
    %c224_155 = arith.constant 224 : index
    %191 = vector.load %arg15[%c0_154, %c224_155] : memref<2x512xbf16, #tpu.memory_space<vmem>>, vector<2x32xbf16>
    tpu.vector_store %arg15[%c0_154, %c224_155], %190 {strides = array<i32>} : memref<2x512xbf16, #tpu.memory_space<vmem>>, vector<2x32xbf16>,
    %192 = vector.extract_strided_slice %135 {offsets = [0, 2, 0, 0], sizes = [2, 1, 1, 32], strides = [1, 1, 1, 1]} : vector<2x4x8x32xf32> to vector<2x1x1x32xf32>
    %193 = vector.shape_cast %192 : vector<2x1x1x32xf32> to vector<2x32xf32>
    %194 = vector.extract_strided_slice %135 {offsets = [0, 2, 1, 0], sizes = [2, 1, 1, 32], strides = [1, 1, 1, 1]} : vector<2x4x8x32xf32> to vector<2x1x1x32xf32>
    %195 = vector.shape_cast %194 : vector<2x1x1x32xf32> to vector<2x32xf32>
    %196 = arith.maximumf %193, %195 : vector<2x32xf32>
    %197 = arith.truncf %196 : vector<2x32xf32> to vector<2x32xbf16>
    %c0_156 = arith.constant 0 : index
    %c256_157 = arith.constant 256 : index
    %198 = vector.load %arg15[%c0_156, %c256_157] : memref<2x512xbf16, #tpu.memory_space<vmem>>, vector<2x32xbf16>
    tpu.vector_store %arg15[%c0_156, %c256_157], %197 {strides = array<i32>} : memref<2x512xbf16, #tpu.memory_space<vmem>>, vector<2x32xbf16>,
    %199 = vector.extract_strided_slice %135 {offsets = [0, 2, 2, 0], sizes = [2, 1, 1, 32], strides = [1, 1, 1, 1]} : vector<2x4x8x32xf32> to vector<2x1x1x32xf32>
    %200 = vector.shape_cast %199 : vector<2x1x1x32xf32> to vector<2x32xf32>
    %201 = vector.extract_strided_slice %135 {offsets = [0, 2, 3, 0], sizes = [2, 1, 1, 32], strides = [1, 1, 1, 1]} : vector<2x4x8x32xf32> to vector<2x1x1x32xf32>
    %202 = vector.shape_cast %201 : vector<2x1x1x32xf32> to vector<2x32xf32>
    %203 = arith.maximumf %200, %202 : vector<2x32xf32>
    %204 = arith.truncf %203 : vector<2x32xf32> to vector<2x32xbf16>
    %c0_158 = arith.constant 0 : index
    %c288_159 = arith.constant 288 : index
    %205 = vector.load %arg15[%c0_158, %c288_159] : memref<2x512xbf16, #tpu.memory_space<vmem>>, vector<2x32xbf16>
    tpu.vector_store %arg15[%c0_158, %c288_159], %204 {strides = array<i32>} : memref<2x512xbf16, #tpu.memory_space<vmem>>, vector<2x32xbf16>,
    %206 = vector.extract_strided_slice %135 {offsets = [0, 2, 4, 0], sizes = [2, 1, 1, 32], strides = [1, 1, 1, 1]} : vector<2x4x8x32xf32> to vector<2x1x1x32xf32>
    %207 = vector.shape_cast %206 : vector<2x1x1x32xf32> to vector<2x32xf32>
    %208 = vector.extract_strided_slice %135 {offsets = [0, 2, 5, 0], sizes = [2, 1, 1, 32], strides = [1, 1, 1, 1]} : vector<2x4x8x32xf32> to vector<2x1x1x32xf32>
    %209 = vector.shape_cast %208 : vector<2x1x1x32xf32> to vector<2x32xf32>
    %210 = arith.maximumf %207, %209 : vector<2x32xf32>
    %211 = arith.truncf %210 : vector<2x32xf32> to vector<2x32xbf16>
    %c0_160 = arith.constant 0 : index
    %c320_161 = arith.constant 320 : index
    %212 = vector.load %arg15[%c0_160, %c320_161] : memref<2x512xbf16, #tpu.memory_space<vmem>>, vector<2x32xbf16>
    tpu.vector_store %arg15[%c0_160, %c320_161], %211 {strides = array<i32>} : memref<2x512xbf16, #tpu.memory_space<vmem>>, vector<2x32xbf16>,
    %213 = vector.extract_strided_slice %135 {offsets = [0, 2, 6, 0], sizes = [2, 1, 1, 32], strides = [1, 1, 1, 1]} : vector<2x4x8x32xf32> to vector<2x1x1x32xf32>
    %214 = vector.shape_cast %213 : vector<2x1x1x32xf32> to vector<2x32xf32>
    %215 = vector.extract_strided_slice %135 {offsets = [0, 2, 7, 0], sizes = [2, 1, 1, 32], strides = [1, 1, 1, 1]} : vector<2x4x8x32xf32> to vector<2x1x1x32xf32>
    %216 = vector.shape_cast %215 : vector<2x1x1x32xf32> to vector<2x32xf32>
    %217 = arith.maximumf %214, %216 : vector<2x32xf32>
    %218 = arith.truncf %217 : vector<2x32xf32> to vector<2x32xbf16>
    %c0_162 = arith.constant 0 : index
    %c352_163 = arith.constant 352 : index
    %219 = vector.load %arg15[%c0_162, %c352_163] : memref<2x512xbf16, #tpu.memory_space<vmem>>, vector<2x32xbf16>
    tpu.vector_store %arg15[%c0_162, %c352_163], %218 {strides = array<i32>} : memref<2x512xbf16, #tpu.memory_space<vmem>>, vector<2x32xbf16>,
    %220 = vector.extract_strided_slice %135 {offsets = [0, 3, 0, 0], sizes = [2, 1, 1, 32], strides = [1, 1, 1, 1]} : vector<2x4x8x32xf32> to vector<2x1x1x32xf32>
    %221 = vector.shape_cast %220 : vector<2x1x1x32xf32> to vector<2x32xf32>
    %222 = vector.extract_strided_slice %135 {offsets = [0, 3, 1, 0], sizes = [2, 1, 1, 32], strides = [1, 1, 1, 1]} : vector<2x4x8x32xf32> to vector<2x1x1x32xf32>
    %223 = vector.shape_cast %222 : vector<2x1x1x32xf32> to vector<2x32xf32>
    %224 = arith.maximumf %221, %223 : vector<2x32xf32>
    %225 = arith.truncf %224 : vector<2x32xf32> to vector<2x32xbf16>
    %c0_164 = arith.constant 0 : index
    %c384_165 = arith.constant 384 : index
    %226 = vector.load %arg15[%c0_164, %c384_165] : memref<2x512xbf16, #tpu.memory_space<vmem>>, vector<2x32xbf16>
    tpu.vector_store %arg15[%c0_164, %c384_165], %225 {strides = array<i32>} : memref<2x512xbf16, #tpu.memory_space<vmem>>, vector<2x32xbf16>,
    %227 = vector.extract_strided_slice %135 {offsets = [0, 3, 2, 0], sizes = [2, 1, 1, 32], strides = [1, 1, 1, 1]} : vector<2x4x8x32xf32> to vector<2x1x1x32xf32>
    %228 = vector.shape_cast %227 : vector<2x1x1x32xf32> to vector<2x32xf32>
    %229 = vector.extract_strided_slice %135 {offsets = [0, 3, 3, 0], sizes = [2, 1, 1, 32], strides = [1, 1, 1, 1]} : vector<2x4x8x32xf32> to vector<2x1x1x32xf32>
    %230 = vector.shape_cast %229 : vector<2x1x1x32xf32> to vector<2x32xf32>
    %231 = arith.maximumf %228, %230 : vector<2x32xf32>
    %232 = arith.truncf %231 : vector<2x32xf32> to vector<2x32xbf16>
    %c0_166 = arith.constant 0 : index
    %c416 = arith.constant 416 : index
    %233 = vector.load %arg15[%c0_166, %c416] : memref<2x512xbf16, #tpu.memory_space<vmem>>, vector<2x32xbf16>
    tpu.vector_store %arg15[%c0_166, %c416], %232 {strides = array<i32>} : memref<2x512xbf16, #tpu.memory_space<vmem>>, vector<2x32xbf16>,
    %234 = vector.extract_strided_slice %135 {offsets = [0, 3, 4, 0], sizes = [2, 1, 1, 32], strides = [1, 1, 1, 1]} : vector<2x4x8x32xf32> to vector<2x1x1x32xf32>
    %235 = vector.shape_cast %234 : vector<2x1x1x32xf32> to vector<2x32xf32>
    %236 = vector.extract_strided_slice %135 {offsets = [0, 3, 5, 0], sizes = [2, 1, 1, 32], strides = [1, 1, 1, 1]} : vector<2x4x8x32xf32> to vector<2x1x1x32xf32>
    %237 = vector.shape_cast %236 : vector<2x1x1x32xf32> to vector<2x32xf32>
    %238 = arith.maximumf %235, %237 : vector<2x32xf32>
    %239 = arith.truncf %238 : vector<2x32xf32> to vector<2x32xbf16>
    %c0_167 = arith.constant 0 : index
    %c448 = arith.constant 448 : index
    %240 = vector.load %arg15[%c0_167, %c448] : memref<2x512xbf16, #tpu.memory_space<vmem>>, vector<2x32xbf16>
    tpu.vector_store %arg15[%c0_167, %c448], %239 {strides = array<i32>} : memref<2x512xbf16, #tpu.memory_space<vmem>>, vector<2x32xbf16>,
    %241 = vector.extract_strided_slice %135 {offsets = [0, 3, 6, 0], sizes = [2, 1, 1, 32], strides = [1, 1, 1, 1]} : vector<2x4x8x32xf32> to vector<2x1x1x32xf32>
    %242 = vector.shape_cast %241 : vector<2x1x1x32xf32> to vector<2x32xf32>
    %243 = vector.extract_strided_slice %135 {offsets = [0, 3, 7, 0], sizes = [2, 1, 1, 32], strides = [1, 1, 1, 1]} : vector<2x4x8x32xf32> to vector<2x1x1x32xf32>
    %244 = vector.shape_cast %243 : vector<2x1x1x32xf32> to vector<2x32xf32>
    %245 = arith.maximumf %242, %244 : vector<2x32xf32>
    %246 = arith.truncf %245 : vector<2x32xf32> to vector<2x32xbf16>
    %c0_168 = arith.constant 0 : index
    %c480 = arith.constant 480 : index
    %247 = vector.load %arg15[%c0_168, %c480] : memref<2x512xbf16, #tpu.memory_space<vmem>>, vector<2x32xbf16>
    tpu.vector_store %arg15[%c0_168, %c480], %246 {strides = array<i32>} : memref<2x512xbf16, #tpu.memory_space<vmem>>, vector<2x32xbf16>,
    %c0_169 = arith.constant 0 : index
    %c0_170 = arith.constant 0 : index
    %248 = vector.load %arg15[%c0_169, %c0_170] : memref<2x512xbf16, #tpu.memory_space<vmem>>, vector<2x512xbf16>
    %c0_171 = arith.constant 0 : index
    %c0_172 = arith.constant 0 : index
    %249 = vector.load %arg6[%c0_171, %c0_172] : memref<512x100xbf16, #tpu.memory_space<vmem>>, vector<512x100xbf16>
    %cst_173 = arith.constant dense<0.000000e+00> : vector<2x100xf32>
    %250 = tpu.matmul %248, %249, %cst_173 {dimension_numbers = #tpu.dot_dimension_numbers<[1], [0], [0], [1], [0, 0, 1, 1], [], []>} : vector<2x512xbf16>, vector<512x100xbf16>, vector<2x100xf32> -> vector<2x100xf32>
    %c0_174 = arith.constant 0 : index
    %c0_175 = arith.constant 0 : index
    %251 = vector.load %arg7[%c0_174, %c0_175] : memref<1x100xf32, #tpu.memory_space<vmem>>, vector<1x100xf32>
    %252 = vector.broadcast %251 : vector<1x100xf32> to vector<2x100xf32>
    %253 = arith.addf %250, %252 : vector<2x100xf32>
    %cst_176 = arith.constant 0.000000e+00 : f32
    %254 = vector.broadcast %cst_176 : f32 to vector<2x100xf32>
    %255 = arith.maximumf %253, %254 : vector<2x100xf32>
    %256 = arith.truncf %255 : vector<2x100xf32> to vector<2x100xbf16>
    %c0_177 = arith.constant 0 : index
    %c0_178 = arith.constant 0 : index
    %257 = vector.load %arg8[%c0_177, %c0_178] : memref<100x100xbf16, #tpu.memory_space<vmem>>, vector<100x100xbf16>
    %cst_179 = arith.constant dense<0.000000e+00> : vector<2x100xf32>
    %258 = tpu.matmul %256, %257, %cst_179 {dimension_numbers = #tpu.dot_dimension_numbers<[1], [0], [0], [1], [0, 0, 1, 1], [], []>} : vector<2x100xbf16>, vector<100x100xbf16>, vector<2x100xf32> -> vector<2x100xf32>
    %c0_180 = arith.constant 0 : index
    %c0_181 = arith.constant 0 : index
    %259 = vector.load %arg9[%c0_180, %c0_181] : memref<1x100xf32, #tpu.memory_space<vmem>>, vector<1x100xf32>
    %260 = vector.broadcast %259 : vector<1x100xf32> to vector<2x100xf32>
    %261 = arith.addf %258, %260 : vector<2x100xf32>
    %cst_182 = arith.constant 0.000000e+00 : f32
    %262 = vector.broadcast %cst_182 : f32 to vector<2x100xf32>
    %263 = arith.maximumf %261, %262 : vector<2x100xf32>
    %264 = arith.truncf %263 : vector<2x100xf32> to vector<2x100xbf16>
    %c0_183 = arith.constant 0 : index
    %c0_184 = arith.constant 0 : index
    %265 = vector.load %arg10[%c0_183, %c0_184] : memref<100x128xbf16, #tpu.memory_space<vmem>>, vector<100x128xbf16>
    %cst_185 = arith.constant dense<0.000000e+00> : vector<2x128xf32>
    %266 = tpu.matmul %264, %265, %cst_185 {dimension_numbers = #tpu.dot_dimension_numbers<[1], [0], [0], [1], [0, 0, 1, 1], [], []>} : vector<2x100xbf16>, vector<100x128xbf16>, vector<2x128xf32> -> vector<2x128xf32>
    %c0_186 = arith.constant 0 : index
    %c0_187 = arith.constant 0 : index
    %267 = vector.load %arg11[%c0_186, %c0_187] : memref<1x128xf32, #tpu.memory_space<vmem>>, vector<1x128xf32>
    %268 = vector.broadcast %267 : vector<1x128xf32> to vector<2x128xf32>
    %269 = arith.addf %266, %268 : vector<2x128xf32>
    %c0_188 = arith.constant 0 : index
    %c0_189 = arith.constant 0 : index
    %270 = vector.load %arg12[%c0_188, %c0_189] : memref<2x128xf32, #tpu.memory_space<vmem>>, vector<2x128xf32>
    tpu.vector_store %arg12[%c0_188, %c0_189], %269 {strides = array<i32>} : memref<2x128xf32, #tpu.memory_space<vmem>>, vector<2x128xf32>,
    return
  }
  func.func @transform_0(%arg0: i32) -> (i32, i32) {
    %c0_i32 = arith.constant 0 : i32
    %c0_i32_0 = arith.constant 0 : i32
    return %arg0, %c0_i32 : i32, i32
  }
  func.func @transform_1(%arg0: i32) -> (i32, i32) {
    %c0_i32 = arith.constant 0 : i32
    %c0_i32_0 = arith.constant 0 : i32
    %c0_i32_1 = arith.constant 0 : i32
    return %c0_i32, %c0_i32_0 : i32, i32
  }
  func.func @transform_2(%arg0: i32) -> (i32, i32) {
    %c0_i32 = arith.constant 0 : i32
    %c0_i32_0 = arith.constant 0 : i32
    %c0_i32_1 = arith.constant 0 : i32
    return %c0_i32, %c0_i32_0 : i32, i32
  }
  func.func @transform_3(%arg0: i32) -> (i32, i32) {
    %c0_i32 = arith.constant 0 : i32
    %c0_i32_0 = arith.constant 0 : i32
    %c0_i32_1 = arith.constant 0 : i32
    return %c0_i32, %c0_i32_0 : i32, i32
  }
  func.func @transform_4(%arg0: i32) -> (i32, i32) {
    %c0_i32 = arith.constant 0 : i32
    %c0_i32_0 = arith.constant 0 : i32
    %c0_i32_1 = arith.constant 0 : i32
    return %c0_i32, %c0_i32_0 : i32, i32
  }
  func.func @transform_5(%arg0: i32) -> (i32, i32) {
    %c0_i32 = arith.constant 0 : i32
    %c0_i32_0 = arith.constant 0 : i32
    %c0_i32_1 = arith.constant 0 : i32
    return %c0_i32, %c0_i32_0 : i32, i32
  }
  func.func @transform_6(%arg0: i32) -> (i32, i32) {
    %c0_i32 = arith.constant 0 : i32
    %c0_i32_0 = arith.constant 0 : i32
    %c0_i32_1 = arith.constant 0 : i32
    return %c0_i32, %c0_i32_0 : i32, i32
  }
  func.func @transform_7(%arg0: i32) -> (i32, i32) {
    %c0_i32 = arith.constant 0 : i32
    %c0_i32_0 = arith.constant 0 : i32
    %c0_i32_1 = arith.constant 0 : i32
    return %c0_i32, %c0_i32_0 : i32, i32
  }
  func.func @transform_8(%arg0: i32) -> (i32, i32) {
    %c0_i32 = arith.constant 0 : i32
    %c0_i32_0 = arith.constant 0 : i32
    %c0_i32_1 = arith.constant 0 : i32
    return %c0_i32, %c0_i32_0 : i32, i32
  }
  func.func @transform_9(%arg0: i32) -> (i32, i32) {
    %c0_i32 = arith.constant 0 : i32
    %c0_i32_0 = arith.constant 0 : i32
    %c0_i32_1 = arith.constant 0 : i32
    return %c0_i32, %c0_i32_0 : i32, i32
  }
  func.func @transform_10(%arg0: i32) -> (i32, i32) {
    %c0_i32 = arith.constant 0 : i32
    %c0_i32_0 = arith.constant 0 : i32
    %c0_i32_1 = arith.constant 0 : i32
    return %c0_i32, %c0_i32_0 : i32, i32
  }
  func.func @transform_11(%arg0: i32) -> (i32, i32) {
    %c0_i32 = arith.constant 0 : i32
    %c0_i32_0 = arith.constant 0 : i32
    return %arg0, %c0_i32 : i32, i32
  }
}

</mosaic_0001>

<bundles_post_ra>
// kernel: cnn_forward.1
= control target key start
LH: loop header
LB: loop body
LE: loop exit
PB: predicated region body
PF: predicated region fallthrough
CT: control target
= control target key end

     0   :  { %s10090_s0 = inlined_call_operand.vmem [shape: bf16[1536,32], index: 0, kind: input, shape index: {}]   ;;  %s10091_s1 = inlined_call_operand.vmem [shape: bf16[32,16], index: 1, kind: input, shape index: {}]   ;;  %s10092_s2 = inlined_call_operand.vmem [shape: f32[1,16], index: 2, kind: input, shape index: {}]   ;;  %s10093_s3 = inlined_call_operand.vmem [shape: bf16[400,32], index: 3, kind: input, shape index: {}]   ;;  %s10094_s4 = inlined_call_operand.vmem [shape: f32[1,32], index: 4, kind: input, shape index: {}]   ;;  %s10095_s5 = inlined_call_operand.vmem [shape: bf16[512,100], index: 5, kind: input, shape index: {}]   ;;  %s10096_s6 = inlined_call_operand.vmem [shape: f32[1,100], index: 6, kind: input, shape index: {}]   ;;  %s10097_s7 = inlined_call_operand.vmem [shape: bf16[100,100], index: 7, kind: input, shape index: {}]   ;;  %s10098_s8 = inlined_call_operand.vmem [shape: f32[1,100], index: 8, kind: input, shape index: {}]   ;;  %s10099_s9 = inlined_call_operand.vmem [shape: bf16[100,128], index: 9, kind: input, shape index: {}]   ;;  %s10100_s10 = inlined_call_operand.vmem [shape: f32[1,128], index: 10, kind: input, shape index: {}]   ;;  %s10101_s11 = inlined_call_operand.hbm [shape: f32[2,128], index: 11, kind: output, shape index: {}]  }
   0x1   :  { %v7060_v0 = vld [vmem:[%s10091_s1 + $0x8] sm:$0xff]  ;;  %v7059_v1 = vld [vmem:[%s10091_s1] sm:$0xff] }
   0x2   :  { %1027 = vmatpush.bf16.msra.mxu0 %v7060_v0  ;;  %7162 = vmatpush.bf16.msra.mxu1 %v7060_v0  ;;  %v6963_v2 = vld [vmem:[%s10090_s0] sm:$0xff] }
   0x3   :  { %7163 = vmatpush.bf16.msra.mxu2 %v7060_v0  ;;  %7164 = vmatpush.bf16.msra.mxu3 %v7060_v0  ;;  %v6999_v3 = vld [vmem:[%s10090_s0 + $0x120] sm:$0xff] }
   0x4   :  { %16 = vsyncpa [#allocation6], 0  ;;  %vm732_vm0 = vcmask 261120   ;;  %v7015_v4 = vld [vmem:[%s10090_s0 + $0x1a0] sm:$0xff]  ;;  %v7037_v5 = vld [vmem:[%s10090_s0 + $0x250] sm:$0xff]  ;;  %vm1846_vm1 = vcmask 130048  }
   0x5   :  { %v6964_v6 = vld [vmem:[%s10090_s0 + $0x8] sm:$0xff]  ;;  %v7038_v9 = vld [vmem:[%s10090_s0 + $0x258] sm:$0xff]  ;;  %v6965_v10 = vld [vmem:[%s10090_s0 + $0x10] sm:$0xff]  ;;  %vm1927_vm2 = vcmask 125952   ;;  %s7210_s30 = smov 32   ;;  %s7211_s12 = smov 80  }
   0x6   :  { %1028 = vmatpush.bf16.msra.mxu0 %v7059_v1  ;;  %7165 = vmatpush.bf16.msra.mxu1 %v7059_v1  ;;  %v7000_v7 = vld [vmem:[%s10090_s0 + $0x128] sm:$0xff]  ;;  %v7001_v11 = vld [vmem:[%s10090_s0 + $0x130] sm:$0xff]  ;;  %v7039_v13 = vld [vmem:[%s10090_s0 + $0x260] sm:$0xff]  ;;  %s7212_s13 = smov 112   ;;  %s7213_s14 = smov 64   ;;  %vm2040_vm3 = vcmask 257152  }
   0x7   :  { %7166 = vmatpush.bf16.msra.mxu2 %v7059_v1  ;;  %7167 = vmatpush.bf16.msra.mxu3 %v7059_v1  ;;  %v7016_v8 = vld [vmem:[%s10090_s0 + $0x1a8] sm:$0xff]  ;;  %v7017_v12 = vld [vmem:[%s10090_s0 + $0x1b0] sm:$0xff]  ;;  %v6966_v14 = vld [vmem:[%s10090_s0 + $0x18] sm:$0xff]  ;;  %s7214_s17 = smov 96   ;;  %s7215_s18 = smov 16   ;;  %vm2153_vm4 = vcmask 388352  }
   0x8   :  { %v7002_v15 = vld [vmem:[%s10090_s0 + $0x138] sm:$0xff]  ;;  %v7040_v17 = vld [vmem:[%s10090_s0 + $0x268] sm:$0xff]  ;;  %v6967_v18 = vld [vmem:[%s10090_s0 + $0x20] sm:$0xff]  ;;  %s7216_s21 = smov 48   ;;  %vm2266_vm5 = vcmask 519552   ;;  %vm2379_vm6 = vcmask 650752  }
   0x9   :  { %6453 = vmatmul.msk.bf16.vlgmr.msra.gmra.mxu0 %vm732_vm0, %v6963_v2  ;;  %6489 = vmatmul.msk.bf16.vlgmr.msra.gmra.mxu1 %vm732_vm0, %v6999_v3  ;;  %v7018_v16 = vld [vmem:[%s10090_s0 + $0x1b8] sm:$0xff]  ;;  %v7003_v19 = vld [vmem:[%s10090_s0 + $0x140] sm:$0xff]  ;;  %v7041_v21 = vld [vmem:[%s10090_s0 + $0x270] sm:$0xff]  ;;  %vm2493_vm7 = vcmask 781952   ;;  %vm2606_vm8 = vcmask 913152   ;;  %vm2719_vm9 = vcmask 1044352  }
   0xa   :  { %6505 = vmatmul.msk.bf16.vlgmr.msra.gmra.mxu2 %vm732_vm0, %v7015_v4  ;;  %6527 = vmatmul.msk.bf16.vlgmr.msra.gmra.mxu3 %vm732_vm0, %v7037_v5  ;;  %v7019_v20 = vld [vmem:[%s10090_s0 + $0x1c0] sm:$0xff]  ;;  %v6968_v22 = vld [vmem:[%s10090_s0 + $0x28] sm:$0xff]  ;;  %v7042_v25 = vld [vmem:[%s10090_s0 + $0x278] sm:$0xff]  ;;  %vm5097_vm10 = vcmask 1040384   ;;  %vm5114_vm11 = vcmask 1041409   ;;  %vm5122_vm12 = vcmask 253952  }
   0xb   :  { %v7004_v23 = vld [vmem:[%s10090_s0 + $0x148] sm:$0xff]  ;;  %v6969_v26 = vld [vmem:[%s10090_s0 + $0x30] sm:$0xff]  ;;  %v7043_v29 = vld [vmem:[%s10090_s0 + $0x280] sm:$0xff]  ;;  %vm5150_vm13 = vcmask 516352   ;;  %vm5178_vm14 = vcmask 778752   ;;  %vm5206_vm15 = vcmask 1041152  }
   0xc   :  { %v7020_v24 = vld [vmem:[%s10090_s0 + $0x1c8] sm:$0xff]  ;;  %v7005_v27 = vld [vmem:[%s10090_s0 + $0x150] sm:$0xff]  ;;  %v6970_v30 = vld [vmem:[%s10090_s0 + $0x38] sm:$0xff] }
   0xd   :  { %v7021_v28 = vld [vmem:[%s10090_s0 + $0x1d0] sm:$0xff]  ;;  %v7006_v31 = vld [vmem:[%s10090_s0 + $0x158] sm:$0xff]  ;;  %v7044_v33 = vld [vmem:[%s10090_s0 + $0x288] sm:$0xff] }
   0xe   :  { %v7022_v32 = vld [vmem:[%s10090_s0 + $0x1d8] sm:$0xff]  ;;  %v6971_v34 = vld [vmem:[%s10090_s0 + $0x40] sm:$0xff]  ;;  %v7045_v39 = vld [vmem:[%s10090_s0 + $0x290] sm:$0xff] }
   0xf   :  { %v7007_v35 = vld [vmem:[%s10090_s0 + $0x160] sm:$0xff]  ;;  %v6972_v46 = vld [vmem:[%s10090_s0 + $0x48] sm:$0xff]  ;;  %v7046_v51 = vld [vmem:[%s10090_s0 + $0x298] sm:$0xff] }
  0x10   :  { %v7023_v38 = vld [vmem:[%s10090_s0 + $0x1e0] sm:$0xff]  ;;  %v7008_v47 = vld [vmem:[%s10090_s0 + $0x168] sm:$0xff]  ;;  %v6973_v58 = vld [vmem:[%s10090_s0 + $0x50] sm:$0xff] }
  0x11   :  { %v7024_v50 = vld [vmem:[%s10090_s0 + $0x1e8] sm:$0xff]  ;;  %v7009_v59 = vld [vmem:[%s10090_s0 + $0x170] sm:$0xff]  ;;  %v7047_v63 = vld [vmem:[%s10090_s0 + $0x2a0] sm:$0xff] }
  0x12   :  { %v7025_v62 = vld [vmem:[%s10090_s0 + $0x1f0] sm:$0xff] }
  0x19   :  { %6454 = vmatmul.msk.bf16.gmra.mxu0 %vm732_vm0, %v6964_v6  ;;  %6490 = vmatmul.msk.bf16.gmra.mxu1 %vm732_vm0, %v7000_v7  ;;  %v6974_v6 = vld [vmem:[%s10090_s0 + $0x58] sm:$0xff] }
  0x1a   :  { %6506 = vmatmul.msk.bf16.gmra.mxu2 %vm732_vm0, %v7016_v8  ;;  %6528 = vmatmul.msk.bf16.gmra.mxu3 %vm732_vm0, %v7038_v9  ;;  %v7010_v7 = vld [vmem:[%s10090_s0 + $0x178] sm:$0xff] }
  0x29   :  { %6455 = vmatmul.msk.bf16.gmra.mxu0 %vm732_vm0, %v6965_v10  ;;  %6491 = vmatmul.msk.bf16.gmra.mxu1 %vm732_vm0, %v7001_v11  ;;  %v7026_v10 = vld [vmem:[%s10090_s0 + $0x1f8] sm:$0xff]  ;;  %v7048_v11 = vld [vmem:[%s10090_s0 + $0x2a8] sm:$0xff] }
  0x2a   :  { %6507 = vmatmul.msk.bf16.gmra.mxu2 %vm732_vm0, %v7017_v12  ;;  %6529 = vmatmul.msk.bf16.gmra.mxu3 %vm732_vm0, %v7039_v13 }
  0x39   :  { %6456 = vmatmul.msk.bf16.gmra.mxu0 %vm732_vm0, %v6966_v14  ;;  %6492 = vmatmul.msk.bf16.gmra.mxu1 %vm732_vm0, %v7002_v15 }
  0x3a   :  { %6508 = vmatmul.msk.bf16.gmra.mxu2 %vm732_vm0, %v7018_v16  ;;  %6530 = vmatmul.msk.bf16.gmra.mxu3 %vm732_vm0, %v7040_v17 }
  0x49   :  { %6457 = vmatmul.msk.bf16.gmra.mxu0 %vm732_vm0, %v6967_v18  ;;  %6493 = vmatmul.msk.bf16.gmra.mxu1 %vm732_vm0, %v7003_v19  ;;  %v6975_v18 = vld [vmem:[%s10090_s0 + $0x60] sm:$0xff] }
  0x4a   :  { %6509 = vmatmul.msk.bf16.gmra.mxu2 %vm732_vm0, %v7019_v20  ;;  %6531 = vmatmul.msk.bf16.gmra.mxu3 %vm732_vm0, %v7041_v21  ;;  %v7011_v19 = vld [vmem:[%s10090_s0 + $0x180] sm:$0xff] }
  0x59   :  { %6458 = vmatmul.msk.bf16.gmra.mxu0 %vm732_vm0, %v6968_v22  ;;  %6494 = vmatmul.msk.bf16.gmra.mxu1 %vm732_vm0, %v7004_v23  ;;  %v7027_v22 = vld [vmem:[%s10090_s0 + $0x200] sm:$0xff]  ;;  %v7049_v23 = vld [vmem:[%s10090_s0 + $0x2b0] sm:$0xff] }
  0x5a   :  { %6510 = vmatmul.msk.bf16.gmra.mxu2 %vm732_vm0, %v7020_v24  ;;  %6532 = vmatmul.msk.bf16.gmra.mxu3 %vm732_vm0, %v7042_v25 }
  0x69   :  { %6459 = vmatmul.msk.bf16.gmra.mxu0 %vm732_vm0, %v6969_v26  ;;  %6495 = vmatmul.msk.bf16.gmra.mxu1 %vm732_vm0, %v7005_v27 }
  0x6a   :  { %6511 = vmatmul.msk.bf16.gmra.mxu2 %vm732_vm0, %v7021_v28  ;;  %6533 = vmatmul.msk.bf16.gmra.mxu3 %vm732_vm0, %v7043_v29 }
  0x79   :  { %6460 = vmatmul.msk.bf16.gmra.mxu0 %vm732_vm0, %v6970_v30  ;;  %6496 = vmatmul.msk.bf16.gmra.mxu1 %vm732_vm0, %v7006_v31  ;;  %v6976_v30 = vld [vmem:[%s10090_s0 + $0x68] sm:$0xff] }
  0x7a   :  { %6512 = vmatmul.msk.bf16.gmra.mxu2 %vm732_vm0, %v7022_v32  ;;  %6534 = vmatmul.msk.bf16.gmra.mxu3 %vm732_vm0, %v7044_v33  ;;  %v7012_v31 = vld [vmem:[%s10090_s0 + $0x188] sm:$0xff] }
  0x86   :  { %v7418_v36 = vpop.f32.mrf.mxu0  ;;  %v7420_v37 = vpop.f32.mrf.mxu1 }
  0x87   :  { %10109 = vst [vmem:[#allocation8_spill] sm:$0xff] %v7420_v37 }
  0x89   :  { %6461 = vmatmul.msk.bf16.gmra.mxu0 %vm732_vm0, %v6971_v34  ;;  %6497 = vmatmul.msk.bf16.gmra.mxu1 %vm732_vm0, %v7007_v35  ;;  %v7028_v34 = vld [vmem:[%s10090_s0 + $0x208] sm:$0xff]  ;;  %v7050_v35 = vld [vmem:[%s10090_s0 + $0x2b8] sm:$0xff] }
  0x8a   :  { %6513 = vmatmul.msk.bf16.gmra.mxu2 %vm732_vm0, %v7023_v38  ;;  %6535 = vmatmul.msk.bf16.gmra.mxu3 %vm732_vm0, %v7045_v39 }
  0x8d   :  { %v7432_v40 = vpop.f32.mrf.mxu2  ;;  %v7434_v41 = vpop.f32.mrf.mxu3 }
  0x8e   :  { %v7436_v42 = vpop.f32.mrf.mxu0  ;;  %v7438_v43 = vpop.f32.mrf.mxu1 }
  0x8f   :  { %10110 = vst [vmem:[#allocation9_spill] sm:$0xff] %v7438_v43 }
  0x95   :  { %v7440_v44 = vpop.f32.mrf.mxu2  ;;  %v7442_v45 = vpop.f32.mrf.mxu3 }
  0x96   :  { %v7450_v48 = vpop.f32.mrf.mxu0  ;;  %v7452_v49 = vpop.f32.mrf.mxu1 }
  0x97   :  { %10111 = vst [vmem:[#allocation10_spill] sm:$0xff] %v7452_v49 }
  0x99   :  { %6462 = vmatmul.msk.bf16.gmra.mxu0 %vm732_vm0, %v6972_v46  ;;  %6498 = vmatmul.msk.bf16.gmra.mxu1 %vm732_vm0, %v7008_v47 }
  0x9a   :  { %6514 = vmatmul.msk.bf16.gmra.mxu2 %vm732_vm0, %v7024_v50  ;;  %6536 = vmatmul.msk.bf16.gmra.mxu3 %vm732_vm0, %v7046_v51 }
  0x9d   :  { %v7464_v52 = vpop.f32.mrf.mxu2  ;;  %v7466_v53 = vpop.f32.mrf.mxu3 }
  0x9e   :  { %v7468_v54 = vpop.f32.mrf.mxu0  ;;  %v7470_v55 = vpop.f32.mrf.mxu1 }
  0x9f   :  { %10112 = vst [vmem:[#allocation11_spill] sm:$0xff] %v7470_v55 }
  0xa5   :  { %v7472_v56 = vpop.f32.mrf.mxu2  ;;  %v7474_v57 = vpop.f32.mrf.mxu3 }
  0xa6   :  { %v7482_v60 = vpop.f32.mrf.mxu0  ;;  %v7484_v61 = vpop.f32.mrf.mxu1 }
  0xa7   :  { %10113 = vst [vmem:[#allocation12_spill] sm:$0xff] %v7484_v61 }
  0xa9   :  { %6463 = vmatmul.msk.bf16.gmra.mxu0 %vm732_vm0, %v6973_v58  ;;  %6499 = vmatmul.msk.bf16.gmra.mxu1 %vm732_vm0, %v7009_v59  ;;  %v6977_v58 = vld [vmem:[%s10090_s0 + $0x70] sm:$0xff] }
  0xaa   :  { %6515 = vmatmul.msk.bf16.gmra.mxu2 %vm732_vm0, %v7025_v62  ;;  %6537 = vmatmul.msk.bf16.gmra.mxu3 %vm732_vm0, %v7047_v63  ;;  %v7013_v59 = vld [vmem:[%s10090_s0 + $0x190] sm:$0xff] }
  0xad   :  { %v7496_v0 = vpop.f32.mrf.mxu2  ;;  %v7498_v1 = vpop.f32.mrf.mxu3 }
  0xae   :  { %v7500_v2 = vpop.f32.mrf.mxu0  ;;  %v7502_v3 = vpop.f32.mrf.mxu1 }
  0xaf   :  { %10114 = vst [vmem:[#allocation13_spill] sm:$0xff] %v7502_v3  ;;  %v6980_v3 = vld [vmem:[%s10090_s0 + $0x88] sm:$0xff] }
  0xb5   :  { %v7504_v4 = vpop.f32.mrf.mxu2  ;;  %v7506_v5 = vpop.f32.mrf.mxu3 }
  0xb6   :  { %v7514_v8 = vpop.f32.mrf.mxu0  ;;  %v7516_v9 = vpop.f32.mrf.mxu1 }
  0xb7   :  { %10115 = vst [vmem:[#allocation14_spill] sm:$0xff] %v7516_v9 }
  0xb9   :  { %6464 = vmatmul.msk.bf16.gmra.mxu0 %vm732_vm0, %v6974_v6  ;;  %6500 = vmatmul.msk.bf16.gmra.mxu1 %vm732_vm0, %v7010_v7  ;;  %v7029_v6 = vld [vmem:[%s10090_s0 + $0x210] sm:$0xff]  ;;  %v7051_v7 = vld [vmem:[%s10090_s0 + $0x2c0] sm:$0xff] }
  0xba   :  { %6516 = vmatmul.msk.bf16.gmra.mxu2 %vm732_vm0, %v7026_v10  ;;  %6538 = vmatmul.msk.bf16.gmra.mxu3 %vm732_vm0, %v7048_v11 }
  0xbd   :  { %v7528_v12 = vpop.f32.mrf.mxu2  ;;  %v7530_v13 = vpop.f32.mrf.mxu3 }
  0xbe   :  { %v7532_v14 = vpop.f32.mrf.mxu0  ;;  %v7534_v15 = vpop.f32.mrf.mxu1 }
  0xbf   :  { %10116 = vst [vmem:[#allocation15_spill] sm:$0xff] %v7534_v15 }
  0xc5   :  { %v7536_v16 = vpop.f32.mrf.mxu2  ;;  %v7538_v17 = vpop.f32.mrf.mxu3 }
  0xc6   :  { %v7546_v20 = vpop.f32.mrf.mxu0  ;;  %v7548_v21 = vpop.f32.mrf.mxu1 }
  0xc7   :  { %10117 = vst [vmem:[#allocation16_spill] sm:$0xff] %v7548_v21 }
  0xc9   :  { %6465 = vmatmul.msk.bf16.gmra.mxu0 %vm732_vm0, %v6975_v18  ;;  %6501 = vmatmul.msk.bf16.gmra.mxu1 %vm732_vm0, %v7011_v19 }
  0xca   :  { %6517 = vmatmul.msk.bf16.gmra.mxu2 %vm732_vm0, %v7027_v22  ;;  %6539 = vmatmul.msk.bf16.gmra.mxu3 %vm732_vm0, %v7049_v23 }
  0xcd   :  { %v7560_v24 = vpop.f32.mrf.mxu2  ;;  %v7562_v25 = vpop.f32.mrf.mxu3 }
  0xce   :  { %v7564_v26 = vpop.f32.mrf.mxu0  ;;  %v7566_v27 = vpop.f32.mrf.mxu1 }
  0xcf   :  { %10118 = vst [vmem:[#allocation17_spill] sm:$0xff] %v7566_v27 }
  0xd5   :  { %v7568_v28 = vpop.f32.mrf.mxu2  ;;  %v7570_v29 = vpop.f32.mrf.mxu3 }
  0xd6   :  { %v7578_v32 = vpop.f32.mrf.mxu0  ;;  %v7580_v33 = vpop.f32.mrf.mxu1 }
  0xd7   :  { %10119 = vst [vmem:[#allocation18_spill] sm:$0xff] %v7580_v33 }
  0xd9   :  { %6466 = vmatmul.msk.bf16.gmra.mxu0 %vm732_vm0, %v6976_v30  ;;  %6502 = vmatmul.msk.bf16.gmra.mxu1 %vm732_vm0, %v7012_v31  ;;  %v6978_v30 = vld [vmem:[%s10090_s0 + $0x78] sm:$0xff] }
  0xda   :  { %6518 = vmatmul.msk.bf16.gmra.mxu2 %vm732_vm0, %v7028_v34  ;;  %6540 = vmatmul.msk.bf16.gmra.mxu3 %vm732_vm0, %v7050_v35  ;;  %v7014_v31 = vld [vmem:[%s10090_s0 + $0x198] sm:$0xff] }
  0xdd   :  { %v7592_v38 = vpop.f32.mrf.mxu2  ;;  %v7594_v39 = vpop.f32.mrf.mxu3 }
  0xde   :  { %v7596_v46 = vpop.f32.mrf.mxu0  ;;  %v7598_v47 = vpop.f32.mrf.mxu1 }
  0xdf   :  { %10120 = vst [vmem:[#allocation19_spill] sm:$0xff] %v7598_v47 }
  0xe5   :  { %v7600_v50 = vpop.f32.mrf.mxu2  ;;  %v7602_v51 = vpop.f32.mrf.mxu3 }
  0xe6   :  { %10121 = vst [vmem:[#allocation20_spill] sm:$0xff] %v7600_v50  ;;  %v7610_v62 = vpop.f32.mrf.mxu0  ;;  %v7612_v63 = vpop.f32.mrf.mxu1 }
  0xe7   :  { %10122 = vst [vmem:[#allocation21_spill] sm:$0xff] %v7612_v63 }
  0xe9   :  { %6467 = vmatmul.msk.bf16.gmra.mxu0 %vm732_vm0, %v6977_v58  ;;  %6503 = vmatmul.msk.bf16.gmra.mxu1 %vm732_vm0, %v7013_v59  ;;  %v7030_v58 = vld [vmem:[%s10090_s0 + $0x218] sm:$0xff]  ;;  %v7052_v59 = vld [vmem:[%s10090_s0 + $0x2c8] sm:$0xff] }
  0xea   :  { %6519 = vmatmul.msk.bf16.gmra.mxu2 %vm732_vm0, %v7029_v6  ;;  %6541 = vmatmul.msk.bf16.gmra.mxu3 %vm732_vm0, %v7051_v7 }
  0xed   :  { %v7624_v10 = vpop.f32.mrf.mxu2  ;;  %v7626_v11 = vpop.f32.mrf.mxu3 }
  0xee   :  { %10123 = vst [vmem:[#allocation22_spill] sm:$0xff] %v7624_v10  ;;  %v7628_v18 = vpop.f32.mrf.mxu0  ;;  %v7630_v19 = vpop.f32.mrf.mxu1 }
  0xef   :  { %10124 = vst [vmem:[#allocation23_spill] sm:$0xff] %v7630_v19 }
  0xf5   :  { %v7632_v22 = vpop.f32.mrf.mxu2  ;;  %v7634_v23 = vpop.f32.mrf.mxu3 }
  0xf6   :  { %10125 = vst [vmem:[#allocation24_spill] sm:$0xff] %v7632_v22  ;;  %v7642_v34 = vpop.f32.mrf.mxu0  ;;  %v7644_v35 = vpop.f32.mrf.mxu1 }
  0xf7   :  { %10126 = vst [vmem:[#allocation25_spill] sm:$0xff] %v7644_v35 }
  0xf9   :  { %6468 = vmatmul.msk.bf16.gmra.mxu0 %vm732_vm0, %v6978_v30  ;;  %6504 = vmatmul.msk.bf16.gmra.mxu1 %vm732_vm0, %v7014_v31  ;;  %v6979_v30 = vld [vmem:[%s10090_s0 + $0x80] sm:$0xff] }
  0xfa   :  { %6520 = vmatmul.msk.bf16.gmra.mxu2 %vm732_vm0, %v7030_v58  ;;  %6542 = vmatmul.msk.bf16.gmra.mxu3 %vm732_vm0, %v7052_v59  ;;  %v7031_v59 = vld [vmem:[%s10090_s0 + $0x220] sm:$0xff] }
  0xfd   :  { %v7656_v6 = vpop.f32.mrf.mxu2  ;;  %v7658_v7 = vpop.f32.mrf.mxu3 }
  0xfe   :  { %10127 = vst [vmem:[#allocation26_spill] sm:$0xff] %v7656_v6  ;;  %v7660_v35 = vpop.f32.mrf.mxu0  ;;  %v7662_v19 = vpop.f32.mrf.mxu1 }
  0xff   :  { %10128 = vst [vmem:[#allocation27_spill] sm:$0xff] %v7658_v7 }
 0x100   :  { %10129 = vst [vmem:[#allocation28_spill] sm:$0xff] %v7660_v35 }
 0x101   :  { %10130 = vst [vmem:[#allocation29_spill] sm:$0xff] %v7662_v19  ;;  %v7053_v19 = vld [vmem:[%s10090_s0 + $0x2d0] sm:$0xff] }
 0x105   :  { %v7664_v63 = vpop.f32.mrf.mxu2  ;;  %v7666_v47 = vpop.f32.mrf.mxu3 }
 0x106   :  { %10131 = vst [vmem:[#allocation30_spill] sm:$0xff] %v7664_v63  ;;  %v7671_v31 = vpop.f32.mrf.mxu0  ;;  %v7673_v58 = vpop.f32.mrf.mxu1 }
 0x107   :  { %10132 = vst [vmem:[#allocation31_spill] sm:$0xff] %v7666_v47 }
 0x108   :  { %10133 = vst [vmem:[#allocation32_spill] sm:$0xff] %v7671_v31 }
 0x109   :  { %10134 = vst [vmem:[#allocation33_spill] sm:$0xff] %v7673_v58  ;;  %6469 = vmatmul.msk.bf16.gmra.mxu0 %vm732_vm0, %v6979_v30 }
 0x10a   :  { %6521 = vmatmul.msk.bf16.gmra.mxu2 %vm732_vm0, %v7031_v59  ;;  %6543 = vmatmul.msk.bf16.gmra.mxu3 %vm732_vm0, %v7053_v19  ;;  %v7032_v19 = vld [vmem:[%s10090_s0 + $0x228] sm:$0xff] }
 0x10d   :  { %v1330_v33 = vpop.f32.mrf.mxu2  ;;  %v7684_v27 = vpop.f32.mrf.mxu3 }
 0x10e   :  { %10135 = vst [vmem:[#allocation34_spill] sm:$0xff] %v7684_v27  ;;  %v7686_v21 = vpop.f32.mrf.mxu0  ;;  %v7688_v58 = vpop.f32.mrf.mxu1 }
 0x10f   :  { %10136 = vst [vmem:[#allocation35_spill] sm:$0xff] %v7686_v21 }
 0x110   :  { %10137 = vst [vmem:[#allocation36_spill] sm:$0xff] %v7688_v58  ;;  %v7054_v58 = vld [vmem:[%s10090_s0 + $0x2d8] sm:$0xff] }
 0x115   :  { %v7690_v15 = vpop.f32.mrf.mxu2  ;;  %v7692_v9 = vpop.f32.mrf.mxu3 }
 0x116   :  { %10138 = vst [vmem:[#allocation37_spill] sm:$0xff] %v7690_v15  ;;  %v7697_v30 = vpop.f32.mrf.mxu0  ;;  %v7699_v59 = vpop.f32.mrf.mxu1  ;;  %v7035_v15 = vld [vmem:[%s10090_s0 + $0x240] sm:$0xff] }
 0x117   :  { %10139 = vst [vmem:[#allocation38_spill] sm:$0xff] %v7692_v9 }
 0x118   :  { %10140 = vst [vmem:[#allocation39_spill] sm:$0xff] %v7697_v30 }
 0x119   :  { %10141 = vst [vmem:[#allocation40_spill] sm:$0xff] %v7699_v59  ;;  %6470 = vmatmul.msk.bf16.gmra.mxu0 %vm732_vm0, %v6980_v3  ;;  %v6981_v3 = vld [vmem:[%s10090_s0 + $0x90] sm:$0xff] }
 0x11a   :  { %6522 = vmatmul.msk.bf16.gmra.mxu2 %vm732_vm0, %v7032_v19  ;;  %6544 = vmatmul.msk.bf16.gmra.mxu3 %vm732_vm0, %v7054_v58  ;;  %v7033_v58 = vld [vmem:[%s10090_s0 + $0x230] sm:$0xff] }
 0x11d   :  { %v7710_v61 = vpop.f32.mrf.mxu2  ;;  %v7712_v55 = vpop.f32.mrf.mxu3 }
 0x11e   :  { %10142 = vst [vmem:[#allocation41_spill] sm:$0xff] %v7712_v55  ;;  %v7714_v49 = vpop.f32.mrf.mxu0  ;;  %v7716_v59 = vpop.f32.mrf.mxu1 }
 0x11f   :  { %10143 = vst [vmem:[#allocation42_spill] sm:$0xff] %v7714_v49 }
 0x120   :  { %10144 = vst [vmem:[#allocation43_spill] sm:$0xff] %v7716_v59  ;;  %v7055_v59 = vld [vmem:[%s10090_s0 + $0x2e0] sm:$0xff] }
 0x125   :  { %v7718_v43 = vpop.f32.mrf.mxu2  ;;  %v7720_v37 = vpop.f32.mrf.mxu3 }
 0x126   :  { %10145 = vst [vmem:[#allocation44_spill] sm:$0xff] %v7718_v43  ;;  %v7725_v63 = vpop.f32.mrf.mxu0  ;;  %v7727_v19 = vpop.f32.mrf.mxu1 }
 0x127   :  { %10146 = vst [vmem:[#allocation45_spill] sm:$0xff] %v7720_v37 }
 0x128   :  { %10147 = vst [vmem:[#allocation46_spill] sm:$0xff] %v7725_v63 }
 0x129   :  { %10148 = vst [vmem:[#allocation47_spill] sm:$0xff] %v7727_v19  ;;  %6471 = vmatmul.msk.bf16.gmra.mxu0 %vm732_vm0, %v6981_v3  ;;  %v6982_v3 = vld [vmem:[%s10090_s0 + $0x98] sm:$0xff] }
 0x12a   :  { %6523 = vmatmul.msk.bf16.gmra.mxu2 %vm732_vm0, %v7033_v58  ;;  %6545 = vmatmul.msk.bf16.gmra.mxu3 %vm732_vm0, %v7055_v59  ;;  %v7034_v59 = vld [vmem:[%s10090_s0 + $0x238] sm:$0xff] }
 0x12d   :  { %v7738_v37 = vpop.f32.mrf.mxu2  ;;  %v7740_v43 = vpop.f32.mrf.mxu3 }
 0x12e   :  { %10149 = vst [vmem:[#allocation48_spill] sm:$0xff] %v7740_v43  ;;  %v7742_v63 = vpop.f32.mrf.mxu0  ;;  %v7744_v19 = vpop.f32.mrf.mxu1 }
 0x12f   :  { %10150 = vst [vmem:[#allocation49_spill] sm:$0xff] %v7742_v63 }
 0x130   :  { %10151 = vst [vmem:[#allocation50_spill] sm:$0xff] %v7744_v19  ;;  %v7056_v19 = vld [vmem:[%s10090_s0 + $0x2e8] sm:$0xff] }
 0x135   :  { %v7746_v49 = vpop.f32.mrf.mxu2  ;;  %v7748_v55 = vpop.f32.mrf.mxu3 }
 0x136   :  { %10152 = vst [vmem:[#allocation51_spill] sm:$0xff] %v7748_v55  ;;  %v7753_v6 = vpop.f32.mrf.mxu0  ;;  %v7755_v58 = vpop.f32.mrf.mxu1  ;;  %v7777_v55 = vld [vmem:[%s10092_s2] ss:$0 sm:$0xff] }
 0x137   :  { %10153 = vst [vmem:[#allocation52_spill] sm:$0xff] %v7753_v6  ;;  %v1033_v47 = vadd.f32 %v7777_v55, %v7436_v42 }
 0x138   :  { %10154 = vst [vmem:[#allocation53_spill] sm:$0xff] %v7755_v58 }
 0x139   :  { %6472 = vmatmul.msk.bf16.gmra.mxu0 %vm732_vm0, %v6982_v3  ;;  %v1031_v3 = vadd.f32 %v7777_v55, %v7418_v36  ;;  %v7057_v36 = vld [vmem:[%s10090_s0 + $0x2f0] sm:$0xff] }
 0x13a   :  { %6524 = vmatmul.msk.bf16.gmra.mxu2 %vm732_vm0, %v7034_v59  ;;  %6546 = vmatmul.msk.bf16.gmra.mxu3 %vm732_vm0, %v7056_v19  ;;  %v1331_v59 = vadd.f32 %v7777_v55, %v1330_v33 }
 0x13b   :  { %v1510_v21 = vmax.f32 %v1031_v3, 0.0 }
 0x13d   :  { %v7766_v63 = vpop.f32.mrf.mxu2  ;;  %v7768_v30 = vpop.f32.mrf.mxu3 }
 0x13e   :  { %10155 = vst [vmem:[#allocation54_spill] sm:$0xff] %v7768_v30  ;;  %v7770_v6 = vpop.f32.mrf.mxu0  ;;  %v7772_v58 = vpop.f32.mrf.mxu1 }
 0x13f   :  { %10156 = vst [vmem:[#allocation55_spill] sm:$0xff] %v7770_v6  ;;  %v6983_v6 = vld [vmem:[%s10090_s0 + $0xa0] sm:$0xff] }
 0x140   :  { %10157 = vst [vmem:[#allocation56_spill] sm:$0xff] %v7772_v58 }
 0x145   :  { %v7782_v9 = vpop.f32.mrf.mxu2  ;;  %v7784_v19 = vpop.f32.mrf.mxu3 }
 0x146   :  { %10158 = vst [vmem:[#allocation57_spill] sm:$0xff] %v7784_v19  ;;  %v1090_v30 = vpop.f32.mrf.mxu0  ;;  %v1270_v58 = vpop.f32.mrf.mxu1  ;;  %v1630_v19 = vmax.f32 %v1331_v59, 0.0  ;;  %v1511_v59 = vmax.f32 %v1033_v47, 0.0  ;;  %v7036_v47 = vld [vmem:[%s10090_s0 + $0x248] sm:$0xff] }
 0x147   :  { %v1091_v33 = vadd.f32 %v7777_v55, %v1090_v30  ;;  %v1271_v22 = vadd.f32 %v7777_v55, %v1270_v58 }
 0x149   :  { %v1534_v43 = vmax.f32 %v1091_v33, 0.0  ;;  %v1606_v27 = vmax.f32 %v1271_v22, 0.0  ;;  %6473 = vmatmul.msk.bf16.gmra.mxu0 %vm732_vm0, %v6983_v6 }
 0x14a   :  { %6525 = vmatmul.msk.bf16.gmra.mxu2 %vm732_vm0, %v7035_v15  ;;  %6547 = vmatmul.msk.bf16.gmra.mxu3 %vm732_vm0, %v7057_v36  ;;  %v1336_v15 = vadd.f32 %v7777_v55, %v7710_v61 }
 0x14b   :  { %v7800_v10 = vmax.f32 %v1510_v21, %v1534_v43  ;;  %v7802_v31 = vmax.f32 %v1606_v27, %v1630_v19  ;;  %v1036_v43 = vadd.f32 %v7777_v55, %v7450_v48  ;;  %v6984_v27 = vld [vmem:[%s10090_s0 + $0xa8] sm:$0xff]  ;;  %v7058_v48 = vld [vmem:[%s10090_s0 + $0x2f8] sm:$0xff] }
 0x14d   :  { %10159 = vst [vmem:[#allocation58_spill] sm:$0xff] %v7800_v10  ;;  %v1350_v30 = vpop.f32.mrf.mxu2  ;;  %v1460_v50 = vpop.f32.mrf.mxu3 }
 0x14e   :  { %10160 = vst [vmem:[#allocation59_spill] sm:$0xff] %v7802_v31  ;;  %v1092_v58 = vpop.f32.mrf.mxu0  ;;  %v7806_v3 = vpop.f32.mrf.mxu1 }
 0x14f   :  { %10161 = vst [vmem:[#allocation60_spill] sm:$0xff] %v7806_v3  ;;  %v1093_v22 = vadd.f32 %v7777_v55, %v1092_v58  ;;  %v1038_v3 = vadd.f32 %v7777_v55, %v7468_v54  ;;  %v1041_v54 = vadd.f32 %v7777_v55, %v7482_v60 }
 0x151   :  { %v1535_v6 = vmax.f32 %v1093_v22, 0.0  ;;  %v1512_v22 = vmax.f32 %v1036_v43, 0.0  ;;  %v1514_v60 = vmax.f32 %v1041_v54, 0.0  ;;  %v1411_v54 = vadd.f32 %v7777_v55, %v7498_v1 }
 0x153   :  { %v7809_v33 = vmax.f32 %v1511_v59, %v1535_v6  ;;  %v1632_v59 = vmax.f32 %v1336_v15, 0.0 }
 0x155   :  { %10162 = vst [vmem:[#allocation61_spill] sm:$0xff] %v7809_v33  ;;  %v7815_v21 = vpop.f32.mrf.mxu2  ;;  %v1462_v42 = vpop.f32.mrf.mxu3 }
 0x156   :  { %v1095_v19 = vpop.f32.mrf.mxu0  ;;  %v1275_v36 = vpop.f32.mrf.mxu1  ;;  %v1463_v7 = vadd.f32 %v7777_v55, %v1462_v42 }
 0x157   :  { %v1096_v58 = vadd.f32 %v7777_v55, %v1095_v19  ;;  %v1276_v61 = vadd.f32 %v7777_v55, %v1275_v36 }
 0x159   :  { %v1536_v6 = vmax.f32 %v1096_v58, 0.0  ;;  %v1608_v33 = vmax.f32 %v1276_v61, 0.0  ;;  %6474 = vmatmul.msk.bf16.gmra.mxu0 %vm732_vm0, %v6984_v27  ;;  %v1513_v27 = vmax.f32 %v1038_v3, 0.0  ;;  %v6985_v3 = vld [vmem:[%s10090_s0 + $0xb0] sm:$0xff] }
 0x15a   :  { %6526 = vmatmul.msk.bf16.gmra.mxu2 %vm732_vm0, %v7036_v47  ;;  %6548 = vmatmul.msk.bf16.gmra.mxu3 %vm732_vm0, %v7058_v48  ;;  %v1461_v47 = vadd.f32 %v7777_v55, %v1460_v50 }
 0x15b   :  { %v7831_v10 = vmax.f32 %v1512_v22, %v1536_v6  ;;  %v7833_v31 = vmax.f32 %v1608_v33, %v1632_v59  ;;  %v1401_v33 = vadd.f32 %v7777_v55, %v7434_v41  ;;  %v1341_v22 = vadd.f32 %v7777_v55, %v7738_v37 }
 0x15d   :  { %10163 = vst [vmem:[#allocation62_spill] sm:$0xff] %v7831_v10  ;;  %v7837_v19 = vpop.f32.mrf.mxu2  ;;  %v1465_v36 = vpop.f32.mrf.mxu3 }
 0x15e   :  { %10164 = vst [vmem:[#allocation63_spill] sm:$0xff] %v7833_v31  ;;  %v1097_v43 = vpop.f32.mrf.mxu0  ;;  %v7839_v15 = vpop.f32.mrf.mxu1  ;;  %v1291_v31 = vadd.f32 %v7777_v55, %v7432_v40  ;;  %v1343_v40 = vadd.f32 %v7777_v55, %v7746_v49  ;;  %v1293_v49 = vadd.f32 %v7777_v55, %v7440_v44  ;;  %v1406_v44 = vadd.f32 %v7777_v55, %v7466_v53 }
 0x15f   :  { %10165 = vst [vmem:[#allocation64_spill] sm:$0xff] %v7839_v15  ;;  %v1098_v58 = vadd.f32 %v7777_v55, %v1097_v43  ;;  %v1351_v15 = vadd.f32 %v7777_v55, %v1350_v30 }
 0x161   :  { %v1537_v61 = vmax.f32 %v1098_v58, 0.0  ;;  %v1682_v58 = vmax.f32 %v1461_v47, 0.0 }
 0x163   :  { %v7843_v48 = vmax.f32 %v1513_v27, %v1537_v61  ;;  %v1658_v61 = vmax.f32 %v1401_v33, 0.0  ;;  %v1403_v33 = vadd.f32 %v7777_v55, %v7442_v45  ;;  %v1614_v45 = vmax.f32 %v1291_v31, 0.0 }
 0x165   :  { %10166 = vst [vmem:[#allocation65_spill] sm:$0xff] %v7843_v48  ;;  %v7851_v59 = vpop.f32.mrf.mxu2  ;;  %v7853_v6 = vpop.f32.mrf.mxu3  ;;  %v1634_v48 = vmax.f32 %v1341_v22, 0.0  ;;  %v1778_v35 = vmax.f32 %v1658_v61, %v1682_v58  ;;  %v1043_v22 = vadd.f32 %v7777_v55, %v7500_v2 }
 0x166   :  { %v1100_v50 = vpop.f32.mrf.mxu0  ;;  %v1280_v43 = vpop.f32.mrf.mxu1 }
 0x167   :  { %v1101_v27 = vadd.f32 %v7777_v55, %v1100_v50  ;;  %v1281_v41 = vadd.f32 %v7777_v55, %v1280_v43 }
 0x169   :  { %v1538_v10 = vmax.f32 %v1101_v27, 0.0  ;;  %v1610_v37 = vmax.f32 %v1281_v41, 0.0  ;;  %6475 = vmatmul.msk.bf16.gmra.mxu0 %vm732_vm0, %v6985_v3  ;;  %v1683_v27 = vmax.f32 %v1463_v7, 0.0  ;;  %v1662_v41 = vmax.f32 %v1411_v54, 0.0 }
 0x16a   :  { %v1353_v7 = vadd.f32 %v7777_v55, %v7815_v21  ;;  %v1346_v21 = vadd.f32 %v7777_v55, %v7766_v63 }
 0x16b   :  { %v7865_v47 = vmax.f32 %v1514_v60, %v1538_v10  ;;  %v1730_v50 = vmax.f32 %v1610_v37, %v1634_v48  ;;  %v1638_v10 = vmax.f32 %v1351_v15, 0.0  ;;  %v1515_v60 = vmax.f32 %v1043_v22, 0.0 }
 0x16c   :  { %v1635_v15 = vmax.f32 %v1343_v40, 0.0  ;;  %v1615_v22 = vmax.f32 %v1293_v49, 0.0  ;;  %v1046_v40 = vadd.f32 %v7777_v55, %v7514_v8 }
 0x16d   :  { %10167 = vst [vmem:[#allocation66_spill] sm:$0xff] %v7865_v47  ;;  %v1826_v30 = vmax.f32 %v1730_v50, %v1778_v35  ;;  %v7875_v3 = vpop.f32.mrf.mxu2  ;;  %v1470_v42 = vpop.f32.mrf.mxu3  ;;  %v1659_v35 = vmax.f32 %v1403_v33, 0.0  ;;  %v1413_v33 = vadd.f32 %v7777_v55, %v7506_v5 }
 0x16e   :  { %v1471_v48 = vadd.f32 %v7777_v55, %v1470_v42  ;;  %v1102_v43 = vpop.f32.mrf.mxu0  ;;  %v1282_v58 = vpop.f32.mrf.mxu1  ;;  %v1734_v42 = vmax.f32 %v1614_v45, %v1638_v10  ;;  %v1639_v45 = vmax.f32 %v1353_v7, 0.0 }
 0x16f   :  { %1875 = vst.msk [vmem:[#allocation2 + $0xe0] sm:$0xff] %vm1846_vm1, %v1826_v30  ;;  %v1103_v1 = vadd.f32 %v7777_v55, %v1102_v43  ;;  %v1283_v2 = vadd.f32 %v7777_v55, %v1282_v58  ;;  %v1779_v30 = vmax.f32 %v1659_v35, %v1683_v27  ;;  %v1466_v43 = vadd.f32 %v7777_v55, %v1465_v36 }
 0x170   :  { %v1686_v61 = vmax.f32 %v1471_v48, 0.0 }
 0x171   :  { %v1539_v37 = vmax.f32 %v1103_v1, 0.0  ;;  %v1611_v50 = vmax.f32 %v1283_v2, 0.0  ;;  %v6986_v2 = vld [vmem:[%s10090_s0 + $0xb8] sm:$0xff]  ;;  %v1684_v8 = vmax.f32 %v1466_v43, 0.0 }
 0x172   :  { %v1782_v31 = vmax.f32 %v1662_v41, %v1686_v61  ;;  %v1296_v41 = vadd.f32 %v7777_v55, %v7464_v52  ;;  %v1660_v61 = vmax.f32 %v1406_v44, 0.0  ;;  %v1468_v52 = vadd.f32 %v7777_v55, %v7853_v6 }
 0x173   :  { %v7886_v47 = vmax.f32 %v1515_v60, %v1539_v37  ;;  %v1731_v58 = vmax.f32 %v1611_v50, %v1635_v15  ;;  %v1663_v60 = vmax.f32 %v1413_v33, 0.0  ;;  %v1516_v37 = vmax.f32 %v1046_v40, 0.0 }
 0x174   :  { %v1830_v54 = vmax.f32 %v1734_v42, %v1782_v31  ;;  %v1636_v50 = vmax.f32 %v1346_v21, 0.0  ;;  %v1735_v31 = vmax.f32 %v1615_v22, %v1639_v45  ;;  %v1416_v40 = vadd.f32 %v7777_v55, %v7530_v13 }
 0x175   :  { %v1827_v10 = vmax.f32 %v1731_v58, %v1779_v30  ;;  %v7896_v48 = vpop.f32.mrf.mxu2  ;;  %v1472_v36 = vpop.f32.mrf.mxu3  ;;  %v1356_v30 = vadd.f32 %v7777_v55, %v7837_v19  ;;  %v1780_v58 = vmax.f32 %v1660_v61, %v1684_v8  ;;  %v1616_v21 = vmax.f32 %v1296_v41, 0.0 }
 0x176   :  { %1879 = vst.msk [vmem:[#allocation2 + $0x100] sm:$0xff] %vm1846_vm1, %v1830_v54  ;;  %v1473_v53 = vadd.f32 %v7777_v55, %v1472_v36  ;;  %v1105_v27 = vpop.f32.mrf.mxu0  ;;  %v1285_v1 = vpop.f32.mrf.mxu1  ;;  %v2905_v5 = vld [vmem:[#allocation2 + $0xe0] sm:$0xff]  ;;  %v1408_v54 = vadd.f32 %v7777_v55, %v7474_v57  ;;  %v1048_v19 = vadd.f32 %v7777_v55, %v7532_v14  ;;  %v1348_v6 = vadd.f32 %v7777_v55, %v7782_v9 }
 0x177   :  { %1876 = vst.msk [vmem:[#allocation2 + $0xe8] sm:$0xff] %vm1846_vm1, %v1827_v10  ;;  %v1106_v63 = vadd.f32 %v7777_v55, %v1105_v27  ;;  %v1286_v49 = vadd.f32 %v7777_v55, %v1285_v1  ;;  %v2921_v35 = vpack.c.bf16 %v2905_v5, %v2905_v5  ;;  %v1640_v1 = vmax.f32 %v1356_v30, 0.0 }
 0x178   :  { %v1687_v15 = vmax.f32 %v1473_v53, 0.0  ;;  %v1685_v5 = vmax.f32 %v1468_v52, 0.0  ;;  %v1661_v61 = vmax.f32 %v1408_v54, 0.0  ;;  %v1358_v52 = vadd.f32 %v7777_v55, %v7851_v59 }
 0x179   :  { %v1540_v42 = vmax.f32 %v1106_v63, 0.0  ;;  %v1612_v7 = vmax.f32 %v1286_v49, 0.0  ;;  %2961 = vrot.lane.b32.xlu1 %v2921_v35, %s7210_s30  ;;  %2463 = vrot.lane.b32.xlu2 %v2921_v35, %s7211_s12  ;;  %1938 = vst.msk [vmem:[#allocation3 + $0xa0] sm:$0xf] %vm1927_vm2, %v2921_v35  ;;  %v1736_v30 = vmax.f32 %v1616_v21, %v1640_v1  ;;  %v1418_v21 = vadd.f32 %v7777_v55, %v7538_v17  ;;  %v6987_v17 = vld [vmem:[%s10090_s0 + $0xc0] sm:$0xff] }
 0x17a   :  { %v1783_v43 = vmax.f32 %v1663_v60, %v1687_v15  ;;  %6476 = vmatmul.msk.bf16.gmra.mxu0 %vm732_vm0, %v6986_v2  ;;  %v1664_v60 = vmax.f32 %v1416_v40, 0.0  ;;  %v1641_v1 = vmax.f32 %v1358_v52, 0.0  ;;  %v1301_v52 = vadd.f32 %v7777_v55, %v7496_v0 }
 0x17b   :  { %v7916_v44 = vmax.f32 %v1516_v37, %v1540_v42  ;;  %v1732_v33 = vmax.f32 %v1612_v7, %v1636_v50  ;;  %v1517_v50 = vmax.f32 %v1048_v19, 0.0  ;;  %v1637_v42 = vmax.f32 %v1348_v6, 0.0 }
 0x17c   :  { %v1831_v22 = vmax.f32 %v1735_v31, %v1783_v43  ;;  %v1051_v19 = vadd.f32 %v7777_v55, %v7546_v20 }
 0x17d   :  { %v1828_v10 = vmax.f32 %v1732_v33, %v1780_v58  ;;  %v7926_v36 = vpop.f32.mrf.mxu2  ;;  %v1475_v45 = vpop.f32.mrf.mxu3  ;;  %v2408_v53 = vld [vmem:[#allocation2 + $0x100] sm:$0xff]  ;;  %v1781_v58 = vmax.f32 %v1661_v61, %v1685_v5  ;;  %v1665_v61 = vmax.f32 %v1418_v21, 0.0 }
 0x17e   :  { %v1907_v27 = vld [vmem:[#allocation2 + $0x100] sm:$0xff]  ;;  %1880 = vst.msk [vmem:[#allocation2 + $0x108] sm:$0xff] %vm1846_vm1, %v1831_v22  ;;  %v1476_v57 = vadd.f32 %v7777_v55, %v1475_v45  ;;  %v1107_v13 = vpop.f32.mrf.mxu0  ;;  %v1287_v2 = vpop.f32.mrf.mxu1  ;;  %v7933_v49 = vpack.c.bf16 %v2408_v53, %v2408_v53  ;;  %v1298_v22 = vadd.f32 %v7777_v55, %v7472_v56 }
 0x17f   :  { %v2632_v8 = vld [vmem:[#allocation2 + $0xe2] sm:$0xff]  ;;  %v1923_v63 = vpack.c.bf16 %v1907_v27, %v1907_v27  ;;  %1877 = vst.msk [vmem:[#allocation2 + $0xf0] sm:$0xff] %vm1846_vm1, %v1828_v10  ;;  %v1108_v9 = vadd.f32 %v7777_v55, %v1107_v13  ;;  %v1288_v14 = vadd.f32 %v7777_v55, %v1287_v2 }
 0x180   :  { %v7935_v35 = vpack.c.bf16 %v2632_v8, %v2632_v8  ;;  %v2180_v41 = vld [vmem:[#allocation2 + $0xe3] sm:$0xff]  ;;  %v1688_v15 = vmax.f32 %v1476_v57, 0.0 }
 0x181   :  { %v7937_v37 = vpack.c.bf16 %v2180_v41, %v2180_v41  ;;  %1940 = vst.msk [vmem:[#allocation3 + $0xc0] sm:$0xf] %vm1927_vm2, %v1923_v63  ;;  %v1541_v7 = vmax.f32 %v1108_v9, 0.0  ;;  %v1613_v31 = vmax.f32 %v1288_v14, 0.0  ;;  %2467 = vrot.lane.b32.xlu1 %v7933_v49, %s7211_s12  ;;  %4019 = vrot.lane.b32.xlu2 %v7933_v49, %s7213_s14  ;;  %v2519_v40 = vld [vmem:[#allocation2 + $0xe1] sm:$0xff]  ;;  %v1617_v41 = vmax.f32 %v1298_v22, 0.0 }
 0x182   :  { %2689 = vrot.lane.b32.xlu0 %v7935_v35, %s7212_s13  ;;  %v1784_v43 = vmax.f32 %v1664_v60, %v1688_v15  ;;  %v7964_v13 = vpack.c.bf16 %v2519_v40, %v2519_v40  ;;  %v1518_v15 = vmax.f32 %v1051_v19, 0.0 }
 0x183   :  { %2777 = vst.msk [vmem:[#allocation3 + $0x94] sm:$0xf] %vm1927_vm2, %v7937_v37  ;;  %v7950_v33 = vmax.f32 %v1517_v50, %v1541_v7  ;;  %v1733_v54 = vmax.f32 %v1613_v31, %v1637_v42  ;;  %v1737_v42 = vmax.f32 %v1617_v41, %v1641_v1  ;;  %v1361_v7 = vadd.f32 %v7777_v55, %v7875_v3 }
 0x184   :  { %v1832_v59 = vmax.f32 %v1736_v30, %v1784_v43  ;;  %v1421_v3 = vadd.f32 %v7777_v55, %v7562_v25  ;;  %v1363_v41 = vadd.f32 %v7777_v55, %v7896_v48 }
 0x185   :  { %v4411_v6 = vld [vmem:[#allocation2 + $0x104] sm:$0xff]  ;;  %v1829_v10 = vmax.f32 %v1733_v54, %v1781_v58  ;;  %v7958_v45 = vpop.f32.mrf.mxu2  ;;  %v1477_v53 = vpop.f32.mrf.mxu3  ;;  %v1053_v54 = vadd.f32 %v7777_v55, %v7564_v26  ;;  %v1618_v26 = vmax.f32 %v1301_v52, 0.0 }
 0x186   :  { %v2521_v27 = vld [vmem:[#allocation2 + $0x101] sm:$0xff]  ;;  %v7960_v5 = vpack.c.bf16 %v4411_v6, %v4411_v6  ;;  %1881 = vst.msk [vmem:[#allocation2 + $0x110] sm:$0xff] %vm1846_vm1, %v1832_v59  ;;  %v1478_v56 = vadd.f32 %v7777_v55, %v1477_v53  ;;  %v1110_v57 = vpop.f32.mrf.mxu0  ;;  %v2906_v2 = vld [vmem:[#allocation2 + $0xf0] sm:$0xff]  ;;  %v1642_v59 = vmax.f32 %v1361_v7, 0.0  ;;  %v1056_v7 = vadd.f32 %v7777_v55, %v7578_v32 }
 0x187   :  { %v2182_v20 = vld [vmem:[#allocation2 + $0x103] sm:$0xff]  ;;  %1878 = vst.msk [vmem:[#allocation2 + $0xf8] sm:$0xff] %vm1846_vm1, %v1829_v10  ;;  %v1111_v8 = vadd.f32 %v7777_v55, %v1110_v57  ;;  %v7971_v63 = vpack.c.bf16 %v2521_v27, %v2521_v27  ;;  %v7975_v14 = vpack.c.bf16 %v2906_v2, %v2906_v2 }
 0x188   :  { %v7973_v9 = vpack.c.bf16 %v2182_v20, %v2182_v20  ;;  %v1689_v60 = vmax.f32 %v1478_v56, 0.0  ;;  %4443 = vst.msk [vmem:[#allocation3 + $0x8c] sm:$0xf] %vm1927_vm2, %v7960_v5  ;;  %v2793_v58 = vld [vmem:[#allocation2 + $0xe4] sm:$0xff]  ;;  %v1666_v56 = vmax.f32 %v1421_v3, 0.0  ;;  %v1519_v20 = vmax.f32 %v1053_v54, 0.0 }
 0x189   :  { %v1542_v50 = vmax.f32 %v1111_v8, 0.0  ;;  %2576 = vrot.lane.b32.xlu1 %v7964_v13, %s7214_s17  ;;  %1939 = vst.msk [vmem:[#allocation3 + $0xb0] sm:$0xf] %vm1927_vm2, %v7975_v14  ;;  %3524 = vrot.lane.b32.xlu2 %v7933_v49, %s7212_s13  ;;  %v8007_v25 = vpack.c.bf16 %v2793_v58, %v2793_v58  ;;  %v1738_v8 = vmax.f32 %v1618_v26, %v1642_v59 }
 0x18a   :  { %2125 = vrot.lane.b32.xlu0 %v7935_v35, %s7210_s30  ;;  %v1785_v31 = vmax.f32 %v1665_v61, %v1689_v60  ;;  %6477 = vmatmul.msk.bf16.gmra.mxu0 %vm732_vm0, %v6987_v17  ;;  %3611 = vst.msk [vmem:[#allocation3 + $0x98] sm:$0xf] %vm1927_vm2, %v7971_v63 }
 0x18b   :  { %v7992_v30 = vmax.f32 %v1518_v15, %v1542_v50  ;;  %2779 = vst.msk [vmem:[#allocation3 + $0xb4] sm:$0xf] %vm1927_vm2, %v7973_v9  ;;  %v1303_v15 = vadd.f32 %v7777_v55, %v7504_v4  ;;  %v1423_v50 = vadd.f32 %v7777_v55, %v7570_v29  ;;  %v6988_v4 = vld [vmem:[%s10090_s0 + $0xc8] sm:$0xff] }
 0x18c   :  { %v1833_v43 = vmax.f32 %v1737_v42, %v1785_v31 }
 0x18d   :  { %v8002_v40 = vpop.f32.mrf.mxu2  ;;  %v1480_v22 = vpop.f32.mrf.mxu3  ;;  %v1908_v21 = vld [vmem:[#allocation2 + $0x110] sm:$0xff]  ;;  %v1667_v59 = vmax.f32 %v1423_v50, 0.0 }
 0x18e   :  { %1882 = vst.msk [vmem:[#allocation2 + $0x118] sm:$0xff] %vm1846_vm1, %v1833_v43  ;;  %v1481_v19 = vadd.f32 %v7777_v55, %v1480_v22  ;;  %v1112_v6 = vpop.f32.mrf.mxu0  ;;  %v1955_v10 = vld [vmem:[#allocation2 + $0xf1] sm:$0xff]  ;;  %v1924_v0 = vpack.c.bf16 %v1908_v21, %v1908_v21  ;;  %v1619_v21 = vmax.f32 %v1303_v15, 0.0 }
 0x18f   :  { %v1113_v53 = vadd.f32 %v7777_v55, %v1112_v6  ;;  %v8009_v27 = vpack.c.bf16 %v1955_v10, %v1955_v10  ;;  %v2181_v1 = vld [vmem:[#allocation2 + $0xf3] sm:$0xff]  ;;  %v1520_v6 = vmax.f32 %v1056_v7, 0.0 }
 0x190   :  { %v1690_v57 = vmax.f32 %v1481_v19, 0.0  ;;  %v8011_v17 = vpack.c.bf16 %v2181_v1, %v2181_v1  ;;  %1941 = vst.msk [vmem:[#allocation3 + $0xd0] sm:$0xf] %vm1927_vm2, %v1924_v0  ;;  %v1366_v1 = vadd.f32 %v7777_v55, %v7926_v36  ;;  %v1058_v36 = vadd.f32 %v7777_v55, %v7596_v46 }
 0x191   :  { %v1543_v2 = vmax.f32 %v1113_v53, 0.0  ;;  %2012 = vrot.lane.b32.xlu1 %v7964_v13, %s7215_s18  ;;  %3610 = vst.msk [vmem:[#allocation3 + $0x88] sm:$0xf] %vm1927_vm2, %v8009_v27  ;;  %2965 = vrot.lane.b32.xlu2 %v7933_v49, %s7210_s30  ;;  %v1643_v49 = vmax.f32 %v1363_v41, 0.0 }
 0x192   :  { %2850 = vrot.lane.b32.xlu0 %v8007_v25, %s7215_s18  ;;  %v1786_v61 = vmax.f32 %v1666_v56, %v1690_v57  ;;  %2778 = vst.msk [vmem:[#allocation3 + $0xa4] sm:$0xf] %vm1927_vm2, %v8011_v17  ;;  %v1426_v57 = vadd.f32 %v7777_v55, %v7594_v39  ;;  %v1521_v46 = vmax.f32 %v1058_v36, 0.0 }
 0x193   :  { %v8026_v60 = vmax.f32 %v1519_v20, %v1543_v2  ;;  %v1739_v53 = vmax.f32 %v1619_v21, %v1643_v49 }
 0x194   :  { %v1834_v42 = vmax.f32 %v1738_v8, %v1786_v61  ;;  %v1644_v61 = vmax.f32 %v1366_v1, 0.0  ;;  %v1668_v39 = vmax.f32 %v1426_v57, 0.0 }
 0x195   :  { %v4412_v48 = vld [vmem:[#allocation2 + $0x114] sm:$0xff]  ;;  %v8034_v31 = vpop.f32.mrf.mxu2  ;;  %v1482_v52 = vpop.f32.mrf.mxu3 }
 0x196   :  { %v8036_v3 = vpack.c.bf16 %v4412_v48, %v4412_v48  ;;  %1883 = vst.msk [vmem:[#allocation2 + $0x120] sm:$0xff] %vm1846_vm1, %v1834_v42  ;;  %v1483_v43 = vadd.f32 %v7777_v55, %v1482_v52  ;;  %v1115_v58 = vpop.f32.mrf.mxu0  ;;  %v3020_v29 = vld [vmem:[#allocation2 + $0x111] sm:$0xff] }
 0x197   :  { %v1116_v54 = vadd.f32 %v7777_v55, %v1115_v58  ;;  %v8044_v32 = vpack.c.bf16 %v3020_v29, %v3020_v29  ;;  %v2748_v22 = vld [vmem:[#allocation2 + $0x113] sm:$0xff] }
 0x198   :  { %v1691_v19 = vmax.f32 %v1483_v43, 0.0  ;;  %4444 = vst.msk [vmem:[#allocation3 + $0x9c] sm:$0xf] %vm1927_vm2, %v8036_v3  ;;  %v2764_v0 = vpack.c.bf16 %v2748_v22, %v2748_v22  ;;  %v1368_v43 = vadd.f32 %v7777_v55, %v7958_v45 }
 0x199   :  { %v1544_v10 = vmax.f32 %v1116_v54, 0.0  ;;  %2351 = vrot.lane.b32.xlu1 %v8007_v25, %s7213_s14  ;;  %3612 = vst.msk [vmem:[#allocation3 + $0xa8] sm:$0xf] %vm1927_vm2, %v8044_v32  ;;  %2238 = vrot.lane.b32.xlu2 %v7937_v37, %s7216_s21  ;;  %v1428_v54 = vadd.f32 %v7777_v55, %v7602_v51  ;;  %v6989_v51 = vld [vmem:[%s10090_s0 + $0xd0] sm:$0xff] }
 0x19a   :  { %3073 = vrot.lane.b32.xlu0 %v7964_v13, %s7216_s21  ;;  %v1787_v26 = vmax.f32 %v1667_v59, %v1691_v19  ;;  %6478 = vmatmul.msk.bf16.gmra.mxu0 %vm732_vm0, %v6988_v4  ;;  %2780 = vst.msk [vmem:[#allocation3 + $0xc4] sm:$0xf] %vm1927_vm2, %v2764_v0  ;;  %v1306_v13 = vadd.f32 %v7777_v55, %v7528_v12  ;;  %v2634_v59 = vld [vmem:[#allocation2 + $0x102] sm:$0xff]  ;;  %v1645_v19 = vmax.f32 %v1368_v43, 0.0 }
 0x19b   :  { %v8059_v56 = vmax.f32 %v1520_v6, %v1544_v10  ;;  %v1308_v4 = vadd.f32 %v7777_v55, %v7536_v16  ;;  %v1669_v1 = vmax.f32 %v1428_v54, 0.0 }
 0x19c   :  { %v1835_v20 = vmax.f32 %v1739_v53, %v1787_v26  ;;  %v1620_v7 = vmax.f32 %v1306_v13, 0.0  ;;  %v8103_v13 = vpack.c.bf16 %v2634_v59, %v2634_v59 }
 0x19d   :  { %v8068_v2 = vpop.f32.mrf.mxu2  ;;  %v1485_v8 = vpop.f32.mrf.mxu3  ;;  %v2410_v41 = vld [vmem:[#allocation2 + $0x120] sm:$0xff]  ;;  %v1621_v10 = vmax.f32 %v1308_v4, 0.0 }
 0x19e   :  { %1884 = vst.msk [vmem:[#allocation2 + $0x128] sm:$0xff] %vm1846_vm1, %v1835_v20  ;;  %v1486_v15 = vadd.f32 %v7777_v55, %v1485_v8  ;;  %v1117_v50 = vpop.f32.mrf.mxu0  ;;  %v8072_v42 = vpack.c.bf16 %v2410_v41, %v2410_v41  ;;  %v1740_v49 = vmax.f32 %v1620_v7, %v1644_v61  ;;  %v1371_v61 = vadd.f32 %v7777_v55, %v8002_v40 }
 0x19f   :  { %v1118_v12 = vadd.f32 %v7777_v55, %v1117_v50  ;;  %v1741_v41 = vmax.f32 %v1621_v10, %v1645_v19  ;;  %v1431_v7 = vadd.f32 %v7777_v55, %v7626_v11  ;;  %v1066_v10 = vadd.f32 %v7777_v55, %v7642_v34 }
 0x1a0   :  { %v1692_v48 = vmax.f32 %v1486_v15, 0.0  ;;  %1942 = vst.msk [vmem:[#allocation3 + $0xe0] sm:$0xf] %vm1927_vm2, %v8072_v42 }
 0x1a1   :  { %v1545_v52 = vmax.f32 %v1118_v12, 0.0  ;;  %3185 = vrot.lane.b32.xlu1 %v7935_v35, %s7213_s14  ;;  %3297 = vrot.lane.b32.xlu2 %v7937_v37, %s7211_s12  ;;  %v1061_v35 = vadd.f32 %v7777_v55, %v7610_v62  ;;  %v1311_v12 = vadd.f32 %v7777_v55, %v7560_v24  ;;  %v1670_v11 = vmax.f32 %v1431_v7, 0.0 }
 0x1a2   :  { %3409 = vrot.lane.b32.xlu0 %v8007_v25, %s7214_s17  ;;  %v1788_v58 = vmax.f32 %v1668_v39, %v1692_v48  ;;  %v1063_v39 = vadd.f32 %v7777_v55, %v7628_v18  ;;  %v1524_v7 = vmax.f32 %v1066_v10, 0.0 }
 0x1a3   :  { %v8087_v29 = vmax.f32 %v1521_v46, %v1545_v52  ;;  %v1522_v20 = vmax.f32 %v1061_v35, 0.0  ;;  %v1622_v54 = vmax.f32 %v1311_v12, 0.0 }
 0x1a4   :  { %v1836_v25 = vmax.f32 %v1740_v49, %v1788_v58  ;;  %v1646_v49 = vmax.f32 %v1371_v61, 0.0  ;;  %v1523_v18 = vmax.f32 %v1063_v39, 0.0 }
 0x1a5   :  { %v4413_v22 = vld [vmem:[#allocation2 + $0x124] sm:$0xff]  ;;  %v8093_v21 = vpop.f32.mrf.mxu2  ;;  %v1487_v45 = vpop.f32.mrf.mxu3 }
 0x1a6   :  { %v8095_v6 = vpack.c.bf16 %v4413_v22, %v4413_v22  ;;  %1885 = vst.msk [vmem:[#allocation2 + $0x130] sm:$0xff] %vm1846_vm1, %v1836_v25  ;;  %v1488_v16 = vadd.f32 %v7777_v55, %v1487_v45  ;;  %v1120_v37 = vpop.f32.mrf.mxu0  ;;  %v3581_v0 = vld [vmem:[#allocation2 + $0x121] sm:$0xff]  ;;  %v1742_v22 = vmax.f32 %v1622_v54, %v1646_v49  ;;  %v1373_v45 = vadd.f32 %v7777_v55, %v8034_v31 }
 0x1a7   :  { %v1121_v62 = vadd.f32 %v7777_v55, %v1120_v37  ;;  %v2749_v53 = vld [vmem:[#allocation2 + $0x123] sm:$0xff]  ;;  %v8107_v57 = vpack.c.bf16 %v3581_v0, %v3581_v0  ;;  %v1433_v37 = vadd.f32 %v7777_v55, %v7634_v23 }
 0x1a8   :  { %v1693_v26 = vmax.f32 %v1488_v16, 0.0  ;;  %4445 = vst.msk [vmem:[#allocation3 + $0xac] sm:$0xf] %vm1927_vm2, %v8095_v6  ;;  %v2765_v8 = vpack.c.bf16 %v2749_v53, %v2749_v53  ;;  %v1313_v16 = vadd.f32 %v7777_v55, %v7568_v28  ;;  %v1647_v53 = vmax.f32 %v1373_v45, 0.0  ;;  %v6990_v28 = vld [vmem:[%s10090_s0 + $0xd8] sm:$0xff]  ;;  %v10169_v54 = vld [vmem:[#allocation28_spill] sm:$0xff] }
 0x1a9   :  { %v1546_v36 = vmax.f32 %v1121_v62, 0.0  ;;  %2242 = vrot.lane.b32.xlu1 %v7973_v9, %s7216_s21  ;;  %2693 = vrot.lane.b32.xlu2 %v8103_v13, %s7212_s13  ;;  %3613 = vst.msk [vmem:[#allocation3 + $0xb8] sm:$0xf] %vm1927_vm2, %v8107_v57  ;;  %v1671_v61 = vmax.f32 %v1433_v37, 0.0 }
 0x1aa   :  { %2580 = vrot.lane.b32.xlu0 %v7971_v63, %s7214_s17  ;;  %v1789_v15 = vmax.f32 %v1669_v1, %v1693_v26  ;;  %6479 = vmatmul.msk.bf16.gmra.mxu0 %vm732_vm0, %v6989_v51  ;;  %2781 = vst.msk [vmem:[#allocation3 + $0xd4] sm:$0xf] %vm1927_vm2, %v2765_v8 }
 0x1ab   :  { %v8120_v50 = vmax.f32 %v1522_v20, %v1546_v36 }
 0x1ac   :  { %v1837_v40 = vmax.f32 %v1741_v41, %v1789_v15  ;;  %v1623_v41 = vmax.f32 %v1313_v16, 0.0 }
 0x1ad   :  { %v8129_v48 = vpop.f32.mrf.mxu2  ;;  %v1490_v46 = vpop.f32.mrf.mxu3  ;;  %v2411_v52 = vld [vmem:[#allocation2 + $0x130] sm:$0xff] }
 0x1ae   :  { %1886 = vst.msk [vmem:[#allocation2 + $0x138] sm:$0xff] %vm1846_vm1, %v1837_v40  ;;  %v1491_v43 = vadd.f32 %v7777_v55, %v1490_v46  ;;  %v1122_v58 = vpop.f32.mrf.mxu0  ;;  %v8133_v4 = vpack.c.bf16 %v2411_v52, %v2411_v52  ;;  %v1743_v39 = vmax.f32 %v1623_v41, %v1647_v53  ;;  %v1376_v46 = vadd.f32 %v7777_v55, %v8068_v2  ;;  %v10170_v53 = vld [vmem:[#allocation20_spill] sm:$0xff] }
 0x1af   :  { %v1123_v24 = vadd.f32 %v7777_v55, %v1122_v58  ;;  %v1068_v2 = vadd.f32 %v7777_v55, %v10169_v54 }
 0x1b0   :  { %v1694_v25 = vmax.f32 %v1491_v43, 0.0  ;;  %1943 = vst.msk [vmem:[#allocation3 + $0xf0] sm:$0xf] %vm1927_vm2, %v8133_v4  ;;  %v10168_v43 = vld [vmem:[#allocation27_spill] sm:$0xff] }
 0x1b1   :  { %v1547_v35 = vmax.f32 %v1123_v24, 0.0  ;;  %3796 = vrot.lane.b32.xlu1 %v7973_v9, %s7210_s30  ;;  %2129 = vrot.lane.b32.xlu2 %v8103_v13, %s7210_s30  ;;  %v1436_v58 = vadd.f32 %v7777_v55, %v10168_v43  ;;  %v1525_v37 = vmax.f32 %v1068_v2, 0.0 }
 0x1b2   :  { %2016 = vrot.lane.b32.xlu0 %v7971_v63, %s7215_s18  ;;  %v1790_v59 = vmax.f32 %v1670_v11, %v1694_v25 }
 0x1b3   :  { %v8146_v19 = vmax.f32 %v1523_v18, %v1547_v35  ;;  %v1648_v18 = vmax.f32 %v1376_v46, 0.0 }
 0x1b4   :  { %v1838_v51 = vmax.f32 %v1742_v22, %v1790_v59 }
 0x1b5   :  { %v4414_v62 = vld [vmem:[#allocation2 + $0x134] sm:$0xff]  ;;  %v8154_v0 = vpop.f32.mrf.mxu2  ;;  %v1492_v31 = vpop.f32.mrf.mxu3 }
 0x1b6   :  { %v8156_v1 = vpack.c.bf16 %v4414_v62, %v4414_v62  ;;  %1887 = vst.msk [vmem:[#allocation2 + $0x140] sm:$0xff] %vm1846_vm1, %v1838_v51  ;;  %v1493_v26 = vadd.f32 %v7777_v55, %v1492_v31  ;;  %v1125_v20 = vpop.f32.mrf.mxu0  ;;  %v4078_v23 = vld [vmem:[#allocation2 + $0x131] sm:$0xff]  ;;  %v1378_v62 = vadd.f32 %v7777_v55, %v8093_v21 }
 0x1b7   :  { %v1126_v36 = vadd.f32 %v7777_v55, %v1125_v20  ;;  %v8164_v34 = vpack.c.bf16 %v4078_v23, %v4078_v23  ;;  %v4302_v8 = vld [vmem:[#allocation2 + $0x133] sm:$0xff] }
 0x1b8   :  { %v1695_v15 = vmax.f32 %v1493_v26, 0.0  ;;  %4446 = vst.msk [vmem:[#allocation3 + $0xbc] sm:$0xf] %vm1927_vm2, %v8156_v1  ;;  %v8168_v12 = vpack.c.bf16 %v4302_v8, %v4302_v8  ;;  %v1318_v26 = vadd.f32 %v7777_v55, %v10170_v53  ;;  %v10172_v8 = vld [vmem:[#allocation32_spill] sm:$0xff] }
 0x1b9   :  { %v1548_v40 = vmax.f32 %v1126_v36, 0.0  ;;  %4355 = vrot.lane.b32.xlu1 %v7973_v9, %s7212_s13  ;;  %3614 = vst.msk [vmem:[#allocation3 + $0xc8] sm:$0xf] %vm1927_vm2, %v8164_v34  ;;  %3908 = vrot.lane.b32.xlu2 %v7960_v5, %s7216_s21  ;;  %v1316_v9 = vadd.f32 %v7777_v55, %v7592_v38  ;;  %v1672_v38 = vmax.f32 %v1436_v58, 0.0 }
 0x1ba   :  { %2355 = vrot.lane.b32.xlu0 %v7960_v5, %s7213_s14  ;;  %v1791_v52 = vmax.f32 %v1671_v61, %v1695_v15  ;;  %6480 = vmatmul.msk.bf16.gmra.mxu0 %vm732_vm0, %v6990_v28  ;;  %2782 = vst.msk [vmem:[#allocation3 + $0xe4] sm:$0xf] %vm1927_vm2, %v8168_v12  ;;  %v10171_v28 = vld [vmem:[#allocation31_spill] sm:$0xff]  ;;  %v1649_v15 = vmax.f32 %v1378_v62, 0.0 }
 0x1bb   :  { %v8183_v49 = vmax.f32 %v1524_v7, %v1548_v40  ;;  %v1624_v59 = vmax.f32 %v1316_v9, 0.0  ;;  %v1438_v23 = vadd.f32 %v7777_v55, %v10171_v28  ;;  %v10178_v62 = vld [vmem:[#allocation35_spill] sm:$0xff]  ;;  %v2409_v28 = vld [vmem:[#allocation2 + $0x110] sm:$0xff] }
 0x1bc   :  { %v1839_v24 = vmax.f32 %v1743_v39, %v1791_v52  ;;  %v6991_v39 = vld [vmem:[%s10090_s0 + $0xe0] sm:$0xff]  ;;  %v1625_v52 = vmax.f32 %v1318_v26, 0.0 }
 0x1bd   :  { %v8191_v11 = vpop.f32.mrf.mxu2  ;;  %v1495_v25 = vpop.f32.mrf.mxu3  ;;  %v1744_v10 = vmax.f32 %v1624_v59, %v1648_v18  ;;  %v1673_v58 = vmax.f32 %v1438_v23, 0.0  ;;  %v10175_v59 = vld [vmem:[#allocation22_spill] sm:$0xff] }
 0x1be   :  { %1888 = vst.msk [vmem:[#allocation2 + $0x148] sm:$0xff] %vm1846_vm1, %v1839_v24  ;;  %v1496_v35 = vadd.f32 %v7777_v55, %v1495_v25  ;;  %v1127_v22 = vpop.f32.mrf.mxu0 }
 0x1bf   :  { %v1128_v45 = vadd.f32 %v7777_v55, %v1127_v22  ;;  %v1381_v22 = vadd.f32 %v7777_v55, %v8129_v48  ;;  %v10177_v48 = vld [vmem:[#allocation48_spill] sm:$0xff] }
 0x1c0   :  { %v1696_v16 = vmax.f32 %v1496_v35, 0.0  ;;  %v1745_v35 = vmax.f32 %v1625_v52, %v1649_v15  ;;  %v8257_v52 = vld [vmem:[%s10092_s2] ss:$0 sm:$0xff] }
 0x1c1   :  { %v1549_v51 = vmax.f32 %v1128_v45, 0.0  ;;  %2854 = vrot.lane.b32.xlu1 %v7960_v5, %s7215_s18  ;;  %4243 = vrot.lane.b32.xlu2 %v8103_v13, %s7214_s17  ;;  %v1071_v5 = vadd.f32 %v7777_v55, %v10172_v8  ;;  %v1650_v23 = vmax.f32 %v1381_v22, 0.0 }
 0x1c2   :  { %3684 = vrot.lane.b32.xlu0 %v8103_v13, %s7215_s18  ;;  %v1792_v31 = vmax.f32 %v1672_v38, %v1696_v16  ;;  %v1321_v38 = vadd.f32 %v7777_v55, %v10175_v59  ;;  %v10176_v16 = vld [vmem:[#allocation34_spill] sm:$0xff] }
 0x1c3   :  { %v8206_v20 = vmax.f32 %v1525_v37, %v1549_v51  ;;  %v1526_v25 = vmax.f32 %v1071_v5, 0.0  ;;  %v1441_v37 = vadd.f32 %v7777_v55, %v10176_v16  ;;  %v1451_v51 = vadd.f32 %v7777_v55, %v10177_v48  ;;  %v10182_v16 = vld [vmem:[#allocation38_spill] sm:$0xff] }
 0x1c4   :  { %v1840_v36 = vmax.f32 %v1744_v10, %v1792_v31  ;;  %v1073_v31 = vadd.f32 %v7777_v55, %v10178_v62 }
 0x1c5   :  { %v4415_v41 = vld [vmem:[#allocation2 + $0x144] sm:$0xff]  ;;  %v8212_v61 = vpop.f32.mrf.mxu2  ;;  %v1497_v21 = vpop.f32.mrf.mxu3 }
 0x1c6   :  { %v4431_v7 = vpack.c.bf16 %v4415_v41, %v4415_v41  ;;  %1889 = vst.msk [vmem:[#allocation2 + $0x150] sm:$0xff] %vm1846_vm1, %v1840_v36  ;;  %v1498_v13 = vadd.f32 %v7777_v55, %v1497_v21  ;;  %v1130_v40 = vpop.f32.mrf.mxu0  ;;  %v3743_v46 = vld [vmem:[#allocation2 + $0x143] sm:$0xff]  ;;  %v1626_v41 = vmax.f32 %v1321_v38, 0.0  ;;  %v1674_v21 = vmax.f32 %v1441_v37, 0.0 }
 0x1c7   :  { %v1131_v9 = vadd.f32 %v7777_v55, %v1130_v40  ;;  %v4079_v43 = vld [vmem:[#allocation2 + $0x141] sm:$0xff]  ;;  %v8221_v54 = vpack.c.bf16 %v3743_v46, %v3743_v46  ;;  %v1527_v46 = vmax.f32 %v1073_v31, 0.0  ;;  %v1443_v37 = vadd.f32 %v8257_v52, %v10182_v16  ;;  %v2068_v31 = vld [vmem:[#allocation2 + $0xf2] sm:$0xff] }
 0x1c8   :  { %v1697_v24 = vmax.f32 %v1498_v13, 0.0  ;;  %4447 = vst.msk [vmem:[#allocation3 + $0xcc] sm:$0xf] %vm1927_vm2, %v4431_v7  ;;  %v8223_v2 = vpack.c.bf16 %v4079_v43, %v4079_v43  ;;  %v1678_v7 = vmax.f32 %v1451_v51, 0.0  ;;  %v10184_v51 = vld [vmem:[#allocation59_spill] sm:$0xff] }
 0x1c9   :  { %10173 = vst [vmem:[#allocation27_spill] sm:$0xff] %v8221_v54  ;;  %v1550_v18 = vmax.f32 %v1131_v9, 0.0  ;;  %3077 = vrot.lane.b32.xlu1 %v7971_v63, %s7216_s21  ;;  %2963 = vrot.lane.b32.xlu2 %v7975_v14, %s7210_s30  ;;  %v10179_v9 = vld [vmem:[#allocation60_spill] sm:$0xff] }
 0x1ca   :  { %10174 = vst [vmem:[#allocation28_spill] sm:$0xff] %v8223_v2  ;;  %4131 = vrot.lane.b32.xlu0 %v7971_v63, %s7211_s12  ;;  %v1793_v45 = vmax.f32 %v1673_v58, %v1697_v24  ;;  %6481 = vmatmul.msk.bf16.gmra.mxu0 %vm732_vm0, %v6991_v39  ;;  %v8252_v39 = vpack.c.bf16 %v2409_v28, %v2409_v28 }
 0x1cb   :  { %3615 = vst.msk [vmem:[#allocation3 + $0xd8] sm:$0xf] %vm1927_vm2, %v8223_v2  ;;  %v8240_v63 = vmax.f32 %v1526_v25, %v1550_v18  ;;  %v1273_v43 = vadd.f32 %v8257_v52, %v10179_v9  ;;  %v1383_v58 = vadd.f32 %v8257_v52, %v8154_v0  ;;  %v1746_v18 = vmax.f32 %v1626_v41, %v1650_v23 }
 0x1cc   :  { %2783 = vst.msk [vmem:[#allocation3 + $0xf4] sm:$0xf] %vm1927_vm2, %v8221_v54  ;;  %v1841_v10 = vmax.f32 %v1745_v35, %v1793_v45  ;;  %v10181_v45 = vld [vmem:[#allocation37_spill] sm:$0xff] }
 0x1cd   :  { %v1390_v53 = vpop.f32.mrf.mxu2  ;;  %v1500_v26 = vpop.f32.mrf.mxu3  ;;  %v1333_v59 = vadd.f32 %v8257_v52, %v10181_v45  ;;  %v1607_v28 = vmax.f32 %v1273_v43, 0.0  ;;  %v1651_v23 = vmax.f32 %v1383_v58, 0.0  ;;  %v8292_v58 = vpack.c.bf16 %v2068_v31, %v2068_v31 }
 0x1ce   :  { %1890 = vst.msk [vmem:[#allocation2 + $0x158] sm:$0xff] %vm1846_vm1, %v1841_v10  ;;  %v1391_v36 = vadd.f32 %v7777_v55, %v1390_v53  ;;  %v1501_v8 = vadd.f32 %v7777_v55, %v1500_v26  ;;  %v1132_v5 = vpop.f32.mrf.mxu0  ;;  %v10185_v53 = vld [vmem:[#allocation39_spill] sm:$0xff] }
 0x1cf   :  { %v1133_v15 = vadd.f32 %v7777_v55, %v1132_v5  ;;  %v10180_v55 = vld [vmem:[#allocation24_spill] sm:$0xff]  ;;  %v1076_v26 = vadd.f32 %v8257_v52, %v10185_v53  ;;  %v1631_v9 = vmax.f32 %v1333_v59, 0.0  ;;  %v1386_v59 = vadd.f32 %v8257_v52, %v8191_v11 }
 0x1d0   :  { %v1654_v13 = vmax.f32 %v1391_v36, 0.0  ;;  %v1698_v40 = vmax.f32 %v1501_v8, 0.0  ;;  %v1323_v25 = vadd.f32 %v8257_v52, %v10180_v55  ;;  %v1675_v55 = vmax.f32 %v1443_v37, 0.0 }
 0x1d1   :  { %v1551_v24 = vmax.f32 %v1133_v15, 0.0  ;;  %3522 = vrot.lane.b32.xlu1 %v7975_v14, %s7212_s13  ;;  %2469 = vrot.lane.b32.xlu2 %v8252_v39, %s7211_s12  ;;  %v1727_v45 = vmax.f32 %v1607_v28, %v1631_v9 }
 0x1d2   :  { %2465 = vrot.lane.b32.xlu0 %v7975_v14, %s7211_s12  ;;  %v1774_v35 = vmax.f32 %v1654_v13, %v1678_v7  ;;  %v1794_v22 = vmax.f32 %v1674_v21, %v1698_v40  ;;  %v10183_v14 = vld [vmem:[#allocation51_spill] sm:$0xff]  ;;  %v1627_v41 = vmax.f32 %v1323_v25, 0.0 }
 0x1d3   :  { %v8273_v0 = vmax.f32 %v1527_v46, %v1551_v24  ;;  %v8275_v38 = vpop.permute.xlu2 %2463  ;;  %v1453_v48 = vadd.f32 %v8257_v52, %v10183_v14  ;;  %v6992_v40 = vld [vmem:[%s10090_s0 + $0xe8] sm:$0xff] }
 0x1d4   :  { %v1822_v10 = vmax.f32 %v10184_v51, %v1774_v35  ;;  %v1842_v62 = vmax.f32 %v1746_v18, %v1794_v22  ;;  %v1528_v22 = vmax.f32 %v1076_v26, 0.0  ;;  %v1747_v16 = vmax.f32 %v1627_v41, %v1651_v23  ;;  %v10187_v51 = vld [vmem:[#allocation26_spill] sm:$0xff] }
 0x1d5   :  { %v4416_v36 = vld [vmem:[#allocation2 + $0x154] sm:$0xff]  ;;  %v1392_v8 = vpop.f32.mrf.mxu2  ;;  %v1502_v5 = vpop.f32.mrf.mxu3  ;;  %v1679_v25 = vmax.f32 %v1453_v48, 0.0 }
 0x1d6   :  { %v4432_v21 = vpack.c.bf16 %v4416_v36, %v4416_v36  ;;  %1871 = vst.msk [vmem:[#allocation2 + $0xc0] sm:$0xff] %vm1846_vm1, %v1822_v10  ;;  %v1393_v15 = vadd.f32 %v8257_v52, %v1392_v8  ;;  %v1503_v7 = vadd.f32 %v8257_v52, %v1502_v5  ;;  %v1135_v13 = vpop.f32.mrf.mxu0  ;;  %v4080_v46 = vld [vmem:[#allocation2 + $0x151] sm:$0xff]  ;;  %v1326_v10 = vadd.f32 %v8257_v52, %v10187_v51 }
 0x1d7   :  { %1891 = vst.msk [vmem:[#allocation2 + $0x160] sm:$0xff] %vm1846_vm1, %v1842_v62  ;;  %v1136_v43 = vadd.f32 %v8257_v52, %v1135_v13  ;;  %v8294_v24 = vpack.c.bf16 %v4080_v46, %v4080_v46  ;;  %v10188_v62 = vld [vmem:[#allocation41_spill] sm:$0xff]  ;;  %v10189_v26 = vld [vmem:[#allocation54_spill] sm:$0xff]  ;;  %v1652_v13 = vmax.f32 %v1386_v59, 0.0  ;;  %v10191_v59 = vld [vmem:[#allocation64_spill] sm:$0xff] }
 0x1d8   :  { %v1655_v18 = vmax.f32 %v1393_v15, 0.0  ;;  %v1699_v35 = vmax.f32 %v1503_v7, 0.0  ;;  %4448 = vst.msk [vmem:[#allocation3 + $0xdc] sm:$0xf] %vm1927_vm2, %v4432_v21  ;;  %v1446_v31 = vadd.f32 %v8257_v52, %v10188_v62  ;;  %v1456_v28 = vadd.f32 %v8257_v52, %v10189_v26  ;;  %v10190_v8 = vld [vmem:[#allocation42_spill] sm:$0xff] }
 0x1d9   :  { %10186 = vst [vmem:[#allocation20_spill] sm:$0xff] %v8294_v24  ;;  %v1552_v14 = vmax.f32 %v1136_v43, 0.0  ;;  %2127 = vrot.lane.b32.xlu1 %v8292_v58, %s7210_s30  ;;  %2014 = vrot.lane.b32.xlu2 %v8009_v27, %s7215_s18  ;;  %v1078_v5 = vadd.f32 %v8257_v52, %v10190_v8  ;;  %v2294_v15 = vld [vmem:[#allocation2 + $0xf4] sm:$0xff] }
 0x1da   :  { %4021 = vrot.lane.b32.xlu0 %v8252_v39, %s7213_s14  ;;  %3616 = vst.msk [vmem:[#allocation3 + $0xe8] sm:$0xf] %vm1927_vm2, %v8294_v24  ;;  %v1775_v37 = vmax.f32 %v1655_v18, %v1679_v25  ;;  %v1795_v48 = vmax.f32 %v1675_v55, %v1699_v35  ;;  %6482 = vmatmul.msk.bf16.gmra.mxu0 %vm732_vm0, %v6992_v40  ;;  %v1628_v55 = vmax.f32 %v1326_v10, 0.0  ;;  %v1676_v25 = vmax.f32 %v1446_v31, 0.0  ;;  %v10192_v26 = vld [vmem:[#allocation30_spill] sm:$0xff]  ;;  %v10194_v8 = vld [vmem:[#allocation45_spill] sm:$0xff] }
 0x1db   :  { %v8312_v53 = vmax.f32 %v1528_v22, %v1552_v14  ;;  %v8316_v36 = vpop.permute.xlu2 %4019  ;;  %v1680_v35 = vmax.f32 %v1456_v28, 0.0  ;;  %v1529_v14 = vmax.f32 %v1078_v5, 0.0  ;;  %v1328_v28 = vadd.f32 %v8257_v52, %v10192_v26  ;;  %v10195_v5 = vld [vmem:[#allocation57_spill] sm:$0xff] }
 0x1dc   :  { %v1823_v23 = vmax.f32 %v1727_v45, %v1775_v37  ;;  %v1843_v11 = vmax.f32 %v1747_v16, %v1795_v48  ;;  %v8325_v16 = vpack.c.bf16 %v2294_v15, %v2294_v15  ;;  %v1278_v37 = vadd.f32 %v8257_v52, %v10191_v59 }
 0x1dd   :  { %v1395_v41 = vpop.f32.mrf.mxu2  ;;  %v1505_v21 = vpop.f32.mrf.mxu3  ;;  %v1903_v7 = vld [vmem:[#allocation2 + $0xc0] sm:$0xff]  ;;  %v1388_v48 = vadd.f32 %v8257_v52, %v8212_v61  ;;  %v1748_v10 = vmax.f32 %v1628_v55, %v1652_v13  ;;  %v1629_v59 = vmax.f32 %v1328_v28, 0.0 }
 0x1de   :  { %1872 = vst.msk [vmem:[#allocation2 + $0xc8] sm:$0xff] %vm1846_vm1, %v1823_v23  ;;  %v1396_v40 = vadd.f32 %v8257_v52, %v1395_v41  ;;  %v1506_v46 = vadd.f32 %v8257_v52, %v1505_v21  ;;  %v1137_v9 = vpop.f32.mrf.mxu0  ;;  %v1919_v43 = vpack.c.bf16 %v1903_v7, %v1903_v7  ;;  %v10193_v23 = vld [vmem:[#allocation44_spill] sm:$0xff]  ;;  %v1458_v41 = vadd.f32 %v8257_v52, %v10195_v5  ;;  %v10196_v21 = vld [vmem:[#allocation63_spill] sm:$0xff] }
 0x1df   :  { %1892 = vst.msk [vmem:[#allocation2 + $0x168] sm:$0xff] %vm1846_vm1, %v1843_v11  ;;  %v1138_v18 = vadd.f32 %v8257_v52, %v1137_v9  ;;  %v1338_v11 = vadd.f32 %v8257_v52, %v10193_v23  ;;  %v1609_v9 = vmax.f32 %v1278_v37, 0.0 }
 0x1e0   :  { %v1656_v22 = vmax.f32 %v1396_v40, 0.0  ;;  %v1700_v45 = vmax.f32 %v1506_v46, 0.0  ;;  %1936 = vst.msk [vmem:[#allocation3 + $0x80] sm:$0xf] %vm1927_vm2, %v1919_v43  ;;  %v10197_v40 = vld [vmem:[#allocation46_spill] sm:$0xff]  ;;  %v1653_v43 = vmax.f32 %v1388_v48, 0.0 }
 0x1e1   :  { %v1553_v51 = vmax.f32 %v1138_v18, 0.0  ;;  %2691 = vrot.lane.b32.xlu1 %v8292_v58, %s7212_s13  ;;  %2353 = vrot.lane.b32.xlu2 %v8325_v16, %s7213_s14  ;;  %v1081_v46 = vadd.f32 %v8257_v52, %v10197_v40 }
 0x1e2   :  { %2967 = vrot.lane.b32.xlu0 %v8252_v39, %s7210_s30  ;;  %v1776_v62 = vmax.f32 %v1656_v22, %v1680_v35  ;;  %v1796_v31 = vmax.f32 %v1676_v25, %v1700_v45  ;;  %v1448_v39 = vadd.f32 %v8257_v52, %v10194_v8 }
 0x1e3   :  { %v8342_v61 = vmax.f32 %v1529_v14, %v1553_v51  ;;  %v8349_v13 = vpop.permute.xlu2 %3524  ;;  %v6993_v14 = vld [vmem:[%s10090_s0 + $0xf0] sm:$0xff]  ;;  %v1633_v51 = vmax.f32 %v1338_v11, 0.0  ;;  %v1530_v8 = vmax.f32 %v1081_v46, 0.0 }
 0x1e4   :  { %v1824_v15 = vmax.f32 %v10196_v21, %v1776_v62  ;;  %v1844_v7 = vmax.f32 %v1748_v10, %v1796_v31  ;;  %v1677_v62 = vmax.f32 %v1448_v39, 0.0  ;;  %v1681_v31 = vmax.f32 %v1458_v41, 0.0 }
 0x1e5   :  { %v1397_v55 = vpop.f32.mrf.mxu2  ;;  %v1507_v25 = vpop.f32.mrf.mxu3  ;;  %v1729_v5 = vmax.f32 %v1609_v9, %v1633_v51  ;;  %v1749_v21 = vmax.f32 %v1629_v59, %v1653_v43  ;;  %v10199_v43 = vld [vmem:[#allocation49_spill] sm:$0xff] }
 0x1e6   :  { %v4417_v18 = vld [vmem:[#allocation2 + $0x164] sm:$0xff]  ;;  %1873 = vst.msk [vmem:[#allocation2 + $0xd0] sm:$0xff] %vm1846_vm1, %v1824_v15  ;;  %v1398_v35 = vadd.f32 %v8257_v52, %v1397_v55  ;;  %v1508_v22 = vadd.f32 %v8257_v52, %v1507_v25  ;;  %v1140_v45 = vpop.f32.mrf.mxu0  ;;  %v1083_v55 = vadd.f32 %v8257_v52, %v10199_v43 }
 0x1e7   :  { %v4433_v10 = vpack.c.bf16 %v4417_v18, %v4417_v18  ;;  %1893 = vst.msk [vmem:[#allocation2 + $0x170] sm:$0xff] %vm1846_vm1, %v1844_v7  ;;  %v1141_v37 = vadd.f32 %v8257_v52, %v1140_v45  ;;  %v4081_v48 = vld [vmem:[#allocation2 + $0x161] sm:$0xff] }
 0x1e8   :  { %v1657_v26 = vmax.f32 %v1398_v35, 0.0  ;;  %v1701_v23 = vmax.f32 %v1508_v22, 0.0  ;;  %v8369_v39 = vpack.c.bf16 %v4081_v48, %v4081_v48  ;;  %v1531_v22 = vmax.f32 %v1083_v55, 0.0  ;;  %v10200_v48 = vld [vmem:[#allocation52_spill] sm:$0xff]  ;;  %v2183_v55 = vld [vmem:[#allocation2 + $0x113] sm:$0xff] }
 0x1e9   :  { %v1554_v15 = vmax.f32 %v1141_v37, 0.0  ;;  %3075 = vrot.lane.b32.xlu1 %v8009_v27, %s7216_s21  ;;  %4449 = vst.msk [vmem:[#allocation3 + $0xec] sm:$0xf] %vm1927_vm2, %v4433_v10  ;;  %2578 = vrot.lane.b32.xlu2 %v8009_v27, %s7214_s17 }
 0x1ea   :  { %2240 = vrot.lane.b32.xlu0 %v8011_v17, %s7216_s21  ;;  %v1777_v28 = vmax.f32 %v1657_v26, %v1681_v31  ;;  %v1797_v11 = vmax.f32 %v1677_v62, %v1701_v23  ;;  %6483 = vmatmul.msk.bf16.gmra.mxu0 %vm732_vm0, %v6993_v14  ;;  %10198 = vst [vmem:[#allocation31_spill] sm:$0xff] %v8369_v39  ;;  %v6994_v26 = vld [vmem:[%s10090_s0 + $0xf8] sm:$0xff] }
 0x1eb   :  { %v8371_v41 = vmax.f32 %v1530_v8, %v1554_v15  ;;  %v8373_v7 = vpop.permute.xlu1 %2961  ;;  %v8375_v9 = vpop.permute.xlu2 %2965  ;;  %3617 = vst.msk [vmem:[#allocation3 + $0xf8] sm:$0xf] %vm1927_vm2, %v8369_v39  ;;  %v1086_v62 = vadd.f32 %v8257_v52, %v10200_v48  ;;  %v10208_v39 = vld [vmem:[#allocation62_spill] sm:$0xff] }
 0x1ec   :  { %v1825_v40 = vmax.f32 %v1729_v5, %v1777_v28  ;;  %v1845_v46 = vmax.f32 %v1749_v21, %v1797_v11 }
 0x1ed   :  { %v2405_v25 = vld [vmem:[#allocation2 + $0xd0] sm:$0xff]  ;;  %v1532_v15 = vmax.f32 %v1086_v62, 0.0 }
 0x1ee   :  { %1874 = vst.msk [vmem:[#allocation2 + $0xd8] sm:$0xff] %vm1846_vm1, %v1825_v40  ;;  %v1142_v27 = vpop.f32.mrf.mxu0  ;;  %v8382_v18 = vpack.c.bf16 %v2405_v25, %v2405_v25  ;;  %v10201_v25 = vld [vmem:[#allocation55_spill] sm:$0xff] }
 0x1ef   :  { %1894 = vst.msk [vmem:[#allocation2 + $0x178] sm:$0xff] %vm1846_vm1, %v1845_v46  ;;  %v1143_v35 = vadd.f32 %v8257_v52, %v1142_v27  ;;  %v1088_v27 = vadd.f32 %v8257_v52, %v10201_v25 }
 0x1f0   :  { %1937 = vst.msk [vmem:[#allocation3 + $0x90] sm:$0xf] %vm1927_vm2, %v8382_v18 }
 0x1f1   :  { %v1555_v45 = vmax.f32 %v1143_v35, 0.0  ;;  %3906 = vrot.lane.b32.xlu1 %v8325_v16, %s7216_s21  ;;  %3682 = vrot.lane.b32.xlu2 %v8292_v58, %s7215_s18 }
 0x1f2   :  { %3794 = vrot.lane.b32.xlu0 %v8011_v17, %s7210_s30 }
 0x1f3   :  { %v8394_v14 = vmax.f32 %v1531_v22, %v1555_v45  ;;  %v8396_v59 = vpop.permute.xlu1 %2467  ;;  %v2239_v10 = vpop.permute.xlu2 %2238 }
 0x1f4   :  { %v8398_v51 = vpop.permute.xlu0 %2689 }
 0x1f5   :  { %v2179_v37 = vld [vmem:[#allocation2 + $0xd3] sm:$0xff] }
 0x1f6   :  { %v4418_v31 = vld [vmem:[#allocation2 + $0x174] sm:$0xff]  ;;  %v8405_v23 = vpack.c.bf16 %v2179_v37, %v2179_v37  ;;  %v2199_v37 = vpack.c.bf16 %v2183_v55, %v2183_v55 }
 0x1f7   :  { %v4434_v8 = vpack.c.bf16 %v4418_v31, %v4418_v31  ;;  %v1145_v5 = vpop.f32.mrf.mxu0 }
 0x1f8   :  { %v1146_v21 = vadd.f32 %v8257_v52, %v1145_v5  ;;  %2776 = vst.msk [vmem:[#allocation3 + $0x84] sm:$0xf] %vm1927_vm2, %v8405_v23  ;;  %v2070_v5 = vld [vmem:[#allocation2 + $0x112] sm:$0xff] }
 0x1f9   :  { %3411 = vrot.lane.b32.xlu1 %v8325_v16, %s7214_s17  ;;  %4450 = vst.msk [vmem:[#allocation3 + $0xfc] sm:$0xf] %vm1927_vm2, %v4434_v8  ;;  %3187 = vrot.lane.b32.xlu2 %v8292_v58, %s7213_s14  ;;  %v1533_v58 = vmax.f32 %v1088_v27, 0.0 }
 0x1fa   :  { %3299 = vrot.lane.b32.xlu0 %v8011_v17, %s7211_s12  ;;  %v1556_v28 = vmax.f32 %v1146_v21, 0.0  ;;  %6484 = vmatmul.msk.bf16.gmra.mxu0 %vm732_vm0, %v6994_v26  ;;  %v1957_v17 = vld [vmem:[#allocation2 + $0x111] sm:$0xff] }
 0x1fb   :  { %v8418_v11 = vpop.permute.xlu1 %2576  ;;  %v8422_v43 = vpop.permute.xlu2 %3297  ;;  %v1973_v22 = vpack.c.bf16 %v1957_v17, %v1957_v17  ;;  %v2086_v17 = vpack.c.bf16 %v2070_v5, %v2070_v5 }
 0x1fc   :  { %v2126_v40 = vpop.permute.xlu0 %2125  ;;  %v8420_v46 = vmax.f32 %v1532_v15, %v1556_v28  ;;  %v6995_v15 = vld [vmem:[%s10090_s0 + $0x100] sm:$0xff] }
 0x1ff   :  { %v1147_v35 = vpop.f32.mrf.mxu0 }
 0x200   :  { %v1148_v45 = vadd.f32 %v8257_v52, %v1147_v35 }
 0x201   :  { %2018 = vrot.lane.b32.xlu1 %v1973_v22, %s7215_s18  ;;  %2244 = vrot.lane.b32.xlu2 %v2199_v37, %s7216_s21 }
 0x202   :  { %2852 = vrot.lane.b32.xlu0 %v8325_v16, %s7215_s18  ;;  %v1557_v48 = vmax.f32 %v1148_v45, 0.0  ;;  %v10202_v16 = vld [vmem:[#allocation8_spill] sm:$0xff] }
 0x203   :  { %v2013_v31 = vpop.permute.xlu1 %2012  ;;  %v8433_v8 = vpop.permute.xlu2 %2693  ;;  %v1211_v21 = vadd.f32 %v8257_v52, %v10202_v16 }
 0x204   :  { %v2851_v62 = vpop.permute.xlu0 %2850  ;;  %v8431_v26 = vmax.f32 %v1533_v58, %v1557_v48  ;;  %2051 = vst.msk [vmem:[#allocation3 + $0xa0] sm:$0xf] %vm2040_vm3, %v2013_v31  ;;  %v10203_v48 = vld [vmem:[#allocation9_spill] sm:$0xff]  ;;  %v10204_v31 = vld [vmem:[#allocation58_spill] sm:$0xff] }
 0x205   :  { %2889 = vst.msk [vmem:[#allocation3 + $0x94] sm:$0xf] %vm2040_vm3, %v2851_v62  ;;  %v1582_v25 = vmax.f32 %v1211_v21, 0.0  ;;  %v1213_v62 = vadd.f32 %v8257_v52, %v10203_v48  ;;  %v10206_v48 = vld [vmem:[#allocation61_spill] sm:$0xff] }
 0x206   :  { %2164 = vst.msk [vmem:[#allocation3 + $0xa0] sm:$0xf] %vm2153_vm4, %v2126_v40 }
 0x207   :  { %v1150_v28 = vpop.f32.mrf.mxu0  ;;  %2277 = vst.msk [vmem:[#allocation3 + $0xa0] sm:$0xf] %vm2266_vm5, %v2239_v10  ;;  %v2523_v10 = vld [vmem:[#allocation2 + $0x121] sm:$0xff]  ;;  %v1583_v21 = vmax.f32 %v1213_v62, 0.0 }
 0x208   :  { %v1151_v55 = vadd.f32 %v8257_v52, %v1150_v28  ;;  %v2539_v16 = vpack.c.bf16 %v2523_v10, %v2523_v10 }
 0x209   :  { %2357 = vrot.lane.b32.xlu1 %v8036_v3, %s7213_s14  ;;  %4357 = vrot.lane.b32.xlu2 %v2199_v37, %s7212_s13 }
 0x20a   :  { %2131 = vrot.lane.b32.xlu0 %v2086_v17, %s7210_s30  ;;  %v1558_v27 = vmax.f32 %v1151_v55, 0.0  ;;  %6485 = vmatmul.msk.bf16.gmra.mxu0 %vm732_vm0, %v6995_v15 }
 0x20b   :  { %v2352_v35 = vpop.permute.xlu1 %2351  ;;  %v2130_v58 = vpop.permute.xlu2 %2129 }
 0x20c   :  { %v8450_v40 = vpop.permute.xlu0 %3073  ;;  %v1750_v45 = vmax.f32 %v1558_v27, %v1582_v25  ;;  %2390 = vst.msk [vmem:[#allocation3 + $0xa0] sm:$0xf] %vm2379_vm6, %v2352_v35  ;;  %v10205_v35 = vld [vmem:[#allocation10_spill] sm:$0xff] }
 0x20e   :  { %v1798_v3 = vmax.f32 %v10204_v31, %v1750_v45  ;;  %v1216_v45 = vadd.f32 %v8257_v52, %v10205_v35  ;;  %v6996_v31 = vld [vmem:[%s10090_s0 + $0x108] sm:$0xff] }
 0x20f   :  { %v1152_v5 = vpop.f32.mrf.mxu0 }
 0x210   :  { %1847 = vst.msk [vmem:[#allocation2] sm:$0xff] %vm1846_vm1, %v1798_v3  ;;  %v1153_v37 = vadd.f32 %v8257_v52, %v1152_v5 }
 0x211   :  { %2582 = vrot.lane.b32.xlu1 %v1973_v22, %s7214_s17  ;;  %2584 = vrot.lane.b32.xlu2 %v2539_v16, %s7214_s17 }
 0x212   :  { %2695 = vrot.lane.b32.xlu0 %v2086_v17, %s7212_s13  ;;  %v1559_v15 = vmax.f32 %v1153_v37, 0.0 }
 0x213   :  { %v8463_v55 = vpop.permute.xlu1 %3185  ;;  %v8465_v27 = vpop.permute.xlu2 %3908 }
 0x214   :  { %v8461_v28 = vpop.permute.xlu0 %3409  ;;  %v1751_v25 = vmax.f32 %v1559_v15, %v1583_v21  ;;  %v1584_v21 = vmax.f32 %v1216_v45, 0.0 }
 0x216   :  { %v1799_v10 = vmax.f32 %v10206_v48, %v1751_v25 }
 0x217   :  { %v1155_v62 = vpop.f32.mrf.mxu0  ;;  %v1895_v3 = vld [vmem:[#allocation2] sm:$0xff] }
 0x218   :  { %1848 = vst.msk [vmem:[#allocation2 + $0x8] sm:$0xff] %vm1846_vm1, %v1799_v10  ;;  %v1156_v5 = vadd.f32 %v8257_v52, %v1155_v62  ;;  %v1911_v37 = vpack.c.bf16 %v1895_v3, %v1895_v3  ;;  %v2636_v62 = vld [vmem:[#allocation2 + $0x122] sm:$0xff] }
 0x219   :  { %4133 = vrot.lane.b32.xlu1 %v1973_v22, %s7211_s12  ;;  %2020 = vrot.lane.b32.xlu2 %v2539_v16, %s7215_s18  ;;  %v10207_v3 = vld [vmem:[#allocation11_spill] sm:$0xff] }
 0x21a   :  { %4245 = vrot.lane.b32.xlu0 %v2086_v17, %s7214_s17  ;;  %v1560_v15 = vmax.f32 %v1156_v5, 0.0  ;;  %6486 = vmatmul.msk.bf16.gmra.mxu0 %vm732_vm0, %v6996_v31  ;;  %1928 = vst.msk [vmem:[#allocation3] sm:$0xf] %vm1927_vm2, %v1911_v37  ;;  %v1218_v17 = vadd.f32 %v8257_v52, %v10207_v3  ;;  %v2652_v5 = vpack.c.bf16 %v2636_v62, %v2636_v62  ;;  %v2072_v62 = vld [vmem:[#allocation2 + $0x132] sm:$0xff] }
 0x21b   :  { %v2243_v35 = vpop.permute.xlu1 %2242  ;;  %v8482_v10 = vpop.permute.xlu2 %4243 }
 0x21c   :  { %v8480_v25 = vpop.permute.xlu0 %2580  ;;  %v1752_v48 = vmax.f32 %v1560_v15, %v1584_v21  ;;  %v1585_v31 = vmax.f32 %v1218_v17, 0.0 }
 0x21e   :  { %v1800_v22 = vmax.f32 %v10208_v39, %v1752_v48  ;;  %v2184_v48 = vld [vmem:[#allocation2 + $0x123] sm:$0xff] }
 0x21f   :  { %v1157_v45 = vpop.f32.mrf.mxu0 }
 0x220   :  { %1849 = vst.msk [vmem:[#allocation2 + $0x10] sm:$0xff] %vm1846_vm1, %v1800_v22  ;;  %v1158_v16 = vadd.f32 %v8257_v52, %v1157_v45  ;;  %v10209_v22 = vld [vmem:[#allocation12_spill] sm:$0xff]  ;;  %v10210_v45 = vld [vmem:[#allocation65_spill] sm:$0xff] }
 0x221   :  { %2697 = vrot.lane.b32.xlu1 %v2652_v5, %s7212_s13  ;;  %2359 = vrot.lane.b32.xlu2 %v8095_v6, %s7213_s14  ;;  %v6997_v6 = vld [vmem:[%s10090_s0 + $0x110] sm:$0xff] }
 0x222   :  { %2471 = vrot.lane.b32.xlu0 %v8072_v42, %s7211_s12  ;;  %v1561_v37 = vmax.f32 %v1158_v16, 0.0  ;;  %v1221_v42 = vadd.f32 %v8257_v52, %v10209_v22  ;;  %v2200_v16 = vpack.c.bf16 %v2184_v48, %v2184_v48  ;;  %v1959_v22 = vld [vmem:[#allocation2 + $0x131] sm:$0xff] }
 0x223   :  { %v3797_v15 = vpop.permute.xlu1 %3796  ;;  %v2964_v39 = vpop.permute.xlu2 %2963 }
 0x224   :  { %v2017_v21 = vpop.permute.xlu0 %2016  ;;  %v1753_v3 = vmax.f32 %v1561_v37, %v1585_v31  ;;  %3002 = vst.msk [vmem:[#allocation3 + $0x94] sm:$0xf] %vm2153_vm4, %v2964_v39 }
 0x225   :  { %2053 = vst.msk [vmem:[#allocation3 + $0xc0] sm:$0xf] %vm2040_vm3, %v2017_v21  ;;  %v2088_v21 = vpack.c.bf16 %v2072_v62, %v2072_v62 }
 0x226   :  { %v1801_v24 = vmax.f32 %v10210_v45, %v1753_v3  ;;  %2166 = vst.msk [vmem:[#allocation3 + $0xc0] sm:$0xf] %vm2153_vm4, %v2130_v58  ;;  %v1586_v58 = vmax.f32 %v1221_v42, 0.0  ;;  %v10212_v45 = vld [vmem:[#allocation66_spill] sm:$0xff] }
 0x227   :  { %2279 = vst.msk [vmem:[#allocation3 + $0xc0] sm:$0xf] %vm2266_vm5, %v2243_v35  ;;  %v1160_v17 = vpop.f32.mrf.mxu0  ;;  %v2397_v31 = vld [vmem:[#allocation2 + $0x10] sm:$0xff] }
 0x228   :  { %1850 = vst.msk [vmem:[#allocation2 + $0x18] sm:$0xff] %vm1846_vm1, %v1801_v24  ;;  %v1161_v37 = vadd.f32 %v8257_v52, %v1160_v17  ;;  %v8506_v39 = vpack.c.bf16 %v2397_v31, %v2397_v31 }
 0x229   :  { %2133 = vrot.lane.b32.xlu1 %v2652_v5, %s7210_s30  ;;  %2135 = vrot.lane.b32.xlu2 %v2088_v21, %s7210_s30  ;;  %v10211_v5 = vld [vmem:[#allocation13_spill] sm:$0xff] }
 0x22a   :  { %2246 = vrot.lane.b32.xlu0 %v2200_v16, %s7216_s21  ;;  %v1562_v3 = vmax.f32 %v1161_v37, 0.0  ;;  %6487 = vmatmul.msk.bf16.gmra.mxu0 %vm732_vm0, %v6997_v6  ;;  %1929 = vst.msk [vmem:[#allocation3 + $0x10] sm:$0xf] %vm1927_vm2, %v8506_v39  ;;  %v1223_v42 = vadd.f32 %v8257_v52, %v10211_v5  ;;  %v1975_v16 = vpack.c.bf16 %v1959_v22, %v1959_v22  ;;  %v2185_v5 = vld [vmem:[#allocation2 + $0x133] sm:$0xff] }
 0x22b   :  { %v8514_v35 = vpop.permute.xlu1 %4355  ;;  %v2470_v62 = vpop.permute.xlu2 %2469 }
 0x22c   :  { %v2356_v24 = vpop.permute.xlu0 %2355  ;;  %v1754_v48 = vmax.f32 %v1562_v3, %v1586_v58  ;;  %v1587_v58 = vmax.f32 %v1223_v42, 0.0 }
 0x22d   :  { %2392 = vst.msk [vmem:[#allocation3 + $0xc0] sm:$0xf] %vm2379_vm6, %v2356_v24 }
 0x22e   :  { %2506 = vst.msk [vmem:[#allocation3 + $0xc0] sm:$0xf] %vm2493_vm7, %v2470_v62  ;;  %v1802_v17 = vmax.f32 %v10212_v45, %v1754_v48  ;;  %v2412_v45 = vld [vmem:[#allocation2 + $0x140] sm:$0xff] }
 0x22f   :  { %v1162_v6 = vpop.f32.mrf.mxu0  ;;  %v2171_v31 = vld [vmem:[#allocation2 + $0x13] sm:$0xff] }
 0x230   :  { %1851 = vst.msk [vmem:[#allocation2 + $0x20] sm:$0xff] %vm1846_vm1, %v1802_v17  ;;  %v1163_v37 = vadd.f32 %v8257_v52, %v1162_v6  ;;  %v8523_v2 = vpack.c.bf16 %v2171_v31, %v2171_v31  ;;  %v10213_v17 = vld [vmem:[#allocation14_spill] sm:$0xff]  ;;  %v2201_v31 = vpack.c.bf16 %v2185_v5, %v2185_v5  ;;  %v2525_v5 = vld [vmem:[#allocation2 + $0x141] sm:$0xff] }
 0x231   :  { %2473 = vrot.lane.b32.xlu1 %v8133_v4, %s7211_s12  ;;  %2699 = vrot.lane.b32.xlu2 %v2088_v21, %s7212_s13  ;;  %v1226_v4 = vadd.f32 %v8257_v52, %v10213_v17  ;;  %v6998_v21 = vld [vmem:[%s10090_s0 + $0x118] sm:$0xff] }
 0x232   :  { %2022 = vrot.lane.b32.xlu0 %v1975_v16, %s7215_s18  ;;  %v1563_v3 = vmax.f32 %v1163_v37, 0.0  ;;  %2768 = vst.msk [vmem:[#allocation3 + $0x4] sm:$0xf] %vm1927_vm2, %v8523_v2 }
 0x233   :  { %v2855_v48 = vpop.permute.xlu1 %2854  ;;  %v2015_v22 = vpop.permute.xlu2 %2014 }
 0x234   :  { %v3685_v24 = vpop.permute.xlu0 %3684  ;;  %v1755_v62 = vmax.f32 %v1563_v3, %v1587_v58  ;;  %2052 = vst.msk [vmem:[#allocation3 + $0xb0] sm:$0xf] %vm2040_vm3, %v2015_v22  ;;  %v2428_v3 = vpack.c.bf16 %v2412_v45, %v2412_v45  ;;  %v10214_v45 = vld [vmem:[#allocation15_spill] sm:$0xff] }
 0x235   :  { %3723 = vst.msk [vmem:[#allocation3 + $0x98] sm:$0xf] %vm2040_vm3, %v3685_v24  ;;  %v1228_v17 = vadd.f32 %v8257_v52, %v10214_v45  ;;  %v2291_v45 = vld [vmem:[#allocation2 + $0xc4] sm:$0xff] }
 0x236   :  { %v1803_v42 = vmax.f32 %v7886_v47, %v1755_v62  ;;  %3835 = vst.msk [vmem:[#allocation3 + $0x98] sm:$0xf] %vm2153_vm4, %v3797_v15  ;;  %v1588_v47 = vmax.f32 %v1226_v4, 0.0 }
 0x237   :  { %3947 = vst.msk [vmem:[#allocation3 + $0x98] sm:$0xf] %vm2266_vm5, %v8465_v27  ;;  %v1165_v6 = vpop.f32.mrf.mxu0  ;;  %v2398_v37 = vld [vmem:[#allocation2 + $0x20] sm:$0xff] }
 0x238   :  { %1852 = vst.msk [vmem:[#allocation2 + $0x28] sm:$0xff] %vm1846_vm1, %v1803_v42  ;;  %v1166_v58 = vadd.f32 %v8257_v52, %v1165_v6  ;;  %v8544_v24 = vpack.c.bf16 %v2398_v37, %v2398_v37  ;;  %v2541_v6 = vpack.c.bf16 %v2525_v5, %v2525_v5 }
 0x239   :  { %2891 = vst.msk [vmem:[#allocation3 + $0xb4] sm:$0xf] %vm2040_vm3, %v2855_v48  ;;  %2248 = vrot.lane.b32.xlu1 %v2201_v31, %s7216_s21  ;;  %2475 = vrot.lane.b32.xlu2 %v2428_v3, %s7211_s12  ;;  %v1589_v3 = vmax.f32 %v1228_v17, 0.0  ;;  %v10215_v17 = vld [vmem:[#allocation16_spill] sm:$0xff] }
 0x23a   :  { %2361 = vrot.lane.b32.xlu0 %v8156_v1, %s7213_s14  ;;  %v1564_v15 = vmax.f32 %v1166_v58, 0.0  ;;  %6488 = vmatmul.msk.bf16.gmra.mxu0 %vm732_vm0, %v6998_v21  ;;  %1930 = vst.msk [vmem:[#allocation3 + $0x20] sm:$0xf] %vm1927_vm2, %v8544_v24  ;;  %v1952_v1 = vld [vmem:[#allocation2 + $0xc1] sm:$0xff]  ;;  %vm5950_vm0 = vcmask 1041408  }
 0x23b   :  { %v8556_v62 = vpop.permute.xlu1 %3077  ;;  %v8558_v48 = vpop.permute.xlu2 %2353  ;;  %v1968_v31 = vpack.c.bf16 %v1952_v1, %v1952_v1  ;;  %v2065_v1 = vld [vmem:[#allocation2 + $0xc2] sm:$0xff] }
 0x23c   :  { %v8554_v27 = vpop.permute.xlu0 %4131  ;;  %v1756_v22 = vmax.f32 %v1564_v15, %v1588_v47 }
 0x23e   :  { %v1804_v4 = vmax.f32 %v7916_v44, %v1756_v22 }
 0x23f   :  { %v1167_v42 = vpop.f32.mrf.mxu0  ;;  %v3233_v37 = vld [vmem:[#allocation2 + $0x23] sm:$0xff] }
 0x240   :  { %1853 = vst.msk [vmem:[#allocation2 + $0x30] sm:$0xff] %vm1846_vm1, %v1804_v4  ;;  %v1168_v21 = vadd.f32 %v8257_v52, %v1167_v42  ;;  %v8567_v58 = vpack.c.bf16 %v3233_v37, %v3233_v37  ;;  %v1231_v4 = vadd.f32 %v8257_v52, %v10215_v17  ;;  %v2066_v17 = vld [vmem:[#allocation2 + $0xd2] sm:$0xff] }
 0x241   :  { %2588 = vrot.lane.b32.xlu1 %v2541_v6, %s7214_s17  ;;  %2008 = vrot.lane.b32.xlu2 %v1968_v31, %s7215_s18  ;;  %v2081_v31 = vpack.c.bf16 %v2065_v1, %v2065_v1 }
 0x242   :  { %2586 = vrot.lane.b32.xlu0 %v1975_v16, %s7214_s17  ;;  %v1565_v47 = vmax.f32 %v1168_v21, 0.0  ;;  %2769 = vst.msk [vmem:[#allocation3 + $0x14] sm:$0xf] %vm1927_vm2, %v8567_v58  ;;  %v2638_v16 = vld [vmem:[#allocation2 + $0x142] sm:$0xff] }
 0x243   :  { %v8570_v15 = vpop.permute.xlu1 %3522  ;;  %v2579_v5 = vpop.permute.xlu2 %2578  ;;  %v2654_v21 = vpack.c.bf16 %v2638_v16, %v2638_v16 }
 0x244   :  { %v2466_v44 = vpop.permute.xlu0 %2465  ;;  %v1757_v22 = vmax.f32 %v1565_v47, %v1589_v3  ;;  %v2307_v47 = vpack.c.bf16 %v2291_v45, %v2291_v45  ;;  %v2178_v45 = vld [vmem:[#allocation2 + $0xc3] sm:$0xff] }
 0x245   :  { %2504 = vst.msk [vmem:[#allocation3 + $0xa0] sm:$0xf] %vm2493_vm7, %v2466_v44 }
 0x246   :  { %2617 = vst.msk [vmem:[#allocation3 + $0xa0] sm:$0xf] %vm2606_vm8, %v2579_v5  ;;  %v1805_v42 = vmax.f32 %v7950_v33, %v1757_v22  ;;  %v1590_v5 = vmax.f32 %v1231_v4, 0.0 }
 0x247   :  { %v1170_v6 = vpop.f32.mrf.mxu0  ;;  %v2399_v37 = vld [vmem:[#allocation2 + $0x30] sm:$0xff] }
 0x248   :  { %1854 = vst.msk [vmem:[#allocation2 + $0x38] sm:$0xff] %vm1846_vm1, %v1805_v42  ;;  %v1171_v3 = vadd.f32 %v8257_v52, %v1170_v6  ;;  %v8581_v44 = vpack.c.bf16 %v2399_v37, %v2399_v37  ;;  %v10216_v42 = vld [vmem:[#allocation17_spill] sm:$0xff] }
 0x249   :  { %2121 = vrot.lane.b32.xlu1 %v2081_v31, %s7210_s30  ;;  %2347 = vrot.lane.b32.xlu2 %v2307_v47, %s7213_s14  ;;  %v1233_v6 = vadd.f32 %v8257_v52, %v10216_v42  ;;  %v2194_v31 = vpack.c.bf16 %v2178_v45, %v2178_v45  ;;  %v2082_v47 = vpack.c.bf16 %v2066_v17, %v2066_v17  ;;  %v1953_v42 = vld [vmem:[#allocation2 + $0xd1] sm:$0xff] }
 0x24a   :  { %2701 = vrot.lane.b32.xlu0 %v2654_v21, %s7212_s13  ;;  %v1566_v54 = vmax.f32 %v1171_v3, 0.0  ;;  %1931 = vst.msk [vmem:[#allocation3 + $0x30] sm:$0xf] %vm1927_vm2, %v8581_v44 }
 0x24b   :  { %v2128_v22 = vpop.permute.xlu1 %2127  ;;  %v3683_v1 = vpop.permute.xlu2 %3682 }
 0x24c   :  { %v4022_v33 = vpop.permute.xlu0 %4021  ;;  %v1758_v16 = vmax.f32 %v1566_v54, %v1590_v5  ;;  %3722 = vst.msk [vmem:[#allocation3 + $0x88] sm:$0xf] %vm2040_vm3, %v3683_v1 }
 0x24d   :  { %4060 = vst.msk [vmem:[#allocation3 + $0x98] sm:$0xf] %vm2379_vm6, %v4022_v33 }
 0x24e   :  { %v1806_v4 = vmax.f32 %v7992_v30, %v1758_v16  ;;  %2165 = vst.msk [vmem:[#allocation3 + $0xb0] sm:$0xf] %vm2153_vm4, %v2128_v22  ;;  %v1591_v30 = vmax.f32 %v1233_v6, 0.0 }
 0x24f   :  { %v1172_v21 = vpop.f32.mrf.mxu0  ;;  %v2173_v37 = vld [vmem:[#allocation2 + $0x33] sm:$0xff] }
 0x250   :  { %v1947_v3 = vld [vmem:[#allocation2 + $0x31] sm:$0xff]  ;;  %1855 = vst.msk [vmem:[#allocation2 + $0x40] sm:$0xff] %vm1846_vm1, %v1806_v4  ;;  %v1173_v54 = vadd.f32 %v8257_v52, %v1172_v21  ;;  %v8596_v5 = vpack.c.bf16 %v2173_v37, %v2173_v37 }
 0x251   :  { %v8598_v33 = vpack.c.bf16 %v1947_v3, %v1947_v3  ;;  %2461 = vrot.lane.b32.xlu1 %v8382_v18, %s7211_s12  ;;  %2123 = vrot.lane.b32.xlu2 %v2082_v47, %s7210_s30  ;;  %v10217_v18 = vld [vmem:[#allocation18_spill] sm:$0xff] }
 0x252   :  { %2234 = vrot.lane.b32.xlu0 %v2194_v31, %s7216_s21  ;;  %v1567_v22 = vmax.f32 %v1173_v54, 0.0  ;;  %2770 = vst.msk [vmem:[#allocation3 + $0x24] sm:$0xf] %vm1927_vm2, %v8596_v5  ;;  %v1236_v6 = vadd.f32 %v8257_v52, %v10217_v18  ;;  %v1969_v31 = vpack.c.bf16 %v1953_v42, %v1953_v42  ;;  %v2292_v42 = vld [vmem:[#allocation2 + $0xd4] sm:$0xff]  ;;  %v2057_v18 = vld [vmem:[#allocation2 + $0x2] sm:$0xff] }
 0x253   :  { %v2692_v1 = vpop.permute.xlu1 %2691  ;;  %3602 = vst.msk [vmem:[#allocation3 + $0x8] sm:$0xf] %vm1927_vm2, %v8598_v33  ;;  %v3188_v17 = vpop.permute.xlu2 %3187 }
 0x254   :  { %v2968_v16 = vpop.permute.xlu0 %2967  ;;  %v1759_v45 = vmax.f32 %v1567_v22, %v1591_v30  ;;  %2730 = vst.msk [vmem:[#allocation3 + $0xa0] sm:$0xf] %vm2719_vm9, %v2692_v1  ;;  %v1592_v30 = vmax.f32 %v1236_v6, 0.0 }
 0x255   :  { %3004 = vst.msk [vmem:[#allocation3 + $0xb4] sm:$0xf] %vm2153_vm4, %v2968_v16 }
 0x256   :  { %v1807_v4 = vmax.f32 %v8026_v60, %v1759_v45 }
 0x257   :  { %v1175_v21 = vpop.f32.mrf.mxu0  ;;  %v3955_v37 = vld [vmem:[#allocation2 + $0x40] sm:$0xff] }
 0x258   :  { %1856 = vst.msk [vmem:[#allocation2 + $0x48] sm:$0xff] %vm1846_vm1, %v1807_v4  ;;  %v1176_v3 = vadd.f32 %v8257_v52, %v1175_v21  ;;  %v8615_v54 = vpack.c.bf16 %v3955_v37, %v3955_v37  ;;  %v2308_v37 = vpack.c.bf16 %v2292_v42, %v2292_v42  ;;  %v2170_v42 = vld [vmem:[#allocation2 + $0x3] sm:$0xff] }
 0x259   :  { %2236 = vrot.lane.b32.xlu1 %v8405_v23, %s7216_s21  ;;  %2687 = vrot.lane.b32.xlu2 %v2082_v47, %s7212_s13  ;;  %v10218_v23 = vld [vmem:[#allocation19_spill] sm:$0xff] }
 0x25a   :  { %2010 = vrot.lane.b32.xlu0 %v1969_v31, %s7215_s18  ;;  %v1568_v22 = vmax.f32 %v1176_v3, 0.0  ;;  %1932 = vst.msk [vmem:[#allocation3 + $0x40] sm:$0xf] %vm1927_vm2, %v8615_v54  ;;  %v1238_v6 = vadd.f32 %v8257_v52, %v10218_v23  ;;  %v2073_v3 = vpack.c.bf16 %v2057_v18, %v2057_v18  ;;  %v10219_v18 = vld [vmem:[#allocation21_spill] sm:$0xff] }
 0x25b   :  { %v3076_v16 = vpop.permute.xlu1 %3075  ;;  %v8623_v45 = vpop.permute.xlu2 %2244  ;;  %v1241_v23 = vadd.f32 %v8257_v52, %v10219_v18 }
 0x25c   :  { %v2241_v60 = vpop.permute.xlu0 %2240  ;;  %v1760_v1 = vmax.f32 %v1568_v22, %v1592_v30  ;;  %3114 = vst.msk [vmem:[#allocation3 + $0x94] sm:$0xf] %vm2266_vm5, %v3076_v16 }
 0x25d   :  { %2278 = vst.msk [vmem:[#allocation3 + $0xb0] sm:$0xf] %vm2266_vm5, %v2241_v60 }
 0x25e   :  { %2391 = vst.msk [vmem:[#allocation3 + $0xb0] sm:$0xf] %vm2379_vm6, %v8558_v48  ;;  %v1808_v47 = vmax.f32 %v8059_v56, %v1760_v1  ;;  %v1593_v56 = vmax.f32 %v1238_v6, 0.0 }
 0x25f   :  { %2505 = vst.msk [vmem:[#allocation3 + $0xb0] sm:$0xf] %vm2493_vm7, %v8396_v59  ;;  %v4403_v4 = vld [vmem:[#allocation2 + $0x44] sm:$0xff]  ;;  %v1177_v21 = vpop.f32.mrf.mxu0 }
 0x260   :  { %2618 = vst.msk [vmem:[#allocation3 + $0xb0] sm:$0xf] %vm2606_vm8, %v8480_v25  ;;  %v8635_v30 = vpack.c.bf16 %v4403_v4, %v4403_v4  ;;  %v1178_v48 = vadd.f32 %v8257_v52, %v1177_v21  ;;  %v2186_v4 = vpack.c.bf16 %v2170_v42, %v2170_v42  ;;  %v2513_v21 = vld [vmem:[#allocation2 + $0x41] sm:$0xff] }
 0x261   :  { %1857 = vst.msk [vmem:[#allocation2 + $0x50] sm:$0xff] %vm1846_vm1, %v1808_v47  ;;  %2105 = vrot.lane.b32.xlu1 %v2073_v3, %s7210_s30  ;;  %2848 = vrot.lane.b32.xlu2 %v2308_v37, %s7215_s18 }
 0x262   :  { %2731 = vst.msk [vmem:[#allocation3 + $0xb0] sm:$0xf] %vm2719_vm9, %v8433_v8  ;;  %2349 = vrot.lane.b32.xlu0 %v2308_v37, %s7213_s14  ;;  %v1569_v59 = vmax.f32 %v1178_v48, 0.0  ;;  %v2058_v8 = vld [vmem:[#allocation2 + $0x12] sm:$0xff] }
 0x263   :  { %4435 = vst.msk [vmem:[#allocation3 + $0xc] sm:$0xf] %vm1927_vm2, %v8635_v30  ;;  %v3907_v22 = vpop.permute.xlu1 %3906  ;;  %v8648_v1 = vpop.permute.xlu2 %4357  ;;  %v8657_v47 = vpack.c.bf16 %v2058_v8, %v2058_v8 }
 0x264   :  { %v3795_v25 = vpop.permute.xlu0 %3794  ;;  %3226 = vst.msk [vmem:[#allocation3 + $0x94] sm:$0xf] %vm2379_vm6, %v3188_v17  ;;  %v1761_v60 = vmax.f32 %v1569_v59, %v1593_v56  ;;  %v8671_v56 = vpack.c.bf16 %v2513_v21, %v2513_v21  ;;  %v2284_v59 = vld [vmem:[#allocation2 + $0x14] sm:$0xff] }
 0x265   :  { %3834 = vst.msk [vmem:[#allocation3 + $0x88] sm:$0xf] %vm2153_vm4, %v3795_v25  ;;  %v1944_v25 = vld [vmem:[#allocation2 + $0x1] sm:$0xff] }
 0x266   :  { %v1809_v6 = vmax.f32 %v8087_v29, %v1761_v60  ;;  %3946 = vst.msk [vmem:[#allocation3 + $0x88] sm:$0xf] %vm2266_vm5, %v3907_v22  ;;  %v1594_v29 = vmax.f32 %v1241_v23, 0.0  ;;  %v2174_v22 = vld [vmem:[#allocation2 + $0x43] sm:$0xff]  ;;  %v8684_v23 = vpack.c.bf16 %v2284_v59, %v2284_v59 }
 0x267   :  { %4059 = vst.msk [vmem:[#allocation3 + $0x88] sm:$0xf] %vm2379_vm6, %v8316_v36  ;;  %v1180_v16 = vpop.f32.mrf.mxu0  ;;  %v10220_v60 = vld [vmem:[#allocation23_spill] sm:$0xff] }
 0x268   :  { %1858 = vst.msk [vmem:[#allocation2 + $0x58] sm:$0xff] %vm1846_vm1, %v1809_v6  ;;  %v1181_v17 = vadd.f32 %v8257_v52, %v1180_v16  ;;  %v3956_v37 = vld [vmem:[#allocation2 + $0x50] sm:$0xff]  ;;  %v1243_v8 = vadd.f32 %v8257_v52, %v10220_v60  ;;  %v1960_v6 = vpack.c.bf16 %v1944_v25, %v1944_v25  ;;  %v8686_v16 = vpack.c.bf16 %v2174_v22, %v2174_v22 }
 0x269   :  { %4171 = vst.msk [vmem:[#allocation3 + $0x88] sm:$0xf] %vm2493_vm7, %v8554_v27  ;;  %2107 = vrot.lane.b32.xlu1 %v8657_v47, %s7210_s30  ;;  %2218 = vrot.lane.b32.xlu2 %v2186_v4, %s7216_s21  ;;  %v10221_v25 = vld [vmem:[#allocation25_spill] sm:$0xff] }
 0x26a   :  { %2574 = vrot.lane.b32.xlu0 %v1969_v31, %s7214_s17  ;;  %4283 = vst.msk [vmem:[#allocation3 + $0x88] sm:$0xf] %vm2606_vm8, %v8482_v10  ;;  %v1570_v36 = vmax.f32 %v1181_v17, 0.0  ;;  %v8677_v10 = vpack.c.bf16 %v3956_v37, %v3956_v37 }
 0x26b   :  { %4395 = vst.msk [vmem:[#allocation3 + $0x88] sm:$0xf] %vm2719_vm9, %v8514_v35  ;;  %v3412_v48 = vpop.permute.xlu1 %3411  ;;  %v8673_v31 = vpop.permute.xlu2 %2584 }
 0x26c   :  { %v3300_v3 = vpop.permute.xlu0 %3299  ;;  %v1762_v27 = vmax.f32 %v1570_v36, %v1594_v29  ;;  %3603 = vst.msk [vmem:[#allocation3 + $0x18] sm:$0xf] %vm1927_vm2, %v8671_v56 }
 0x26d   :  { %3338 = vst.msk [vmem:[#allocation3 + $0x94] sm:$0xf] %vm2493_vm7, %v3300_v3 }
 0x26e   :  { %3450 = vst.msk [vmem:[#allocation3 + $0x94] sm:$0xf] %vm2606_vm8, %v3412_v48  ;;  %v1810_v35 = vmax.f32 %v8120_v50, %v1762_v27  ;;  %v8694_v50 = vld [vmem:[%s10092_s2] ss:$0 sm:$0xff]  ;;  %v2283_v27 = vld [vmem:[#allocation2 + $0x4] sm:$0xff] }
 0x26f   :  { %3563 = vst.msk [vmem:[#allocation3 + $0x94] sm:$0xf] %vm2719_vm9, %v8349_v13  ;;  %v4404_v42 = vld [vmem:[#allocation2 + $0x54] sm:$0xff]  ;;  %v1182_v18 = vpop.f32.mrf.mxu0  ;;  %v1595_v13 = vmax.f32 %v1243_v8, 0.0  ;;  %v1246_v22 = vadd.f32 %v8694_v50, %v10221_v25 }
 0x270   :  { %v4420_v17 = vpack.c.bf16 %v4404_v42, %v4404_v42  ;;  %1859 = vst.msk [vmem:[#allocation2 + $0x60] sm:$0xff] %vm1846_vm1, %v1810_v35  ;;  %v1183_v52 = vadd.f32 %v8694_v50, %v1182_v18  ;;  %v1949_v36 = vld [vmem:[#allocation2 + $0x51] sm:$0xff]  ;;  %v2299_v42 = vpack.c.bf16 %v2283_v27, %v2283_v27 }
 0x271   :  { %2333 = vrot.lane.b32.xlu1 %v8684_v23, %s7213_s14  ;;  %1933 = vst.msk [vmem:[#allocation3 + $0x50] sm:$0xf] %vm1927_vm2, %v8677_v10  ;;  %2445 = vrot.lane.b32.xlu2 %v8506_v39, %s7211_s12  ;;  %v2510_v48 = vld [vmem:[#allocation2 + $0x11] sm:$0xff]  ;;  %v8714_v60 = vpack.c.bf16 %v1949_v36, %v1949_v36 }
 0x272   :  { %1992 = vrot.lane.b32.xlu0 %v1960_v6, %s7215_s18  ;;  %4436 = vst.msk [vmem:[#allocation3 + $0x1c] sm:$0xf] %vm1927_vm2, %v4420_v17  ;;  %v1571_v4 = vmax.f32 %v1183_v52, 0.0  ;;  %v4292_v59 = vld [vmem:[#allocation2 + $0x53] sm:$0xff]  ;;  %v2526_v35 = vpack.c.bf16 %v2510_v48, %v2510_v48 }
 0x273   :  { %v2019_v29 = vpop.permute.xlu1 %2018  ;;  %2771 = vst.msk [vmem:[#allocation3 + $0x34] sm:$0xf] %vm1927_vm2, %v8686_v16  ;;  %v2021_v3 = vpop.permute.xlu2 %2020  ;;  %v8718_v18 = vpack.c.bf16 %v4292_v59, %v4292_v59 }
 0x274   :  { %v2853_v21 = vpop.permute.xlu0 %2852  ;;  %v1763_v37 = vmax.f32 %v1571_v4, %v1595_v13  ;;  %2055 = vst.msk [vmem:[#allocation3 + $0xe0] sm:$0xf] %vm2040_vm3, %v2021_v3 }
 0x275   :  { %2890 = vst.msk [vmem:[#allocation3 + $0xa4] sm:$0xf] %vm2040_vm3, %v2853_v21 }
 0x276   :  { %v1811_v39 = vmax.f32 %v8146_v19, %v1763_v37  ;;  %3003 = vst.msk [vmem:[#allocation3 + $0xa4] sm:$0xf] %vm2153_vm4, %v8375_v9  ;;  %v1596_v19 = vmax.f32 %v1246_v22, 0.0 }
 0x277   :  { %3115 = vst.msk [vmem:[#allocation3 + $0xa4] sm:$0xf] %vm2266_vm5, %v8556_v62  ;;  %v1185_v8 = vpop.f32.mrf.mxu0  ;;  %v3957_v17 = vld [vmem:[#allocation2 + $0x60] sm:$0xff] }
 0x278   :  { %1860 = vst.msk [vmem:[#allocation2 + $0x68] sm:$0xff] %vm1846_vm1, %v1811_v39  ;;  %v1186_v6 = vadd.f32 %v8694_v50, %v1185_v8  ;;  %v8729_v13 = vpack.c.bf16 %v3957_v17, %v3957_v17 }
 0x279   :  { %2054 = vst.msk [vmem:[#allocation3 + $0xd0] sm:$0xf] %vm2040_vm3, %v2019_v29  ;;  %2558 = vrot.lane.b32.xlu1 %v2526_v35, %s7214_s17  ;;  %2220 = vrot.lane.b32.xlu2 %v8523_v2, %s7216_s21  ;;  %v2511_v29 = vld [vmem:[#allocation2 + $0x21] sm:$0xff]  ;;  %v10222_v2 = vld [vmem:[#allocation29_spill] sm:$0xff] }
 0x27a   :  { %2331 = vrot.lane.b32.xlu0 %v2299_v42, %s7213_s14  ;;  %v1572_v9 = vmax.f32 %v1186_v6, 0.0  ;;  %3604 = vst.msk [vmem:[#allocation3 + $0x28] sm:$0xf] %vm1927_vm2, %v8714_v60  ;;  %v1248_v36 = vadd.f32 %v8694_v50, %v10222_v2  ;;  %v8746_v22 = vpack.c.bf16 %v2511_v29, %v2511_v29 }
 0x27b   :  { %v2358_v52 = vpop.permute.xlu1 %2357  ;;  %2772 = vst.msk [vmem:[#allocation3 + $0x44] sm:$0xf] %vm1927_vm2, %v8718_v18  ;;  %v8733_v21 = vpop.permute.xlu2 %2359 }
 0x27c   :  { %v2132_v62 = vpop.permute.xlu0 %2131  ;;  %v1764_v4 = vmax.f32 %v1572_v9, %v1596_v19  ;;  %1934 = vst.msk [vmem:[#allocation3 + $0x60] sm:$0xf] %vm1927_vm2, %v8729_v13 }
 0x27d   :  { %2167 = vst.msk [vmem:[#allocation3 + $0xd0] sm:$0xf] %vm2153_vm4, %v2132_v62 }
 0x27e   :  { %2280 = vst.msk [vmem:[#allocation3 + $0xd0] sm:$0xf] %vm2266_vm5, %v8623_v45  ;;  %v1812_v37 = vmax.f32 %v8183_v49, %v1764_v4  ;;  %v1597_v49 = vmax.f32 %v1248_v36, 0.0 }
 0x27f   :  { %2393 = vst.msk [vmem:[#allocation3 + $0xd0] sm:$0xf] %vm2379_vm6, %v2358_v52  ;;  %v4405_v3 = vld [vmem:[#allocation2 + $0x64] sm:$0xff]  ;;  %v1187_v48 = vpop.f32.mrf.mxu0 }
 0x280   :  { %v2176_v27 = vld [vmem:[#allocation2 + $0x63] sm:$0xff]  ;;  %v4421_v25 = vpack.c.bf16 %v4405_v3, %v4405_v3  ;;  %1861 = vst.msk [vmem:[#allocation2 + $0x70] sm:$0xff] %vm1846_vm1, %v1812_v37  ;;  %v1188_v45 = vadd.f32 %v8694_v50, %v1187_v48 }
 0x281   :  { %v2515_v59 = vld [vmem:[#allocation2 + $0x61] sm:$0xff]  ;;  %v8748_v39 = vpack.c.bf16 %v2176_v27, %v2176_v27  ;;  %2832 = vrot.lane.b32.xlu1 %v8684_v23, %s7215_s18  ;;  %2560 = vrot.lane.b32.xlu2 %v8746_v22, %s7214_s17 }
 0x282   :  { %1994 = vrot.lane.b32.xlu0 %v2526_v35, %s7215_s18  ;;  %4437 = vst.msk [vmem:[#allocation3 + $0x2c] sm:$0xf] %vm1927_vm2, %v4421_v25  ;;  %v1573_v8 = vmax.f32 %v1188_v45, 0.0  ;;  %v8756_v42 = vpack.c.bf16 %v2515_v59, %v2515_v59  ;;  %v2624_v23 = vld [vmem:[#allocation2 + $0x22] sm:$0xff]  ;;  %v10223_v35 = vld [vmem:[#allocation33_spill] sm:$0xff] }
 0x283   :  { %v2583_v17 = vpop.permute.xlu1 %2582  ;;  %2773 = vst.msk [vmem:[#allocation3 + $0x54] sm:$0xf] %vm1927_vm2, %v8748_v39  ;;  %v8760_v9 = vpop.permute.xlu2 %2135  ;;  %v1251_v62 = vadd.f32 %v8694_v50, %v10223_v35  ;;  %v8769_v29 = vpack.c.bf16 %v2624_v23, %v2624_v23  ;;  %v2285_v45 = vld [vmem:[#allocation2 + $0x24] sm:$0xff] }
 0x284   :  { %v2696_v6 = vpop.permute.xlu0 %2695  ;;  %v1765_v19 = vmax.f32 %v1573_v8, %v1597_v49  ;;  %2619 = vst.msk [vmem:[#allocation3 + $0xc0] sm:$0xf] %vm2606_vm8, %v2583_v17  ;;  %v10224_v49 = vld [vmem:[#allocation36_spill] sm:$0xff] }
 0x285   :  { %2732 = vst.msk [vmem:[#allocation3 + $0xc0] sm:$0xf] %vm2719_vm9, %v2696_v6 }
 0x286   :  { %v1813_v52 = vmax.f32 %v8206_v20, %v1765_v19  ;;  %3605 = vst.msk [vmem:[#allocation3 + $0x38] sm:$0xf] %vm1927_vm2, %v8756_v42  ;;  %v1598_v20 = vmax.f32 %v1251_v62, 0.0  ;;  %v8794_v62 = vpack.c.bf16 %v2285_v45, %v2285_v45 }
 0x287   :  { %v1190_v4 = vpop.f32.mrf.mxu0  ;;  %v2403_v2 = vld [vmem:[#allocation2 + $0x70] sm:$0xff] }
 0x288   :  { %1862 = vst.msk [vmem:[#allocation2 + $0x78] sm:$0xff] %vm1846_vm1, %v1813_v52  ;;  %v1191_v36 = vadd.f32 %v8694_v50, %v1190_v4  ;;  %v8773_v37 = vpack.c.bf16 %v2403_v2, %v2403_v2 }
 0x289   :  { %2673 = vrot.lane.b32.xlu1 %v8769_v29, %s7212_s13  ;;  %1996 = vrot.lane.b32.xlu2 %v8746_v22, %s7215_s18 }
 0x28a   :  { %2671 = vrot.lane.b32.xlu0 %v8657_v47, %s7212_s13  ;;  %v1574_v3 = vmax.f32 %v1191_v36, 0.0  ;;  %1935 = vst.msk [vmem:[#allocation3 + $0x70] sm:$0xf] %vm1927_vm2, %v8773_v37  ;;  %v1253_v47 = vadd.f32 %v8694_v50, %v10224_v49 }
 0x28b   :  { %v4134_v27 = vpop.permute.xlu1 %4133  ;;  %v8783_v25 = vpop.permute.xlu2 %2699 }
 0x28c   :  { %v4246_v48 = vpop.permute.xlu0 %4245  ;;  %v1766_v59 = vmax.f32 %v1574_v3, %v1598_v20  ;;  %4172 = vst.msk [vmem:[#allocation3 + $0x98] sm:$0xf] %vm2493_vm7, %v4134_v27  ;;  %v10225_v27 = vld [vmem:[#allocation40_spill] sm:$0xff] }
 0x28d   :  { %4284 = vst.msk [vmem:[#allocation3 + $0x98] sm:$0xf] %vm2606_vm8, %v4246_v48 }
 0x28e   :  { %v1814_v8 = vmax.f32 %v8240_v63, %v1766_v59  ;;  %4396 = vst.msk [vmem:[#allocation3 + $0x98] sm:$0xf] %vm2719_vm9, %v8648_v1  ;;  %v1599_v63 = vmax.f32 %v1253_v47, 0.0  ;;  %v1256_v59 = vadd.f32 %v8694_v50, %v10225_v27 }
 0x28f   :  { %v4406_v6 = vld [vmem:[#allocation2 + $0x74] sm:$0xff]  ;;  %v1192_v17 = vpop.f32.mrf.mxu0 }
 0x290   :  { %v1951_v19 = vld [vmem:[#allocation2 + $0x71] sm:$0xff]  ;;  %v4422_v23 = vpack.c.bf16 %v4406_v6, %v4406_v6  ;;  %1863 = vst.msk [vmem:[#allocation2 + $0x80] sm:$0xff] %vm1846_vm1, %v1814_v8  ;;  %v1193_v35 = vadd.f32 %v8694_v50, %v1192_v17 }
 0x291   :  { %v8796_v52 = vpack.c.bf16 %v1951_v19, %v1951_v19  ;;  %v2177_v4 = vld [vmem:[#allocation2 + $0x73] sm:$0xff]  ;;  %2109 = vrot.lane.b32.xlu1 %v8769_v29, %s7210_s30  ;;  %2335 = vrot.lane.b32.xlu2 %v8794_v62, %s7213_s14 }
 0x292   :  { %2447 = vrot.lane.b32.xlu0 %v8544_v24, %s7211_s12  ;;  %4438 = vst.msk [vmem:[#allocation3 + $0x3c] sm:$0xf] %vm1927_vm2, %v4422_v23  ;;  %v1575_v1 = vmax.f32 %v1193_v35, 0.0  ;;  %v8805_v20 = vpack.c.bf16 %v2177_v4, %v2177_v4  ;;  %v10226_v23 = vld [vmem:[#allocation43_spill] sm:$0xff] }
 0x293   :  { %v2698_v36 = vpop.permute.xlu1 %2697  ;;  %3606 = vst.msk [vmem:[#allocation3 + $0x48] sm:$0xf] %vm1927_vm2, %v8796_v52  ;;  %v8809_v48 = vpop.permute.xlu2 %2475  ;;  %v1258_v35 = vadd.f32 %v8694_v50, %v10226_v23 }
 0x294   :  { %v2472_v2 = vpop.permute.xlu0 %2471  ;;  %v1767_v3 = vmax.f32 %v1575_v1, %v1599_v63  ;;  %2774 = vst.msk [vmem:[#allocation3 + $0x64] sm:$0xf] %vm1927_vm2, %v8805_v20 }
 0x295   :  { %2507 = vst.msk [vmem:[#allocation3 + $0xd0] sm:$0xf] %vm2493_vm7, %v2472_v2 }
 0x296   :  { %2620 = vst.msk [vmem:[#allocation3 + $0xd0] sm:$0xf] %vm2606_vm8, %v8673_v31  ;;  %v1815_v45 = vmax.f32 %v8273_v0, %v1767_v3  ;;  %v1600_v31 = vmax.f32 %v1256_v59, 0.0 }
 0x297   :  { %2733 = vst.msk [vmem:[#allocation3 + $0xd0] sm:$0xf] %vm2719_vm9, %v2698_v36  ;;  %v1195_v49 = vpop.f32.mrf.mxu0 }
 0x298   :  { %1864 = vst.msk [vmem:[#allocation2 + $0x88] sm:$0xff] %vm1846_vm1, %v1815_v45  ;;  %v1196_v47 = vadd.f32 %v8694_v50, %v1195_v49 }
 0x299   :  { %3281 = vrot.lane.b32.xlu1 %v8567_v58, %s7211_s12  ;;  %2834 = vrot.lane.b32.xlu2 %v8794_v62, %s7215_s18 }
 0x29a   :  { %2945 = vrot.lane.b32.xlu0 %v8544_v24, %s7210_s30  ;;  %v1576_v8 = vmax.f32 %v1196_v47, 0.0 }
 0x29b   :  { %v2134_v6 = vpop.permute.xlu1 %2133  ;;  %v2009_v19 = vpop.permute.xlu2 %2008 }
 0x29c   :  { %v2247_v0 = vpop.permute.xlu0 %2246  ;;  %v1768_v17 = vmax.f32 %v1576_v8, %v1600_v31  ;;  %2168 = vst.msk [vmem:[#allocation3 + $0xe0] sm:$0xf] %vm2153_vm4, %v2134_v6  ;;  %v10227_v31 = vld [vmem:[#allocation47_spill] sm:$0xff] }
 0x29d   :  { %2281 = vst.msk [vmem:[#allocation3 + $0xe0] sm:$0xf] %vm2266_vm5, %v2247_v0  ;;  %v1261_v8 = vadd.f32 %v8694_v50, %v10227_v31 }
 0x29e   :  { %v1816_v4 = vmax.f32 %v8312_v53, %v1768_v17  ;;  %2394 = vst.msk [vmem:[#allocation3 + $0xe0] sm:$0xf] %vm2379_vm6, %v8733_v21  ;;  %v1601_v21 = vmax.f32 %v1258_v35, 0.0 }
 0x29f   :  { %v4407_v24 = vld [vmem:[#allocation2 + $0x84] sm:$0xff]  ;;  %2049 = vst.msk [vmem:[#allocation3 + $0x80] sm:$0xf] %vm2040_vm3, %v2009_v19  ;;  %v1197_v63 = vpop.f32.mrf.mxu0 }
 0x2a0   :  { %v4423_v1 = vpack.c.bf16 %v4407_v24, %v4407_v24  ;;  %1865 = vst.msk [vmem:[#allocation2 + $0x90] sm:$0xff] %vm1846_vm1, %v1816_v4  ;;  %v1198_v2 = vadd.f32 %v8694_v50, %v1197_v63  ;;  %v2517_v36 = vld [vmem:[#allocation2 + $0x81] sm:$0xff]  ;;  %v2060_v4 = vld [vmem:[#allocation2 + $0x32] sm:$0xff] }
 0x2a1   :  { %v3735_v3 = vld [vmem:[#allocation2 + $0x83] sm:$0xff]  ;;  %2449 = vrot.lane.b32.xlu1 %v8581_v44, %s7211_s12  ;;  %3057 = vrot.lane.b32.xlu2 %v8746_v22, %s7216_s21  ;;  %v8847_v49 = vpack.c.bf16 %v2517_v36, %v2517_v36  ;;  %v10228_v24 = vld [vmem:[#allocation50_spill] sm:$0xff] }
 0x2a2   :  { %2222 = vrot.lane.b32.xlu0 %v8567_v58, %s7216_s21  ;;  %v8842_v53 = vpack.c.bf16 %v3735_v3, %v3735_v3  ;;  %4439 = vst.msk [vmem:[#allocation3 + $0x4c] sm:$0xf] %vm1927_vm2, %v4423_v1  ;;  %v1577_v27 = vmax.f32 %v1198_v2, 0.0  ;;  %v1263_v63 = vadd.f32 %v8694_v50, %v10228_v24 }
 0x2a3   :  { %v2474_v45 = vpop.permute.xlu1 %2473  ;;  %v8852_v58 = vpop.permute.xlu2 %2347  ;;  %3607 = vst.msk [vmem:[#allocation3 + $0x58] sm:$0xf] %vm1927_vm2, %v8847_v49 }
 0x2a4   :  { %v2023_v59 = vpop.permute.xlu0 %2022  ;;  %2775 = vst.msk [vmem:[#allocation3 + $0x74] sm:$0xf] %vm1927_vm2, %v8842_v53  ;;  %v1769_v47 = vmax.f32 %v1577_v27, %v1601_v21  ;;  %v2076_v21 = vpack.c.bf16 %v2060_v4, %v2060_v4  ;;  %v10230_v4 = vld [vmem:[#allocation56_spill] sm:$0xff] }
 0x2a5   :  { %2056 = vst.msk [vmem:[#allocation3 + $0xf0] sm:$0xf] %vm2040_vm3, %v2023_v59  ;;  %v1268_v24 = vadd.f32 %v8694_v50, %v10230_v4 }
 0x2a6   :  { %2169 = vst.msk [vmem:[#allocation3 + $0xf0] sm:$0xf] %vm2153_vm4, %v8760_v9  ;;  %v1817_v22 = vmax.f32 %v8342_v61, %v1769_v47  ;;  %v1602_v9 = vmax.f32 %v1261_v8, 0.0 }
 0x2a7   :  { %2508 = vst.msk [vmem:[#allocation3 + $0xe0] sm:$0xf] %vm2493_vm7, %v2474_v45  ;;  %v1200_v0 = vpop.f32.mrf.mxu0 }
 0x2a8   :  { %1866 = vst.msk [vmem:[#allocation2 + $0x98] sm:$0xff] %vm1846_vm1, %v1817_v22  ;;  %v1201_v6 = vadd.f32 %v8694_v50, %v1200_v0 }
 0x2a9   :  { %2947 = vrot.lane.b32.xlu1 %v8581_v44, %s7210_s30  ;;  %3393 = vrot.lane.b32.xlu2 %v8794_v62, %s7214_s17 }
 0x2aa   :  { %3169 = vrot.lane.b32.xlu0 %v8769_v29, %s7213_s14  ;;  %v1578_v17 = vmax.f32 %v1201_v6, 0.0 }
 0x2ab   :  { %v2249_v19 = vpop.permute.xlu1 %2248  ;;  %v8871_v35 = vpop.permute.xlu2 %2123 }
 0x2ac   :  { %v2362_v61 = vpop.permute.xlu0 %2361  ;;  %v1770_v23 = vmax.f32 %v1578_v17, %v1602_v9  ;;  %2282 = vst.msk [vmem:[#allocation3 + $0xf0] sm:$0xf] %vm2266_vm5, %v2249_v19 }
 0x2ad   :  { %2395 = vst.msk [vmem:[#allocation3 + $0xf0] sm:$0xf] %vm2379_vm6, %v2362_v61 }
 0x2ae   :  { %v1818_v29 = vmax.f32 %v8371_v41, %v1770_v23  ;;  %2509 = vst.msk [vmem:[#allocation3 + $0xf0] sm:$0xf] %vm2493_vm7, %v8809_v48  ;;  %v1603_v41 = vmax.f32 %v1263_v63, 0.0  ;;  %v2286_v23 = vld [vmem:[#allocation2 + $0x34] sm:$0xff] }
 0x2af   :  { %v4408_v1 = vld [vmem:[#allocation2 + $0x94] sm:$0xff]  ;;  %v1202_v62 = vpop.f32.mrf.mxu0 }
 0x2b0   :  { %v4072_v2 = vld [vmem:[#allocation2 + $0x91] sm:$0xff]  ;;  %v4424_v36 = vpack.c.bf16 %v4408_v1, %v4408_v1  ;;  %1867 = vst.msk [vmem:[#allocation2 + $0xa0] sm:$0xff] %vm1846_vm1, %v1818_v29  ;;  %v1203_v3 = vadd.f32 %v8694_v50, %v1202_v62  ;;  %v8914_v62 = vpack.c.bf16 %v2286_v23, %v2286_v23 }
 0x2b1   :  { %v8881_v27 = vpack.c.bf16 %v4072_v2, %v4072_v2  ;;  %2224 = vrot.lane.b32.xlu1 %v8596_v5, %s7216_s21  ;;  %2111 = vrot.lane.b32.xlu2 %v2076_v21, %s7210_s30 }
 0x2b2   :  { %3506 = vrot.lane.b32.xlu0 %v8581_v44, %s7212_s13  ;;  %4440 = vst.msk [vmem:[#allocation3 + $0x5c] sm:$0xf] %vm1927_vm2, %v4424_v36  ;;  %v1579_v48 = vmax.f32 %v1203_v3, 0.0  ;;  %v10229_v44 = vld [vmem:[#allocation53_spill] sm:$0xff] }
 0x2b3   :  { %v2589_v45 = vpop.permute.xlu1 %2588  ;;  %3608 = vst.msk [vmem:[#allocation3 + $0x68] sm:$0xf] %vm1927_vm2, %v8881_v27  ;;  %v8892_v31 = vpop.permute.xlu2 %2687  ;;  %v1266_v8 = vadd.f32 %v8694_v50, %v10229_v44  ;;  %v7097_v44 = vld [vmem:[%s10093_s3 + $0x20] sm:$0xff] }
 0x2b4   :  { %v2587_v59 = vpop.permute.xlu0 %2586  ;;  %v1771_v47 = vmax.f32 %v1579_v48, %v1603_v41  ;;  %2622 = vst.msk [vmem:[#allocation3 + $0xf0] sm:$0xf] %vm2606_vm8, %v2589_v45 }
 0x2b5   :  { %2621 = vst.msk [vmem:[#allocation3 + $0xe0] sm:$0xf] %vm2606_vm8, %v2587_v59  ;;  %v1604_v9 = vmax.f32 %v1266_v8, 0.0 }
 0x2b6   :  { %2734 = vst.msk [vmem:[#allocation3 + $0xe0] sm:$0xf] %vm2719_vm9, %v8783_v25  ;;  %v1819_v22 = vmax.f32 %v8394_v14, %v1771_v47 }
 0x2b7   :  { %v1205_v0 = vpop.f32.mrf.mxu0 }
 0x2b8   :  { %1868 = vst.msk [vmem:[#allocation2 + $0xa8] sm:$0xff] %vm1846_vm1, %v1819_v22  ;;  %v1206_v6 = vadd.f32 %v8694_v50, %v1205_v0  ;;  %v3619_v0 = vld [vmem:[#allocation2 + $0x42] sm:$0xff] }
 0x2b9   :  { %3666 = vrot.lane.b32.xlu1 %v2076_v21, %s7215_s18  ;;  %2675 = vrot.lane.b32.xlu2 %v2076_v21, %s7212_s13 }
 0x2ba   :  { %1998 = vrot.lane.b32.xlu0 %v8598_v33, %s7215_s18  ;;  %v1580_v17 = vmax.f32 %v1206_v6, 0.0  ;;  %v3635_v6 = vpack.c.bf16 %v3619_v0, %v3619_v0 }
 0x2bb   :  { %v2122_v61 = vpop.permute.xlu1 %2121  ;;  %v2849_v14 = vpop.permute.xlu2 %2848 }
 0x2bc   :  { %v2702_v25 = vpop.permute.xlu0 %2701  ;;  %v1772_v19 = vmax.f32 %v1580_v17, %v1604_v9  ;;  %2162 = vst.msk [vmem:[#allocation3 + $0x80] sm:$0xf] %vm2153_vm4, %v2122_v61  ;;  %v7095_v9 = vld [vmem:[%s10093_s3 + $0x10] sm:$0xff]  ;;  %v7094_v17 = vld [vmem:[%s10093_s3 + $0x8] sm:$0xff] }
 0x2bd   :  { %2735 = vst.msk [vmem:[#allocation3 + $0xf0] sm:$0xf] %vm2719_vm9, %v2702_v25 }
 0x2be   :  { %v1820_v63 = vmax.f32 %v8420_v46, %v1772_v19  ;;  %2888 = vst.msk [vmem:[#allocation3 + $0x84] sm:$0xf] %vm2040_vm3, %v2849_v14  ;;  %v1605_v46 = vmax.f32 %v1268_v24, 0.0  ;;  %v7093_v14 = vld [vmem:[%s10093_s3] sm:$0xff] }
 0x2bf   :  { %v4409_v29 = vld [vmem:[#allocation2 + $0xa4] sm:$0xff]  ;;  %3001 = vst.msk [vmem:[#allocation3 + $0x84] sm:$0xf] %vm2153_vm4, %v8373_v7  ;;  %v1207_v1 = vpop.f32.mrf.mxu0 }
 0x2c0   :  { %v4425_v2 = vpack.c.bf16 %v4409_v29, %v4409_v29  ;;  %1869 = vst.msk [vmem:[#allocation2 + $0xb0] sm:$0xff] %vm1846_vm1, %v1820_v63  ;;  %v1208_v36 = vadd.f32 %v8694_v50, %v1207_v1  ;;  %v4073_v41 = vld [vmem:[#allocation2 + $0xa1] sm:$0xff] }
 0x2c1   :  { %3113 = vst.msk [vmem:[#allocation3 + $0x84] sm:$0xf] %vm2266_vm5, %v8450_v40  ;;  %3171 = vrot.lane.b32.xlu1 %v2076_v21, %s7213_s14  ;;  %3778 = vrot.lane.b32.xlu2 %v8596_v5, %s7210_s30  ;;  %v8936_v59 = vpack.c.bf16 %v4073_v41, %v4073_v41  ;;  %v7108_v41 = vld [vmem:[%s10093_s3 + $0x78] sm:$0xff] }
 0x2c2   :  { %2337 = vrot.lane.b32.xlu0 %v8914_v62, %s7213_s14  ;;  %4441 = vst.msk [vmem:[#allocation3 + $0x6c] sm:$0xf] %vm1927_vm2, %v4425_v2  ;;  %v1581_v7 = vmax.f32 %v1208_v36, 0.0  ;;  %v2787_v36 = vld [vmem:[#allocation2 + $0x44] sm:$0xff]  ;;  %4912 = vmatpush.bf16.msrb.mxu2 %v7108_v41 }
 0x2c3   :  { %3225 = vst.msk [vmem:[#allocation3 + $0x84] sm:$0xf] %vm2379_vm6, %v8463_v55  ;;  %v2462_v50 = vpop.permute.xlu1 %2461  ;;  %v2219_v21 = vpop.permute.xlu2 %2218  ;;  %v7100_v55 = vld [vmem:[%s10093_s3 + $0x38] sm:$0xff] }
 0x2c4   :  { %v2235_v3 = vpop.permute.xlu0 %2234  ;;  %3337 = vst.msk [vmem:[#allocation3 + $0x84] sm:$0xf] %vm2493_vm7, %v8422_v43  ;;  %v1773_v40 = vmax.f32 %v1581_v7, %v1605_v46  ;;  %4863 = vmatpush.bf16.msrb.mxu1 %v7100_v55  ;;  %v2803_v46 = vpack.c.bf16 %v2787_v36, %v2787_v36  ;;  %v2062_v55 = vld [vmem:[#allocation2 + $0x52] sm:$0xff] }
 0x2c5   :  { %3449 = vst.msk [vmem:[#allocation3 + $0x84] sm:$0xf] %vm2606_vm8, %v8461_v28 }
 0x2c6   :  { %3562 = vst.msk [vmem:[#allocation3 + $0x84] sm:$0xf] %vm2719_vm9, %v8570_v15  ;;  %v1821_v48 = vmax.f32 %v8431_v26, %v1773_v40 }
 0x2c7   :  { %2275 = vst.msk [vmem:[#allocation3 + $0x80] sm:$0xf] %vm2266_vm5, %v2235_v3 }
 0x2c8   :  { %1870 = vst.msk [vmem:[#allocation2 + $0xb8] sm:$0xff] %vm1846_vm1, %v1821_v48  ;;  %v7116_v48 = vld [vmem:[%s10093_s3 + $0xb8] sm:$0xff] }
 0x2c9   :  { %2388 = vst.msk [vmem:[#allocation3 + $0x80] sm:$0xf] %vm2379_vm6, %v8852_v58  ;;  %4003 = vrot.lane.b32.xlu1 %v8615_v54, %s7213_s14  ;;  %3283 = vrot.lane.b32.xlu2 %v8596_v5, %s7211_s12 }
 0x2ca   :  { %2562 = vrot.lane.b32.xlu0 %v8598_v33, %s7214_s17  ;;  %2502 = vst.msk [vmem:[#allocation3 + $0x80] sm:$0xf] %vm2493_vm7, %v2462_v50  ;;  %4961 = vmatpush.bf16.msrb.mxu3 %v7116_v48 }
 0x2cb   :  { %v2237_v26 = vpop.permute.xlu1 %2236  ;;  %3609 = vst.msk [vmem:[#allocation3 + $0x78] sm:$0xf] %vm1927_vm2, %v8936_v59  ;;  %v2446_v28 = vpop.permute.xlu2 %2445 }
 0x2cc   :  { %v2011_v43 = vpop.permute.xlu0 %2010 }
 0x2cd   :  { %2050 = vst.msk [vmem:[#allocation3 + $0x90] sm:$0xf] %vm2040_vm3, %v2011_v43 }
 0x2ce   :  { %2163 = vst.msk [vmem:[#allocation3 + $0x90] sm:$0xf] %vm2153_vm4, %v8871_v35 }
 0x2cf   :  { %2276 = vst.msk [vmem:[#allocation3 + $0x90] sm:$0xf] %vm2266_vm5, %v2237_v26  ;;  %v4410_v15 = vld [vmem:[#allocation2 + $0xb4] sm:$0xff] }
 0x2d0   :  { %v4426_v58 = vpack.c.bf16 %v4410_v15, %v4410_v15  ;;  %v2288_v15 = vld [vmem:[#allocation2 + $0x54] sm:$0xff] }
 0x2d1   :  { %3508 = vrot.lane.b32.xlu1 %v8615_v54, %s7212_s13  ;;  %2836 = vrot.lane.b32.xlu2 %v8914_v62, %s7215_s18 }
 0x2d2   :  { %3059 = vrot.lane.b32.xlu0 %v8598_v33, %s7216_s21  ;;  %4442 = vst.msk [vmem:[#allocation3 + $0x7c] sm:$0xf] %vm1927_vm2, %v4426_v58  ;;  %v7099_v33 = vld [vmem:[%s10093_s3 + $0x30] sm:$0xff]  ;;  %v2078_v58 = vpack.c.bf16 %v2062_v55, %v2062_v55 }
 0x2d3   :  { %v2106_v35 = vpop.permute.xlu1 %2105  ;;  %v2221_v45 = vpop.permute.xlu2 %2220  ;;  %4864 = vmatpush.bf16.msrb.mxu1 %v7099_v33 }
 0x2d4   :  { %v2350_v5 = vpop.permute.xlu0 %2349 }
 0x2d5   :  { %2389 = vst.msk [vmem:[#allocation3 + $0x90] sm:$0xf] %vm2379_vm6, %v2350_v5  ;;  %v9068_v5 = vpack.c.bf16 %v2288_v15, %v2288_v15  ;;  %v7114_v15 = vld [vmem:[%s10093_s3 + $0xa8] sm:$0xff] }
 0x2d6   :  { %2503 = vst.msk [vmem:[#allocation3 + $0x90] sm:$0xf] %vm2493_vm7, %v8275_v38  ;;  %v7098_v38 = vld [vmem:[%s10093_s3 + $0x28] sm:$0xff] }
 0x2d7   :  { %2616 = vst.msk [vmem:[#allocation3 + $0x90] sm:$0xf] %vm2606_vm8, %v8418_v11  ;;  %4865 = vmatpush.bf16.msrb.mxu1 %v7098_v38 }
 0x2d8   :  { %2729 = vst.msk [vmem:[#allocation3 + $0x90] sm:$0xf] %vm2719_vm9, %v8398_v51 }
 0x2d9   :  { %2949 = vrot.lane.b32.xlu1 %v8615_v54, %s7210_s30  ;;  %2451 = vrot.lane.b32.xlu2 %v8615_v54, %s7211_s12  ;;  %v7096_v54 = vld [vmem:[%s10093_s3 + $0x18] sm:$0xff] }
 0x2da   :  { %3890 = vrot.lane.b32.xlu0 %v8914_v62, %s7216_s21 }
 0x2db   :  { %v2108_v51 = vpop.permute.xlu1 %2107  ;;  %v2561_v47 = vpop.permute.xlu2 %2560  ;;  %4866 = vmatpush.bf16.msrb.mxu1 %v7097_v44 }
 0x2dc   :  { %v2575_v11 = vpop.permute.xlu0 %2574 }
 0x2dd   :  { %2615 = vst.msk [vmem:[#allocation3 + $0x80] sm:$0xf] %vm2606_vm8, %v2575_v11 }
 0x2de   :  { %2728 = vst.msk [vmem:[#allocation3 + $0x80] sm:$0xf] %vm2719_vm9, %v8892_v31 }
 0x2df   :  { %4867 = vmatpush.bf16.msrb.mxu1 %v7096_v54 }
 0x2e1   :  { %2564 = vrot.lane.b32.xlu1 %v8671_v56, %s7214_s17  ;;  %2226 = vrot.lane.b32.xlu2 %v8686_v16, %s7216_s21 }
 0x2e2   :  { %3395 = vrot.lane.b32.xlu0 %v8914_v62, %s7214_s17 }
 0x2e3   :  { %v2334_v31 = vpop.permute.xlu1 %2333  ;;  %v1997_v22 = vpop.permute.xlu2 %1996  ;;  %4868 = vmatpush.bf16.msrb.mxu1 %v7095_v9  ;;  %v7103_v9 = vld [vmem:[%s10093_s3 + $0x50] sm:$0xff] }
 0x2e4   :  { %v1993_v8 = vpop.permute.xlu0 %1992  ;;  %2043 = vst.msk [vmem:[#allocation3 + $0x20] sm:$0xf] %vm2040_vm3, %v1997_v22 }
 0x2e5   :  { %2041 = vst.msk [vmem:[#allocation3] sm:$0xf] %vm2040_vm3, %v1993_v8  ;;  %v7104_v8 = vld [vmem:[%s10093_s3 + $0x58] sm:$0xff] }
 0x2e6   :  { %2154 = vst.msk [vmem:[#allocation3] sm:$0xf] %vm2153_vm4, %v2106_v35 }
 0x2e7   :  { %2267 = vst.msk [vmem:[#allocation3] sm:$0xf] %vm2266_vm5, %v2219_v21  ;;  %4869 = vmatpush.bf16.msrb.mxu1 %v7094_v17  ;;  %v7115_v17 = vld [vmem:[%s10093_s3 + $0xb0] sm:$0xff] }
 0x2e8   :  { %4962 = vmatpush.bf16.msrb.mxu3 %v7115_v17 }
 0x2e9   :  { %2000 = vrot.lane.b32.xlu1 %v8671_v56, %s7215_s18  ;;  %3668 = vrot.lane.b32.xlu2 %v3635_v6, %s7215_s18 }
 0x2ea   :  { %2677 = vrot.lane.b32.xlu0 %v3635_v6, %s7212_s13 }
 0x2eb   :  { %v2559_v25 = vpop.permute.xlu1 %2558  ;;  %v2336_v19 = vpop.permute.xlu2 %2335  ;;  %4870 = vmatpush.bf16.msrb.mxu1 %v7093_v14  ;;  %v7101_v14 = vld [vmem:[%s10093_s3 + $0x40] sm:$0xff] }
 0x2ec   :  { %v2332_v61 = vpop.permute.xlu0 %2331  ;;  %4963 = vmatpush.bf16.msrb.mxu3 %v7114_v15 }
 0x2ed   :  { %2380 = vst.msk [vmem:[#allocation3] sm:$0xf] %vm2379_vm6, %v2332_v61 }
 0x2ee   :  { %2494 = vst.msk [vmem:[#allocation3] sm:$0xf] %vm2493_vm7, %v2446_v28 }
 0x2ef   :  { %2607 = vst.msk [vmem:[#allocation3] sm:$0xf] %vm2606_vm8, %v2559_v25 }
 0x2f1   :  { %2339 = vrot.lane.b32.xlu1 %v8635_v30, %s7213_s14  ;;  %4115 = vrot.lane.b32.xlu2 %v8671_v56, %s7211_s12 }
 0x2f2   :  { %2113 = vrot.lane.b32.xlu0 %v3635_v6, %s7210_s30 }
 0x2f3   :  { %v2833_v23 = vpop.permute.xlu1 %2832  ;;  %v2835_v24 = vpop.permute.xlu2 %2834 }
 0x2f4   :  { %v1995_v4 = vpop.permute.xlu0 %1994  ;;  %2880 = vst.msk [vmem:[#allocation3 + $0x4] sm:$0xf] %vm2040_vm3, %v2833_v23 }
 0x2f5   :  { %2881 = vst.msk [vmem:[#allocation3 + $0x14] sm:$0xf] %vm2040_vm3, %v2835_v24 }
 0x2f6   :  { %2042 = vst.msk [vmem:[#allocation3 + $0x10] sm:$0xf] %vm2040_vm3, %v1995_v4 }
 0x2f7   :  { %2155 = vst.msk [vmem:[#allocation3 + $0x10] sm:$0xf] %vm2153_vm4, %v2108_v51  ;;  %v7107_v51 = vld [vmem:[%s10093_s3 + $0x70] sm:$0xff] }
 0x2f8   :  { %2268 = vst.msk [vmem:[#allocation3 + $0x10] sm:$0xf] %vm2266_vm5, %v2221_v45  ;;  %4913 = vmatpush.bf16.msrb.mxu2 %v7107_v51 }
 0x2f9   :  { %2381 = vst.msk [vmem:[#allocation3 + $0x10] sm:$0xf] %vm2379_vm6, %v2334_v31  ;;  %3892 = vrot.lane.b32.xlu1 %v8635_v30, %s7216_s21  ;;  %3285 = vrot.lane.b32.xlu2 %v8686_v16, %s7211_s12  ;;  %v7105_v31 = vld [vmem:[%s10093_s3 + $0x60] sm:$0xff] }
 0x2fa   :  { %3780 = vrot.lane.b32.xlu0 %v8686_v16, %s7210_s30 }
 0x2fb   :  { %v2674_v63 = vpop.permute.xlu1 %2673  ;;  %v3058_v1 = vpop.permute.xlu2 %3057 }
 0x2fc   :  { %v2672_v29 = vpop.permute.xlu0 %2671 }
 0x2fd   :  { %2720 = vst.msk [vmem:[#allocation3] sm:$0xf] %vm2719_vm9, %v2672_v29 }
 0x301   :  { %4227 = vrot.lane.b32.xlu1 %v3635_v6, %s7214_s17  ;;  %4005 = vrot.lane.b32.xlu2 %v8677_v10, %s7213_s14 }
 0x302   :  { %4339 = vrot.lane.b32.xlu0 %v8686_v16, %s7212_s13 }
 0x303   :  { %v2110_v30 = vpop.permute.xlu1 %2109  ;;  %v3394_v2 = vpop.permute.xlu2 %3393 }
 0x304   :  { %v2448_v62 = vpop.permute.xlu0 %2447  ;;  %2156 = vst.msk [vmem:[#allocation3 + $0x20] sm:$0xf] %vm2153_vm4, %v2110_v30  ;;  %v6551_v50 = vld [vmem:[#allocation3] sm:$0xf] }
 0x305   :  { %2495 = vst.msk [vmem:[#allocation3 + $0x10] sm:$0xf] %vm2493_vm7, %v2448_v62 }
 0x306   :  { %2608 = vst.msk [vmem:[#allocation3 + $0x10] sm:$0xf] %vm2606_vm8, %v2561_v47  ;;  %v7106_v47 = vld [vmem:[%s10093_s3 + $0x68] sm:$0xff] }
 0x307   :  { %2721 = vst.msk [vmem:[#allocation3 + $0x10] sm:$0xf] %vm2719_vm9, %v2674_v63  ;;  %4914 = vmatpush.bf16.msrb.mxu2 %v7106_v47  ;;  %v7112_v47 = vld [vmem:[%s10093_s3 + $0x98] sm:$0xff] }
 0x309   :  { %3173 = vrot.lane.b32.xlu1 %v3635_v6, %s7213_s14  ;;  %2951 = vrot.lane.b32.xlu2 %v8677_v10, %s7210_s30 }
 0x30a   :  { %2838 = vrot.lane.b32.xlu0 %v2803_v46, %s7215_s18 }
 0x30b   :  { %v3282_v16 = vpop.permute.xlu1 %3281  ;;  %v2112_v3 = vpop.permute.xlu2 %2111  ;;  %4915 = vmatpush.bf16.msrb.mxu2 %v7105_v31 }
 0x30c   :  { %v2946_v7 = vpop.permute.xlu0 %2945 }
 0x30d   :  { %2993 = vst.msk [vmem:[#allocation3 + $0x4] sm:$0xf] %vm2153_vm4, %v2946_v7  ;;  %v2289_v7 = vld [vmem:[#allocation2 + $0x64] sm:$0xff] }
 0x30e   :  { %3105 = vst.msk [vmem:[#allocation3 + $0x4] sm:$0xf] %vm2266_vm5, %v3058_v1  ;;  %v7063_v40 = vld [vmem:[#allocation3 + $0xc] sm:$0xf0] }
 0x30f   :  { %v6552_v21 = vor.u32 %v7063_v40, %v6551_v50  ;;  %4916 = vmatpush.bf16.msrb.mxu2 %v7104_v8  ;;  %v7111_v8 = vld [vmem:[%s10093_s3 + $0x90] sm:$0xff] }
 0x311   :  { %4871 = vmatmul.bf16.vlgmr.msrb.gmra.mxu1 %v6552_v21  ;;  %3510 = vrot.lane.b32.xlu1 %v8677_v10, %s7212_s13  ;;  %v2305_v21 = vpack.c.bf16 %v2289_v7, %v2289_v7 }
 0x312   :  { %2002 = vrot.lane.b32.xlu2 %v8714_v60, %s7215_s18  ;;  %3061 = vrot.lane.b32.xlu0 %v8671_v56, %s7216_s21 }
 0x313   :  { %v2450_v43 = vpop.permute.xlu1 %2449  ;;  %v9063_v28 = vpop.permute.xlu2 %2675  ;;  %4917 = vmatpush.bf16.msrb.mxu2 %v7103_v9 }
 0x314   :  { %v2223_v26 = vpop.permute.xlu0 %2222 }
 0x315   :  { %2269 = vst.msk [vmem:[#allocation3 + $0x20] sm:$0xf] %vm2266_vm5, %v2223_v26 }
 0x316   :  { %2382 = vst.msk [vmem:[#allocation3 + $0x20] sm:$0xf] %vm2379_vm6, %v2336_v19 }
 0x317   :  { %2496 = vst.msk [vmem:[#allocation3 + $0x20] sm:$0xf] %vm2493_vm7, %v2450_v43 }
 0x319   :  { %2115 = vrot.lane.b32.xlu1 %v2078_v58, %s7210_s30 }
 0x31a   :  { %2341 = vrot.lane.b32.xlu2 %v9068_v5, %s7213_s14  ;;  %3397 = vrot.lane.b32.xlu0 %v2803_v46, %s7214_s17 }
 0x31b   :  { %v2948_v56 = vpop.permute.xlu1 %2947  ;;  %v3779_v45 = vpop.permute.xlu2 %3778 }
 0x31c   :  { %v3170_v35 = vpop.permute.xlu0 %3169  ;;  %2994 = vst.msk [vmem:[#allocation3 + $0x14] sm:$0xf] %vm2153_vm4, %v2948_v56 }
 0x31d   :  { %3217 = vst.msk [vmem:[#allocation3 + $0x4] sm:$0xf] %vm2379_vm6, %v3170_v35 }
 0x31e   :  { %3329 = vst.msk [vmem:[#allocation3 + $0x4] sm:$0xf] %vm2493_vm7, %v3282_v16 }
 0x31f   :  { %3441 = vst.msk [vmem:[#allocation3 + $0x4] sm:$0xf] %vm2606_vm8, %v3394_v2  ;;  %v2628_v2 = vld [vmem:[#allocation2 + $0x62] sm:$0xff] }
 0x320   :  { %v2644_v36 = vpack.c.bf16 %v2628_v2, %v2628_v2 }
 0x321   :  { %2679 = vrot.lane.b32.xlu1 %v2078_v58, %s7212_s13 }
 0x322   :  { %2566 = vrot.lane.b32.xlu2 %v8714_v60, %s7214_s17  ;;  %2453 = vrot.lane.b32.xlu0 %v8677_v10, %s7211_s12 }
 0x323   :  { %v2225_v33 = vpop.permute.xlu1 %2224  ;;  %v3284_v11 = vpop.permute.xlu2 %3283 }
 0x324   :  { %v3507_v38 = vpop.permute.xlu0 %3506 }
 0x325   :  { %3554 = vst.msk [vmem:[#allocation3 + $0x4] sm:$0xf] %vm2719_vm9, %v3507_v38 }
 0x329   :  { %4341 = vrot.lane.b32.xlu1 %v8718_v18, %s7212_s13 }
 0x32a   :  { %4229 = vrot.lane.b32.xlu2 %v2078_v58, %s7214_s17  ;;  %2228 = vrot.lane.b32.xlu0 %v8718_v18, %s7216_s21 }
 0x32b   :  { %v3667_v10 = vpop.permute.xlu1 %3666  ;;  %v2837_v54 = vpop.permute.xlu2 %2836 }
 0x32c   :  { %v1999_v44 = vpop.permute.xlu0 %1998  ;;  %3714 = vst.msk [vmem:[#allocation3 + $0x8] sm:$0xf] %vm2040_vm3, %v3667_v10 }
 0x32d   :  { %2882 = vst.msk [vmem:[#allocation3 + $0x24] sm:$0xf] %vm2040_vm3, %v2837_v54  ;;  %v2290_v54 = vld [vmem:[#allocation2 + $0x74] sm:$0xff] }
 0x32e   :  { %3826 = vst.msk [vmem:[#allocation3 + $0x8] sm:$0xf] %vm2153_vm4, %v3779_v45  ;;  %v2306_v31 = vpack.c.bf16 %v2290_v54, %v2290_v54 }
 0x32f   :  { %2044 = vst.msk [vmem:[#allocation3 + $0x30] sm:$0xf] %vm2040_vm3, %v1999_v44 }
 0x330   :  { %2157 = vst.msk [vmem:[#allocation3 + $0x30] sm:$0xf] %vm2153_vm4, %v2112_v3  ;;  %v7061_v3 = vld [vmem:[#allocation3 + $0x4] sm:$0xf] }
 0x331   :  { %2270 = vst.msk [vmem:[#allocation3 + $0x30] sm:$0xf] %vm2266_vm5, %v2225_v33  ;;  %3063 = vrot.lane.b32.xlu1 %v8714_v60, %s7216_s21 }
 0x332   :  { %3670 = vrot.lane.b32.xlu2 %v2078_v58, %s7215_s18  ;;  %4117 = vrot.lane.b32.xlu0 %v8714_v60, %s7211_s12  ;;  %v7102_v60 = vld [vmem:[%s10093_s3 + $0x48] sm:$0xff] }
 0x333   :  { %v3172_v22 = vpop.permute.xlu1 %3171  ;;  %v2452_v6 = vpop.permute.xlu2 %2451  ;;  %4918 = vmatpush.bf16.msrb.mxu2 %v7102_v60  ;;  %v2064_v60 = vld [vmem:[#allocation2 + $0x72] sm:$0xff] }
 0x334   :  { %v2338_v0 = vpop.permute.xlu0 %2337  ;;  %v2080_v17 = vpack.c.bf16 %v2064_v60, %v2064_v60 }
 0x335   :  { %2383 = vst.msk [vmem:[#allocation3 + $0x30] sm:$0xf] %vm2379_vm6, %v2338_v0  ;;  %v7110_v0 = vld [vmem:[%s10093_s3 + $0x88] sm:$0xff] }
 0x336   :  { %2497 = vst.msk [vmem:[#allocation3 + $0x30] sm:$0xf] %vm2493_vm7, %v2452_v6 }
 0x337   :  { %4919 = vmatpush.bf16.msrb.mxu2 %v7101_v14 }
 0x339   :  { %3894 = vrot.lane.b32.xlu1 %v9068_v5, %s7216_s21 }
 0x33a   :  { %3175 = vrot.lane.b32.xlu2 %v2078_v58, %s7213_s14  ;;  %3782 = vrot.lane.b32.xlu0 %v8718_v18, %s7210_s30 }
 0x33b   :  { %v4004_v25 = vpop.permute.xlu1 %4003  ;;  %v2227_v19 = vpop.permute.xlu2 %2226 }
 0x33c   :  { %v2563_v61 = vpop.permute.xlu0 %2562 }
 0x33d   :  { %2609 = vst.msk [vmem:[#allocation3 + $0x20] sm:$0xf] %vm2606_vm8, %v2563_v61 }
 0x33e   :  { %2722 = vst.msk [vmem:[#allocation3 + $0x20] sm:$0xf] %vm2719_vm9, %v9063_v28 }
 0x341   :  { %3399 = vrot.lane.b32.xlu1 %v9068_v5, %s7214_s17 }
 0x342   :  { %4007 = vrot.lane.b32.xlu2 %v8729_v13, %s7213_s14  ;;  %3287 = vrot.lane.b32.xlu0 %v8718_v18, %s7211_s12 }
 0x343   :  { %v3509_v23 = vpop.permute.xlu1 %3508  ;;  %v3669_v24 = vpop.permute.xlu2 %3668 }
 0x344   :  { %v3060_v4 = vpop.permute.xlu0 %3059  ;;  %3715 = vst.msk [vmem:[#allocation3 + $0x18] sm:$0xf] %vm2040_vm3, %v3669_v24 }
 0x345   :  { %3106 = vst.msk [vmem:[#allocation3 + $0x14] sm:$0xf] %vm2266_vm5, %v3060_v4  ;;  %v6567_v26 = vld [vmem:[#allocation3 + $0x20] sm:$0xf] }
 0x346   :  { %3218 = vst.msk [vmem:[#allocation3 + $0x14] sm:$0xf] %vm2379_vm6, %v3172_v22 }
 0x347   :  { %3330 = vst.msk [vmem:[#allocation3 + $0x14] sm:$0xf] %vm2493_vm7, %v3284_v11 }
 0x349   :  { %2455 = vrot.lane.b32.xlu1 %v8729_v13, %s7211_s12 }
 0x34a   :  { %3512 = vrot.lane.b32.xlu2 %v8729_v13, %s7212_s13  ;;  %2840 = vrot.lane.b32.xlu0 %v9068_v5, %s7215_s18 }
 0x34b   :  { %v2950_v18 = vpop.permute.xlu1 %2949  ;;  %v4116_v29 = vpop.permute.xlu2 %4115 }
 0x34c   :  { %v3891_v63 = vpop.permute.xlu0 %3890  ;;  %2995 = vst.msk [vmem:[#allocation3 + $0x24] sm:$0xf] %vm2153_vm4, %v2950_v18 }
 0x34d   :  { %3938 = vst.msk [vmem:[#allocation3 + $0x8] sm:$0xf] %vm2266_vm5, %v3891_v63 }
 0x34e   :  { %4051 = vst.msk [vmem:[#allocation3 + $0x8] sm:$0xf] %vm2379_vm6, %v4004_v25 }
 0x34f   :  { %4163 = vst.msk [vmem:[#allocation3 + $0x8] sm:$0xf] %vm2493_vm7, %v4116_v29 }
 0x351   :  { %2230 = vrot.lane.b32.xlu1 %v8748_v39, %s7216_s21 }
 0x352   :  { %2953 = vrot.lane.b32.xlu2 %v8729_v13, %s7210_s30  ;;  %2568 = vrot.lane.b32.xlu0 %v8756_v42, %s7214_s17 }
 0x353   :  { %v2565_v1 = vpop.permute.xlu1 %2564  ;;  %v9160_v62 = vpop.permute.xlu2 %3285 }
 0x354   :  { %v3396_v30 = vpop.permute.xlu0 %3395  ;;  %2610 = vst.msk [vmem:[#allocation3 + $0x30] sm:$0xf] %vm2606_vm8, %v2565_v1 }
 0x355   :  { %3442 = vst.msk [vmem:[#allocation3 + $0x14] sm:$0xf] %vm2606_vm8, %v3396_v30 }
 0x356   :  { %3555 = vst.msk [vmem:[#allocation3 + $0x14] sm:$0xf] %vm2719_vm9, %v3509_v23 }
 0x359   :  { %3784 = vrot.lane.b32.xlu1 %v8748_v39, %s7210_s30 }
 0x35a   :  { %2681 = vrot.lane.b32.xlu2 %v2644_v36, %s7212_s13  ;;  %2004 = vrot.lane.b32.xlu0 %v8756_v42, %s7215_s18 }
 0x35b   :  { %v2001_v13 = vpop.permute.xlu1 %2000  ;;  %v4006_v16 = vpop.permute.xlu2 %4005 }
 0x35c   :  { %v2678_v46 = vpop.permute.xlu0 %2677  ;;  %2045 = vst.msk [vmem:[#allocation3 + $0x40] sm:$0xf] %vm2040_vm3, %v2001_v13 }
 0x35d   :  { %2723 = vst.msk [vmem:[#allocation3 + $0x30] sm:$0xf] %vm2719_vm9, %v2678_v46  ;;  %v6553_v50 = vld [vmem:[#allocation3 + $0x10] sm:$0xf0]  ;;  %v3629_v46 = vld [vmem:[#allocation2 + $0x122] sm:$0xff] }
 0x35e   :  { %v6556_v40 = vor.u32 %v7061_v3, %v6553_v50  ;;  %v9274_v7 = vpack.c.bf16 %v3629_v46, %v3629_v46 }
 0x360   :  { %4920 = vmatmul.bf16.vlgmr.msrb.gmra.mxu2 %v6556_v40 }
 0x361   :  { %4343 = vrot.lane.b32.xlu1 %v8748_v39, %s7212_s13 }
 0x362   :  { %2117 = vrot.lane.b32.xlu2 %v2644_v36, %s7210_s30  ;;  %2343 = vrot.lane.b32.xlu0 %v2305_v21, %s7213_s14 }
 0x363   :  { %v2340_v41 = vpop.permute.xlu1 %2339  ;;  %v2952_v43 = vpop.permute.xlu2 %2951 }
 0x364   :  { %v2114_v48 = vpop.permute.xlu0 %2113  ;;  %v7067_v28 = vld [vmem:[#allocation3 + $0x2c] sm:$0xf0] }
 0x365   :  { %2158 = vst.msk [vmem:[#allocation3 + $0x40] sm:$0xf] %vm2153_vm4, %v2114_v48  ;;  %v6568_v55 = vor.u32 %v7067_v28, %v6567_v26 }
 0x366   :  { %2271 = vst.msk [vmem:[#allocation3 + $0x40] sm:$0xf] %vm2266_vm5, %v2227_v19 }
 0x367   :  { %2384 = vst.msk [vmem:[#allocation3 + $0x40] sm:$0xf] %vm2379_vm6, %v2340_v41  ;;  %4876 = vmatmul.bf16.gmra.mxu1 %v6568_v55  ;;  %v2630_v41 = vld [vmem:[#allocation2 + $0x82] sm:$0xff] }
 0x368   :  { %v9284_v28 = vpack.c.bf16 %v2630_v41, %v2630_v41 }
 0x369   :  { %2842 = vrot.lane.b32.xlu1 %v2305_v21, %s7215_s18 }
 0x36a   :  { %3896 = vrot.lane.b32.xlu2 %v2305_v21, %s7216_s21  ;;  %3672 = vrot.lane.b32.xlu0 %v2644_v36, %s7215_s18 }
 0x36b   :  { %v3893_v58 = vpop.permute.xlu1 %3892 }
 0x36c   :  { %v3781_v5 = vpop.permute.xlu0 %3780  ;;  %v2003_v56 = vpop.permute.xlu2 %2002 }
 0x36d   :  { %3827 = vst.msk [vmem:[#allocation3 + $0x18] sm:$0xf] %vm2153_vm4, %v3781_v5  ;;  %v3740_v5 = vld [vmem:[#allocation2 + $0x113] sm:$0xff] }
 0x36e   :  { %2046 = vst.msk [vmem:[#allocation3 + $0x50] sm:$0xf] %vm2040_vm3, %v2003_v56  ;;  %v3131_v56 = vld [vmem:[#allocation2 + $0x102] sm:$0xff] }
 0x36f   :  { %3939 = vst.msk [vmem:[#allocation3 + $0x18] sm:$0xf] %vm2266_vm5, %v3893_v58 }
 0x370   :  { %4052 = vst.msk [vmem:[#allocation3 + $0x18] sm:$0xf] %vm2379_vm6, %v4006_v16  ;;  %v2404_v16 = vld [vmem:[#allocation2 + $0x80] sm:$0xff] }
 0x371   :  { %3065 = vrot.lane.b32.xlu1 %v8756_v42, %s7216_s21  ;;  %v2420_v3 = vpack.c.bf16 %v2404_v16, %v2404_v16 }
 0x372   :  { %4231 = vrot.lane.b32.xlu2 %v2644_v36, %s7214_s17  ;;  %4119 = vrot.lane.b32.xlu0 %v8756_v42, %s7211_s12  ;;  %v7113_v42 = vld [vmem:[%s10093_s3 + $0xa0] sm:$0xff] }
 0x373   :  { %v4228_v35 = vpop.permute.xlu1 %4227  ;;  %4964 = vmatpush.bf16.msrb.mxu3 %v7113_v42 }
 0x374   :  { %v4340_v45 = vpop.permute.xlu0 %4339  ;;  %v2342_v33 = vpop.permute.xlu2 %2341  ;;  %4275 = vst.msk [vmem:[#allocation3 + $0x8] sm:$0xf] %vm2606_vm8, %v4228_v35  ;;  %v9293_v35 = vpack.c.bf16 %v3740_v5, %v3740_v5  ;;  %v3849_v5 = vld [vmem:[#allocation2 + $0xa4] sm:$0xff] }
 0x375   :  { %4387 = vst.msk [vmem:[#allocation3 + $0x8] sm:$0xf] %vm2719_vm9, %v4340_v45  ;;  %v3147_v45 = vpack.c.bf16 %v3131_v56, %v3131_v56 }
 0x377   :  { %4965 = vmatpush.bf16.msrb.mxu3 %v7112_v47 }
 0x379   :  { %3401 = vrot.lane.b32.xlu1 %v2305_v21, %s7214_s17 }
 0x37a   :  { %3177 = vrot.lane.b32.xlu2 %v2644_v36, %s7213_s14  ;;  %3289 = vrot.lane.b32.xlu0 %v8748_v39, %s7211_s12 }
 0x37b   :  { %v3174_v38 = vpop.permute.xlu1 %3173  ;;  %4966 = vmatpush.bf16.msrb.mxu3 %v7111_v8 }
 0x37c   :  { %v2839_v11 = vpop.permute.xlu0 %2838  ;;  %v2567_v51 = vpop.permute.xlu2 %2566  ;;  %v6559_v30 = vld [vmem:[#allocation3 + $0x8] sm:$0xf] }
 0x37d   :  { %2883 = vst.msk [vmem:[#allocation3 + $0x34] sm:$0xf] %vm2040_vm3, %v2839_v11  ;;  %v3741_v11 = vld [vmem:[#allocation2 + $0x123] sm:$0xff] }
 0x37e   :  { %2996 = vst.msk [vmem:[#allocation3 + $0x34] sm:$0xf] %vm2153_vm4, %v2952_v43 }
 0x37f   :  { %4967 = vmatpush.bf16.msrb.mxu3 %v7110_v0 }
 0x381   :  { %2006 = vrot.lane.b32.xlu1 %v8796_v52, %s7215_s18 }
 0x382   :  { %2457 = vrot.lane.b32.xlu2 %v8773_v37, %s7211_s12  ;;  %4009 = vrot.lane.b32.xlu0 %v8773_v37, %s7213_s14 }
 0x383   :  { %v3511_v39 = vpop.permute.xlu1 %3510 }
 0x384   :  { %v4230_v10 = vpop.permute.xlu2 %4229  ;;  %v3062_v44 = vpop.permute.xlu0 %3061 }
 0x385   :  { %3107 = vst.msk [vmem:[#allocation3 + $0x24] sm:$0xf] %vm2266_vm5, %v3062_v44 }
 0x386   :  { %3219 = vst.msk [vmem:[#allocation3 + $0x24] sm:$0xf] %vm2379_vm6, %v3174_v38 }
 0x387   :  { %3331 = vst.msk [vmem:[#allocation3 + $0x24] sm:$0xf] %vm2493_vm7, %v9160_v62 }
 0x389   :  { %2345 = vrot.lane.b32.xlu1 %v2306_v31, %s7213_s14 }
 0x38a   :  { %3514 = vrot.lane.b32.xlu2 %v8773_v37, %s7212_s13  ;;  %2955 = vrot.lane.b32.xlu0 %v8773_v37, %s7210_s30  ;;  %v7109_v37 = vld [vmem:[%s10093_s3 + $0x80] sm:$0xff] }
 0x38b   :  { %v2116_v22 = vpop.permute.xlu1 %2115  ;;  %4968 = vmatpush.bf16.msrb.mxu3 %v7109_v37 }
 0x38c   :  { %v3671_v6 = vpop.permute.xlu2 %3670  ;;  %2159 = vst.msk [vmem:[#allocation3 + $0x50] sm:$0xf] %vm2153_vm4, %v2116_v22  ;;  %v3398_v9 = vpop.permute.xlu0 %3397 }
 0x38d   :  { %3716 = vst.msk [vmem:[#allocation3 + $0x28] sm:$0xf] %vm2040_vm3, %v3671_v6 }
 0x38e   :  { %3443 = vst.msk [vmem:[#allocation3 + $0x24] sm:$0xf] %vm2606_vm8, %v3398_v9 }
 0x38f   :  { %3556 = vst.msk [vmem:[#allocation3 + $0x24] sm:$0xf] %vm2719_vm9, %v3511_v39  ;;  %v9302_v39 = vpack.c.bf16 %v3741_v11, %v3741_v11 }
 0x391   :  { %2570 = vrot.lane.b32.xlu1 %v8796_v52, %s7214_s17 }
 0x392   :  { %2232 = vrot.lane.b32.xlu2 %v8805_v20, %s7216_s21  ;;  %2119 = vrot.lane.b32.xlu0 %v2080_v17, %s7210_s30 }
 0x393   :  { %v2680_v25 = vpop.permute.xlu1 %2679 }
 0x394   :  { %v3176_v61 = vpop.permute.xlu2 %3175  ;;  %v2454_v19 = vpop.permute.xlu0 %2453 }
 0x395   :  { %2498 = vst.msk [vmem:[#allocation3 + $0x40] sm:$0xf] %vm2493_vm7, %v2454_v19 }
 0x396   :  { %2611 = vst.msk [vmem:[#allocation3 + $0x40] sm:$0xf] %vm2606_vm8, %v2567_v51  ;;  %v7065_v48 = vld [vmem:[#allocation3 + $0x24] sm:$0xf] }
 0x397   :  { %2724 = vst.msk [vmem:[#allocation3 + $0x40] sm:$0xf] %vm2719_vm9, %v2680_v25  ;;  %v2791_v25 = vld [vmem:[#allocation2 + $0x84] sm:$0xff] }
 0x398   :  { %v2807_v19 = vpack.c.bf16 %v2791_v25, %v2791_v25 }
 0x399   :  { %4121 = vrot.lane.b32.xlu1 %v8796_v52, %s7211_s12 }
 0x39a   :  { %4345 = vrot.lane.b32.xlu2 %v8805_v20, %s7212_s13  ;;  %2683 = vrot.lane.b32.xlu0 %v2080_v17, %s7212_s13 }
 0x39b   :  { %v4342_v14 = vpop.permute.xlu1 %4341 }
 0x39c   :  { %v4008_v23 = vpop.permute.xlu2 %4007  ;;  %v2229_v4 = vpop.permute.xlu0 %2228 }
 0x39d   :  { %2272 = vst.msk [vmem:[#allocation3 + $0x50] sm:$0xf] %vm2266_vm5, %v2229_v4 }
 0x39e   :  { %2385 = vst.msk [vmem:[#allocation3 + $0x50] sm:$0xf] %vm2379_vm6, %v2342_v33  ;;  %v6583_v51 = vld [vmem:[#allocation3 + $0x40] sm:$0xf] }
 0x3a1   :  { %3786 = vrot.lane.b32.xlu1 %v8805_v20, %s7210_s30 }
 0x3a2   :  { %3067 = vrot.lane.b32.xlu2 %v8796_v52, %s7216_s21  ;;  %4233 = vrot.lane.b32.xlu0 %v2080_v17, %s7214_s17 }
 0x3a3   :  { %v3064_v24 = vpop.permute.xlu1 %3063 }
 0x3a4   :  { %v3513_v18 = vpop.permute.xlu2 %3512  ;;  %3108 = vst.msk [vmem:[#allocation3 + $0x34] sm:$0xf] %vm2266_vm5, %v3064_v24  ;;  %v4118_v63 = vpop.permute.xlu0 %4117 }
 0x3a5   :  { %3220 = vst.msk [vmem:[#allocation3 + $0x34] sm:$0xf] %vm2379_vm6, %v3176_v61 }
 0x3a6   :  { %4164 = vst.msk [vmem:[#allocation3 + $0x18] sm:$0xf] %vm2493_vm7, %v4118_v63  ;;  %v4184_v63 = vld [vmem:[#allocation2 + $0x92] sm:$0xff] }
 0x3a7   :  { %4276 = vst.msk [vmem:[#allocation3 + $0x18] sm:$0xf] %vm2606_vm8, %v4230_v10 }
 0x3a8   :  { %4388 = vst.msk [vmem:[#allocation3 + $0x18] sm:$0xf] %vm2719_vm9, %v4342_v14 }
 0x3a9   :  { %3291 = vrot.lane.b32.xlu1 %v8805_v20, %s7211_s12 }
 0x3aa   :  { %3898 = vrot.lane.b32.xlu2 %v2306_v31, %s7216_s21  ;;  %3674 = vrot.lane.b32.xlu0 %v2080_v17, %s7215_s18 }
 0x3ab   :  { %v3895_v52 = vpop.permute.xlu1 %3894 }
 0x3ac   :  { %v2954_v29 = vpop.permute.xlu2 %2953  ;;  %v3783_v1 = vpop.permute.xlu0 %3782 }
 0x3ad   :  { %3828 = vst.msk [vmem:[#allocation3 + $0x28] sm:$0xf] %vm2153_vm4, %v3783_v1 }
 0x3ae   :  { %3940 = vst.msk [vmem:[#allocation3 + $0x28] sm:$0xf] %vm2266_vm5, %v3895_v52  ;;  %v7117_v52 = vld [vmem:[%s10093_s3 + $0xc0] sm:$0xff] }
 0x3af   :  { %4053 = vst.msk [vmem:[#allocation3 + $0x28] sm:$0xf] %vm2379_vm6, %v4008_v23  ;;  %v7064_v62 = vld [vmem:[#allocation3 + $0x14] sm:$0xf0]  ;;  %5017 = vmatpush.bf16.msra.mxu1 %v7117_v52 }
 0x3b0   :  { %v6560_v2 = vor.u32 %v7064_v62, %v6559_v30 }
 0x3b1   :  { %2844 = vrot.lane.b32.xlu1 %v2306_v31, %s7215_s18 }
 0x3b2   :  { %4969 = vmatmul.bf16.vlgmr.msrb.gmra.mxu3 %v6560_v2  ;;  %3403 = vrot.lane.b32.xlu2 %v2306_v31, %s7214_s17  ;;  %v3628_v31 = vld [vmem:[#allocation2 + $0x112] sm:$0xff] }
 0x3b3   :  { %3179 = vrot.lane.b32.xlu0 %v2080_v17, %s7213_s14  ;;  %v3400_v20 = vpop.permute.xlu1 %3399  ;;  %v3644_v8 = vpack.c.bf16 %v3628_v31, %v3628_v31  ;;  %v3960_v17 = vld [vmem:[#allocation2 + $0x90] sm:$0xff] }
 0x3b4   :  { %v2682_v36 = vpop.permute.xlu2 %2681  ;;  %v3288_v13 = vpop.permute.xlu0 %3287  ;;  %v3976_v61 = vpack.c.bf16 %v3960_v17, %v3960_v17  ;;  %v4074_v17 = vld [vmem:[#allocation2 + $0xb1] sm:$0xff] }
 0x3b5   :  { %3332 = vst.msk [vmem:[#allocation3 + $0x34] sm:$0xf] %vm2493_vm7, %v3288_v13 }
 0x3b6   :  { %3444 = vst.msk [vmem:[#allocation3 + $0x34] sm:$0xf] %vm2606_vm8, %v3400_v20 }
 0x3b7   :  { %3557 = vst.msk [vmem:[#allocation3 + $0x34] sm:$0xf] %vm2719_vm9, %v3513_v18 }
 0x3b9   :  { %3688 = vrot.lane.b32.xlu1 %v9274_v7, %s7215_s18 }
 0x3ba   :  { %2572 = vrot.lane.b32.xlu2 %v8847_v49, %s7214_s17 }
 0x3bb   :  { %2459 = vrot.lane.b32.xlu0 %v2420_v3, %s7211_s12  ;;  %v2456_v50 = vpop.permute.xlu1 %2455 }
 0x3bc   :  { %v2118_v40 = vpop.permute.xlu2 %2117  ;;  %2499 = vst.msk [vmem:[#allocation3 + $0x50] sm:$0xf] %vm2493_vm7, %v2456_v50  ;;  %v2841_v21 = vpop.permute.xlu0 %2840  ;;  %v3961_v50 = vld [vmem:[#allocation2 + $0xa0] sm:$0xff] }
 0x3bd   :  { %2884 = vst.msk [vmem:[#allocation3 + $0x44] sm:$0xf] %vm2040_vm3, %v2841_v21 }
 0x3be   :  { %2997 = vst.msk [vmem:[#allocation3 + $0x44] sm:$0xf] %vm2153_vm4, %v2954_v29  ;;  %v6569_v43 = vld [vmem:[#allocation3 + $0x30] sm:$0xf0]  ;;  %v4200_v29 = vpack.c.bf16 %v4184_v63, %v4184_v63  ;;  %v3243_v63 = vld [vmem:[#allocation2 + $0x103] sm:$0xff] }
 0x3bf   :  { %v6572_v26 = vor.u32 %v7065_v48, %v6569_v43  ;;  %v3625_v43 = vld [vmem:[#allocation2 + $0xa2] sm:$0xff] }
 0x3c1   :  { %4925 = vmatmul.bf16.gmra.mxu2 %v6572_v26  ;;  %2685 = vrot.lane.b32.xlu1 %v9284_v28, %s7212_s13  ;;  %v3848_v26 = vld [vmem:[#allocation2 + $0x94] sm:$0xff] }
 0x3c2   :  { %3079 = vrot.lane.b32.xlu2 %v8044_v32, %s7216_s21 }
 0x3c3   :  { %4011 = vrot.lane.b32.xlu0 %v2420_v3, %s7213_s14  ;;  %v2231_v55 = vpop.permute.xlu1 %2230 }
 0x3c4   :  { %v3897_v15 = vpop.permute.xlu2 %3896  ;;  %v2569_v58 = vpop.permute.xlu0 %2568 }
 0x3c5   :  { %2612 = vst.msk [vmem:[#allocation3 + $0x50] sm:$0xf] %vm2606_vm8, %v2569_v58 }
 0x3c6   :  { %2725 = vst.msk [vmem:[#allocation3 + $0x50] sm:$0xf] %vm2719_vm9, %v2682_v36  ;;  %v3736_v36 = vld [vmem:[#allocation2 + $0x93] sm:$0xff] }
 0x3c7   :  { %v3752_v13 = vpack.c.bf16 %v3736_v36, %v3736_v36 }
 0x3c9   :  { %3798 = vrot.lane.b32.xlu1 %v9293_v35, %s7210_s30 }
 0x3ca   :  { %3189 = vrot.lane.b32.xlu2 %v3147_v45, %s7213_s14 }
 0x3cb   :  { %3516 = vrot.lane.b32.xlu0 %v2420_v3, %s7212_s13  ;;  %v3785_v32 = vpop.permute.xlu1 %3784 }
 0x3cc   :  { %v4232_v33 = vpop.permute.xlu2 %4231  ;;  %v2005_v38 = vpop.permute.xlu0 %2004 }
 0x3cd   :  { %2047 = vst.msk [vmem:[#allocation3 + $0x60] sm:$0xf] %vm2040_vm3, %v2005_v38  ;;  %v7071_v42 = vld [vmem:[#allocation3 + $0x4c] sm:$0xf0] }
 0x3ce   :  { %2160 = vst.msk [vmem:[#allocation3 + $0x60] sm:$0xf] %vm2153_vm4, %v2118_v40  ;;  %v6584_v47 = vor.u32 %v7071_v42, %v6583_v51  ;;  %v3977_v40 = vpack.c.bf16 %v3961_v50, %v3961_v50  ;;  %v3962_v42 = vld [vmem:[#allocation2 + $0xb0] sm:$0xff] }
 0x3cf   :  { %2273 = vst.msk [vmem:[#allocation3 + $0x60] sm:$0xf] %vm2266_vm5, %v2231_v55  ;;  %v3864_v55 = vpack.c.bf16 %v3848_v26, %v3848_v26 }
 0x3d0   :  { %4881 = vmatmul.bf16.gmra.mxu1 %v6584_v47  ;;  %v3737_v47 = vld [vmem:[#allocation2 + $0xa3] sm:$0xff] }
 0x3d1   :  { %3676 = vrot.lane.b32.xlu1 %v9284_v28, %s7215_s18 }
 0x3d2   :  { %3800 = vrot.lane.b32.xlu2 %v9302_v39, %s7210_s30 }
 0x3d3   :  { %2957 = vrot.lane.b32.xlu0 %v2420_v3, %s7210_s30  ;;  %v4344_v10 = vpop.permute.xlu1 %4343 }
 0x3d4   :  { %v3178_v44 = vpop.permute.xlu2 %3177  ;;  %v2344_v54 = vpop.permute.xlu0 %2343 }
 0x3d5   :  { %2386 = vst.msk [vmem:[#allocation3 + $0x60] sm:$0xf] %vm2379_vm6, %v2344_v54 }
 0x3d9   :  { %4123 = vrot.lane.b32.xlu1 %v8847_v49, %s7211_s12 }
 0x3da   :  { %3788 = vrot.lane.b32.xlu2 %v8842_v53, %s7210_s30 }
 0x3db   :  { %3686 = vrot.lane.b32.xlu0 %v3644_v8, %s7215_s18  ;;  %v2843_v22 = vpop.permute.xlu1 %2842 }
 0x3dc   :  { %v2458_v0 = vpop.permute.xlu2 %2457  ;;  %2885 = vst.msk [vmem:[#allocation3 + $0x54] sm:$0xf] %vm2040_vm3, %v2843_v22  ;;  %v3673_v6 = vpop.permute.xlu0 %3672 }
 0x3dd   :  { %2500 = vst.msk [vmem:[#allocation3 + $0x60] sm:$0xf] %vm2493_vm7, %v2458_v0 }
 0x3de   :  { %3717 = vst.msk [vmem:[#allocation3 + $0x38] sm:$0xf] %vm2040_vm3, %v3673_v6 }
 0x3df   :  { %3829 = vst.msk [vmem:[#allocation3 + $0x38] sm:$0xf] %vm2153_vm4, %v3785_v32 }
 0x3e0   :  { %3941 = vst.msk [vmem:[#allocation3 + $0x38] sm:$0xf] %vm2266_vm5, %v3897_v15 }
 0x3e1   :  { %3293 = vrot.lane.b32.xlu1 %v8842_v53, %s7211_s12 }
 0x3e2   :  { %4347 = vrot.lane.b32.xlu2 %v8842_v53, %s7212_s13 }
 0x3e3   :  { %3191 = vrot.lane.b32.xlu0 %v3644_v8, %s7213_s14  ;;  %v3066_v9 = vpop.permute.xlu1 %3065  ;;  %v4186_v8 = vld [vmem:[#allocation2 + $0xb2] sm:$0xff] }
 0x3e4   :  { %v3515_v60 = vpop.permute.xlu2 %3514  ;;  %3109 = vst.msk [vmem:[#allocation3 + $0x44] sm:$0xf] %vm2266_vm5, %v3066_v9  ;;  %v4120_v37 = vpop.permute.xlu0 %4119  ;;  %v4202_v22 = vpack.c.bf16 %v4186_v8, %v4186_v8  ;;  %v4298_v9 = vld [vmem:[#allocation2 + $0xb3] sm:$0xff] }
 0x3e5   :  { %3221 = vst.msk [vmem:[#allocation3 + $0x44] sm:$0xf] %vm2379_vm6, %v3178_v44  ;;  %v4314_v25 = vpack.c.bf16 %v4298_v9, %v4298_v9 }
 0x3e6   :  { %4165 = vst.msk [vmem:[#allocation3 + $0x28] sm:$0xf] %vm2493_vm7, %v4120_v37  ;;  %v3852_v37 = vld [vmem:[#allocation2 + $0x114] sm:$0xff] }
 0x3e7   :  { %4277 = vst.msk [vmem:[#allocation3 + $0x28] sm:$0xf] %vm2606_vm8, %v4232_v33  ;;  %v3865_v33 = vpack.c.bf16 %v3849_v5, %v3849_v5 }
 0x3e8   :  { %4389 = vst.msk [vmem:[#allocation3 + $0x28] sm:$0xf] %vm2719_vm9, %v4344_v10  ;;  %v3978_v10 = vpack.c.bf16 %v3962_v42, %v3962_v42 }
 0x3e9   :  { %4013 = vrot.lane.b32.xlu1 %v3976_v61, %s7213_s14 }
 0x3ea   :  { %2846 = vrot.lane.b32.xlu2 %v2807_v19, %s7215_s18 }
 0x3eb   :  { %3900 = vrot.lane.b32.xlu0 %v2807_v19, %s7216_s21  ;;  %v3402_v53 = vpop.permute.xlu1 %3401 }
 0x3ec   :  { %v2233_v14 = vpop.permute.xlu2 %2232  ;;  %v3290_v23 = vpop.permute.xlu0 %3289 }
 0x3ed   :  { %3333 = vst.msk [vmem:[#allocation3 + $0x44] sm:$0xf] %vm2493_vm7, %v3290_v23 }
 0x3ee   :  { %3445 = vst.msk [vmem:[#allocation3 + $0x44] sm:$0xf] %vm2606_vm8, %v3402_v53 }
 0x3ef   :  { %3558 = vst.msk [vmem:[#allocation3 + $0x44] sm:$0xf] %vm2719_vm9, %v3515_v60  ;;  %v6575_v56 = vld [vmem:[#allocation3 + $0x28] sm:$0xf] }
 0x3f1   :  { %2959 = vrot.lane.b32.xlu1 %v3976_v61, %s7210_s30 }
 0x3f2   :  { %3069 = vrot.lane.b32.xlu2 %v8847_v49, %s7216_s21 }
 0x3f3   :  { %4235 = vrot.lane.b32.xlu0 %v9284_v28, %s7214_s17  ;;  %v2007_v4 = vpop.permute.xlu1 %2006 }
 0x3f4   :  { %v4346_v24 = vpop.permute.xlu2 %4345  ;;  %2048 = vst.msk [vmem:[#allocation3 + $0x70] sm:$0xf] %vm2040_vm3, %v2007_v4  ;;  %v4010_v18 = vpop.permute.xlu0 %4009 }
 0x3f5   :  { %4054 = vst.msk [vmem:[#allocation3 + $0x38] sm:$0xf] %vm2379_vm6, %v4010_v18 }
 0x3f9   :  { %4237 = vrot.lane.b32.xlu1 %v4200_v29, %s7214_s17 }
 0x3fa   :  { %3405 = vrot.lane.b32.xlu2 %v2807_v19, %s7214_s17 }
 0x3fb   :  { %3181 = vrot.lane.b32.xlu0 %v9284_v28, %s7213_s14  ;;  %v2346_v49 = vpop.permute.xlu1 %2345  ;;  %v3641_v28 = vpack.c.bf16 %v3625_v43, %v3625_v43 }
 0x3fc   :  { %v3068_v1 = vpop.permute.xlu2 %3067  ;;  %v2956_v30 = vpop.permute.xlu0 %2955 }
 0x3fd   :  { %2998 = vst.msk [vmem:[#allocation3 + $0x54] sm:$0xf] %vm2153_vm4, %v2956_v30  ;;  %v3468_v30 = vld [vmem:[#allocation2 + $0x110] sm:$0xff] }
 0x3fe   :  { %3110 = vst.msk [vmem:[#allocation3 + $0x54] sm:$0xf] %vm2266_vm5, %v3068_v1 }
 0x401   :  { %3678 = vrot.lane.b32.xlu1 %v4200_v29, %s7215_s18 }
 0x402   :  { %4125 = vrot.lane.b32.xlu2 %v8881_v27, %s7211_s12 }
 0x403   :  { %3518 = vrot.lane.b32.xlu0 %v3976_v61, %s7212_s13  ;;  %v2571_v62 = vpop.permute.xlu1 %2570  ;;  %v9400_v61 = vpack.c.bf16 %v3852_v37, %v3852_v37  ;;  %v7091_v37 = vld [vmem:[#allocation3 + $0xec] sm:$0xf0] }
 0x404   :  { %v3899_v2 = vpop.permute.xlu2 %3898  ;;  %2613 = vst.msk [vmem:[#allocation3 + $0x60] sm:$0xf] %vm2606_vm8, %v2571_v62  ;;  %v2120_v20 = vpop.permute.xlu0 %2119  ;;  %v3966_v62 = vld [vmem:[#allocation2 + $0x130] sm:$0xff] }
 0x405   :  { %2161 = vst.msk [vmem:[#allocation3 + $0x70] sm:$0xf] %vm2153_vm4, %v2120_v20  ;;  %v7069_v20 = vld [vmem:[#allocation3 + $0x44] sm:$0xf] }
 0x406   :  { %2274 = vst.msk [vmem:[#allocation3 + $0x70] sm:$0xf] %vm2266_vm5, %v2233_v14 }
 0x407   :  { %2387 = vst.msk [vmem:[#allocation3 + $0x70] sm:$0xf] %vm2379_vm6, %v2346_v49 }
 0x409   :  { %3183 = vrot.lane.b32.xlu1 %v4200_v29, %s7213_s14  ;;  %v3259_v29 = vpack.c.bf16 %v3243_v63, %v3243_v63 }
 0x40a   :  { %3790 = vrot.lane.b32.xlu2 %v3752_v13, %s7210_s30 }
 0x40b   :  { %4349 = vrot.lane.b32.xlu0 %v3752_v13, %s7212_s13  ;;  %v4122_v46 = vpop.permute.xlu1 %4121 }
 0x40c   :  { %v3404_v16 = vpop.permute.xlu2 %3403  ;;  %4166 = vst.msk [vmem:[#allocation3 + $0x38] sm:$0xf] %vm2493_vm7, %v4122_v46  ;;  %v2684_v3 = vpop.permute.xlu0 %2683  ;;  %v3853_v46 = vld [vmem:[#allocation2 + $0x124] sm:$0xff] }
 0x40d   :  { %2726 = vst.msk [vmem:[#allocation3 + $0x60] sm:$0xf] %vm2719_vm9, %v2684_v3  ;;  %v3484_v3 = vpack.c.bf16 %v3468_v30, %v3468_v30  ;;  %v9421_v50 = vpack.c.bf16 %v3853_v46, %v3853_v46  ;;  %v3967_v30 = vld [vmem:[#allocation2 + $0x140] sm:$0xff] }
 0x411   :  { %4015 = vrot.lane.b32.xlu1 %v3977_v40, %s7213_s14 }
 0x412   :  { %3295 = vrot.lane.b32.xlu2 %v3752_v13, %s7211_s12 }
 0x413   :  { %3071 = vrot.lane.b32.xlu0 %v8881_v27, %s7216_s21  ;;  %v3787_v21 = vpop.permute.xlu1 %3786 }
 0x414   :  { %v2573_v41 = vpop.permute.xlu2 %2572  ;;  %v4234_v48 = vpop.permute.xlu0 %4233  ;;  %v6599_v53 = vld [vmem:[#allocation3 + $0x60] sm:$0xf] }
 0x415   :  { %4278 = vst.msk [vmem:[#allocation3 + $0x38] sm:$0xf] %vm2606_vm8, %v4234_v48 }
 0x416   :  { %4390 = vst.msk [vmem:[#allocation3 + $0x38] sm:$0xf] %vm2719_vm9, %v4346_v24  ;;  %v3355_v24 = vld [vmem:[#allocation2 + $0x104] sm:$0xff] }
 0x417   :  { %v3371_v52 = vpack.c.bf16 %v3355_v24, %v3355_v24 }
 0x419   :  { %3520 = vrot.lane.b32.xlu1 %v3977_v40, %s7212_s13  ;;  %v6615_v40 = vld [vmem:[#allocation3 + $0x80] sm:$0xf] }
 0x41a   :  { %3680 = vrot.lane.b32.xlu2 %v3641_v28, %s7215_s18 }
 0x41b   :  { %3902 = vrot.lane.b32.xlu0 %v3864_v55, %s7216_s21  ;;  %v3292_v15 = vpop.permute.xlu1 %3291 }
 0x41c   :  { %v3080_v58 = vpop.permute.xlu2 %3079  ;;  %v3675_v27 = vpop.permute.xlu0 %3674 }
 0x41d   :  { %3116 = vst.msk [vmem:[#allocation3 + $0xb4] sm:$0xf] %vm2266_vm5, %v3080_v58  ;;  %v7068_v45 = vld [vmem:[#allocation3 + $0x34] sm:$0xf0] }
 0x41e   :  { %3718 = vst.msk [vmem:[#allocation3 + $0x48] sm:$0xf] %vm2040_vm3, %v3675_v27  ;;  %v6576_v32 = vor.u32 %v7068_v45, %v6575_v56  ;;  %v4190_v27 = vld [vmem:[#allocation2 + $0x132] sm:$0xff] }
 0x41f   :  { %3830 = vst.msk [vmem:[#allocation3 + $0x48] sm:$0xf] %vm2153_vm4, %v3787_v21  ;;  %v4206_v56 = vpack.c.bf16 %v4190_v27, %v4190_v27  ;;  %v7083_v45 = vld [vmem:[#allocation3 + $0xac] sm:$0xf0] }
 0x420   :  { %3942 = vst.msk [vmem:[#allocation3 + $0x48] sm:$0xf] %vm2266_vm5, %v3899_v2  ;;  %4974 = vmatmul.bf16.gmra.mxu3 %v6576_v32  ;;  %v4192_v27 = vld [vmem:[#allocation2 + $0x152] sm:$0xff] }
 0x421   :  { %3904 = vrot.lane.b32.xlu1 %v3865_v33, %s7216_s21  ;;  %v6631_v33 = vld [vmem:[#allocation3 + $0xa0] sm:$0xf] }
 0x422   :  { %4127 = vrot.lane.b32.xlu2 %v8936_v59, %s7211_s12  ;;  %v3753_v59 = vpack.c.bf16 %v3737_v47, %v3737_v47 }
 0x423   :  { %3407 = vrot.lane.b32.xlu0 %v3864_v55, %s7214_s17  ;;  %v2845_v38 = vpop.permute.xlu1 %2844 }
 0x424   :  { %v3190_v11 = vpop.permute.xlu2 %3189  ;;  %2886 = vst.msk [vmem:[#allocation3 + $0x64] sm:$0xf] %vm2040_vm3, %v2845_v38 }
 0x425   :  { %3227 = vst.msk [vmem:[#allocation3 + $0xa4] sm:$0xf] %vm2379_vm6, %v3190_v11  ;;  %v3180_v51 = vpop.permute.xlu0 %3179  ;;  %v6632_v11 = vor.u32 %v7083_v45, %v6631_v33 }
 0x426   :  { %3222 = vst.msk [vmem:[#allocation3 + $0x54] sm:$0xf] %vm2379_vm6, %v3180_v51 }
 0x427   :  { %3334 = vst.msk [vmem:[#allocation3 + $0x54] sm:$0xf] %vm2493_vm7, %v3292_v15 }
 0x428   :  { %3446 = vst.msk [vmem:[#allocation3 + $0x54] sm:$0xf] %vm2606_vm8, %v3404_v16  ;;  %v9417_v16 = vpack.c.bf16 %v3966_v62, %v3966_v62 }
 0x429   :  { %4239 = vrot.lane.b32.xlu1 %v3641_v28, %s7214_s17  ;;  %v3965_v28 = vld [vmem:[#allocation2 + $0x120] sm:$0xff] }
 0x42a   :  { %4017 = vrot.lane.b32.xlu2 %v3978_v10, %s7213_s14  ;;  %v3981_v55 = vpack.c.bf16 %v3965_v28, %v3965_v28  ;;  %v7066_v28 = vld [vmem:[#allocation3 + $0x2c] sm:$0xf] }
 0x42b   :  { %3792 = vrot.lane.b32.xlu0 %v3753_v59, %s7210_s30  ;;  %v3689_v44 = vpop.permute.xlu1 %3688 }
 0x42c   :  { %v3801_v54 = vpop.permute.xlu2 %3800  ;;  %3725 = vst.msk [vmem:[#allocation3 + $0xb8] sm:$0xf] %vm2040_vm3, %v3689_v44 }
 0x42d   :  { %3837 = vst.msk [vmem:[#allocation3 + $0xb8] sm:$0xf] %vm2153_vm4, %v3801_v54  ;;  %v2460_v31 = vpop.permute.xlu0 %2459  ;;  %v6647_v54 = vld [vmem:[#allocation3 + $0xc0] sm:$0xf] }
 0x42e   :  { %2501 = vst.msk [vmem:[#allocation3 + $0x70] sm:$0xf] %vm2493_vm7, %v2460_v31 }
 0x42f   :  { %2614 = vst.msk [vmem:[#allocation3 + $0x70] sm:$0xf] %vm2606_vm8, %v2573_v41  ;;  %v7079_v41 = vld [vmem:[#allocation3 + $0x8c] sm:$0xf0] }
 0x430   :  { %v6616_v43 = vor.u32 %v7079_v41, %v6615_v40 }
 0x431   :  { %3303 = vrot.lane.b32.xlu1 %v9293_v35, %s7211_s12  ;;  %v4090_v35 = vpack.c.bf16 %v4074_v17, %v4074_v17 }
 0x432   :  { %4241 = vrot.lane.b32.xlu2 %v4202_v22, %s7214_s17 }
 0x433   :  { %4351 = vrot.lane.b32.xlu0 %v3753_v59, %s7212_s13  ;;  %v2686_v0 = vpop.permute.xlu1 %2685  ;;  %v7087_v59 = vld [vmem:[#allocation3 + $0xcc] sm:$0xf0] }
 0x434   :  { %v3789_v6 = vpop.permute.xlu2 %3788  ;;  %2727 = vst.msk [vmem:[#allocation3 + $0x70] sm:$0xf] %vm2719_vm9, %v2686_v0  ;;  %v6648_v8 = vor.u32 %v7087_v59, %v6647_v54  ;;  %v3631_v0 = vld [vmem:[#allocation2 + $0x142] sm:$0xff] }
 0x435   :  { %v4012_v60 = vpop.permute.xlu0 %4011 }
 0x436   :  { %4055 = vst.msk [vmem:[#allocation3 + $0x48] sm:$0xf] %vm2379_vm6, %v4012_v60 }
 0x439   :  { %4353 = vrot.lane.b32.xlu1 %v4314_v25, %s7212_s13  ;;  %v6663_v25 = vld [vmem:[#allocation3 + $0xe0] sm:$0xf] }
 0x43a   :  { %3910 = vrot.lane.b32.xlu2 %v9400_v61, %s7216_s21 }
 0x43b   :  { %4129 = vrot.lane.b32.xlu0 %v4090_v35, %s7211_s12  ;;  %v3799_v19 = vpop.permute.xlu1 %3798  ;;  %v7075_v14 = vld [vmem:[#allocation3 + $0x6c] sm:$0xf0]  ;;  %v6664_v35 = vor.u32 %v7091_v37, %v6663_v25 }
 0x43c   :  { %v9406_v23 = vpop.permute.xlu2 %4347  ;;  %v6600_v4 = vor.u32 %v7075_v14, %v6599_v53 }
 0x43d   :  { %v3517_v18 = vpop.permute.xlu0 %3516 }
 0x43e   :  { %3559 = vst.msk [vmem:[#allocation3 + $0x54] sm:$0xf] %vm2719_vm9, %v3517_v18  ;;  %4886 = vmatmul.bf16.gmra.mxu1 %v6600_v4 }
 0x441   :  { %3413 = vrot.lane.b32.xlu1 %v3371_v52, %s7214_s17 }
 0x442   :  { %3415 = vrot.lane.b32.xlu2 %v9400_v61, %s7214_s17 }
 0x443   :  { %3301 = vrot.lane.b32.xlu0 %v3259_v29, %s7211_s12  ;;  %v3677_v49 = vpop.permute.xlu1 %3676  ;;  %v7062_v29 = vld [vmem:[#allocation3 + $0xc] sm:$0xf] }
 0x444   :  { %v2847_v1 = vpop.permute.xlu2 %2846  ;;  %3719 = vst.msk [vmem:[#allocation3 + $0x58] sm:$0xf] %vm2040_vm3, %v3677_v49 }
 0x445   :  { %2887 = vst.msk [vmem:[#allocation3 + $0x74] sm:$0xf] %vm2040_vm3, %v2847_v1  ;;  %v2958_v2 = vpop.permute.xlu0 %2957  ;;  %v6585_v36 = vld [vmem:[#allocation3 + $0x50] sm:$0xf0] }
 0x446   :  { %3831 = vst.msk [vmem:[#allocation3 + $0x58] sm:$0xf] %vm2153_vm4, %v3789_v6  ;;  %v6588_v13 = vor.u32 %v7069_v20, %v6585_v36  ;;  %v9463_v6 = vpack.c.bf16 %v3631_v0, %v3631_v0  ;;  %v3854_v20 = vld [vmem:[#allocation2 + $0x134] sm:$0xff]  ;;  %v7077_v0 = vld [vmem:[#allocation3 + $0x84] sm:$0xf] }
 0x447   :  { %2999 = vst.msk [vmem:[#allocation3 + $0x64] sm:$0xf] %vm2153_vm4, %v2958_v2  ;;  %v3968_v2 = vld [vmem:[#allocation2 + $0x150] sm:$0xff] }
 0x448   :  { %4930 = vmatmul.bf16.gmra.mxu2 %v6588_v13  ;;  %v9505_v13 = vpack.c.bf16 %v3967_v30, %v3967_v30  ;;  %v9508_v46 = vpack.c.bf16 %v3968_v2, %v3968_v2  ;;  %v3745_v2 = vld [vmem:[#allocation2 + $0x163] sm:$0xff] }
 0x449   :  { %4025 = vrot.lane.b32.xlu1 %v9417_v16, %s7213_s14 }
 0x44a   :  { %3526 = vrot.lane.b32.xlu2 %v3484_v3, %s7212_s13  ;;  %v3870_v3 = vpack.c.bf16 %v3854_v20, %v3854_v20 }
 0x44b   :  { %3912 = vrot.lane.b32.xlu0 %v9421_v50, %s7216_s21  ;;  %v4124_v21 = vpop.permute.xlu1 %4123 }
 0x44c   :  { %v3070_v48 = vpop.permute.xlu2 %3069  ;;  %4167 = vst.msk [vmem:[#allocation3 + $0x48] sm:$0xf] %vm2493_vm7, %v4124_v21 }
 0x44d   :  { %3111 = vst.msk [vmem:[#allocation3 + $0x64] sm:$0xf] %vm2266_vm5, %v3070_v48  ;;  %v3687_v26 = vpop.permute.xlu0 %3686  ;;  %v6577_v48 = vld [vmem:[#allocation3 + $0x38] sm:$0xf0] }
 0x44e   :  { %3724 = vst.msk [vmem:[#allocation3 + $0xa8] sm:$0xf] %vm2040_vm3, %v3687_v26  ;;  %4891 = vmatmul.bf16.gmra.mxu1 %v6616_v43  ;;  %v10232_v43 = vld [vmem:[#allocation28_spill] sm:$0xff] }
 0x44f   :  { %3836 = vst.msk [vmem:[#allocation3 + $0xa8] sm:$0xf] %vm2153_vm4, %v3799_v19 }
 0x451   :  { %4135 = vrot.lane.b32.xlu1 %v8107_v57, %s7211_s12 }
 0x452   :  { %4137 = vrot.lane.b32.xlu2 %v8164_v34, %s7211_s12 }
 0x453   :  { %4023 = vrot.lane.b32.xlu0 %v3981_v55, %s7213_s14  ;;  %v3294_v15 = vpop.permute.xlu1 %3293 }
 0x454   :  { %v3406_v58 = vpop.permute.xlu2 %3405 }
 0x455   :  { %v3192_v5 = vpop.permute.xlu0 %3191 }
 0x456   :  { %3228 = vst.msk [vmem:[#allocation3 + $0xb4] sm:$0xf] %vm2379_vm6, %v3192_v5 }
 0x459   :  { %4249 = vrot.lane.b32.xlu1 %v4206_v56, %s7214_s17 }
 0x45a   :  { %4359 = vrot.lane.b32.xlu2 %v9302_v39, %s7212_s13 }
 0x45b   :  { %3528 = vrot.lane.b32.xlu0 %v3981_v55, %s7212_s13  ;;  %v4014_v32 = vpop.permute.xlu1 %4013 }
 0x45c   :  { %v4126_v38 = vpop.permute.xlu2 %4125 }
 0x45d   :  { %v3901_v51 = vpop.permute.xlu0 %3900 }
 0x45e   :  { %3943 = vst.msk [vmem:[#allocation3 + $0x58] sm:$0xf] %vm2266_vm5, %v3901_v51  ;;  %4896 = vmatmul.bf16.gmra.mxu1 %v6632_v11  ;;  %v4304_v51 = vld [vmem:[#allocation2 + $0x153] sm:$0xff] }
 0x45f   :  { %4056 = vst.msk [vmem:[#allocation3 + $0x58] sm:$0xf] %vm2379_vm6, %v4014_v32  ;;  %v9530_v32 = vpack.c.bf16 %v4192_v27, %v4192_v27 }
 0x460   :  { %4168 = vst.msk [vmem:[#allocation3 + $0x58] sm:$0xf] %vm2493_vm7, %v4126_v38 }
 0x461   :  { %2856 = vrot.lane.b32.xlu1 %v9400_v61, %s7215_s18 }
 0x462   :  { %2858 = vrot.lane.b32.xlu2 %v9421_v50, %s7215_s18 }
 0x463   :  { %4247 = vrot.lane.b32.xlu0 %v9274_v7, %s7214_s17  ;;  %v2960_v42 = vpop.permute.xlu1 %2959 }
 0x464   :  { %v3791_v47 = vpop.permute.xlu2 %3790  ;;  %3000 = vst.msk [vmem:[#allocation3 + $0x74] sm:$0xf] %vm2153_vm4, %v2960_v42 }
 0x465   :  { %v4236_v10 = vpop.permute.xlu0 %4235 }
 0x466   :  { %4279 = vst.msk [vmem:[#allocation3 + $0x48] sm:$0xf] %vm2606_vm8, %v4236_v10  ;;  %v9545_v10 = vpack.c.bf16 %v4304_v51, %v4304_v51 }
 0x467   :  { %4391 = vst.msk [vmem:[#allocation3 + $0x48] sm:$0xf] %vm2719_vm9, %v9406_v23  ;;  %v9485_v23 = vpop.f32.mrf.mxu1 }
 0x469   :  { %2971 = vrot.lane.b32.xlu1 %v9417_v16, %s7210_s30 }
 0x46a   :  { %3081 = vrot.lane.b32.xlu2 %v8107_v57, %s7216_s21 }
 0x46b   :  { %4361 = vrot.lane.b32.xlu0 %v8168_v12, %s7212_s13  ;;  %v4238_v44 = vpop.permute.xlu1 %4237 }
 0x46c   :  { %v3296_v31 = vpop.permute.xlu2 %3295  ;;  %4280 = vst.msk [vmem:[#allocation3 + $0x58] sm:$0xf] %vm2606_vm8, %v4238_v44  ;;  %v10233_v44 = vld [vmem:[#allocation20_spill] sm:$0xff] }
 0x46d   :  { %v3182_v22 = vpop.permute.xlu0 %3181 }
 0x46e   :  { %3223 = vst.msk [vmem:[#allocation3 + $0x64] sm:$0xf] %vm2379_vm6, %v3182_v22  ;;  %4901 = vmatmul.bf16.gmra.mxu1 %v6648_v8  ;;  %v6591_v24 = vld [vmem:[#allocation3 + $0x48] sm:$0xf] }
 0x46f   :  { %3335 = vst.msk [vmem:[#allocation3 + $0x64] sm:$0xf] %vm2493_vm7, %v3294_v15  ;;  %v9502_v36 = vpop.f32.mrf.mxu1  ;;  %v6580_v15 = vor.u32 %v7066_v28, %v6577_v48 }
 0x470   :  { %3447 = vst.msk [vmem:[#allocation3 + $0x64] sm:$0xf] %vm2606_vm8, %v3406_v58 }
 0x471   :  { %3690 = vrot.lane.b32.xlu1 %v4206_v56, %s7215_s18 }
 0x472   :  { %3692 = vrot.lane.b32.xlu2 %v9463_v6, %s7215_s18 }
 0x473   :  { %2969 = vrot.lane.b32.xlu0 %v3981_v55, %s7210_s30  ;;  %v3679_v57 = vpop.permute.xlu1 %3678 }
 0x474   :  { %v3681_v9 = vpop.permute.xlu2 %3680  ;;  %3720 = vst.msk [vmem:[#allocation3 + $0x68] sm:$0xf] %vm2040_vm3, %v3679_v57 }
 0x475   :  { %3721 = vst.msk [vmem:[#allocation3 + $0x78] sm:$0xf] %vm2040_vm3, %v3681_v9  ;;  %v3519_v60 = vpop.permute.xlu0 %3518  ;;  %v6617_v9 = vld [vmem:[#allocation3 + $0x90] sm:$0xf0] }
 0x476   :  { %3832 = vst.msk [vmem:[#allocation3 + $0x68] sm:$0xf] %vm2153_vm4, %v3791_v47  ;;  %v9542_v47 = vpop.f32.mrf.mxu2 }
 0x477   :  { %3560 = vst.msk [vmem:[#allocation3 + $0x64] sm:$0xf] %vm2719_vm9, %v3519_v60  ;;  %v9517_v41 = vpop.f32.mrf.mxu1  ;;  %v6620_v60 = vor.u32 %v7077_v0, %v6617_v9  ;;  %v6641_v0 = vld [vmem:[#allocation3 + $0xb8] sm:$0xf0]  ;;  %v7082_v9 = vld [vmem:[#allocation3 + $0xac] sm:$0xf] }
 0x479   :  { %3195 = vrot.lane.b32.xlu1 %v4206_v56, %s7213_s14 }
 0x47a   :  { %3802 = vrot.lane.b32.xlu2 %v8168_v12, %s7210_s30 }
 0x47b   :  { %3083 = vrot.lane.b32.xlu0 %v8164_v34, %s7216_s21  ;;  %v3184_v17 = vpop.permute.xlu1 %3183  ;;  %v3855_v34 = vld [vmem:[#allocation2 + $0x144] sm:$0xff] }
 0x47c   :  { %v4128_v61 = vpop.permute.xlu2 %4127 }
 0x47d   :  { %v4350_v19 = vpop.permute.xlu0 %4349 }
 0x47e   :  { %4392 = vst.msk [vmem:[#allocation3 + $0x58] sm:$0xf] %vm2719_vm9, %v4350_v19  ;;  %4906 = vmatmul.bf16.gmra.mxu1 %v6664_v35  ;;  %v7073_v5 = vld [vmem:[#allocation3 + $0x64] sm:$0xf]  ;;  %v9558_v37 = vpop.f32.mrf.mxu2 }
 0x47f   :  { %v9532_v33 = vpop.f32.mrf.mxu1 }
 0x481   :  { %3305 = vrot.lane.b32.xlu1 %v9302_v39, %s7211_s12  ;;  %v9489_v39 = vpack.c.bf16 %v3855_v34, %v3855_v34 }
 0x482   :  { %3307 = vrot.lane.b32.xlu2 %v8168_v12, %s7211_s12  ;;  %v6561_v12 = vld [vmem:[#allocation3 + $0x18] sm:$0xf0] }
 0x483   :  { %3193 = vrot.lane.b32.xlu0 %v9274_v7, %s7213_s14  ;;  %v4016_v53 = vpop.permute.xlu1 %4015  ;;  %v10231_v7 = vld [vmem:[#allocation27_spill] sm:$0xff]  ;;  %v6564_v1 = vor.u32 %v7062_v29, %v6561_v12 }
 0x484   :  { %v4018_v14 = vpop.permute.xlu2 %4017 }
 0x485   :  { %v3072_v4 = vpop.permute.xlu0 %3071  ;;  %v7072_v18 = vld [vmem:[#allocation3 + $0x54] sm:$0xf0] }
 0x486   :  { %3112 = vst.msk [vmem:[#allocation3 + $0x74] sm:$0xf] %vm2266_vm5, %v3072_v4  ;;  %v6592_v63 = vor.u32 %v7072_v18, %v6591_v24  ;;  %v6609_v4 = vld [vmem:[#allocation3 + $0x78] sm:$0xf0] }
 0x487   :  { %3224 = vst.msk [vmem:[#allocation3 + $0x74] sm:$0xf] %vm2379_vm6, %v3184_v17  ;;  %v9547_v59 = vpop.f32.mrf.mxu1 }
 0x488   :  { %3336 = vst.msk [vmem:[#allocation3 + $0x74] sm:$0xf] %vm2493_vm7, %v3296_v31  ;;  %4979 = vmatmul.bf16.gmra.mxu3 %v6592_v63  ;;  %v7070_v31 = vld [vmem:[#allocation3 + $0x4c] sm:$0xf] }
 0x489   :  { %3916 = vrot.lane.b32.xlu1 %v9489_v39, %s7216_s21  ;;  %v7074_v63 = vld [vmem:[#allocation3 + $0x6c] sm:$0xf] }
 0x48a   :  { %3417 = vrot.lane.b32.xlu2 %v9421_v50, %s7214_s17 }
 0x48b   :  { %3804 = vrot.lane.b32.xlu0 %v10231_v7, %s7210_s30  ;;  %v3521_v52 = vpop.permute.xlu1 %3520 }
 0x48c   :  { %v9498_v49 = vpop.permute.xlu2 %4241 }
 0x48d   :  { %v3903_v62 = vpop.permute.xlu0 %3902 }
 0x48e   :  { %3944 = vst.msk [vmem:[#allocation3 + $0x68] sm:$0xf] %vm2266_vm5, %v3903_v62  ;;  %6777 = vmatmul.msk.bf16.vlgmr.msra.gmra.mxu1 %vm1846_vm1, %v6564_v1 }
 0x48f   :  { %4057 = vst.msk [vmem:[#allocation3 + $0x68] sm:$0xf] %vm2379_vm6, %v4016_v53  ;;  %v9565_v17 = vpop.f32.mrf.mxu1 }
 0x490   :  { %4169 = vst.msk [vmem:[#allocation3 + $0x68] sm:$0xf] %vm2493_vm7, %v4128_v61 }
 0x491   :  { %4027 = vrot.lane.b32.xlu1 %v9505_v13, %s7213_s14 }
 0x492   :  { %4029 = vrot.lane.b32.xlu2 %v9508_v46, %s7213_s14 }
 0x493   :  { %3914 = vrot.lane.b32.xlu0 %v3870_v3, %s7216_s21  ;;  %v3905_v50 = vpop.permute.xlu1 %3904 }
 0x494   :  { %v3911_v40 = vpop.permute.xlu2 %3910 }
 0x495   :  { %3948 = vst.msk [vmem:[#allocation3 + $0xa8] sm:$0xf] %vm2266_vm5, %v3911_v40  ;;  %v3408_v21 = vpop.permute.xlu0 %3407  ;;  %v9608_v40 = vld [vmem:[%s10094_s4] ss:$0 sm:$0xff] }
 0x496   :  { %3448 = vst.msk [vmem:[#allocation3 + $0x74] sm:$0xf] %vm2606_vm8, %v3408_v21 }
 0x497   :  { %3561 = vst.msk [vmem:[#allocation3 + $0x74] sm:$0xf] %vm2719_vm9, %v3521_v52  ;;  %v6612_v52 = vor.u32 %v7074_v63, %v6609_v4 }
 0x499   :  { %3532 = vrot.lane.b32.xlu1 %v9505_v13, %s7212_s13 }
 0x49a   :  { %4139 = vrot.lane.b32.xlu2 %v10232_v43, %s7211_s12 }
 0x49b   :  { %3419 = vrot.lane.b32.xlu0 %v3870_v3, %s7214_s17  ;;  %v4240_v26 = vpop.permute.xlu1 %4239 }
 0x49c   :  { %v3416_v55 = vpop.permute.xlu2 %3415  ;;  %4281 = vst.msk [vmem:[#allocation3 + $0x68] sm:$0xf] %vm2606_vm8, %v4240_v26  ;;  %v4883_v26 = vadd.f32 %v9608_v40, %v9547_v59 }
 0x49d   :  { %v3793_v58 = vpop.permute.xlu0 %3792 }
 0x49e   :  { %3833 = vst.msk [vmem:[#allocation3 + $0x78] sm:$0xf] %vm2153_vm4, %v3793_v58  ;;  %6778 = vmatmul.msk.bf16.gmra.mxu1 %vm1846_vm1, %v6580_v15  ;;  %v6601_v56 = vld [vmem:[#allocation3 + $0x70] sm:$0xf0]  ;;  %v7078_v15 = vld [vmem:[#allocation3 + $0x8c] sm:$0xf] }
 0x49f   :  { %3945 = vst.msk [vmem:[#allocation3 + $0x78] sm:$0xf] %vm2266_vm5, %v3905_v50  ;;  %v6604_v45 = vor.u32 %v7073_v5, %v6601_v56  ;;  %v9603_v50 = vpack.c.bf16 %v3745_v2, %v3745_v2 }
 0x4a0   :  { %4058 = vst.msk [vmem:[#allocation3 + $0x78] sm:$0xf] %vm2379_vm6, %v4018_v14  ;;  %v9573_v14 = vpop.f32.mrf.mxu2 }
 0x4a1   :  { %4935 = vmatmul.bf16.gmra.mxu2 %v6604_v45  ;;  %4251 = vrot.lane.b32.xlu1 %v9463_v6, %s7214_s17  ;;  %v3856_v45 = vld [vmem:[#allocation2 + $0x154] sm:$0xff] }
 0x4a2   :  { %4253 = vrot.lane.b32.xlu2 %v9530_v32, %s7214_s17 }
 0x4a3   :  { %3530 = vrot.lane.b32.xlu0 %v9417_v16, %s7212_s13  ;;  %v3304_v38 = vpop.permute.xlu1 %3303  ;;  %v6593_v16 = vld [vmem:[#allocation3 + $0x58] sm:$0xf0] }
 0x4a4   :  { %v3527_v11 = vpop.permute.xlu2 %3526  ;;  %3340 = vst.msk [vmem:[#allocation3 + $0xb4] sm:$0xf] %vm2493_vm7, %v3304_v38  ;;  %v6596_v22 = vor.u32 %v7070_v31, %v6593_v16  ;;  %v3857_v38 = vld [vmem:[#allocation2 + $0x164] sm:$0xff] }
 0x4a5   :  { %3452 = vst.msk [vmem:[#allocation3 + $0xb4] sm:$0xf] %vm2606_vm8, %v3416_v55  ;;  %v4352_v42 = vpop.permute.xlu0 %4351  ;;  %v3969_v31 = vld [vmem:[#allocation2 + $0x160] sm:$0xff] }
 0x4a6   :  { %4393 = vst.msk [vmem:[#allocation3 + $0x68] sm:$0xf] %vm2719_vm9, %v4352_v42 }
 0x4a9   :  { %4365 = vrot.lane.b32.xlu1 %v9545_v10, %s7212_s13 }
 0x4aa   :  { %2860 = vrot.lane.b32.xlu2 %v3870_v3, %s7215_s18  ;;  %v3633_v3 = vld [vmem:[#allocation2 + $0x162] sm:$0xff] }
 0x4ab   :  { %4141 = vrot.lane.b32.xlu0 %v10233_v44, %s7211_s12  ;;  %v4354_v54 = vpop.permute.xlu1 %4353  ;;  %v9612_v48 = vpack.c.bf16 %v3633_v3, %v3633_v3 }
 0x4ac   :  { %v4138_v8 = vpop.permute.xlu2 %4137 }
 0x4ad   :  { %v4130_v57 = vpop.permute.xlu0 %4129  ;;  %v6607_v19 = vld [vmem:[#allocation3 + $0x68] sm:$0xf] }
 0x4ae   :  { %4170 = vst.msk [vmem:[#allocation3 + $0x78] sm:$0xf] %vm2493_vm7, %v4130_v57  ;;  %6779 = vmatmul.msk.bf16.gmra.mxu1 %vm1846_vm1, %v6596_v22  ;;  %v3985_v22 = vpack.c.bf16 %v3969_v31, %v3969_v31 }
 0x4af   :  { %4282 = vst.msk [vmem:[#allocation3 + $0x78] sm:$0xf] %vm2606_vm8, %v9498_v49  ;;  %v9591_v49 = vpop.f32.mrf.mxu2 }
 0x4b0   :  { %4394 = vst.msk [vmem:[#allocation3 + $0x78] sm:$0xf] %vm2719_vm9, %v4354_v54 }
 0x4b1   :  { %4940 = vmatmul.bf16.gmra.mxu2 %v6620_v60  ;;  %2973 = vrot.lane.b32.xlu1 %v9505_v13, %s7210_s30  ;;  %v7080_v13 = vld [vmem:[#allocation3 + $0x94] sm:$0xf0] }
 0x4b2   :  { %2975 = vrot.lane.b32.xlu2 %v9508_v46, %s7210_s30 }
 0x4b3   :  { %4363 = vrot.lane.b32.xlu0 %v10231_v7, %s7212_s13  ;;  %v3414_v25 = vpop.permute.xlu1 %3413 }
 0x4b4   :  { %v9569_v61 = vpop.permute.xlu2 %4359 }
 0x4b5   :  { %v3302_v35 = vpop.permute.xlu0 %3301 }
 0x4b6   :  { %3339 = vst.msk [vmem:[#allocation3 + $0xa4] sm:$0xf] %vm2493_vm7, %v3302_v35  ;;  %v6644_v35 = vor.u32 %v7082_v9, %v6641_v0 }
 0x4b7   :  { %3451 = vst.msk [vmem:[#allocation3 + $0xa4] sm:$0xf] %vm2606_vm8, %v3414_v25  ;;  %v7076_v53 = vld [vmem:[#allocation3 + $0x74] sm:$0xf0] }
 0x4b8   :  { %3564 = vst.msk [vmem:[#allocation3 + $0xa4] sm:$0xf] %vm2719_vm9, %v3527_v11  ;;  %v6608_v34 = vor.u32 %v7076_v53, %v6607_v19  ;;  %v3873_v11 = vpack.c.bf16 %v3857_v38, %v3857_v38 }
 0x4b9   :  { %3087 = vrot.lane.b32.xlu1 %v10233_v44, %s7216_s21 }
 0x4ba   :  { %4984 = vmatmul.bf16.gmra.mxu3 %v6608_v34  ;;  %3694 = vrot.lane.b32.xlu2 %v9530_v32, %s7215_s18  ;;  %v4082_v34 = vld [vmem:[#allocation2 + $0x171] sm:$0xff] }
 0x4bb   :  { %2862 = vrot.lane.b32.xlu0 %v9489_v39, %s7215_s18  ;;  %v4026_v24 = vpop.permute.xlu1 %4025  ;;  %v9582_v18 = vpop.f32.mrf.mxu1 }
 0x4bc   :  { %v2859_v12 = vpop.permute.xlu2 %2858 }
 0x4bd   :  { %2893 = vst.msk [vmem:[#allocation3 + $0xd4] sm:$0xf] %vm2040_vm3, %v2859_v12  ;;  %v3913_v29 = vpop.permute.xlu0 %3912  ;;  %v3970_v12 = vld [vmem:[#allocation2 + $0x170] sm:$0xff] }
 0x4be   :  { %3949 = vst.msk [vmem:[#allocation3 + $0xb8] sm:$0xf] %vm2266_vm5, %v3913_v29  ;;  %6780 = vmatmul.msk.bf16.gmra.mxu1 %vm1846_vm1, %v6612_v52  ;;  %v9657_v52 = vpop.f32.mrf.mxu3  ;;  %v3986_v29 = vpack.c.bf16 %v3970_v12, %v3970_v12 }
 0x4bf   :  { %4062 = vst.msk [vmem:[#allocation3 + $0xb8] sm:$0xf] %vm2379_vm6, %v4026_v24  ;;  %v7081_v44 = vld [vmem:[#allocation3 + $0xa4] sm:$0xf] }
 0x4c0   :  { %4174 = vst.msk [vmem:[#allocation3 + $0xb8] sm:$0xf] %vm2493_vm7, %v4138_v8 }
 0x4c1   :  { %3197 = vrot.lane.b32.xlu1 %v9463_v6, %s7213_s14  ;;  %v6623_v6 = vld [vmem:[#allocation3 + $0x88] sm:$0xf] }
 0x4c2   :  { %3199 = vrot.lane.b32.xlu2 %v9530_v32, %s7213_s14  ;;  %v6624_v21 = vor.u32 %v7080_v13, %v6623_v6 }
 0x4c3   :  { %3085 = vrot.lane.b32.xlu0 %v10232_v43, %s7216_s21  ;;  %v4136_v1 = vpop.permute.xlu1 %4135  ;;  %v9597_v30 = vpop.f32.mrf.mxu1  ;;  %v6625_v43 = vld [vmem:[#allocation3 + $0x98] sm:$0xf0] }
 0x4c4   :  { %v9599_v62 = vpop.permute.xlu2 %3081  ;;  %v6628_v56 = vor.u32 %v7078_v15, %v6625_v43  ;;  %v4306_v43 = vld [vmem:[#allocation2 + $0x173] sm:$0xff] }
 0x4c5   :  { %v4024_v20 = vpop.permute.xlu0 %4023 }
 0x4c6   :  { %4061 = vst.msk [vmem:[#allocation3 + $0xa8] sm:$0xf] %vm2379_vm6, %v4024_v20  ;;  %v7086_v20 = vld [vmem:[#allocation3 + $0xcc] sm:$0xf] }
 0x4c7   :  { %4173 = vst.msk [vmem:[#allocation3 + $0xa8] sm:$0xf] %vm2493_vm7, %v4136_v1  ;;  %v6657_v1 = vld [vmem:[#allocation3 + $0xd8] sm:$0xf0] }
 0x4c8   :  { %v6660_v6 = vor.u32 %v7086_v20, %v6657_v1 }
 0x4c9   :  { %3808 = vrot.lane.b32.xlu1 %v9603_v50, %s7210_s30 }
 0x4ca   :  { %4989 = vmatmul.bf16.gmra.mxu3 %v6624_v21  ;;  %3309 = vrot.lane.b32.xlu2 %v10231_v7, %s7211_s12  ;;  %v3872_v7 = vpack.c.bf16 %v3856_v45, %v3856_v45 }
 0x4cb   :  { %3696 = vrot.lane.b32.xlu0 %v9612_v48, %s7215_s18  ;;  %v4931_v28 = vpop.f32.mrf.mxu2  ;;  %v4250_v55 = vpop.permute.xlu1 %4249 }
 0x4cc   :  { %v9620_v58 = vadd.f32 %v4931_v28, %v4883_v26  ;;  %v3693_v27 = vpop.permute.xlu2 %3692  ;;  %4286 = vst.msk [vmem:[#allocation3 + $0xb8] sm:$0xf] %vm2606_vm8, %v4250_v55  ;;  %v9623_v5 = vpop.f32.mrf.mxu1  ;;  %v10234_v26 = vld [vmem:[#allocation31_spill] sm:$0xff] }
 0x4cd   :  { %3727 = vst.msk [vmem:[#allocation3 + $0xd8] sm:$0xf] %vm2040_vm3, %v3693_v27  ;;  %v3529_v32 = vpop.permute.xlu0 %3528 }
 0x4ce   :  { %3565 = vst.msk [vmem:[#allocation3 + $0xb4] sm:$0xf] %vm2719_vm9, %v3529_v32  ;;  %6781 = vmatmul.msk.bf16.gmra.mxu1 %vm1846_vm1, %v6628_v56  ;;  %v4194_v56 = vld [vmem:[#allocation2 + $0x172] sm:$0xff]  ;;  %v6673_v32 = vld [vmem:[#allocation3 + $0xf8] sm:$0xf0] }
 0x4d1   :  { %3918 = vrot.lane.b32.xlu1 %v3872_v7, %s7216_s21 }
 0x4d2   :  { %3920 = vrot.lane.b32.xlu2 %v3873_v11, %s7216_s21 }
 0x4d3   :  { %3806 = vrot.lane.b32.xlu0 %v9545_v10, %s7210_s30  ;;  %v2857_v51 = vpop.permute.xlu1 %2856  ;;  %v4933_v20 = vpop.f32.mrf.mxu2 }
 0x4d4   :  { %v3803_v42 = vpop.permute.xlu2 %3802  ;;  %2892 = vst.msk [vmem:[#allocation3 + $0xc4] sm:$0xf] %vm2040_vm3, %v2857_v51  ;;  %v9633_v59 = vpop.f32.mrf.mxu1 }
 0x4d5   :  { %v4248_v16 = vpop.permute.xlu0 %4247  ;;  %v6633_v54 = vld [vmem:[#allocation3 + $0xb0] sm:$0xf0] }
 0x4d6   :  { %4285 = vst.msk [vmem:[#allocation3 + $0xa8] sm:$0xf] %vm2606_vm8, %v4248_v16  ;;  %v6636_v8 = vor.u32 %v7081_v44, %v6633_v54 }
 0x4d7   :  { %4397 = vst.msk [vmem:[#allocation3 + $0xa8] sm:$0xf] %vm2719_vm9, %v9569_v61 }
 0x4d8   :  { %4945 = vmatmul.bf16.gmra.mxu2 %v6636_v8 }
 0x4d9   :  { %3423 = vrot.lane.b32.xlu1 %v3872_v7, %s7214_s17  ;;  %v7090_v7 = vld [vmem:[#allocation3 + $0xec] sm:$0xf] }
 0x4da   :  { %4031 = vrot.lane.b32.xlu2 %v3985_v22, %s7213_s14 }
 0x4db   :  { %3311 = vrot.lane.b32.xlu0 %v9545_v10, %s7211_s12  ;;  %v2972_v57 = vpop.permute.xlu1 %2971 }
 0x4dc   :  { %v3308_v60 = vpop.permute.xlu2 %3307  ;;  %3006 = vst.msk [vmem:[#allocation3 + $0xd4] sm:$0xf] %vm2153_vm4, %v2972_v57  ;;  %v9643_v25 = vpop.f32.mrf.mxu1 }
 0x4dd   :  { %v4362_v19 = vpop.permute.xlu0 %4361 }
 0x4de   :  { %4398 = vst.msk [vmem:[#allocation3 + $0xb8] sm:$0xf] %vm2719_vm9, %v4362_v19  ;;  %6782 = vmatmul.msk.bf16.gmra.mxu1 %vm1846_vm1, %v6644_v35  ;;  %v6639_v24 = vld [vmem:[#allocation3 + $0xa8] sm:$0xf]  ;;  %v4873_v19 = vadd.f32 %v9608_v40, %v9485_v23 }
 0x4e1   :  { %3534 = vrot.lane.b32.xlu1 %v9508_v46, %s7212_s13 }
 0x4e2   :  { %3536 = vrot.lane.b32.xlu2 %v3985_v22, %s7212_s13 }
 0x4e3   :  { %3421 = vrot.lane.b32.xlu0 %v9489_v39, %s7214_s17  ;;  %v3691_v10 = vpop.permute.xlu1 %3690  ;;  %v4098_v39 = vpack.c.bf16 %v4082_v34, %v4082_v34  ;;  %v4922_v34 = vadd.f32 %v9542_v47, %v4873_v19 }
 0x4e4   :  { %v3418_v61 = vpop.permute.xlu2 %3417  ;;  %3726 = vst.msk [vmem:[#allocation3 + $0xc8] sm:$0xf] %vm2040_vm3, %v3691_v10  ;;  %v9653_v53 = vpop.f32.mrf.mxu1 }
 0x4e5   :  { %3838 = vst.msk [vmem:[#allocation3 + $0xc8] sm:$0xf] %vm2153_vm4, %v3803_v42  ;;  %v2970_v4 = vpop.permute.xlu0 %2969  ;;  %v7084_v63 = vld [vmem:[#allocation3 + $0xb4] sm:$0xf0]  ;;  %v6676_v42 = vor.u32 %v7090_v7, %v6673_v32 }
 0x4e6   :  { %3005 = vst.msk [vmem:[#allocation3 + $0xc4] sm:$0xf] %vm2153_vm4, %v2970_v4  ;;  %v6640_v46 = vor.u32 %v7084_v63, %v6639_v24 }
 0x4e7   :  { %3117 = vst.msk [vmem:[#allocation3 + $0xc4] sm:$0xf] %vm2266_vm5, %v9599_v62  ;;  %v4322_v62 = vpack.c.bf16 %v4306_v43, %v4306_v43 }
 0x4e8   :  { %4994 = vmatmul.bf16.gmra.mxu3 %v6640_v46 }
 0x4e9   :  { %4145 = vrot.lane.b32.xlu1 %v4098_v39, %s7211_s12 }
 0x4ea   :  { %4255 = vrot.lane.b32.xlu2 %v9612_v48, %s7214_s17  ;;  %v4972_v48 = vpop.f32.mrf.mxu3 }
 0x4eb   :  { %4033 = vrot.lane.b32.xlu0 %v3986_v29, %s7213_s14  ;;  %v3196_v2 = vpop.permute.xlu1 %3195 }
 0x4ec   :  { %v4030_v13 = vpop.permute.xlu2 %4029  ;;  %v9665_v3 = vpop.f32.mrf.mxu1 }
 0x4ed   :  { %v3084_v21 = vpop.permute.xlu0 %3083 }
 0x4ee   :  { %3118 = vst.msk [vmem:[#allocation3 + $0xd4] sm:$0xf] %vm2266_vm5, %v3084_v21  ;;  %6783 = vmatmul.msk.bf16.gmra.mxu1 %vm1846_vm1, %v6660_v6 }
 0x4ef   :  { %3230 = vst.msk [vmem:[#allocation3 + $0xd4] sm:$0xf] %vm2379_vm6, %v3196_v2 }
 0x4f0   :  { %3342 = vst.msk [vmem:[#allocation3 + $0xd4] sm:$0xf] %vm2493_vm7, %v3308_v60 }
 0x4f1   :  { %4367 = vrot.lane.b32.xlu1 %v9603_v50, %s7212_s13  ;;  %v4210_v50 = vpack.c.bf16 %v4194_v56, %v4194_v56 }
 0x4f2   :  { %4369 = vrot.lane.b32.xlu2 %v4322_v62, %s7212_s13  ;;  %v9681_v45 = vpop.f32.mrf.mxu3 }
 0x4f3   :  { %4143 = vrot.lane.b32.xlu0 %v10234_v26, %s7211_s12  ;;  %v3306_v28 = vpop.permute.xlu1 %3305  ;;  %s7217_s12 = smov [#allocation5]  }
 0x4f4   :  { %v4140_v55 = vpop.permute.xlu2 %4139  ;;  %v9676_v15 = vpop.f32.mrf.mxu1  ;;  %s6050_s13 = sshll.u32 %s7217_s12, 4  ;;  %s6051_s13 = int_to_ptr.vmem [resolvable:$true] %s6050_s13 }
 0x4f5   :  { %v3194_v27 = vpop.permute.xlu0 %3193 }
 0x4f6   :  { %3229 = vst.msk [vmem:[#allocation3 + $0xc4] sm:$0xf] %vm2379_vm6, %v3194_v27 }
 0x4f7   :  { %3341 = vst.msk [vmem:[#allocation3 + $0xc4] sm:$0xf] %vm2493_vm7, %v3306_v28  ;;  %v4888_v28 = vadd.f32 %v9608_v40, %v9582_v18 }
 0x4f8   :  { %3453 = vst.msk [vmem:[#allocation3 + $0xc4] sm:$0xf] %vm2606_vm8, %v3418_v61  ;;  %v4875_v61 = vadd.f32 %v9608_v40, %v9502_v36 }
 0x4fa   :  { %v9690_v44 = vpop.f32.mrf.mxu3  ;;  %v4924_v4 = vadd.f32 %v9558_v37, %v4875_v61 }
 0x4fb   :  { %4257 = vrot.lane.b32.xlu0 %v4210_v50, %s7214_s17  ;;  %v3917_v38 = vpop.permute.xlu1 %3916 }
 0x4fc   :  { %v4254_v11 = vpop.permute.xlu2 %4253  ;;  %v9684_v51 = vpop.f32.mrf.mxu1  ;;  %v4973_v24 = vadd.f32 %v4972_v48, %v4924_v4 }
 0x4fd   :  { %v3805_v16 = vpop.permute.xlu0 %3804 }
 0x4fe   :  { %3839 = vst.msk [vmem:[#allocation3 + $0xd8] sm:$0xf] %vm2153_vm4, %v3805_v16  ;;  %6784 = vmatmul.msk.bf16.gmra.mxu1 %vm1846_vm1, %v6676_v42  ;;  %vm5946_vm1 = vcmask 818176  }
 0x4ff   :  { %3951 = vst.msk [vmem:[#allocation3 + $0xd8] sm:$0xf] %vm2266_vm5, %v3917_v38 }
 0x500   :  { %4064 = vst.msk [vmem:[#allocation3 + $0xd8] sm:$0xf] %vm2379_vm6, %v4030_v13 }
 0x503   :  { %v4028_v54 = vpop.permute.xlu1 %4027 }
 0x504   :  { %v2861_v31 = vpop.permute.xlu2 %2860  ;;  %v9692_v8 = vpop.f32.mrf.mxu1 }
 0x505   :  { %2894 = vst.msk [vmem:[#allocation3 + $0xe4] sm:$0xf] %vm2040_vm3, %v2861_v31  ;;  %v3915_v22 = vpop.permute.xlu0 %3914 }
 0x506   :  { %3950 = vst.msk [vmem:[#allocation3 + $0xc8] sm:$0xf] %vm2266_vm5, %v3915_v22 }
 0x507   :  { %4063 = vst.msk [vmem:[#allocation3 + $0xc8] sm:$0xf] %vm2379_vm6, %v4028_v54 }
 0x508   :  { %4175 = vst.msk [vmem:[#allocation3 + $0xc8] sm:$0xf] %vm2493_vm7, %v4140_v55 }
 0x50b   :  { %v4980_v0 = vpop.f32.mrf.mxu3  ;;  %v3533_v57 = vpop.permute.xlu1 %3532 }
 0x50c   :  { %v4981_v9 = vadd.f32 %v4980_v0, %v9620_v58  ;;  %v9699_v60 = vpop.permute.xlu2 %2975  ;;  %v5019_v35 = vpop.f32.mrf.mxu1  ;;  %v4971_v58 = vadd.f32 %v9657_v52, %v4922_v34 }
 0x50d   :  { %v3420_v10 = vpop.permute.xlu0 %3419 }
 0x50e   :  { %3454 = vst.msk [vmem:[#allocation3 + $0xd4] sm:$0xf] %vm2606_vm8, %v3420_v10  ;;  %v5020_v63 = vadd.f32 %v5019_v35, %v4971_v58 }
 0x50f   :  { %3567 = vst.msk [vmem:[#allocation3 + $0xd4] sm:$0xf] %vm2719_vm9, %v3533_v57 }
 0x510   :  { %v5059_v36 = vmax.f32 %v5020_v63, 0.0 }
 0x513   :  { %v4252_v46 = vpop.permute.xlu1 %4251  ;;  %v4982_v61 = vpop.f32.mrf.mxu3 }
 0x514   :  { %v3695_v12 = vpop.permute.xlu2 %3694  ;;  %4287 = vst.msk [vmem:[#allocation3 + $0xc8] sm:$0xf] %vm2606_vm8, %v4252_v46  ;;  %v5021_v23 = vpop.f32.mrf.mxu1 }
 0x515   :  { %3728 = vst.msk [vmem:[#allocation3 + $0xe8] sm:$0xf] %vm2040_vm3, %v3695_v12  ;;  %v3531_v39 = vpop.permute.xlu0 %3530  ;;  %v5022_v29 = vadd.f32 %v5021_v23, %v4973_v24  ;;  %v4880_v12 = vadd.f32 %v9608_v40, %v9532_v33 }
 0x516   :  { %3566 = vst.msk [vmem:[#allocation3 + $0xc4] sm:$0xf] %vm2719_vm9, %v3531_v39  ;;  %v6649_v43 = vld [vmem:[#allocation3 + $0xd0] sm:$0xf0] }
 0x517   :  { %v5060_v47 = vmax.f32 %v5022_v29, 0.0  ;;  %v4878_v29 = vadd.f32 %v9608_v40, %v9517_v41 }
 0x519   :  { %v5075_v1 = vmax.f32 %v5059_v36, %v5060_v47  ;;  %v4929_v36 = vadd.f32 %v9591_v49, %v4880_v12 }
 0x51b   :  { %v5085_v2 = vrot.slane %v5075_v1, 1  ;;  %v4366_v37 = vpop.permute.xlu1 %4365 }
 0x51c   :  { %v9713_v52 = vpop.f32.mrf.mxu1  ;;  %v3200_v7 = vpop.permute.xlu2 %3199 }
 0x51d   :  { %v5089_v13 = vmax.f32 %v5075_v1, %v5085_v2  ;;  %v4142_v6 = vpop.permute.xlu0 %4141  ;;  %v7085_v21 = vld [vmem:[#allocation3 + $0xc4] sm:$0xf]  ;;  %v4927_v2 = vadd.f32 %v9573_v14, %v4878_v29 }
 0x51e   :  { %4176 = vst.msk [vmem:[#allocation3 + $0xd8] sm:$0xf] %vm2493_vm7, %v4142_v6  ;;  %v6652_v62 = vor.u32 %v7085_v21, %v6649_v43 }
 0x51f   :  { %v9716_v48 = vpack.c.bf16 %v5089_v13, %v5089_v13  ;;  %4288 = vst.msk [vmem:[#allocation3 + $0xd8] sm:$0xf] %vm2606_vm8, %v4254_v11  ;;  %v4890_v11 = vadd.f32 %v9608_v40, %v9597_v30  ;;  %v4885_v30 = vadd.f32 %v9608_v40, %v9565_v17  ;;  %v4976_v21 = vadd.f32 %v9681_v45, %v4927_v2 }
 0x520   :  { %4400 = vst.msk [vmem:[#allocation3 + $0xd8] sm:$0xf] %vm2719_vm9, %v4366_v37  ;;  %4950 = vmatmul.bf16.gmra.mxu2 %v6652_v62  ;;  %v4978_v37 = vadd.f32 %v9690_v44, %v4929_v36 }
 0x521   :  { %v5095_v26 = vrot.slane %v9716_v48, 3  ;;  %v4934_v34 = vadd.f32 %v4933_v20, %v4885_v30  ;;  %v5025_v43 = vadd.f32 %v9713_v52, %v4976_v21 }
 0x523   :  { %v5100_v55 = vsel %vm5097_vm10, %v9716_v48, %v5095_v26  ;;  %v2974_v27 = vpop.permute.xlu1 %2973  ;;  %v4983_v24 = vadd.f32 %v4982_v61, %v4934_v34  ;;  %v4895_v61 = vadd.f32 %v9608_v40, %v9633_v59 }
 0x524   :  { %5104 = vst [vmem:[#allocation1] ss:$4 sm:$0xff] %v5100_v55  ;;  %v4936_v56 = vpop.f32.mrf.mxu2  ;;  %v5026_v38 = vpop.f32.mrf.mxu1 }
 0x525   :  { %v4937_v50 = vadd.f32 %v4936_v56, %v4888_v28  ;;  %3007 = vst.msk [vmem:[#allocation3 + $0xe4] sm:$0xf] %vm2153_vm4, %v2974_v27  ;;  %v4364_v32 = vpop.permute.xlu0 %4363  ;;  %v3310_v10 = vpop.permute.xlu2 %3309  ;;  %v5027_v41 = vadd.f32 %v5026_v38, %v4978_v37  ;;  %v5061_v28 = vmax.f32 %v5025_v43, 0.0 }
 0x526   :  { %4399 = vst.msk [vmem:[#allocation3 + $0xc8] sm:$0xf] %vm2719_vm9, %v4364_v32 }
 0x527   :  { %v7088_v57 = vld [vmem:[#allocation3 + $0xd4] sm:$0xf0]  ;;  %v5062_v62 = vmax.f32 %v5027_v41, 0.0 }
 0x52b   :  { %v9729_v42 = vld [vmem:[#allocation1] sm:$0xf]  ;;  %v3088_v18 = vpop.permute.xlu1 %3087 }
 0x52c   :  { %5124 = vst [vmem:[#allocation1] sm:$0xff] %v9716_v48  ;;  %v4938_v16 = vpop.f32.mrf.mxu2  ;;  %v5029_v22 = vpop.f32.mrf.mxu1 }
 0x52d   :  { %v4939_v54 = vadd.f32 %v4938_v16, %v4890_v11  ;;  %v2863_v31 = vpop.permute.xlu0 %2862  ;;  %v6655_v0 = vld [vmem:[#allocation3 + $0xc8] sm:$0xf]  ;;  %v5030_v35 = vadd.f32 %v5029_v22, %v4981_v9  ;;  %v3921_v23 = vpop.permute.xlu2 %3920 }
 0x52e   :  { %2895 = vst.msk [vmem:[#allocation3 + $0xf4] sm:$0xf] %vm2040_vm3, %v2863_v31  ;;  %v6656_v19 = vor.u32 %v7088_v57, %v6655_v0  ;;  %v4893_v0 = vadd.f32 %v9608_v40, %v9623_v5 }
 0x52f   :  { %3008 = vst.msk [vmem:[#allocation3 + $0xf4] sm:$0xf] %vm2153_vm4, %v9699_v60  ;;  %v5063_v17 = vmax.f32 %v5030_v35, 0.0 }
 0x530   :  { %3120 = vst.msk [vmem:[#allocation3 + $0xf4] sm:$0xf] %vm2266_vm5, %v3088_v18  ;;  %4999 = vmatmul.bf16.gmra.mxu3 %v6656_v19 }
 0x531   :  { %3232 = vst.msk [vmem:[#allocation3 + $0xf4] sm:$0xf] %vm2379_vm6, %v3200_v7 }
 0x533   :  { %v5126_v4 = vld [vmem:[#allocation1 + $0x1] ss:$4 sm:$0xff]  ;;  %v3198_v58 = vpop.permute.xlu1 %3197 }
 0x534   :  { %5130 = vst [vmem:[#allocation1] ss:$4 sm:$0xff] %v5126_v4  ;;  %v5031_v63 = vpop.f32.mrf.mxu1  ;;  %v4941_v32 = vpop.f32.mrf.mxu2 }
 0x535   :  { %v3086_v9 = vpop.permute.xlu0 %3085  ;;  %v5032_v60 = vadd.f32 %v5031_v63, %v4983_v24  ;;  %v4032_v44 = vpop.permute.xlu2 %4031  ;;  %v4942_v30 = vadd.f32 %v4941_v32, %v4893_v0 }
 0x536   :  { %3119 = vst.msk [vmem:[#allocation3 + $0xe4] sm:$0xf] %vm2266_vm5, %v3086_v9 }
 0x537   :  { %3231 = vst.msk [vmem:[#allocation3 + $0xe4] sm:$0xf] %vm2379_vm6, %v3198_v58  ;;  %v5064_v46 = vmax.f32 %v5032_v60, 0.0 }
 0x538   :  { %3343 = vst.msk [vmem:[#allocation3 + $0xe4] sm:$0xf] %vm2493_vm7, %v3310_v10 }
 0x539   :  { %v9744_v39 = vmax.f32 %v5063_v17, %v5064_v46 }
 0x53b   :  { %v3809_v47 = vpop.permute.xlu1 %3808  ;;  %v9749_v1 = vld [vmem:[#allocation1] sm:$0xf] }
 0x53c   :  { %5152 = vst [vmem:[#allocation1] sm:$0xff] %v9716_v48  ;;  %v5034_v6 = vpop.f32.mrf.mxu1  ;;  %v4943_v10 = vpop.f32.mrf.mxu2 }
 0x53d   :  { %v4985_v20 = vpop.f32.mrf.mxu3  ;;  %v3697_v13 = vpop.permute.xlu0 %3696  ;;  %v4944_v5 = vadd.f32 %v4943_v10, %v4895_v61 }
 0x53e   :  { %v4986_v33 = vadd.f32 %v4985_v20, %v4937_v50  ;;  %3729 = vst.msk [vmem:[#allocation3 + $0xf8] sm:$0xf] %vm2040_vm3, %v3697_v13  ;;  %v5076_v50 = vmax.f32 %v5061_v28, %v5062_v62  ;;  %v3537_v19 = vpop.permute.xlu2 %3536 }
 0x53f   :  { %3841 = vst.msk [vmem:[#allocation3 + $0xf8] sm:$0xf] %vm2153_vm4, %v3809_v47 }
 0x540   :  { %3953 = vst.msk [vmem:[#allocation3 + $0xf8] sm:$0xf] %vm2266_vm5, %v3921_v23  ;;  %v5035_v49 = vadd.f32 %v5034_v6, %v4986_v33  ;;  %v5210_v11 = vrot.slane %v5076_v50, 1 }
 0x542   :  { %v5065_v52 = vmax.f32 %v5035_v49, 0.0  ;;  %v5214_v35 = vmax.f32 %v5076_v50, %v5210_v11 }
 0x543   :  { %v3919_v14 = vpop.permute.xlu1 %3918  ;;  %v5154_v26 = vld [vmem:[#allocation1 + $0x2] ss:$4 sm:$0xff] }
 0x544   :  { %5158 = vst [vmem:[#allocation1] ss:$4 sm:$0xff] %v5154_v26  ;;  %v5036_v45 = vpop.f32.mrf.mxu1  ;;  %v9774_v34 = vpack.c.bf16 %v5214_v35, %v5214_v35 }
 0x545   :  { %v4987_v55 = vpop.f32.mrf.mxu3  ;;  %v3807_v27 = vpop.permute.xlu0 %3806 }
 0x546   :  { %v4988_v56 = vadd.f32 %v4987_v55, %v4939_v54  ;;  %3840 = vst.msk [vmem:[#allocation3 + $0xe8] sm:$0xf] %vm2153_vm4, %v3807_v27  ;;  %v5220_v17 = vrot.slane %v9774_v34, 3  ;;  %v4256_v43 = vpop.permute.xlu2 %4255 }
 0x547   :  { %3952 = vst.msk [vmem:[#allocation3 + $0xe8] sm:$0xf] %vm2266_vm5, %v3919_v14 }
 0x548   :  { %4065 = vst.msk [vmem:[#allocation3 + $0xe8] sm:$0xf] %vm2379_vm6, %v4032_v44  ;;  %v5037_v38 = vadd.f32 %v5036_v45, %v4988_v56  ;;  %v5224_v29 = vsel %vm5097_vm10, %v9774_v34, %v5220_v17  ;;  %v4898_v45 = vadd.f32 %v9608_v40, %v9643_v25  ;;  %v5111_v25 = vunpack.c.l.b16 %v9729_v42 }
 0x54a   :  { %v5066_v7 = vmax.f32 %v5037_v38, 0.0 }
 0x54b   :  { %v3424_v18 = vpop.permute.xlu1 %3423  ;;  %v9762_v16 = vld [vmem:[#allocation1] sm:$0xf] }
 0x54c   :  { %v9764_v31 = vmax.f32 %v5065_v52, %v5066_v7  ;;  %5180 = vst [vmem:[#allocation1] sm:$0xff] %v9716_v48  ;;  %v5039_v57 = vpop.f32.mrf.mxu1 }
 0x54d   :  { %v4990_v54 = vpop.f32.mrf.mxu3  ;;  %v3312_v22 = vpop.permute.xlu0 %3311 }
 0x54e   :  { %3344 = vst.msk [vmem:[#allocation3 + $0xf4] sm:$0xf] %vm2493_vm7, %v3312_v22  ;;  %v4991_v48 = vadd.f32 %v4990_v54, %v4942_v30  ;;  %v4370_v52 = vpop.permute.xlu2 %4369 }
 0x54f   :  { %3456 = vst.msk [vmem:[#allocation3 + $0xf4] sm:$0xf] %vm2606_vm8, %v3424_v18  ;;  %v4900_v18 = vadd.f32 %v9608_v40, %v9653_v53 }
 0x550   :  { %3569 = vst.msk [vmem:[#allocation3 + $0xf4] sm:$0xf] %vm2719_vm9, %v3537_v19  ;;  %v5040_v63 = vadd.f32 %v5039_v57, %v4991_v48 }
 0x552   :  { %v5067_v59 = vmax.f32 %v5040_v63, 0.0 }
 0x553   :  { %v3535_v4 = vpop.permute.xlu1 %3534  ;;  %v5182_v58 = vld [vmem:[#allocation1 + $0x3] ss:$4 sm:$0xff] }
 0x554   :  { %5186 = vst [vmem:[#allocation1] ss:$4 sm:$0xff] %v5182_v58  ;;  %v5041_v46 = vpop.f32.mrf.mxu1 }
 0x555   :  { %v4992_v24 = vpop.f32.mrf.mxu3  ;;  %v3422_v9 = vpop.permute.xlu0 %3421 }
 0x556   :  { %v4993_v60 = vadd.f32 %v4992_v24, %v4944_v5  ;;  %3455 = vst.msk [vmem:[#allocation3 + $0xe4] sm:$0xf] %vm2606_vm8, %v3422_v9 }
 0x557   :  { %3568 = vst.msk [vmem:[#allocation3 + $0xe4] sm:$0xf] %vm2719_vm9, %v3535_v4  ;;  %v6665_v20 = vld [vmem:[#allocation3 + $0xf0] sm:$0xf0] }
 0x558   :  { %v5042_v12 = vadd.f32 %v5041_v46, %v4993_v60 }
 0x55a   :  { %v5068_v23 = vmax.f32 %v5042_v12, 0.0 }
 0x55b   :  { %v9781_v36 = vld [vmem:[#allocation1] sm:$0xf]  ;;  %v4146_v2 = vpop.permute.xlu1 %4145  ;;  %v4946_v14 = vpop.f32.mrf.mxu2 }
 0x55c   :  { %v5079_v47 = vmax.f32 %v5067_v59, %v5068_v23  ;;  %5228 = vst [vmem:[#allocation1] ss:$4 sm:$0xff] %v5224_v29  ;;  %v5044_v55 = vpop.f32.mrf.mxu1  ;;  %v4947_v38 = vadd.f32 %v4946_v14, %v4898_v45  ;;  %v5137_v23 = vunpack.c.l.b16 %v9749_v1 }
 0x55d   :  { %v4034_v37 = vpop.permute.xlu0 %4033 }
 0x55e   :  { %v5086_v13 = vrot.slane %v5079_v47, 1  ;;  %4066 = vst.msk [vmem:[#allocation3 + $0xf8] sm:$0xf] %vm2379_vm6, %v4034_v37  ;;  %v7089_v33 = vld [vmem:[#allocation3 + $0xe4] sm:$0xf] }
 0x55f   :  { %4178 = vst.msk [vmem:[#allocation3 + $0xf8] sm:$0xf] %vm2493_vm7, %v4146_v2  ;;  %v6668_v6 = vor.u32 %v7089_v33, %v6665_v20 }
 0x560   :  { %v5090_v21 = vmax.f32 %v5079_v47, %v5086_v13  ;;  %v5329_v47 = vrot.slane %v9744_v39, 1 }
 0x561   :  { %4955 = vmatmul.bf16.gmra.mxu2 %v6668_v6 }
 0x562   :  { %v9785_v41 = vpack.c.bf16 %v5090_v21, %v5090_v21  ;;  %v5333_v6 = vmax.f32 %v9744_v39, %v5329_v47 }
 0x563   :  { %v9787_v49 = vld [vmem:[#allocation1] sm:$0xf]  ;;  %v4368_v28 = vpop.permute.xlu1 %4367  ;;  %v4948_v7 = vpop.f32.mrf.mxu2 }
 0x564   :  { %v5096_v62 = vrot.slane %v9785_v41, 3  ;;  %5246 = vst [vmem:[#allocation1] sm:$0xff] %v9774_v34  ;;  %v4949_v0 = vadd.f32 %v4948_v7, %v4900_v18  ;;  %v5046_v48 = vpop.f32.mrf.mxu1  ;;  %v9820_v1 = vpack.c.bf16 %v5333_v6, %v5333_v6 }
 0x565   :  { %v4144_v26 = vpop.permute.xlu0 %4143 }
 0x566   :  { %v5103_v44 = vsel %vm5097_vm10, %v9785_v41, %v5096_v62  ;;  %4177 = vst.msk [vmem:[#allocation3 + $0xe8] sm:$0xf] %vm2493_vm7, %v4144_v26  ;;  %v5339_v26 = vrot.slane %v9820_v1, 3 }
 0x567   :  { %5108 = vst [vmem:[#allocation1 + $0x20] ss:$4 sm:$0xff] %v5103_v44 }
 0x568   :  { %4289 = vst.msk [vmem:[#allocation3 + $0xe8] sm:$0xf] %vm2606_vm8, %v4256_v43 }
 0x569   :  { %4401 = vst.msk [vmem:[#allocation3 + $0xe8] sm:$0xf] %vm2719_vm9, %v4368_v28 }
 0x56b   :  { %v4995_v27 = vpop.f32.mrf.mxu3  ;;  %v5248_v56 = vld [vmem:[#allocation1 + $0x1] ss:$4 sm:$0xff] }
 0x56c   :  { %5252 = vst [vmem:[#allocation1] ss:$4 sm:$0xff] %v5248_v56  ;;  %v4996_v54 = vadd.f32 %v4995_v27, %v4947_v38 }
 0x56d   :  { %v4258_v50 = vpop.permute.xlu0 %4257 }
 0x56e   :  { %v5109_v32 = vld [vmem:[#allocation1 + $0x20] sm:$0xf]  ;;  %4290 = vst.msk [vmem:[#allocation3 + $0xf8] sm:$0xf] %vm2606_vm8, %v4258_v50  ;;  %v5045_v30 = vadd.f32 %v5044_v55, %v4996_v54  ;;  %v5343_v55 = vsel %vm5097_vm10, %v9820_v1, %v5339_v26  ;;  %v5193_v54 = vunpack.c.l.b16 %v9781_v36 }
 0x56f   :  { %5127 = vst [vmem:[#allocation1 + $0x20] sm:$0xff] %v9785_v41  ;;  %v5112_v11 = vunpack.c.l.b16 %v5109_v32 }
 0x570   :  { %4402 = vst.msk [vmem:[#allocation3 + $0xf8] sm:$0xf] %vm2719_vm9, %v4370_v52  ;;  %v6671_v5 = vld [vmem:[#allocation3 + $0xe8] sm:$0xf]  ;;  %v5069_v42 = vmax.f32 %v5045_v30, 0.0 }
 0x571   :  { %v5113_v22 = vrot.slane %v5112_v11, 7 }
 0x573   :  { %v4997_v57 = vpop.f32.mrf.mxu3  ;;  %v9804_v35 = vld [vmem:[#allocation1] sm:$0xf]  ;;  %v5115_v19 = vsel %vm5114_vm11, %v5113_v22, %v5111_v25 }
 0x574   :  { %v4998_v10 = vadd.f32 %v4997_v57, %v4949_v0  ;;  %5273 = vst [vmem:[#allocation1] sm:$0xff] %v9774_v34  ;;  %v5116_v61 = vpack.c.b16 %v5115_v19, %v5115_v19 }
 0x576   :  { %v5129_v53 = vld [vmem:[#allocation1 + $0x21] ss:$4 sm:$0xff]  ;;  %v5047_v4 = vadd.f32 %v5046_v48, %v4998_v10  ;;  %v5117_v58 = vrot.slane %v5116_v61, 3  ;;  %v5235_v48 = vunpack.c.l.b16 %v9787_v49  ;;  %v4903_v49 = vadd.f32 %v9608_v40, %v9665_v3 }
 0x577   :  { %5134 = vst [vmem:[#allocation1 + $0x20] ss:$4 sm:$0xff] %v5129_v53  ;;  %v7092_v24 = vld [vmem:[#allocation3 + $0xf4] sm:$0xf0] }
 0x578   :  { %v5070_v9 = vmax.f32 %v5047_v4, 0.0  ;;  %v6672_v63 = vor.u32 %v7092_v24, %v6671_v5  ;;  %v5120_v60 = vsel %vm5097_vm10, %v5116_v61, %v5117_v58 }
 0x579   :  { %5123 = vst.msk [vmem:[#allocation4] sm:$0x1] %vm5122_vm12, %v5120_v60 }
 0x57a   :  { %v5080_v17 = vmax.f32 %v5069_v42, %v5070_v9  ;;  %5004 = vmatmul.bf16.gmra.mxu3 %v6672_v63  ;;  %v5049_v63 = vpop.f32.mrf.mxu1 }
 0x57b   :  { %v5275_v46 = vld [vmem:[#allocation1 + $0x2] ss:$4 sm:$0xff] }
 0x57c   :  { %5279 = vst [vmem:[#allocation1] ss:$4 sm:$0xff] %v5275_v46  ;;  %v5211_v62 = vrot.slane %v5080_v17, 1 }
 0x57e   :  { %v5135_v12 = vld [vmem:[#allocation1 + $0x20] sm:$0xf]  ;;  %v5215_v39 = vmax.f32 %v5080_v17, %v5211_v62 }
 0x57f   :  { %v5138_v59 = vunpack.c.l.b16 %v5135_v12  ;;  %5155 = vst [vmem:[#allocation1 + $0x20] sm:$0xff] %v9785_v41 }
 0x580   :  { %v9830_v50 = vpack.c.bf16 %v5215_v39, %v5215_v39 }
 0x581   :  { %v5139_v29 = vrot.slane %v5138_v59, 7 }
 0x582   :  { %v5051_v26 = vpop.f32.mrf.mxu1 }
 0x583   :  { %v5140_v2 = vsel %vm5114_vm11, %v5139_v29, %v5137_v23  ;;  %v9814_v37 = vld [vmem:[#allocation1] sm:$0xf]  ;;  %v4905_v29 = vadd.f32 %v9608_v40, %v9676_v15 }
 0x584   :  { %v5141_v20 = vpack.c.b16 %v5140_v2, %v5140_v2  ;;  %5300 = vst [vmem:[#allocation1] sm:$0xff] %v9774_v34  ;;  %v5165_v34 = vunpack.c.l.b16 %v9762_v16  ;;  %v5221_v16 = vrot.slane %v9830_v50, 3  ;;  %v5259_v2 = vunpack.c.l.b16 %v9804_v35 }
 0x586   :  { %v5142_v13 = vrot.slane %v5141_v20, 3  ;;  %v5157_v33 = vld [vmem:[#allocation1 + $0x22] ss:$4 sm:$0xff]  ;;  %v5227_v11 = vsel %vm5097_vm10, %v9830_v50, %v5221_v16  ;;  %v5286_v16 = vunpack.c.l.b16 %v9814_v37 }
 0x587   :  { %5162 = vst [vmem:[#allocation1 + $0x20] ss:$4 sm:$0xff] %v5157_v33  ;;  %v5448_v33 = vrot.slane %v9764_v31, 1 }
 0x588   :  { %v5145_v21 = vsel %vm5097_vm10, %v5141_v20, %v5142_v13 }
 0x589   :  { %5147 = vrot.lane.b32.xlu0 %v5145_v21, %s7210_s30  ;;  %v5452_v35 = vmax.f32 %v9764_v31, %v5448_v33 }
 0x58b   :  { %v5302_v43 = vld [vmem:[#allocation1 + $0x3] ss:$4 sm:$0xff] }
 0x58c   :  { %5306 = vst [vmem:[#allocation1] ss:$4 sm:$0xff] %v5302_v43 }
 0x58e   :  { %v5163_v14 = vld [vmem:[#allocation1 + $0x20] sm:$0xf] }
 0x58f   :  { %v5166_v44 = vunpack.c.l.b16 %v5163_v14  ;;  %5183 = vst [vmem:[#allocation1 + $0x20] sm:$0xff] %v9785_v41 }
 0x591   :  { %v5167_v28 = vrot.slane %v5166_v44, 7 }
 0x593   :  { %v5168_v27 = vsel %vm5114_vm11, %v5167_v28, %v5165_v34  ;;  %v9828_v56 = vld [vmem:[#allocation1] sm:$0xf] }
 0x594   :  { %v5169_v45 = vpack.c.b16 %v5168_v27, %v5168_v27  ;;  %5347 = vst [vmem:[#allocation1] ss:$4 sm:$0xff] %v5343_v55  ;;  %v5454_v27 = vpack.c.bf16 %v5452_v35, %v5452_v35 }
 0x596   :  { %v5170_v32 = vrot.slane %v5169_v45, 3  ;;  %v5185_v38 = vld [vmem:[#allocation1 + $0x23] ss:$4 sm:$0xff] }
 0x597   :  { %5190 = vst [vmem:[#allocation1 + $0x20] ss:$4 sm:$0xff] %v5185_v38 }
 0x598   :  { %v5173_v41 = vsel %vm5097_vm10, %v5169_v45, %v5170_v32 }
 0x599   :  { %5175 = vrot.lane.b32.xlu1 %v5173_v41, %s7213_s14 }
 0x59b   :  { %v9835_v52 = vld [vmem:[#allocation1] sm:$0xf] }
 0x59c   :  { %5365 = vst [vmem:[#allocation1] sm:$0xff] %v9820_v1 }
 0x59e   :  { %v5191_v7 = vld [vmem:[#allocation1 + $0x20] sm:$0xf] }
 0x59f   :  { %v5194_v18 = vunpack.c.l.b16 %v5191_v7  ;;  %5232 = vst [vmem:[#allocation1 + $0x20] ss:$4 sm:$0xff] %v5227_v11 }
 0x5a1   :  { %v5195_v22 = vrot.slane %v5194_v18, 7 }
 0x5a3   :  { %v5196_v25 = vsel %vm5114_vm11, %v5195_v22, %v5193_v54  ;;  %v5367_v0 = vld [vmem:[#allocation1 + $0x1] ss:$4 sm:$0xff]  ;;  %v4951_v5 = vpop.f32.mrf.mxu2 }
 0x5a4   :  { %v5197_v57 = vpack.c.b16 %v5196_v25, %v5196_v25  ;;  %5371 = vst [vmem:[#allocation1] ss:$4 sm:$0xff] %v5367_v0  ;;  %v4952_v46 = vadd.f32 %v4951_v5, %v4903_v49 }
 0x5a6   :  { %v5198_v19 = vrot.slane %v5197_v57, 3  ;;  %v5233_v30 = vld [vmem:[#allocation1 + $0x20] sm:$0xf] }
 0x5a7   :  { %5249 = vst [vmem:[#allocation1 + $0x20] sm:$0xff] %v9830_v50  ;;  %v5236_v10 = vunpack.c.l.b16 %v5233_v30 }
 0x5a8   :  { %v5201_v61 = vsel %vm5097_vm10, %v5197_v57, %v5198_v19 }
 0x5a9   :  { %5203 = vrot.lane.b32.xlu2 %v5201_v61, %s7214_s17  ;;  %v5237_v53 = vrot.slane %v5236_v10, 7 }
 0x5ab   :  { %v9846_v4 = vld [vmem:[#allocation1] sm:$0xf]  ;;  %v5238_v36 = vsel %vm5114_vm11, %v5237_v53, %v5235_v48  ;;  %v4953_v59 = vpop.f32.mrf.mxu2  ;;  %v5313_v48 = vunpack.c.l.b16 %v9828_v56 }
 0x5ac   :  { %5392 = vst [vmem:[#allocation1] sm:$0xff] %v9820_v1  ;;  %v5239_v58 = vpack.c.b16 %v5238_v36, %v5238_v36  ;;  %v4954_v13 = vadd.f32 %v4953_v59, %v4905_v29 }
 0x5ae   :  { %v5251_v24 = vld [vmem:[#allocation1 + $0x21] ss:$4 sm:$0xff]  ;;  %v5240_v42 = vrot.slane %v5239_v58, 3 }
 0x5af   :  { %5256 = vst [vmem:[#allocation1 + $0x20] ss:$4 sm:$0xff] %v5251_v24 }
 0x5b0   :  { %v5243_v9 = vsel %vm5097_vm10, %v5239_v58, %v5240_v42  ;;  %v5354_v42 = vunpack.c.l.b16 %v9835_v52  ;;  %v5378_v52 = vunpack.c.l.b16 %v9846_v4  ;;  %v5054_v4 = vpop.f32.mrf.mxu1 }
 0x5b1   :  { %5245 = vst.msk [vmem:[#allocation4 + $0x1] sm:$0x1] %vm5122_vm12, %v5243_v9 }
 0x5b3   :  { %v5000_v60 = vpop.f32.mrf.mxu3  ;;  %v5394_v17 = vld [vmem:[#allocation1 + $0x2] ss:$4 sm:$0xff] }
 0x5b4   :  { %5398 = vst [vmem:[#allocation1] ss:$4 sm:$0xff] %v5394_v17  ;;  %v5001_v47 = vadd.f32 %v5000_v60, %v4952_v46 }
 0x5b6   :  { %v5257_v12 = vld [vmem:[#allocation1 + $0x20] sm:$0xf]  ;;  %v5050_v43 = vadd.f32 %v5049_v63, %v5001_v47 }
 0x5b7   :  { %v5260_v23 = vunpack.c.l.b16 %v5257_v12  ;;  %5276 = vst [vmem:[#allocation1 + $0x20] sm:$0xff] %v9830_v50 }
 0x5b8   :  { %v5071_v34 = vmax.f32 %v5050_v43, 0.0 }
 0x5b9   :  { %v5261_v20 = vrot.slane %v5260_v23, 7 }
 0x5bb   :  { %v5002_v6 = vpop.f32.mrf.mxu3  ;;  %v5262_v3 = vsel %vm5114_vm11, %v5261_v20, %v5259_v2  ;;  %v9860_v21 = vld [vmem:[#allocation1] sm:$0xf] }
 0x5bc   :  { %v5003_v62 = vadd.f32 %v5002_v6, %v4954_v13  ;;  %v5263_v14 = vpack.c.b16 %v5262_v3, %v5262_v3  ;;  %5419 = vst [vmem:[#allocation1] sm:$0xff] %v9820_v1  ;;  %v5458_v1 = vrot.slane %v5454_v27, 3 }
 0x5be   :  { %v5052_v44 = vadd.f32 %v5051_v26, %v5003_v62  ;;  %v5264_v40 = vrot.slane %v5263_v14, 3  ;;  %v5278_v15 = vld [vmem:[#allocation1 + $0x22] ss:$4 sm:$0xff]  ;;  %v5462_v11 = vsel %vm5097_vm10, %v5454_v27, %v5458_v1  ;;  %v7183_v26 = vld [vmem:[%s10094_s4] ss:$0 sm:$0xff] }
 0x5bf   :  { %5283 = vst [vmem:[#allocation1 + $0x20] ss:$4 sm:$0xff] %v5278_v15 }
 0x5c0   :  { %v5072_v28 = vmax.f32 %v5052_v44, 0.0  ;;  %v5267_v39 = vsel %vm5097_vm10, %v5263_v14, %v5264_v40  ;;  %v4908_v44 = vadd.f32 %v7183_v26, %v9684_v51 }
 0x5c1   :  { %5269 = vrot.lane.b32.xlu1 %v5267_v39, %s7210_s30 }
 0x5c2   :  { %v5081_v55 = vmax.f32 %v5071_v34, %v5072_v28  ;;  %v5405_v28 = vunpack.c.l.b16 %v9860_v21 }
 0x5c3   :  { %v5421_v45 = vld [vmem:[#allocation1 + $0x3] ss:$4 sm:$0xff] }
 0x5c4   :  { %5425 = vst [vmem:[#allocation1] ss:$4 sm:$0xff] %v5421_v45  ;;  %v5330_v32 = vrot.slane %v5081_v55, 1 }
 0x5c6   :  { %v5284_v38 = vld [vmem:[#allocation1 + $0x20] sm:$0xf]  ;;  %v5334_v7 = vmax.f32 %v5081_v55, %v5330_v32  ;;  %v4910_v55 = vadd.f32 %v7183_v26, %v9692_v8 }
 0x5c7   :  { %v5287_v41 = vunpack.c.l.b16 %v5284_v38  ;;  %5303 = vst [vmem:[#allocation1 + $0x20] sm:$0xff] %v9830_v50 }
 0x5c8   :  { %v5336_v25 = vpack.c.bf16 %v5334_v7, %v5334_v7  ;;  %v5056_v7 = vpop.f32.mrf.mxu1 }
 0x5c9   :  { %v5288_v31 = vrot.slane %v5287_v41, 7 }
 0x5ca   :  { %v5340_v50 = vrot.slane %v5336_v25, 3 }
 0x5cb   :  { %v5289_v18 = vsel %vm5114_vm11, %v5288_v31, %v5286_v16  ;;  %v9870_v54 = vld [vmem:[#allocation1] sm:$0xf] }
 0x5cc   :  { %v5290_v22 = vpack.c.b16 %v5289_v18, %v5289_v18  ;;  %5466 = vst [vmem:[#allocation1] ss:$4 sm:$0xff] %v5462_v11  ;;  %v5346_v30 = vsel %vm5097_vm10, %v5336_v25, %v5340_v50 }
 0x5ce   :  { %v5291_v0 = vrot.slane %v5290_v22, 3  ;;  %v5305_v57 = vld [vmem:[#allocation1 + $0x23] ss:$4 sm:$0xff] }
 0x5cf   :  { %5310 = vst [vmem:[#allocation1 + $0x20] ss:$4 sm:$0xff] %v5305_v57 }
 0x5d0   :  { %v5294_v19 = vsel %vm5097_vm10, %v5290_v22, %v5291_v0 }
 0x5d1   :  { %5296 = vrot.lane.b32.xlu2 %v5294_v19, %s7213_s14 }
 0x5d3   :  { %v9874_v37 = vld [vmem:[#allocation1] sm:$0xf] }
 0x5d4   :  { %5484 = vst [vmem:[#allocation1] sm:$0xff] %v5454_v27 }
 0x5d6   :  { %v5311_v10 = vld [vmem:[#allocation1 + $0x20] sm:$0xf] }
 0x5d7   :  { %5351 = vst [vmem:[#allocation1 + $0x20] ss:$4 sm:$0xff] %v5346_v30  ;;  %v5314_v61 = vunpack.c.l.b16 %v5311_v10 }
 0x5d9   :  { %v5315_v53 = vrot.slane %v5314_v61, 7 }
 0x5db   :  { %v5486_v36 = vld [vmem:[#allocation1 + $0x1] ss:$4 sm:$0xff]  ;;  %v9879_v58 = vsel %vm5114_vm11, %v5315_v53, %v5313_v48 }
 0x5dc   :  { %5490 = vst [vmem:[#allocation1] ss:$4 sm:$0xff] %v5486_v36  ;;  %v5473_v36 = vunpack.c.l.b16 %v9874_v37  ;;  %v7125_v37 = vld [vmem:[%s10095_s5 + $0x38] sm:$0xff] }
 0x5dd   :  { %5836 = vmatpush.bf16.msra.mxu2 %v7125_v37  ;;  %v7137_v37 = vld [vmem:[%s10095_s5 + $0x98] sm:$0xff] }
 0x5de   :  { %v5352_v5 = vld [vmem:[#allocation1 + $0x20] sm:$0xf] }
 0x5df   :  { %5368 = vst [vmem:[#allocation1 + $0x20] sm:$0xff] %v5336_v25  ;;  %v5355_v24 = vunpack.c.l.b16 %v5352_v5 }
 0x5e1   :  { %v5356_v9 = vrot.slane %v5355_v24, 7 }
 0x5e3   :  { %v9882_v63 = vld [vmem:[#allocation1] sm:$0xf]  ;;  %v5357_v60 = vsel %vm5114_vm11, %v5356_v9, %v5354_v42 }
 0x5e4   :  { %5511 = vst [vmem:[#allocation1] sm:$0xff] %v5454_v27  ;;  %v5358_v17 = vpack.c.b16 %v5357_v60, %v5357_v60  ;;  %v4956_v6 = vpop.f32.mrf.mxu2 }
 0x5e5   :  { %v4957_v35 = vadd.f32 %v4956_v6, %v4908_v44  ;;  %v7124_v6 = vld [vmem:[%s10095_s5 + $0x30] sm:$0xff] }
 0x5e6   :  { %v5370_v49 = vld [vmem:[#allocation1 + $0x21] ss:$4 sm:$0xff]  ;;  %v5359_v56 = vrot.slane %v5358_v17, 3  ;;  %5837 = vmatpush.bf16.msra.mxu2 %v7124_v6 }
 0x5e7   :  { %5375 = vst [vmem:[#allocation1 + $0x20] ss:$4 sm:$0xff] %v5370_v49  ;;  %v5902_v6 = vld [vmem:[%s10097_s7 + $0x30] sm:$0x3] }
 0x5e8   :  { %v5362_v46 = vsel %vm5097_vm10, %v5358_v17, %v5359_v56 }
 0x5e9   :  { %5364 = vst.msk [vmem:[#allocation4 + $0x2] sm:$0x1] %vm5122_vm12, %v5362_v46  ;;  %v5497_v46 = vunpack.c.l.b16 %v9882_v63 }
 0x5eb   :  { %v5513_v12 = vld [vmem:[#allocation1 + $0x2] ss:$4 sm:$0xff] }
 0x5ec   :  { %5517 = vst [vmem:[#allocation1] ss:$4 sm:$0xff] %v5513_v12  ;;  %v4958_v34 = vpop.f32.mrf.mxu2 }
 0x5ed   :  { %v4959_v32 = vadd.f32 %v4958_v34, %v4910_v55 }
 0x5ee   :  { %v5376_v59 = vld [vmem:[#allocation1 + $0x20] sm:$0xf] }
 0x5ef   :  { %v5379_v23 = vunpack.c.l.b16 %v5376_v59  ;;  %5395 = vst [vmem:[#allocation1 + $0x20] sm:$0xff] %v5336_v25 }
 0x5f1   :  { %v5380_v29 = vrot.slane %v5379_v23, 7 }
 0x5f3   :  { %v5381_v47 = vsel %vm5114_vm11, %v5380_v29, %v5378_v52  ;;  %v9889_v2 = vld [vmem:[#allocation1] sm:$0xf] }
 0x5f4   :  { %v5382_v20 = vpack.c.b16 %v5381_v47, %v5381_v47  ;;  %5538 = vst [vmem:[#allocation1] sm:$0xff] %v5454_v27  ;;  %v7133_v47 = vld [vmem:[%s10095_s5 + $0x78] sm:$0xff] }
 0x5f5   :  { %5849 = vmatpush.bf16.msra.mxu3 %v7133_v47 }
 0x5f6   :  { %v5383_v13 = vrot.slane %v5382_v20, 3  ;;  %v5397_v33 = vld [vmem:[#allocation1 + $0x22] ss:$4 sm:$0xff] }
 0x5f7   :  { %5402 = vst [vmem:[#allocation1 + $0x20] ss:$4 sm:$0xff] %v5397_v33  ;;  %v5317_v33 = vpack.c.b16 %v9879_v58, %v9879_v58  ;;  %v7131_v58 = vld [vmem:[%s10095_s5 + $0x68] sm:$0xff] }
 0x5f8   :  { %v5386_v3 = vsel %vm5097_vm10, %v5382_v20, %v5383_v13 }
 0x5f9   :  { %5388 = vrot.lane.b32.xlu2 %v5386_v3, %s7210_s30  ;;  %v7132_v3 = vld [vmem:[%s10095_s5 + $0x70] sm:$0xff] }
 0x5fa   :  { %5850 = vmatpush.bf16.msra.mxu3 %v7132_v3  ;;  %v5932_v3 = vunpack.c.l.b16 %v5902_v6 }
 0x5fb   :  { %v5148_v43 = vpop.permute.xlu0 %5147  ;;  %v5540_v62 = vld [vmem:[#allocation1 + $0x3] ss:$4 sm:$0xff] }
 0x5fc   :  { %5151 = vst.msk [vmem:[#allocation4] sm:$0x1] %vm5150_vm13, %v5148_v43  ;;  %v7123_v43 = vld [vmem:[%s10095_s5 + $0x28] sm:$0xff] }
 0x5fd   :  { %v5005_v14 = vpop.f32.mrf.mxu3  ;;  %5544 = vst [vmem:[#allocation1] ss:$4 sm:$0xff] %v5540_v62  ;;  %v5318_v62 = vrot.slane %v5317_v33, 3  ;;  %5838 = vmatpush.bf16.msra.mxu2 %v7123_v43 }
 0x5fe   :  { %v5403_v40 = vld [vmem:[#allocation1 + $0x20] sm:$0xf]  ;;  %v5006_v27 = vadd.f32 %v5005_v14, %v4957_v35  ;;  %5851 = vmatpush.bf16.msra.mxu3 %v7131_v58  ;;  %v5939_v58 = vpack.c.b16 %v5932_v3, %v5932_v3 }
 0x5ff   :  { %v5406_v15 = vunpack.c.l.b16 %v5403_v40  ;;  %5422 = vst [vmem:[#allocation1 + $0x20] sm:$0xff] %v5336_v25  ;;  %v5321_v44 = vsel %vm5097_vm10, %v5317_v33, %v5318_v62  ;;  %v5524_v40 = vunpack.c.l.b16 %v9889_v2  ;;  %v7142_v33 = vld [vmem:[%s10095_s5 + $0xc0] sm:$0xff] }
 0x600   :  { %v5055_v41 = vadd.f32 %v5054_v4, %v5006_v27  ;;  %v5952_v62 = vsel %vm5950_vm0, %v5939_v58, 0 }
 0x601   :  { %v5407_v39 = vrot.slane %v5406_v15, 7 }
 0x602   :  { %v5073_v21 = vmax.f32 %v5055_v41, 0.0 }
 0x603   :  { %v5408_v45 = vsel %vm5114_vm11, %v5407_v39, %v5405_v28  ;;  %v5204_v25 = vpop.permute.xlu2 %5203  ;;  %v5432_v28 = vunpack.c.l.b16 %v9870_v54 }
 0x604   :  { %v5409_v38 = vpack.c.b16 %v5408_v45, %v5408_v45  ;;  %v5545_v41 = vld [vmem:[#allocation1] sm:$0xf] }
 0x605   :  { %v5007_v1 = vpop.f32.mrf.mxu3  ;;  %v5551_v54 = vunpack.c.l.b16 %v5545_v41 }
 0x606   :  { %v5008_v16 = vadd.f32 %v5007_v1, %v4959_v32  ;;  %v5410_v31 = vrot.slane %v5409_v38, 3  ;;  %v5424_v51 = vld [vmem:[#allocation1 + $0x23] ss:$4 sm:$0xff] }
 0x607   :  { %5429 = vst [vmem:[#allocation1 + $0x20] ss:$4 sm:$0xff] %v5424_v51 }
 0x608   :  { %v5057_v11 = vadd.f32 %v5056_v7, %v5008_v16  ;;  %v5413_v18 = vsel %vm5097_vm10, %v5409_v38, %v5410_v31 }
 0x609   :  { %5415 = vrot.lane.b32.xlu0 %v5413_v18, %s7213_s14 }
 0x60a   :  { %v5074_v8 = vmax.f32 %v5057_v11, 0.0 }
 0x60b   :  { %v5176_v22 = vpop.permute.xlu1 %5175 }
 0x60c   :  { %v5082_v0 = vmax.f32 %v5073_v21, %v5074_v8  ;;  %5179 = vst.msk [vmem:[#allocation4] sm:$0x1] %vm5178_vm14, %v5176_v22  ;;  %v7122_v22 = vld [vmem:[%s10095_s5 + $0x20] sm:$0xff] }
 0x60d   :  { %5207 = vst.msk [vmem:[#allocation4] sm:$0x1] %vm5206_vm15, %v5204_v25  ;;  %v7130_v25 = vld [vmem:[%s10095_s5 + $0x60] sm:$0xff]  ;;  %5839 = vmatpush.bf16.msra.mxu2 %v7122_v22 }
 0x60e   :  { %v5449_v57 = vrot.slane %v5082_v0, 1  ;;  %v5430_v61 = vld [vmem:[#allocation1 + $0x20] sm:$0xf]  ;;  %5852 = vmatpush.bf16.msra.mxu3 %v7130_v25 }
 0x60f   :  { %v5433_v4 = vunpack.c.l.b16 %v5430_v61  ;;  %v7127_v61 = vld [vmem:[%s10095_s5 + $0x48] sm:$0xff] }
 0x610   :  { %v5453_v19 = vmax.f32 %v5082_v0, %v5449_v57  ;;  %v7121_v0 = vld [vmem:[%s10095_s5 + $0x18] sm:$0xff] }
 0x611   :  { %v5434_v35 = vrot.slane %v5433_v4, 7  ;;  %v7129_v57 = vld [vmem:[%s10095_s5 + $0x58] sm:$0xff]  ;;  %5840 = vmatpush.bf16.msra.mxu2 %v7121_v0 }
 0x612   :  { %v5455_v50 = vpack.c.bf16 %v5453_v19, %v5453_v19  ;;  %5853 = vmatpush.bf16.msra.mxu3 %v7129_v57  ;;  %v7120_v19 = vld [vmem:[%s10095_s5 + $0x10] sm:$0xff] }
 0x613   :  { %v5435_v55 = vsel %vm5114_vm11, %v5434_v35, %v5432_v28  ;;  %v7153_v35 = vld [vmem:[%s10097_s7 + $0x18] sm:$0xff]  ;;  %v7151_v28 = vld [vmem:[%s10097_s7 + $0x8] sm:$0xff] }
 0x614   :  { %v5459_v30 = vrot.slane %v5455_v50, 3  ;;  %v5436_v38 = vpack.c.b16 %v5435_v55, %v5435_v55  ;;  %v5981_v55 = vld [vmem:[%s10099_s9 + $0x30] sm:$0x3] }
 0x615   :  { %5841 = vmatpush.bf16.msra.mxu2 %v7120_v19 }
 0x616   :  { %v5465_v10 = vsel %vm5097_vm10, %v5455_v50, %v5459_v30  ;;  %v5437_v1 = vrot.slane %v5436_v38, 3 }
 0x617   :  { %5470 = vst [vmem:[#allocation1 + $0x20] ss:$4 sm:$0xff] %v5465_v10  ;;  %v7119_v10 = vld [vmem:[%s10095_s5 + $0x8] sm:$0xff] }
 0x618   :  { %v5440_v31 = vsel %vm5097_vm10, %v5436_v38, %v5437_v1  ;;  %v7161_v38 = vld [vmem:[%s10099_s9 + $0x28] sm:$0xff] }
 0x619   :  { %5842 = vmatpush.bf16.msra.mxu2 %v7119_v10  ;;  %v7156_v10 = vld [vmem:[%s10099_s9] sm:$0xff] }
 0x61e   :  { %v5471_v48 = vld [vmem:[#allocation1 + $0x20] sm:$0xf] }
 0x61f   :  { %5487 = vst [vmem:[#allocation1 + $0x20] sm:$0xff] %v5455_v50  ;;  %v5474_v53 = vunpack.c.l.b16 %v5471_v48 }
 0x621   :  { %v5475_v5 = vrot.slane %v5474_v53, 7  ;;  %v7118_v53 = vld [vmem:[%s10095_s5] sm:$0xff] }
 0x622   :  { %5843 = vmatpush.bf16.msra.mxu2 %v7118_v53 }
 0x623   :  { %v5476_v24 = vsel %vm5114_vm11, %v5475_v5, %v5473_v36  ;;  %v7126_v36 = vld [vmem:[%s10095_s5 + $0x40] sm:$0xff]  ;;  %v7141_v5 = vld [vmem:[%s10095_s5 + $0xb8] sm:$0xff] }
 0x624   :  { %v5477_v42 = vpack.c.b16 %v5476_v24, %v5476_v24  ;;  %v7149_v24 = vld [vmem:[%s10095_s5 + $0xf8] sm:$0xff] }
 0x626   :  { %v5489_v9 = vld [vmem:[#allocation1 + $0x21] ss:$4 sm:$0xff]  ;;  %v5478_v60 = vrot.slane %v5477_v42, 3  ;;  %5862 = vmatpush.bf16.msrb.mxu2 %v7141_v5 }
 0x627   :  { %5494 = vst [vmem:[#allocation1 + $0x20] ss:$4 sm:$0xff] %v5489_v9  ;;  %v7148_v9 = vld [vmem:[%s10095_s5 + $0xf0] sm:$0xff] }
 0x628   :  { %v5481_v17 = vsel %vm5097_vm10, %v5477_v42, %v5478_v60  ;;  %v7140_v42 = vld [vmem:[%s10095_s5 + $0xb0] sm:$0xff] }
 0x629   :  { %5483 = vst.msk [vmem:[#allocation4 + $0x3] sm:$0x1] %vm5122_vm12, %v5481_v17  ;;  %v7139_v17 = vld [vmem:[%s10095_s5 + $0xa8] sm:$0xff] }
 0x62a   :  { %5863 = vmatpush.bf16.msrb.mxu2 %v7140_v42  ;;  %v7180_v42 = vld [vmem:[%s10100_s10] ss:$0 sm:$0xff] }
 0x62b   :  { %v5297_v52 = vpop.permute.xlu2 %5296 }
 0x62e   :  { %v5495_v49 = vld [vmem:[#allocation1 + $0x20] sm:$0xf]  ;;  %5864 = vmatpush.bf16.msrb.mxu2 %v7139_v17 }
 0x62f   :  { %v5498_v56 = vunpack.c.l.b16 %v5495_v49  ;;  %5514 = vst [vmem:[#allocation1 + $0x20] sm:$0xff] %v5455_v50  ;;  %v7147_v49 = vld [vmem:[%s10095_s5 + $0xe8] sm:$0xff] }
 0x631   :  { %v5499_v12 = vrot.slane %v5498_v56, 7  ;;  %v7138_v56 = vld [vmem:[%s10095_s5 + $0xa0] sm:$0xff] }
 0x632   :  { %5865 = vmatpush.bf16.msrb.mxu2 %v7138_v56 }
 0x633   :  { %v5270_v59 = vpop.permute.xlu1 %5269  ;;  %v5500_v23 = vsel %vm5114_vm11, %v5499_v12, %v5497_v46  ;;  %v7146_v46 = vld [vmem:[%s10095_s5 + $0xe0] sm:$0xff] }
 0x634   :  { %5272 = vst.msk [vmem:[#allocation4 + $0x1] sm:$0x1] %vm5150_vm13, %v5270_v59  ;;  %v5501_v29 = vpack.c.b16 %v5500_v23, %v5500_v23  ;;  %v7145_v59 = vld [vmem:[%s10095_s5 + $0xd8] sm:$0xff] }
 0x635   :  { %5299 = vst.msk [vmem:[#allocation4 + $0x1] sm:$0x1] %vm5178_vm14, %v5297_v52  ;;  %v7136_v52 = vld [vmem:[%s10095_s5 + $0x90] sm:$0xff] }
 0x636   :  { %v5502_v63 = vrot.slane %v5501_v29, 3  ;;  %v5516_v20 = vld [vmem:[#allocation1 + $0x22] ss:$4 sm:$0xff]  ;;  %5866 = vmatpush.bf16.msrb.mxu2 %v7137_v37 }
 0x637   :  { %5521 = vst [vmem:[#allocation1 + $0x20] ss:$4 sm:$0xff] %v5516_v20  ;;  %v7143_v20 = vld [vmem:[%s10095_s5 + $0xc8] sm:$0xff] }
 0x638   :  { %v5505_v13 = vsel %vm5097_vm10, %v5501_v29, %v5502_v63  ;;  %v7144_v29 = vld [vmem:[%s10095_s5 + $0xd0] sm:$0xff]  ;;  %v7135_v63 = vld [vmem:[%s10095_s5 + $0x88] sm:$0xff] }
 0x639   :  { %5507 = vrot.lane.b32.xlu0 %v5505_v13, %s7210_s30  ;;  %v7134_v13 = vld [vmem:[%s10095_s5 + $0x80] sm:$0xff] }
 0x63a   :  { %5867 = vmatpush.bf16.msrb.mxu2 %v7136_v52 }
 0x63e   :  { %v5522_v14 = vld [vmem:[#allocation1 + $0x20] sm:$0xf]  ;;  %5868 = vmatpush.bf16.msrb.mxu2 %v7135_v63 }
 0x63f   :  { %v5525_v26 = vunpack.c.l.b16 %v5522_v14  ;;  %5541 = vst [vmem:[#allocation1 + $0x20] sm:$0xff] %v5455_v50  ;;  %v7128_v50 = vld [vmem:[%s10095_s5 + $0x50] sm:$0xff] }
 0x640   :  { %5854 = vmatpush.bf16.msra.mxu3 %v7128_v50 }
 0x641   :  { %5323 = vrot.lane.b32.xlu0 %v5321_v44, %s7214_s17  ;;  %v5526_v15 = vrot.slane %v5525_v26, 7 }
 0x642   :  { %5869 = vmatpush.bf16.msrb.mxu2 %v7134_v13 }
 0x643   :  { %v5527_v34 = vsel %vm5114_vm11, %v5526_v15, %v5524_v40  ;;  %v7155_v40 = vld [vmem:[%s10097_s7 + $0x28] sm:$0xff]  ;;  %v7154_v15 = vld [vmem:[%s10097_s7 + $0x20] sm:$0xff] }
 0x644   :  { %v5528_v39 = vpack.c.b16 %v5527_v34, %v5527_v34  ;;  %5855 = vmatpush.bf16.msra.mxu3 %v7127_v61  ;;  %v7152_v34 = vld [vmem:[%s10097_s7 + $0x10] sm:$0xff]  ;;  %v7179_v61 = vld [vmem:[%s10098_s8] ss:$0 sm:$0xff] }
 0x646   :  { %v5529_v27 = vrot.slane %v5528_v39, 3  ;;  %v5543_v45 = vld [vmem:[#allocation1 + $0x23] ss:$4 sm:$0xff] }
 0x647   :  { %5548 = vst [vmem:[#allocation1 + $0x20] ss:$4 sm:$0xff] %v5543_v45 }
 0x648   :  { %v5532_v32 = vsel %vm5097_vm10, %v5528_v39, %v5529_v27  ;;  %5856 = vmatpush.bf16.msra.mxu3 %v7126_v36  ;;  %v7150_v39 = vld [vmem:[%s10097_s7] sm:$0xff]  ;;  %v6011_v27 = vunpack.c.l.b16 %v5981_v55 }
 0x649   :  { %5534 = vrot.lane.b32.xlu1 %v5532_v32, %s7213_s14 }
 0x64a   :  { %v6018_v45 = vpack.c.b16 %v6011_v27, %v6011_v27 }
 0x64c   :  { %5875 = vmatpush.bf16.msrb.mxu3 %v7149_v24  ;;  %v6029_v32 = vsel %vm5950_vm0, %v6018_v45, 0 }
 0x64e   :  { %v5549_v2 = vld [vmem:[#allocation1 + $0x20] sm:$0xf] }
 0x64f   :  { %v5552_v16 = vunpack.c.l.b16 %v5549_v2  ;;  %v7160_v2 = vld [vmem:[%s10099_s9 + $0x20] sm:$0xff] }
 0x650   :  { %5876 = vmatpush.bf16.msrb.mxu3 %v7148_v9 }
 0x651   :  { %5442 = vrot.lane.b32.xlu1 %v5440_v31, %s7214_s17  ;;  %v5553_v51 = vrot.slane %v5552_v16, 7  ;;  %v7178_v16 = vld [vmem:[%s10096_s6] ss:$0 sm:$0xff]  ;;  %v7159_v31 = vld [vmem:[%s10099_s9 + $0x18] sm:$0xff] }
 0x653   :  { %v5389_v7 = vpop.permute.xlu2 %5388  ;;  %v5554_v11 = vsel %vm5114_vm11, %v5553_v51, %v5551_v54 }
 0x654   :  { %5391 = vst.msk [vmem:[#allocation4 + $0x2] sm:$0x1] %vm5150_vm13, %v5389_v7  ;;  %v5555_v18 = vpack.c.b16 %v5554_v11, %v5554_v11  ;;  %5877 = vmatpush.bf16.msrb.mxu3 %v7147_v49  ;;  %v7158_v11 = vld [vmem:[%s10099_s9 + $0x10] sm:$0xff] }
 0x656   :  { %v5556_v21 = vrot.slane %v5555_v18, 3 }
 0x658   :  { %v5559_v8 = vsel %vm5097_vm10, %v5555_v18, %v5556_v21  ;;  %5878 = vmatpush.bf16.msrb.mxu3 %v7146_v46 }
 0x659   :  { %5561 = vrot.lane.b32.xlu2 %v5559_v8, %s7214_s17 }
 0x65c   :  { %5879 = vmatpush.bf16.msrb.mxu3 %v7145_v59 }
 0x660   :  { %5880 = vmatpush.bf16.msrb.mxu3 %v7144_v29 }
 0x664   :  { %5881 = vmatpush.bf16.msrb.mxu3 %v7143_v20 }
 0x668   :  { %5882 = vmatpush.bf16.msrb.mxu3 %v7142_v33 }
 0x67b   :  { %v5416_v30 = vpop.permute.xlu0 %5415 }
 0x67c   :  { %5418 = vst.msk [vmem:[#allocation4 + $0x2] sm:$0x1] %vm5178_vm14, %v5416_v30  ;;  %v7157_v30 = vld [vmem:[%s10099_s9 + $0x8] sm:$0xff]  ;;  %s6052_s9 = sshll.u32 %s10101_s11, 4  ;;  %s6053_s9 = int_to_ptr.hbm [resolvable:$true] %s6052_s9 }
 0x6ab   :  { %v5508_v48 = vpop.permute.xlu0 %5507 }
 0x6ac   :  { %5510 = vst.msk [vmem:[#allocation4 + $0x3] sm:$0x1] %vm5150_vm13, %v5508_v48 }
 0x6b3   :  { %v5324_v60 = vpop.permute.xlu0 %5323  ;;  %v5562_v23 = vpop.permute.xlu2 %5561 }
 0x6b4   :  { %5326 = vst.msk [vmem:[#allocation4 + $0x1] sm:$0x1] %vm5206_vm15, %v5324_v60 }
 0x6bb   :  { %v5535_v12 = vpop.permute.xlu1 %5534 }
 0x6bc   :  { %5537 = vst.msk [vmem:[#allocation4 + $0x3] sm:$0x1] %vm5178_vm14, %v5535_v12 }
 0x6bd   :  { %5564 = vst.msk [vmem:[#allocation4 + $0x3] sm:$0x1] %vm5206_vm15, %v5562_v23 }
 0x6c3   :  { %v5443_v47 = vpop.permute.xlu1 %5442 }
 0x6c4   :  { %5445 = vst.msk [vmem:[#allocation4 + $0x2] sm:$0x1] %vm5206_vm15, %v5443_v47 }
 0x6cb   :  { %v5565_v43 = vld [vmem:[#allocation4] sm:$0xf] }
 0x6cc   :  { %5635 = vst [vmem:[#allocation1] ss:$9 sm:$0xff] %v5565_v43 }
 0x6d3   :  { %v5636_v4 = vld [vmem:[#allocation1] sm:$0xff]  ;;  %v5637_v14 = vld [vmem:[#allocation1 + $0x9] sm:$0xff]  ;;  %v5638_v26 = vld [vmem:[#allocation1 + $0x12] sm:$0xff] }
 0x6d4   :  { %5844 = vmatmul.bf16.vlgmr.msra.gmra.mxu2 %v5636_v4  ;;  %5857 = vmatmul.bf16.vlgmr.msra.gmra.mxu3 %v5637_v14  ;;  %v5639_v44 = vld [vmem:[#allocation1 + $0x1b] sm:$0xff] }
 0x6d5   :  { %5955 = vmatpush.bf16.msra.mxu2 %v5952_v62  ;;  %6032 = vmatpush.bf16.msra.mxu3 %v6029_v32 }
 0x6d9   :  { %5956 = vmatpush.bf16.msra.mxu2 %v7155_v40  ;;  %6033 = vmatpush.bf16.msra.mxu3 %v7161_v38 }
 0x6dd   :  { %5957 = vmatpush.bf16.msra.mxu2 %v7154_v15  ;;  %6034 = vmatpush.bf16.msra.mxu3 %v7160_v2 }
 0x6e1   :  { %5958 = vmatpush.bf16.msra.mxu2 %v7153_v35  ;;  %6035 = vmatpush.bf16.msra.mxu3 %v7159_v31 }
 0x6e4   :  { %5870 = vmatmul.bf16.vlgmr.msrb.gmra.mxu2 %v5638_v26  ;;  %5883 = vmatmul.bf16.vlgmr.msrb.gmra.mxu3 %v5639_v44 }
 0x6e5   :  { %5959 = vmatpush.bf16.msra.mxu2 %v7152_v34  ;;  %6036 = vmatpush.bf16.msra.mxu3 %v7158_v11 }
 0x6e9   :  { %5960 = vmatpush.bf16.msra.mxu2 %v7151_v28  ;;  %6037 = vmatpush.bf16.msra.mxu3 %v7157_v30 }
 0x6ed   :  { %5961 = vmatpush.bf16.msra.mxu2 %v7150_v39  ;;  %6038 = vmatpush.bf16.msra.mxu3 %v7156_v10 }
 0x757   :  { %v5845_v1 = vpop.f32.mrf.mxu2  ;;  %v5858_v41 = vpop.f32.mrf.mxu3 }
 0x758   :  { %v5846_v7 = vadd.f32 %v7178_v16, %v5845_v1 }
 0x75a   :  { %v5859_v18 = vadd.f32 %v5858_v41, %v5846_v7 }
 0x75f   :  { %v5847_v54 = vpop.f32.mrf.mxu2  ;;  %v5860_v51 = vpop.f32.mrf.mxu3 }
 0x767   :  { %v5871_v21 = vpop.f32.mrf.mxu2  ;;  %v5884_v8 = vpop.f32.mrf.mxu3 }
 0x768   :  { %v5872_v22 = vadd.f32 %v5871_v21, %v5859_v18 }
 0x76a   :  { %v5885_v25 = vadd.f32 %v5884_v8, %v5872_v22 }
 0x76c   :  { %v5888_v0 = vmax.f32 %v5885_v25, 0.0 }
 0x76e   :  { %v5889_v57 = vpack.c.bf16 %v5888_v0, %v5888_v0 }
 0x76f   :  { %v5873_v19 = vpop.f32.mrf.mxu2  ;;  %v5886_v50 = vpop.f32.mrf.mxu3 }
 0x770   :  { %6937 = vmatmul.msk.bf16.vlgmr.msra.gmra.mxu2 %vm5946_vm1, %v5889_v57 }
 0x7f3   :  { %v5963_v48 = vpop.f32.mrf.mxu2 }
 0x7f4   :  { %v5964_v53 = vadd.f32 %v7179_v61, %v5963_v48 }
 0x7f6   :  { %v5967_v36 = vmax.f32 %v5964_v53, 0.0 }
 0x7f8   :  { %v5968_v5 = vpack.c.bf16 %v5967_v36, %v5967_v36 }
 0x7fa   :  { %6962 = vmatmul.msk.bf16.vlgmr.msra.gmra.mxu3 %vm5946_vm1, %v5968_v5 }
 0x7fb   :  { %v5965_v24 = vpop.f32.mrf.mxu2 }
 0x87d   :  { %v6040_v9 = vpop.f32.mrf.mxu3 }
 0x87e   :  { %v6041_v60 = vadd.f32 %v7180_v42, %v6040_v9 }
 0x880   :  { %6044 = vst [vmem:[#allocation5] sm:$0x3] %v6041_v60 }
 0x881   :  { %6055 = dma.vmem_to_hbm [thread:$0]  %s6051_s13, 32, %s6053_s9, [#allocation6]  }
 0x885   :  { %v6042_v17 = vpop.f32.mrf.mxu3 }
 0x886   :  { %7208 = dma.done.wait [#allocation6], 32  }
 0x887   :  { %7209 = vsyncadd [#allocation6], 4294967264 }
 0x888   :  { %6060 = vsyncpa [#allocation6], 1 }

</bundles_post_ra>
